<compile_context>
chip_gen: v6e
topology: v6e:2x2x1
jax: 0.10.0
libtpu: 0.0.40
codegen_flags: <defaults>
</compile_context>

<pallas_src>
import functools

import jax
import jax.numpy as jnp
from jax import lax
from jax.experimental import pallas as pl
from jax.experimental.pallas import tpu as pltpu


_VMEM_LIMIT = 32 * 1024 * 1024   # fits the default scoped VMEM on v5e/v6e/v7x


# ----------------------------------------------------------------------------
# Kernel 1: fused KxK conv (+bias +SiLU), one batch element per grid step.
# x_ref : (Hq, s, Wq, s*Cin) bf16  -- padded input, space-to-depth reshaped so
#                                     every kernel tap is a static slice
# w_ref : (kh*kw, Cin, Cout) bf16
# b_ref : (1, Cout)          f32
# o_ref : (1, Ho, Wo, Cout)  f32
# ----------------------------------------------------------------------------
def _conv_taps_silu_kernel(x_ref, w_ref, b_ref, o_ref, *,
                           kh, kw, stride, Ho, Wo, Cin):
    cout = o_ref.shape[-1]
    bias = b_ref[...]                                    # (1, Cout) f32
    for oh in range(Ho):                                 # static, fully unrolled
        acc = jnp.zeros((Wo, cout), jnp.float32)
        for dh in range(kh):
            dhq, dhr = divmod(dh, stride)
            for dw in range(kw):
                dwq, dwr = divmod(dw, stride)
                # tap window for output row `oh`: (Wo, Cin) bf16, static slice
                lhs = x_ref[oh + dhq, dhr,
                            pl.ds(dwq, Wo),
                            pl.ds(dwr * Cin, Cin)]
                acc = acc + jnp.dot(lhs, w_ref[dh * kw + dw],
                                    preferred_element_type=jnp.float32)
        acc = acc + bias
        # SiLU: exp + approx reciprocal both go to the EUP slot (VPU stays free)
        o_ref[0, oh] = acc * pl.reciprocal(1.0 + jnp.exp(-acc), approx=True)


def _pallas_conv_kxk_silu(x_nhwc, w, b, stride, padding):
    """General KxK conv (+bias +SiLU) with im2col fused inside the kernel."""
    N, H, W, Cin = x_nhwc.shape
    kh, kw, _, Cout = w.shape
    s = stride
    Ho = (H + 2 * padding - kh) // s + 1
    Wo = (W + 2 * padding - kw) // s + 1

    # Pad spatially, rounding the padded dims up to a multiple of the stride so
    # the space-to-depth reshape below is exact (extra rows/cols are zeros that
    # no tap ever reads).
    Hp = pl.cdiv(H + 2 * padding, s) * s
    Wp = pl.cdiv(W + 2 * padding, s) * s
    xp = jnp.pad(x_nhwc, ((0, 0),
                          (padding, Hp - H - padding),
                          (padding, Wp - W - padding),
                          (0, 0)))
    Hq, Wq, sC = Hp // s, Wp // s, s * Cin

    # Space-to-depth: pure row-major reshape (no data blow-up), plus bf16
    # streaming of the activations / weights (f32 accumulation in-kernel).
    xr = xp.reshape(N * Hq, s, Wq, sC).astype(jnp.bfloat16)
    w_taps = w.reshape(kh * kw, Cin, Cout).astype(jnp.bfloat16)
    b2 = b.reshape(1, Cout).astype(jnp.float32)

    kernel = functools.partial(_conv_taps_silu_kernel, kh=kh, kw=kw,
                               stride=s, Ho=Ho, Wo=Wo, Cin=Cin)

    # NOTE: at these (toy) spatial sizes one whole padded image fits trivially
    # in VMEM; for real YOLO feature maps a row-tile grid axis with a haloed
    # manual DMA would be added here.
    return pl.pallas_call(
        kernel,
        out_shape=jax.ShapeDtypeStruct((N, Ho, Wo, Cout), jnp.float32),
        grid=(N,),
        in_specs=[
            pl.BlockSpec((Hq, s, Wq, sC), lambda n: (n, 0, 0, 0)),
            pl.BlockSpec((kh * kw, Cin, Cout), lambda n: (0, 0, 0)),
            pl.BlockSpec((1, Cout), lambda n: (0, 0)),
        ],
        out_specs=pl.BlockSpec((1, Ho, Wo, Cout), lambda n: (n, 0, 0, 0)),
        compiler_params=pltpu.CompilerParams(
            dimension_semantics=("parallel",),
            vmem_limit_bytes=_VMEM_LIMIT),
    )(xr, w_taps, b2)


# ----------------------------------------------------------------------------
# Kernel 2: 1x1-conv fast path -- plain tiled GEMM (+bias +SiLU).
# ----------------------------------------------------------------------------
def _gemm_bias_silu_kernel(x_ref, w_ref, b_ref, o_ref):
    acc = jnp.dot(x_ref[...], w_ref[...], preferred_element_type=jnp.float32)
    acc = acc + b_ref[...]
    o_ref[...] = acc * pl.reciprocal(1.0 + jnp.exp(-acc), approx=True)


def _pallas_conv_1x1_silu(x_nhwc, w, b, tm_max=512):
    """1x1 conv: GEMM directly on x.reshape(M, Cin); no padding/patch gather."""
    N, H, W, Cin = x_nhwc.shape
    Cout = w.shape[-1]
    M = N * H * W
    tm = min(tm_max, max(8, pl.cdiv(M, 8) * 8))      # big M-tile, multiple of 8
    Mp = pl.cdiv(M, tm) * tm

    x2 = x_nhwc.reshape(M, Cin).astype(jnp.bfloat16)
    if Mp != M:
        # padded rows produce garbage after bias+SiLU but are sliced off below
        x2 = jnp.pad(x2, ((0, Mp - M), (0, 0)))
    w2 = w.reshape(Cin, Cout).astype(jnp.bfloat16)
    b2 = b.reshape(1, Cout).astype(jnp.float32)

    out = pl.pallas_call(
        _gemm_bias_silu_kernel,
        out_shape=jax.ShapeDtypeStruct((Mp, Cout), jnp.float32),
        grid=(Mp // tm,),
        in_specs=[
            pl.BlockSpec((tm, Cin), lambda i: (i, 0)),
            pl.BlockSpec((Cin, Cout), lambda i: (0, 0)),
            pl.BlockSpec((1, Cout), lambda i: (0, 0)),
        ],
        out_specs=pl.BlockSpec((tm, Cout), lambda i: (i, 0)),
        compiler_params=pltpu.CompilerParams(
            dimension_semantics=("parallel",),
            vmem_limit_bytes=_VMEM_LIMIT),
    )(x2, w2, b2)
    return out[:M].reshape(N, H, W, Cout)


def pallas_conv2d_silu(x_nhwc, w, b, stride, padding):
    kh, kw = w.shape[0], w.shape[1]
    if kh == 1 and kw == 1 and stride == 1 and padding == 0:
        return _pallas_conv_1x1_silu(x_nhwc, w, b)
    return _pallas_conv_kxk_silu(x_nhwc, w, b, stride, padding)


# ----------------------------------------------------------------------------
# Synthetic YOLO architecture (the PyTorch module is config-driven; a concrete
# small arch is defined here so the forward routing semantics are exercised:
# negative sources, tag sources, explicit int sources, Concat, UpSample, and
# `output=True` collection).
# ----------------------------------------------------------------------------
def _arch():
    return [
        dict(type="Conv", args=dict(out_channels=8,  kernel=3, stride=2), source=-1),
        dict(type="Conv", args=dict(out_channels=16, kernel=3, stride=2), source=-1, tags="B2"),
        dict(type="Conv", args=dict(out_channels=32, kernel=3, stride=2), source=-1),
        dict(type="Conv", args=dict(out_channels=32, kernel=3, stride=1), source=-1),
        dict(type="UpSample", args=dict(scale=2), source=-1),
        dict(type="Concat", source=[-1, "B2"]),
        dict(type="Conv", args=dict(out_channels=16, kernel=1, stride=1), source=-1, output=True),
        dict(type="Conv", args=dict(out_channels=32, kernel=1, stride=1), source=4,  output=True),
    ]


def build_model(key, in_channels=3):
    """Mirrors YOLO.build_model: resolves sources/tags, tracks output_dim,
    and deterministically initializes Conv parameters."""
    layers, params = [], {}
    output_dim = [in_channels]           # output_dim[0] = input channels
    layer_index = {}                     # tag -> layer index (1-based)

    def resolve_source(src, layer_idx):
        if isinstance(src, (list, tuple)):
            return [resolve_source(s, layer_idx) for s in src]
        if isinstance(src, str):
            src = layer_index[src]
        if src < 0:
            src += layer_idx
        return src

    for layer_idx, spec in enumerate(_arch(), start=1):
        ltype = spec["type"]
        src = resolve_source(spec.get("source", -1), layer_idx)
        entry = dict(type=ltype, source_idx=src, output=spec.get("output", False))

        if ltype == "Conv":
            cin = output_dim[src]
            cout = spec["args"]["out_channels"]
            ksz = spec["args"]["kernel"]
            stride = spec["args"]["stride"]
            pad = ksz // 2
            k_w, k_b = jax.random.split(jax.random.fold_in(key, layer_idx))
            fan_in = ksz * ksz * cin
            w = jax.random.normal(k_w, (ksz, ksz, cin, cout), jnp.float32) / jnp.sqrt(fan_in)
            b = 0.01 * jax.random.normal(k_b, (cout,), jnp.float32)
            params[layer_idx] = dict(w=w, b=b)
            entry.update(stride=stride, padding=pad)
            out_c = cout
        elif ltype == "UpSample":
            entry.update(scale=spec["args"]["scale"])
            out_c = output_dim[src]
        elif ltype == "Concat":
            out_c = sum(output_dim[i] for i in src)
        else:
            raise ValueError(f"Unsupported layer type: {ltype}")

        if spec.get("tags"):
            layer_index[spec["tags"]] = layer_idx
        output_dim.append(out_c)
        layers.append(entry)
    return layers, params


def yolo_forward(layers, params, x_nchw, conv_fn):
    """Mirrors YOLO.forward: y = {0: x}; route by layer.source; collect outputs."""
    x = jnp.transpose(x_nchw, (0, 2, 3, 1))  # NCHW -> NHWC (internal layout)
    y = {0: x}
    outputs = []
    for index, layer in enumerate(layers, start=1):
        src = layer["source_idx"]
        inp = [y[i] for i in src] if isinstance(src, list) else y[src]
        t = layer["type"]
        if t == "Conv":
            p = params[index]
            x = conv_fn(inp, p["w"], p["b"], layer["stride"], layer["padding"])
        elif t == "UpSample":
            # TODO(synk): fuse UpSample+Concat into the consuming 1x1 conv
            # (split-weight two-GEMM sum with repeat-index mapping) to avoid
            # materializing the upsampled/concatenated tensors in HBM.
            s = layer["scale"]
            x = jnp.repeat(jnp.repeat(inp, s, axis=1), s, axis=2)
        elif t == "Concat":
            x = jnp.concatenate(inp, axis=-1)
        y[index] = x                      # every layer saved (superset of .save)
        if layer["output"]:
            outputs.append(jnp.transpose(x, (0, 3, 1, 2)))  # back to NCHW
    return outputs


# Pure-JAX reference conv using the same numerical recipe (bf16 operands,
# f32 accumulation) so the Pallas path can be checked tightly.
def _ref_conv2d_silu(x_nhwc, w, b, stride, padding):
    out = lax.conv_general_dilated(
        x_nhwc.astype(jnp.bfloat16), w.astype(jnp.bfloat16),
        window_strides=(stride, stride),
        padding=((padding, padding), (padding, padding)),
        dimension_numbers=("NHWC", "HWIO", "NHWC"),
        preferred_element_type=jnp.float32)
    out = out + b.astype(jnp.float32)
    return out * jax.nn.sigmoid(out)


if __name__ == "__main__":
    key = jax.random.PRNGKey(0)
    k_param, k_x = jax.random.split(key)

    layers, params = build_model(k_param, in_channels=3)

    # small deterministic input, PyTorch-style NCHW
    x = jax.random.normal(k_x, (2, 3, 16, 16), jnp.float32)

    # jit so the pad / space-to-depth reshape / bf16 cast glue fuses into the
    # producers of each pallas_call's inputs.
    fwd = jax.jit(lambda p, xx: yolo_forward(layers, p, xx, pallas_conv2d_silu))
    outs = jax.block_until_ready(fwd(params, x))

    ref_fwd = jax.jit(lambda p, xx: yolo_forward(layers, p, xx, _ref_conv2d_silu))
    refs = jax.block_until_ready(ref_fwd(params, x))

    assert len(outs) == len(refs) == 2
    for o, r in zip(outs, refs):
        assert o.shape == r.shape, (o.shape, r.shape)
        # tolerance covers the approx-reciprocal SiLU vs exact sigmoid over the
        # 3-4 layer chain (both paths use bf16 operands + f32 accumulation).
        assert jnp.max(jnp.abs(o - r)) < 3e-2, float(jnp.max(jnp.abs(o - r)))

    print("KERNEL_OK")
</pallas_src>

<mosaic_0001>
module attributes {stable_mosaic.version = 11 : i64} {
  func.func @_conv_taps_silu_kernel(%arg0: i32, %arg1: memref<5x2x5x16xbf16, #tpu.memory_space<vmem>>, %arg2: memref<9x8x16xbf16, #tpu.memory_space<vmem>>, %arg3: memref<1x16xf32, #tpu.memory_space<vmem>>, %arg4: memref<1x4x4x16xf32, #tpu.memory_space<vmem>>) attributes {dimension_semantics = [#tpu.dimension_semantics<parallel>], iteration_bounds = array<i64: 2>, scalar_prefetch = 0 : i64, scratch_operands = 0 : i64, tpu.core_type = #tpu.core_type<tc>, window_params = [{transform_indices = @transform_0, window_bounds = array<i64: 5, 2, 5, 16>}, {pipeline_mode = #tpu.pipeline_mode<synchronous>, transform_indices = @transform_1, window_bounds = array<i64: 9, 8, 16>}, {pipeline_mode = #tpu.pipeline_mode<synchronous>, transform_indices = @transform_2, window_bounds = array<i64: 1, 16>}, {transform_indices = @transform_3, window_bounds = array<i64: 1, 4, 4, 16>}]} {
    %c0 = arith.constant 0 : index
    %c0_0 = arith.constant 0 : index
    %0 = vector.load %arg3[%c0, %c0_0] : memref<1x16xf32, #tpu.memory_space<vmem>>, vector<1x16xf32>
    %cst = arith.constant 0.000000e+00 : f32
    %1 = vector.broadcast %cst : f32 to vector<4x16xf32>
    %c0_1 = arith.constant 0 : index
    %c0_2 = arith.constant 0 : index
    %c0_3 = arith.constant 0 : index
    %c0_4 = arith.constant 0 : index
    %2 = vector.load %arg1[%c0_1, %c0_2, %c0_3, %c0_4] : memref<5x2x5x16xbf16, #tpu.memory_space<vmem>>, vector<1x1x4x8xbf16>
    %3 = vector.shape_cast %2 : vector<1x1x4x8xbf16> to vector<4x8xbf16>
    %c0_5 = arith.constant 0 : index
    %c0_6 = arith.constant 0 : index
    %c0_7 = arith.constant 0 : index
    %4 = vector.load %arg2[%c0_5, %c0_6, %c0_7] : memref<9x8x16xbf16, #tpu.memory_space<vmem>>, vector<1x8x16xbf16>
    %5 = vector.shape_cast %4 : vector<1x8x16xbf16> to vector<8x16xbf16>
    %cst_8 = arith.constant dense<0.000000e+00> : vector<4x16xf32>
    %6 = tpu.matmul %3, %5, %cst_8 {dimension_numbers = #tpu.dot_dimension_numbers<[1], [0], [0], [1], [0, 0, 1, 1], [], []>} : vector<4x8xbf16>, vector<8x16xbf16>, vector<4x16xf32> -> vector<4x16xf32>
    %7 = arith.addf %1, %6 : vector<4x16xf32>
    %c0_9 = arith.constant 0 : index
    %c0_10 = arith.constant 0 : index
    %c0_11 = arith.constant 0 : index
    %c8 = arith.constant 8 : index
    %8 = vector.load %arg1[%c0_9, %c0_10, %c0_11, %c8] : memref<5x2x5x16xbf16, #tpu.memory_space<vmem>>, vector<1x1x4x8xbf16>
    %9 = vector.shape_cast %8 : vector<1x1x4x8xbf16> to vector<4x8xbf16>
    %c1 = arith.constant 1 : index
    %c0_12 = arith.constant 0 : index
    %c0_13 = arith.constant 0 : index
    %10 = vector.load %arg2[%c1, %c0_12, %c0_13] : memref<9x8x16xbf16, #tpu.memory_space<vmem>>, vector<1x8x16xbf16>
    %11 = vector.shape_cast %10 : vector<1x8x16xbf16> to vector<8x16xbf16>
    %cst_14 = arith.constant dense<0.000000e+00> : vector<4x16xf32>
    %12 = tpu.matmul %9, %11, %cst_14 {dimension_numbers = #tpu.dot_dimension_numbers<[1], [0], [0], [1], [0, 0, 1, 1], [], []>} : vector<4x8xbf16>, vector<8x16xbf16>, vector<4x16xf32> -> vector<4x16xf32>
    %13 = arith.addf %7, %12 : vector<4x16xf32>
    %c0_15 = arith.constant 0 : index
    %c0_16 = arith.constant 0 : index
    %c1_17 = arith.constant 1 : index
    %c0_18 = arith.constant 0 : index
    %14 = vector.load %arg1[%c0_15, %c0_16, %c1_17, %c0_18] : memref<5x2x5x16xbf16, #tpu.memory_space<vmem>>, vector<1x1x4x8xbf16>
    %15 = vector.shape_cast %14 : vector<1x1x4x8xbf16> to vector<4x8xbf16>
    %c2 = arith.constant 2 : index
    %c0_19 = arith.constant 0 : index
    %c0_20 = arith.constant 0 : index
    %16 = vector.load %arg2[%c2, %c0_19, %c0_20] : memref<9x8x16xbf16, #tpu.memory_space<vmem>>, vector<1x8x16xbf16>
    %17 = vector.shape_cast %16 : vector<1x8x16xbf16> to vector<8x16xbf16>
    %cst_21 = arith.constant dense<0.000000e+00> : vector<4x16xf32>
    %18 = tpu.matmul %15, %17, %cst_21 {dimension_numbers = #tpu.dot_dimension_numbers<[1], [0], [0], [1], [0, 0, 1, 1], [], []>} : vector<4x8xbf16>, vector<8x16xbf16>, vector<4x16xf32> -> vector<4x16xf32>
    %19 = arith.addf %13, %18 : vector<4x16xf32>
    %c0_22 = arith.constant 0 : index
    %c1_23 = arith.constant 1 : index
    %c0_24 = arith.constant 0 : index
    %c0_25 = arith.constant 0 : index
    %20 = vector.load %arg1[%c0_22, %c1_23, %c0_24, %c0_25] : memref<5x2x5x16xbf16, #tpu.memory_space<vmem>>, vector<1x1x4x8xbf16>
    %21 = vector.shape_cast %20 : vector<1x1x4x8xbf16> to vector<4x8xbf16>
    %c3 = arith.constant 3 : index
    %c0_26 = arith.constant 0 : index
    %c0_27 = arith.constant 0 : index
    %22 = vector.load %arg2[%c3, %c0_26, %c0_27] : memref<9x8x16xbf16, #tpu.memory_space<vmem>>, vector<1x8x16xbf16>
    %23 = vector.shape_cast %22 : vector<1x8x16xbf16> to vector<8x16xbf16>
    %cst_28 = arith.constant dense<0.000000e+00> : vector<4x16xf32>
    %24 = tpu.matmul %21, %23, %cst_28 {dimension_numbers = #tpu.dot_dimension_numbers<[1], [0], [0], [1], [0, 0, 1, 1], [], []>} : vector<4x8xbf16>, vector<8x16xbf16>, vector<4x16xf32> -> vector<4x16xf32>
    %25 = arith.addf %19, %24 : vector<4x16xf32>
    %c0_29 = arith.constant 0 : index
    %c1_30 = arith.constant 1 : index
    %c0_31 = arith.constant 0 : index
    %c8_32 = arith.constant 8 : index
    %26 = vector.load %arg1[%c0_29, %c1_30, %c0_31, %c8_32] : memref<5x2x5x16xbf16, #tpu.memory_space<vmem>>, vector<1x1x4x8xbf16>
    %27 = vector.shape_cast %26 : vector<1x1x4x8xbf16> to vector<4x8xbf16>
    %c4 = arith.constant 4 : index
    %c0_33 = arith.constant 0 : index
    %c0_34 = arith.constant 0 : index
    %28 = vector.load %arg2[%c4, %c0_33, %c0_34] : memref<9x8x16xbf16, #tpu.memory_space<vmem>>, vector<1x8x16xbf16>
    %29 = vector.shape_cast %28 : vector<1x8x16xbf16> to vector<8x16xbf16>
    %cst_35 = arith.constant dense<0.000000e+00> : vector<4x16xf32>
    %30 = tpu.matmul %27, %29, %cst_35 {dimension_numbers = #tpu.dot_dimension_numbers<[1], [0], [0], [1], [0, 0, 1, 1], [], []>} : vector<4x8xbf16>, vector<8x16xbf16>, vector<4x16xf32> -> vector<4x16xf32>
    %31 = arith.addf %25, %30 : vector<4x16xf32>
    %c0_36 = arith.constant 0 : index
    %c1_37 = arith.constant 1 : index
    %c1_38 = arith.constant 1 : index
    %c0_39 = arith.constant 0 : index
    %32 = vector.load %arg1[%c0_36, %c1_37, %c1_38, %c0_39] : memref<5x2x5x16xbf16, #tpu.memory_space<vmem>>, vector<1x1x4x8xbf16>
    %33 = vector.shape_cast %32 : vector<1x1x4x8xbf16> to vector<4x8xbf16>
    %c5 = arith.constant 5 : index
    %c0_40 = arith.constant 0 : index
    %c0_41 = arith.constant 0 : index
    %34 = vector.load %arg2[%c5, %c0_40, %c0_41] : memref<9x8x16xbf16, #tpu.memory_space<vmem>>, vector<1x8x16xbf16>
    %35 = vector.shape_cast %34 : vector<1x8x16xbf16> to vector<8x16xbf16>
    %cst_42 = arith.constant dense<0.000000e+00> : vector<4x16xf32>
    %36 = tpu.matmul %33, %35, %cst_42 {dimension_numbers = #tpu.dot_dimension_numbers<[1], [0], [0], [1], [0, 0, 1, 1], [], []>} : vector<4x8xbf16>, vector<8x16xbf16>, vector<4x16xf32> -> vector<4x16xf32>
    %37 = arith.addf %31, %36 : vector<4x16xf32>
    %c1_43 = arith.constant 1 : index
    %c0_44 = arith.constant 0 : index
    %c0_45 = arith.constant 0 : index
    %c0_46 = arith.constant 0 : index
    %38 = vector.load %arg1[%c1_43, %c0_44, %c0_45, %c0_46] : memref<5x2x5x16xbf16, #tpu.memory_space<vmem>>, vector<1x1x4x8xbf16>
    %39 = vector.shape_cast %38 : vector<1x1x4x8xbf16> to vector<4x8xbf16>
    %c6 = arith.constant 6 : index
    %c0_47 = arith.constant 0 : index
    %c0_48 = arith.constant 0 : index
    %40 = vector.load %arg2[%c6, %c0_47, %c0_48] : memref<9x8x16xbf16, #tpu.memory_space<vmem>>, vector<1x8x16xbf16>
    %41 = vector.shape_cast %40 : vector<1x8x16xbf16> to vector<8x16xbf16>
    %cst_49 = arith.constant dense<0.000000e+00> : vector<4x16xf32>
    %42 = tpu.matmul %39, %41, %cst_49 {dimension_numbers = #tpu.dot_dimension_numbers<[1], [0], [0], [1], [0, 0, 1, 1], [], []>} : vector<4x8xbf16>, vector<8x16xbf16>, vector<4x16xf32> -> vector<4x16xf32>
    %43 = arith.addf %37, %42 : vector<4x16xf32>
    %c1_50 = arith.constant 1 : index
    %c0_51 = arith.constant 0 : index
    %c0_52 = arith.constant 0 : index
    %c8_53 = arith.constant 8 : index
    %44 = vector.load %arg1[%c1_50, %c0_51, %c0_52, %c8_53] : memref<5x2x5x16xbf16, #tpu.memory_space<vmem>>, vector<1x1x4x8xbf16>
    %45 = vector.shape_cast %44 : vector<1x1x4x8xbf16> to vector<4x8xbf16>
    %c7 = arith.constant 7 : index
    %c0_54 = arith.constant 0 : index
    %c0_55 = arith.constant 0 : index
    %46 = vector.load %arg2[%c7, %c0_54, %c0_55] : memref<9x8x16xbf16, #tpu.memory_space<vmem>>, vector<1x8x16xbf16>
    %47 = vector.shape_cast %46 : vector<1x8x16xbf16> to vector<8x16xbf16>
    %cst_56 = arith.constant dense<0.000000e+00> : vector<4x16xf32>
    %48 = tpu.matmul %45, %47, %cst_56 {dimension_numbers = #tpu.dot_dimension_numbers<[1], [0], [0], [1], [0, 0, 1, 1], [], []>} : vector<4x8xbf16>, vector<8x16xbf16>, vector<4x16xf32> -> vector<4x16xf32>
    %49 = arith.addf %43, %48 : vector<4x16xf32>
    %c1_57 = arith.constant 1 : index
    %c0_58 = arith.constant 0 : index
    %c1_59 = arith.constant 1 : index
    %c0_60 = arith.constant 0 : index
    %50 = vector.load %arg1[%c1_57, %c0_58, %c1_59, %c0_60] : memref<5x2x5x16xbf16, #tpu.memory_space<vmem>>, vector<1x1x4x8xbf16>
    %51 = vector.shape_cast %50 : vector<1x1x4x8xbf16> to vector<4x8xbf16>
    %c8_61 = arith.constant 8 : index
    %c0_62 = arith.constant 0 : index
    %c0_63 = arith.constant 0 : index
    %52 = vector.load %arg2[%c8_61, %c0_62, %c0_63] : memref<9x8x16xbf16, #tpu.memory_space<vmem>>, vector<1x8x16xbf16>
    %53 = vector.shape_cast %52 : vector<1x8x16xbf16> to vector<8x16xbf16>
    %cst_64 = arith.constant dense<0.000000e+00> : vector<4x16xf32>
    %54 = tpu.matmul %51, %53, %cst_64 {dimension_numbers = #tpu.dot_dimension_numbers<[1], [0], [0], [1], [0, 0, 1, 1], [], []>} : vector<4x8xbf16>, vector<8x16xbf16>, vector<4x16xf32> -> vector<4x16xf32>
    %55 = arith.addf %49, %54 : vector<4x16xf32>
    %56 = vector.broadcast %0 : vector<1x16xf32> to vector<4x16xf32>
    %57 = arith.addf %55, %56 : vector<4x16xf32>
    %cst_65 = arith.constant 0.000000e+00 : f32
    %58 = vector.broadcast %cst_65 : f32 to vector<4x16xf32>
    %59 = arith.subf %58, %57 : vector<4x16xf32>
    %60 = math.exp %59 : vector<4x16xf32>
    %cst_66 = arith.constant 1.000000e+00 : f32
    %61 = vector.broadcast %cst_66 : f32 to vector<4x16xf32>
    %62 = arith.addf %61, %60 : vector<4x16xf32>
    %63 = tpu.reciprocal %62 {approx = true} : vector<4x16xf32> -> vector<4x16xf32>
    %64 = arith.mulf %57, %63 : vector<4x16xf32>
    %c0_67 = arith.constant 0 : index
    %c0_68 = arith.constant 0 : index
    %c0_69 = arith.constant 0 : index
    %c0_70 = arith.constant 0 : index
    %65 = vector.load %arg4[%c0_67, %c0_68, %c0_69, %c0_70] : memref<1x4x4x16xf32, #tpu.memory_space<vmem>>, vector<1x1x4x16xf32>
    %66 = vector.shape_cast %65 : vector<1x1x4x16xf32> to vector<4x16xf32>
    %67 = vector.shape_cast %64 : vector<4x16xf32> to vector<1x1x4x16xf32>
    tpu.vector_store %arg4[%c0_67, %c0_68, %c0_69, %c0_70], %67 {strides = array<i32>} : memref<1x4x4x16xf32, #tpu.memory_space<vmem>>, vector<1x1x4x16xf32>,
    %cst_71 = arith.constant 0.000000e+00 : f32
    %68 = vector.broadcast %cst_71 : f32 to vector<4x16xf32>
    %c1_72 = arith.constant 1 : index
    %c0_73 = arith.constant 0 : index
    %c0_74 = arith.constant 0 : index
    %c0_75 = arith.constant 0 : index
    %69 = vector.load %arg1[%c1_72, %c0_73, %c0_74, %c0_75] : memref<5x2x5x16xbf16, #tpu.memory_space<vmem>>, vector<1x1x4x8xbf16>
    %70 = vector.shape_cast %69 : vector<1x1x4x8xbf16> to vector<4x8xbf16>
    %c0_76 = arith.constant 0 : index
    %c0_77 = arith.constant 0 : index
    %c0_78 = arith.constant 0 : index
    %71 = vector.load %arg2[%c0_76, %c0_77, %c0_78] : memref<9x8x16xbf16, #tpu.memory_space<vmem>>, vector<1x8x16xbf16>
    %72 = vector.shape_cast %71 : vector<1x8x16xbf16> to vector<8x16xbf16>
    %cst_79 = arith.constant dense<0.000000e+00> : vector<4x16xf32>
    %73 = tpu.matmul %70, %72, %cst_79 {dimension_numbers = #tpu.dot_dimension_numbers<[1], [0], [0], [1], [0, 0, 1, 1], [], []>} : vector<4x8xbf16>, vector<8x16xbf16>, vector<4x16xf32> -> vector<4x16xf32>
    %74 = arith.addf %68, %73 : vector<4x16xf32>
    %c1_80 = arith.constant 1 : index
    %c0_81 = arith.constant 0 : index
    %c0_82 = arith.constant 0 : index
    %c8_83 = arith.constant 8 : index
    %75 = vector.load %arg1[%c1_80, %c0_81, %c0_82, %c8_83] : memref<5x2x5x16xbf16, #tpu.memory_space<vmem>>, vector<1x1x4x8xbf16>
    %76 = vector.shape_cast %75 : vector<1x1x4x8xbf16> to vector<4x8xbf16>
    %c1_84 = arith.constant 1 : index
    %c0_85 = arith.constant 0 : index
    %c0_86 = arith.constant 0 : index
    %77 = vector.load %arg2[%c1_84, %c0_85, %c0_86] : memref<9x8x16xbf16, #tpu.memory_space<vmem>>, vector<1x8x16xbf16>
    %78 = vector.shape_cast %77 : vector<1x8x16xbf16> to vector<8x16xbf16>
    %cst_87 = arith.constant dense<0.000000e+00> : vector<4x16xf32>
    %79 = tpu.matmul %76, %78, %cst_87 {dimension_numbers = #tpu.dot_dimension_numbers<[1], [0], [0], [1], [0, 0, 1, 1], [], []>} : vector<4x8xbf16>, vector<8x16xbf16>, vector<4x16xf32> -> vector<4x16xf32>
    %80 = arith.addf %74, %79 : vector<4x16xf32>
    %c1_88 = arith.constant 1 : index
    %c0_89 = arith.constant 0 : index
    %c1_90 = arith.constant 1 : index
    %c0_91 = arith.constant 0 : index
    %81 = vector.load %arg1[%c1_88, %c0_89, %c1_90, %c0_91] : memref<5x2x5x16xbf16, #tpu.memory_space<vmem>>, vector<1x1x4x8xbf16>
    %82 = vector.shape_cast %81 : vector<1x1x4x8xbf16> to vector<4x8xbf16>
    %c2_92 = arith.constant 2 : index
    %c0_93 = arith.constant 0 : index
    %c0_94 = arith.constant 0 : index
    %83 = vector.load %arg2[%c2_92, %c0_93, %c0_94] : memref<9x8x16xbf16, #tpu.memory_space<vmem>>, vector<1x8x16xbf16>
    %84 = vector.shape_cast %83 : vector<1x8x16xbf16> to vector<8x16xbf16>
    %cst_95 = arith.constant dense<0.000000e+00> : vector<4x16xf32>
    %85 = tpu.matmul %82, %84, %cst_95 {dimension_numbers = #tpu.dot_dimension_numbers<[1], [0], [0], [1], [0, 0, 1, 1], [], []>} : vector<4x8xbf16>, vector<8x16xbf16>, vector<4x16xf32> -> vector<4x16xf32>
    %86 = arith.addf %80, %85 : vector<4x16xf32>
    %c1_96 = arith.constant 1 : index
    %c1_97 = arith.constant 1 : index
    %c0_98 = arith.constant 0 : index
    %c0_99 = arith.constant 0 : index
    %87 = vector.load %arg1[%c1_96, %c1_97, %c0_98, %c0_99] : memref<5x2x5x16xbf16, #tpu.memory_space<vmem>>, vector<1x1x4x8xbf16>
    %88 = vector.shape_cast %87 : vector<1x1x4x8xbf16> to vector<4x8xbf16>
    %c3_100 = arith.constant 3 : index
    %c0_101 = arith.constant 0 : index
    %c0_102 = arith.constant 0 : index
    %89 = vector.load %arg2[%c3_100, %c0_101, %c0_102] : memref<9x8x16xbf16, #tpu.memory_space<vmem>>, vector<1x8x16xbf16>
    %90 = vector.shape_cast %89 : vector<1x8x16xbf16> to vector<8x16xbf16>
    %cst_103 = arith.constant dense<0.000000e+00> : vector<4x16xf32>
    %91 = tpu.matmul %88, %90, %cst_103 {dimension_numbers = #tpu.dot_dimension_numbers<[1], [0], [0], [1], [0, 0, 1, 1], [], []>} : vector<4x8xbf16>, vector<8x16xbf16>, vector<4x16xf32> -> vector<4x16xf32>
    %92 = arith.addf %86, %91 : vector<4x16xf32>
    %c1_104 = arith.constant 1 : index
    %c1_105 = arith.constant 1 : index
    %c0_106 = arith.constant 0 : index
    %c8_107 = arith.constant 8 : index
    %93 = vector.load %arg1[%c1_104, %c1_105, %c0_106, %c8_107] : memref<5x2x5x16xbf16, #tpu.memory_space<vmem>>, vector<1x1x4x8xbf16>
    %94 = vector.shape_cast %93 : vector<1x1x4x8xbf16> to vector<4x8xbf16>
    %c4_108 = arith.constant 4 : index
    %c0_109 = arith.constant 0 : index
    %c0_110 = arith.constant 0 : index
    %95 = vector.load %arg2[%c4_108, %c0_109, %c0_110] : memref<9x8x16xbf16, #tpu.memory_space<vmem>>, vector<1x8x16xbf16>
    %96 = vector.shape_cast %95 : vector<1x8x16xbf16> to vector<8x16xbf16>
    %cst_111 = arith.constant dense<0.000000e+00> : vector<4x16xf32>
    %97 = tpu.matmul %94, %96, %cst_111 {dimension_numbers = #tpu.dot_dimension_numbers<[1], [0], [0], [1], [0, 0, 1, 1], [], []>} : vector<4x8xbf16>, vector<8x16xbf16>, vector<4x16xf32> -> vector<4x16xf32>
    %98 = arith.addf %92, %97 : vector<4x16xf32>
    %c1_112 = arith.constant 1 : index
    %c1_113 = arith.constant 1 : index
    %c1_114 = arith.constant 1 : index
    %c0_115 = arith.constant 0 : index
    %99 = vector.load %arg1[%c1_112, %c1_113, %c1_114, %c0_115] : memref<5x2x5x16xbf16, #tpu.memory_space<vmem>>, vector<1x1x4x8xbf16>
    %100 = vector.shape_cast %99 : vector<1x1x4x8xbf16> to vector<4x8xbf16>
    %c5_116 = arith.constant 5 : index
    %c0_117 = arith.constant 0 : index
    %c0_118 = arith.constant 0 : index
    %101 = vector.load %arg2[%c5_116, %c0_117, %c0_118] : memref<9x8x16xbf16, #tpu.memory_space<vmem>>, vector<1x8x16xbf16>
    %102 = vector.shape_cast %101 : vector<1x8x16xbf16> to vector<8x16xbf16>
    %cst_119 = arith.constant dense<0.000000e+00> : vector<4x16xf32>
    %103 = tpu.matmul %100, %102, %cst_119 {dimension_numbers = #tpu.dot_dimension_numbers<[1], [0], [0], [1], [0, 0, 1, 1], [], []>} : vector<4x8xbf16>, vector<8x16xbf16>, vector<4x16xf32> -> vector<4x16xf32>
    %104 = arith.addf %98, %103 : vector<4x16xf32>
    %c2_120 = arith.constant 2 : index
    %c0_121 = arith.constant 0 : index
    %c0_122 = arith.constant 0 : index
    %c0_123 = arith.constant 0 : index
    %105 = vector.load %arg1[%c2_120, %c0_121, %c0_122, %c0_123] : memref<5x2x5x16xbf16, #tpu.memory_space<vmem>>, vector<1x1x4x8xbf16>
    %106 = vector.shape_cast %105 : vector<1x1x4x8xbf16> to vector<4x8xbf16>
    %c6_124 = arith.constant 6 : index
    %c0_125 = arith.constant 0 : index
    %c0_126 = arith.constant 0 : index
    %107 = vector.load %arg2[%c6_124, %c0_125, %c0_126] : memref<9x8x16xbf16, #tpu.memory_space<vmem>>, vector<1x8x16xbf16>
    %108 = vector.shape_cast %107 : vector<1x8x16xbf16> to vector<8x16xbf16>
    %cst_127 = arith.constant dense<0.000000e+00> : vector<4x16xf32>
    %109 = tpu.matmul %106, %108, %cst_127 {dimension_numbers = #tpu.dot_dimension_numbers<[1], [0], [0], [1], [0, 0, 1, 1], [], []>} : vector<4x8xbf16>, vector<8x16xbf16>, vector<4x16xf32> -> vector<4x16xf32>
    %110 = arith.addf %104, %109 : vector<4x16xf32>
    %c2_128 = arith.constant 2 : index
    %c0_129 = arith.constant 0 : index
    %c0_130 = arith.constant 0 : index
    %c8_131 = arith.constant 8 : index
    %111 = vector.load %arg1[%c2_128, %c0_129, %c0_130, %c8_131] : memref<5x2x5x16xbf16, #tpu.memory_space<vmem>>, vector<1x1x4x8xbf16>
    %112 = vector.shape_cast %111 : vector<1x1x4x8xbf16> to vector<4x8xbf16>
    %c7_132 = arith.constant 7 : index
    %c0_133 = arith.constant 0 : index
    %c0_134 = arith.constant 0 : index
    %113 = vector.load %arg2[%c7_132, %c0_133, %c0_134] : memref<9x8x16xbf16, #tpu.memory_space<vmem>>, vector<1x8x16xbf16>
    %114 = vector.shape_cast %113 : vector<1x8x16xbf16> to vector<8x16xbf16>
    %cst_135 = arith.constant dense<0.000000e+00> : vector<4x16xf32>
    %115 = tpu.matmul %112, %114, %cst_135 {dimension_numbers = #tpu.dot_dimension_numbers<[1], [0], [0], [1], [0, 0, 1, 1], [], []>} : vector<4x8xbf16>, vector<8x16xbf16>, vector<4x16xf32> -> vector<4x16xf32>
    %116 = arith.addf %110, %115 : vector<4x16xf32>
    %c2_136 = arith.constant 2 : index
    %c0_137 = arith.constant 0 : index
    %c1_138 = arith.constant 1 : index
    %c0_139 = arith.constant 0 : index
    %117 = vector.load %arg1[%c2_136, %c0_137, %c1_138, %c0_139] : memref<5x2x5x16xbf16, #tpu.memory_space<vmem>>, vector<1x1x4x8xbf16>
    %118 = vector.shape_cast %117 : vector<1x1x4x8xbf16> to vector<4x8xbf16>
    %c8_140 = arith.constant 8 : index
    %c0_141 = arith.constant 0 : index
    %c0_142 = arith.constant 0 : index
    %119 = vector.load %arg2[%c8_140, %c0_141, %c0_142] : memref<9x8x16xbf16, #tpu.memory_space<vmem>>, vector<1x8x16xbf16>
    %120 = vector.shape_cast %119 : vector<1x8x16xbf16> to vector<8x16xbf16>
    %cst_143 = arith.constant dense<0.000000e+00> : vector<4x16xf32>
    %121 = tpu.matmul %118, %120, %cst_143 {dimension_numbers = #tpu.dot_dimension_numbers<[1], [0], [0], [1], [0, 0, 1, 1], [], []>} : vector<4x8xbf16>, vector<8x16xbf16>, vector<4x16xf32> -> vector<4x16xf32>
    %122 = arith.addf %116, %121 : vector<4x16xf32>
    %123 = vector.broadcast %0 : vector<1x16xf32> to vector<4x16xf32>
    %124 = arith.addf %122, %123 : vector<4x16xf32>
    %cst_144 = arith.constant 0.000000e+00 : f32
    %125 = vector.broadcast %cst_144 : f32 to vector<4x16xf32>
    %126 = arith.subf %125, %124 : vector<4x16xf32>
    %127 = math.exp %126 : vector<4x16xf32>
    %cst_145 = arith.constant 1.000000e+00 : f32
    %128 = vector.broadcast %cst_145 : f32 to vector<4x16xf32>
    %129 = arith.addf %128, %127 : vector<4x16xf32>
    %130 = tpu.reciprocal %129 {approx = true} : vector<4x16xf32> -> vector<4x16xf32>
    %131 = arith.mulf %124, %130 : vector<4x16xf32>
    %c0_146 = arith.constant 0 : index
    %c1_147 = arith.constant 1 : index
    %c0_148 = arith.constant 0 : index
    %c0_149 = arith.constant 0 : index
    %132 = vector.load %arg4[%c0_146, %c1_147, %c0_148, %c0_149] : memref<1x4x4x16xf32, #tpu.memory_space<vmem>>, vector<1x1x4x16xf32>
    %133 = vector.shape_cast %132 : vector<1x1x4x16xf32> to vector<4x16xf32>
    %134 = vector.shape_cast %131 : vector<4x16xf32> to vector<1x1x4x16xf32>
    tpu.vector_store %arg4[%c0_146, %c1_147, %c0_148, %c0_149], %134 {strides = array<i32>} : memref<1x4x4x16xf32, #tpu.memory_space<vmem>>, vector<1x1x4x16xf32>,
    %cst_150 = arith.constant 0.000000e+00 : f32
    %135 = vector.broadcast %cst_150 : f32 to vector<4x16xf32>
    %c2_151 = arith.constant 2 : index
    %c0_152 = arith.constant 0 : index
    %c0_153 = arith.constant 0 : index
    %c0_154 = arith.constant 0 : index
    %136 = vector.load %arg1[%c2_151, %c0_152, %c0_153, %c0_154] : memref<5x2x5x16xbf16, #tpu.memory_space<vmem>>, vector<1x1x4x8xbf16>
    %137 = vector.shape_cast %136 : vector<1x1x4x8xbf16> to vector<4x8xbf16>
    %c0_155 = arith.constant 0 : index
    %c0_156 = arith.constant 0 : index
    %c0_157 = arith.constant 0 : index
    %138 = vector.load %arg2[%c0_155, %c0_156, %c0_157] : memref<9x8x16xbf16, #tpu.memory_space<vmem>>, vector<1x8x16xbf16>
    %139 = vector.shape_cast %138 : vector<1x8x16xbf16> to vector<8x16xbf16>
    %cst_158 = arith.constant dense<0.000000e+00> : vector<4x16xf32>
    %140 = tpu.matmul %137, %139, %cst_158 {dimension_numbers = #tpu.dot_dimension_numbers<[1], [0], [0], [1], [0, 0, 1, 1], [], []>} : vector<4x8xbf16>, vector<8x16xbf16>, vector<4x16xf32> -> vector<4x16xf32>
    %141 = arith.addf %135, %140 : vector<4x16xf32>
    %c2_159 = arith.constant 2 : index
    %c0_160 = arith.constant 0 : index
    %c0_161 = arith.constant 0 : index
    %c8_162 = arith.constant 8 : index
    %142 = vector.load %arg1[%c2_159, %c0_160, %c0_161, %c8_162] : memref<5x2x5x16xbf16, #tpu.memory_space<vmem>>, vector<1x1x4x8xbf16>
    %143 = vector.shape_cast %142 : vector<1x1x4x8xbf16> to vector<4x8xbf16>
    %c1_163 = arith.constant 1 : index
    %c0_164 = arith.constant 0 : index
    %c0_165 = arith.constant 0 : index
    %144 = vector.load %arg2[%c1_163, %c0_164, %c0_165] : memref<9x8x16xbf16, #tpu.memory_space<vmem>>, vector<1x8x16xbf16>
    %145 = vector.shape_cast %144 : vector<1x8x16xbf16> to vector<8x16xbf16>
    %cst_166 = arith.constant dense<0.000000e+00> : vector<4x16xf32>
    %146 = tpu.matmul %143, %145, %cst_166 {dimension_numbers = #tpu.dot_dimension_numbers<[1], [0], [0], [1], [0, 0, 1, 1], [], []>} : vector<4x8xbf16>, vector<8x16xbf16>, vector<4x16xf32> -> vector<4x16xf32>
    %147 = arith.addf %141, %146 : vector<4x16xf32>
    %c2_167 = arith.constant 2 : index
    %c0_168 = arith.constant 0 : index
    %c1_169 = arith.constant 1 : index
    %c0_170 = arith.constant 0 : index
    %148 = vector.load %arg1[%c2_167, %c0_168, %c1_169, %c0_170] : memref<5x2x5x16xbf16, #tpu.memory_space<vmem>>, vector<1x1x4x8xbf16>
    %149 = vector.shape_cast %148 : vector<1x1x4x8xbf16> to vector<4x8xbf16>
    %c2_171 = arith.constant 2 : index
    %c0_172 = arith.constant 0 : index
    %c0_173 = arith.constant 0 : index
    %150 = vector.load %arg2[%c2_171, %c0_172, %c0_173] : memref<9x8x16xbf16, #tpu.memory_space<vmem>>, vector<1x8x16xbf16>
    %151 = vector.shape_cast %150 : vector<1x8x16xbf16> to vector<8x16xbf16>
    %cst_174 = arith.constant dense<0.000000e+00> : vector<4x16xf32>
    %152 = tpu.matmul %149, %151, %cst_174 {dimension_numbers = #tpu.dot_dimension_numbers<[1], [0], [0], [1], [0, 0, 1, 1], [], []>} : vector<4x8xbf16>, vector<8x16xbf16>, vector<4x16xf32> -> vector<4x16xf32>
    %153 = arith.addf %147, %152 : vector<4x16xf32>
    %c2_175 = arith.constant 2 : index
    %c1_176 = arith.constant 1 : index
    %c0_177 = arith.constant 0 : index
    %c0_178 = arith.constant 0 : index
    %154 = vector.load %arg1[%c2_175, %c1_176, %c0_177, %c0_178] : memref<5x2x5x16xbf16, #tpu.memory_space<vmem>>, vector<1x1x4x8xbf16>
    %155 = vector.shape_cast %154 : vector<1x1x4x8xbf16> to vector<4x8xbf16>
    %c3_179 = arith.constant 3 : index
    %c0_180 = arith.constant 0 : index
    %c0_181 = arith.constant 0 : index
    %156 = vector.load %arg2[%c3_179, %c0_180, %c0_181] : memref<9x8x16xbf16, #tpu.memory_space<vmem>>, vector<1x8x16xbf16>
    %157 = vector.shape_cast %156 : vector<1x8x16xbf16> to vector<8x16xbf16>
    %cst_182 = arith.constant dense<0.000000e+00> : vector<4x16xf32>
    %158 = tpu.matmul %155, %157, %cst_182 {dimension_numbers = #tpu.dot_dimension_numbers<[1], [0], [0], [1], [0, 0, 1, 1], [], []>} : vector<4x8xbf16>, vector<8x16xbf16>, vector<4x16xf32> -> vector<4x16xf32>
    %159 = arith.addf %153, %158 : vector<4x16xf32>
    %c2_183 = arith.constant 2 : index
    %c1_184 = arith.constant 1 : index
    %c0_185 = arith.constant 0 : index
    %c8_186 = arith.constant 8 : index
    %160 = vector.load %arg1[%c2_183, %c1_184, %c0_185, %c8_186] : memref<5x2x5x16xbf16, #tpu.memory_space<vmem>>, vector<1x1x4x8xbf16>
    %161 = vector.shape_cast %160 : vector<1x1x4x8xbf16> to vector<4x8xbf16>
    %c4_187 = arith.constant 4 : index
    %c0_188 = arith.constant 0 : index
    %c0_189 = arith.constant 0 : index
    %162 = vector.load %arg2[%c4_187, %c0_188, %c0_189] : memref<9x8x16xbf16, #tpu.memory_space<vmem>>, vector<1x8x16xbf16>
    %163 = vector.shape_cast %162 : vector<1x8x16xbf16> to vector<8x16xbf16>
    %cst_190 = arith.constant dense<0.000000e+00> : vector<4x16xf32>
    %164 = tpu.matmul %161, %163, %cst_190 {dimension_numbers = #tpu.dot_dimension_numbers<[1], [0], [0], [1], [0, 0, 1, 1], [], []>} : vector<4x8xbf16>, vector<8x16xbf16>, vector<4x16xf32> -> vector<4x16xf32>
    %165 = arith.addf %159, %164 : vector<4x16xf32>
    %c2_191 = arith.constant 2 : index
    %c1_192 = arith.constant 1 : index
    %c1_193 = arith.constant 1 : index
    %c0_194 = arith.constant 0 : index
    %166 = vector.load %arg1[%c2_191, %c1_192, %c1_193, %c0_194] : memref<5x2x5x16xbf16, #tpu.memory_space<vmem>>, vector<1x1x4x8xbf16>
    %167 = vector.shape_cast %166 : vector<1x1x4x8xbf16> to vector<4x8xbf16>
    %c5_195 = arith.constant 5 : index
    %c0_196 = arith.constant 0 : index
    %c0_197 = arith.constant 0 : index
    %168 = vector.load %arg2[%c5_195, %c0_196, %c0_197] : memref<9x8x16xbf16, #tpu.memory_space<vmem>>, vector<1x8x16xbf16>
    %169 = vector.shape_cast %168 : vector<1x8x16xbf16> to vector<8x16xbf16>
    %cst_198 = arith.constant dense<0.000000e+00> : vector<4x16xf32>
    %170 = tpu.matmul %167, %169, %cst_198 {dimension_numbers = #tpu.dot_dimension_numbers<[1], [0], [0], [1], [0, 0, 1, 1], [], []>} : vector<4x8xbf16>, vector<8x16xbf16>, vector<4x16xf32> -> vector<4x16xf32>
    %171 = arith.addf %165, %170 : vector<4x16xf32>
    %c3_199 = arith.constant 3 : index
    %c0_200 = arith.constant 0 : index
    %c0_201 = arith.constant 0 : index
    %c0_202 = arith.constant 0 : index
    %172 = vector.load %arg1[%c3_199, %c0_200, %c0_201, %c0_202] : memref<5x2x5x16xbf16, #tpu.memory_space<vmem>>, vector<1x1x4x8xbf16>
    %173 = vector.shape_cast %172 : vector<1x1x4x8xbf16> to vector<4x8xbf16>
    %c6_203 = arith.constant 6 : index
    %c0_204 = arith.constant 0 : index
    %c0_205 = arith.constant 0 : index
    %174 = vector.load %arg2[%c6_203, %c0_204, %c0_205] : memref<9x8x16xbf16, #tpu.memory_space<vmem>>, vector<1x8x16xbf16>
    %175 = vector.shape_cast %174 : vector<1x8x16xbf16> to vector<8x16xbf16>
    %cst_206 = arith.constant dense<0.000000e+00> : vector<4x16xf32>
    %176 = tpu.matmul %173, %175, %cst_206 {dimension_numbers = #tpu.dot_dimension_numbers<[1], [0], [0], [1], [0, 0, 1, 1], [], []>} : vector<4x8xbf16>, vector<8x16xbf16>, vector<4x16xf32> -> vector<4x16xf32>
    %177 = arith.addf %171, %176 : vector<4x16xf32>
    %c3_207 = arith.constant 3 : index
    %c0_208 = arith.constant 0 : index
    %c0_209 = arith.constant 0 : index
    %c8_210 = arith.constant 8 : index
    %178 = vector.load %arg1[%c3_207, %c0_208, %c0_209, %c8_210] : memref<5x2x5x16xbf16, #tpu.memory_space<vmem>>, vector<1x1x4x8xbf16>
    %179 = vector.shape_cast %178 : vector<1x1x4x8xbf16> to vector<4x8xbf16>
    %c7_211 = arith.constant 7 : index
    %c0_212 = arith.constant 0 : index
    %c0_213 = arith.constant 0 : index
    %180 = vector.load %arg2[%c7_211, %c0_212, %c0_213] : memref<9x8x16xbf16, #tpu.memory_space<vmem>>, vector<1x8x16xbf16>
    %181 = vector.shape_cast %180 : vector<1x8x16xbf16> to vector<8x16xbf16>
    %cst_214 = arith.constant dense<0.000000e+00> : vector<4x16xf32>
    %182 = tpu.matmul %179, %181, %cst_214 {dimension_numbers = #tpu.dot_dimension_numbers<[1], [0], [0], [1], [0, 0, 1, 1], [], []>} : vector<4x8xbf16>, vector<8x16xbf16>, vector<4x16xf32> -> vector<4x16xf32>
    %183 = arith.addf %177, %182 : vector<4x16xf32>
    %c3_215 = arith.constant 3 : index
    %c0_216 = arith.constant 0 : index
    %c1_217 = arith.constant 1 : index
    %c0_218 = arith.constant 0 : index
    %184 = vector.load %arg1[%c3_215, %c0_216, %c1_217, %c0_218] : memref<5x2x5x16xbf16, #tpu.memory_space<vmem>>, vector<1x1x4x8xbf16>
    %185 = vector.shape_cast %184 : vector<1x1x4x8xbf16> to vector<4x8xbf16>
    %c8_219 = arith.constant 8 : index
    %c0_220 = arith.constant 0 : index
    %c0_221 = arith.constant 0 : index
    %186 = vector.load %arg2[%c8_219, %c0_220, %c0_221] : memref<9x8x16xbf16, #tpu.memory_space<vmem>>, vector<1x8x16xbf16>
    %187 = vector.shape_cast %186 : vector<1x8x16xbf16> to vector<8x16xbf16>
    %cst_222 = arith.constant dense<0.000000e+00> : vector<4x16xf32>
    %188 = tpu.matmul %185, %187, %cst_222 {dimension_numbers = #tpu.dot_dimension_numbers<[1], [0], [0], [1], [0, 0, 1, 1], [], []>} : vector<4x8xbf16>, vector<8x16xbf16>, vector<4x16xf32> -> vector<4x16xf32>
    %189 = arith.addf %183, %188 : vector<4x16xf32>
    %190 = vector.broadcast %0 : vector<1x16xf32> to vector<4x16xf32>
    %191 = arith.addf %189, %190 : vector<4x16xf32>
    %cst_223 = arith.constant 0.000000e+00 : f32
    %192 = vector.broadcast %cst_223 : f32 to vector<4x16xf32>
    %193 = arith.subf %192, %191 : vector<4x16xf32>
    %194 = math.exp %193 : vector<4x16xf32>
    %cst_224 = arith.constant 1.000000e+00 : f32
    %195 = vector.broadcast %cst_224 : f32 to vector<4x16xf32>
    %196 = arith.addf %195, %194 : vector<4x16xf32>
    %197 = tpu.reciprocal %196 {approx = true} : vector<4x16xf32> -> vector<4x16xf32>
    %198 = arith.mulf %191, %197 : vector<4x16xf32>
    %c0_225 = arith.constant 0 : index
    %c2_226 = arith.constant 2 : index
    %c0_227 = arith.constant 0 : index
    %c0_228 = arith.constant 0 : index
    %199 = vector.load %arg4[%c0_225, %c2_226, %c0_227, %c0_228] : memref<1x4x4x16xf32, #tpu.memory_space<vmem>>, vector<1x1x4x16xf32>
    %200 = vector.shape_cast %199 : vector<1x1x4x16xf32> to vector<4x16xf32>
    %201 = vector.shape_cast %198 : vector<4x16xf32> to vector<1x1x4x16xf32>
    tpu.vector_store %arg4[%c0_225, %c2_226, %c0_227, %c0_228], %201 {strides = array<i32>} : memref<1x4x4x16xf32, #tpu.memory_space<vmem>>, vector<1x1x4x16xf32>,
    %cst_229 = arith.constant 0.000000e+00 : f32
    %202 = vector.broadcast %cst_229 : f32 to vector<4x16xf32>
    %c3_230 = arith.constant 3 : index
    %c0_231 = arith.constant 0 : index
    %c0_232 = arith.constant 0 : index
    %c0_233 = arith.constant 0 : index
    %203 = vector.load %arg1[%c3_230, %c0_231, %c0_232, %c0_233] : memref<5x2x5x16xbf16, #tpu.memory_space<vmem>>, vector<1x1x4x8xbf16>
    %204 = vector.shape_cast %203 : vector<1x1x4x8xbf16> to vector<4x8xbf16>
    %c0_234 = arith.constant 0 : index
    %c0_235 = arith.constant 0 : index
    %c0_236 = arith.constant 0 : index
    %205 = vector.load %arg2[%c0_234, %c0_235, %c0_236] : memref<9x8x16xbf16, #tpu.memory_space<vmem>>, vector<1x8x16xbf16>
    %206 = vector.shape_cast %205 : vector<1x8x16xbf16> to vector<8x16xbf16>
    %cst_237 = arith.constant dense<0.000000e+00> : vector<4x16xf32>
    %207 = tpu.matmul %204, %206, %cst_237 {dimension_numbers = #tpu.dot_dimension_numbers<[1], [0], [0], [1], [0, 0, 1, 1], [], []>} : vector<4x8xbf16>, vector<8x16xbf16>, vector<4x16xf32> -> vector<4x16xf32>
    %208 = arith.addf %202, %207 : vector<4x16xf32>
    %c3_238 = arith.constant 3 : index
    %c0_239 = arith.constant 0 : index
    %c0_240 = arith.constant 0 : index
    %c8_241 = arith.constant 8 : index
    %209 = vector.load %arg1[%c3_238, %c0_239, %c0_240, %c8_241] : memref<5x2x5x16xbf16, #tpu.memory_space<vmem>>, vector<1x1x4x8xbf16>
    %210 = vector.shape_cast %209 : vector<1x1x4x8xbf16> to vector<4x8xbf16>
    %c1_242 = arith.constant 1 : index
    %c0_243 = arith.constant 0 : index
    %c0_244 = arith.constant 0 : index
    %211 = vector.load %arg2[%c1_242, %c0_243, %c0_244] : memref<9x8x16xbf16, #tpu.memory_space<vmem>>, vector<1x8x16xbf16>
    %212 = vector.shape_cast %211 : vector<1x8x16xbf16> to vector<8x16xbf16>
    %cst_245 = arith.constant dense<0.000000e+00> : vector<4x16xf32>
    %213 = tpu.matmul %210, %212, %cst_245 {dimension_numbers = #tpu.dot_dimension_numbers<[1], [0], [0], [1], [0, 0, 1, 1], [], []>} : vector<4x8xbf16>, vector<8x16xbf16>, vector<4x16xf32> -> vector<4x16xf32>
    %214 = arith.addf %208, %213 : vector<4x16xf32>
    %c3_246 = arith.constant 3 : index
    %c0_247 = arith.constant 0 : index
    %c1_248 = arith.constant 1 : index
    %c0_249 = arith.constant 0 : index
    %215 = vector.load %arg1[%c3_246, %c0_247, %c1_248, %c0_249] : memref<5x2x5x16xbf16, #tpu.memory_space<vmem>>, vector<1x1x4x8xbf16>
    %216 = vector.shape_cast %215 : vector<1x1x4x8xbf16> to vector<4x8xbf16>
    %c2_250 = arith.constant 2 : index
    %c0_251 = arith.constant 0 : index
    %c0_252 = arith.constant 0 : index
    %217 = vector.load %arg2[%c2_250, %c0_251, %c0_252] : memref<9x8x16xbf16, #tpu.memory_space<vmem>>, vector<1x8x16xbf16>
    %218 = vector.shape_cast %217 : vector<1x8x16xbf16> to vector<8x16xbf16>
    %cst_253 = arith.constant dense<0.000000e+00> : vector<4x16xf32>
    %219 = tpu.matmul %216, %218, %cst_253 {dimension_numbers = #tpu.dot_dimension_numbers<[1], [0], [0], [1], [0, 0, 1, 1], [], []>} : vector<4x8xbf16>, vector<8x16xbf16>, vector<4x16xf32> -> vector<4x16xf32>
    %220 = arith.addf %214, %219 : vector<4x16xf32>
    %c3_254 = arith.constant 3 : index
    %c1_255 = arith.constant 1 : index
    %c0_256 = arith.constant 0 : index
    %c0_257 = arith.constant 0 : index
    %221 = vector.load %arg1[%c3_254, %c1_255, %c0_256, %c0_257] : memref<5x2x5x16xbf16, #tpu.memory_space<vmem>>, vector<1x1x4x8xbf16>
    %222 = vector.shape_cast %221 : vector<1x1x4x8xbf16> to vector<4x8xbf16>
    %c3_258 = arith.constant 3 : index
    %c0_259 = arith.constant 0 : index
    %c0_260 = arith.constant 0 : index
    %223 = vector.load %arg2[%c3_258, %c0_259, %c0_260] : memref<9x8x16xbf16, #tpu.memory_space<vmem>>, vector<1x8x16xbf16>
    %224 = vector.shape_cast %223 : vector<1x8x16xbf16> to vector<8x16xbf16>
    %cst_261 = arith.constant dense<0.000000e+00> : vector<4x16xf32>
    %225 = tpu.matmul %222, %224, %cst_261 {dimension_numbers = #tpu.dot_dimension_numbers<[1], [0], [0], [1], [0, 0, 1, 1], [], []>} : vector<4x8xbf16>, vector<8x16xbf16>, vector<4x16xf32> -> vector<4x16xf32>
    %226 = arith.addf %220, %225 : vector<4x16xf32>
    %c3_262 = arith.constant 3 : index
    %c1_263 = arith.constant 1 : index
    %c0_264 = arith.constant 0 : index
    %c8_265 = arith.constant 8 : index
    %227 = vector.load %arg1[%c3_262, %c1_263, %c0_264, %c8_265] : memref<5x2x5x16xbf16, #tpu.memory_space<vmem>>, vector<1x1x4x8xbf16>
    %228 = vector.shape_cast %227 : vector<1x1x4x8xbf16> to vector<4x8xbf16>
    %c4_266 = arith.constant 4 : index
    %c0_267 = arith.constant 0 : index
    %c0_268 = arith.constant 0 : index
    %229 = vector.load %arg2[%c4_266, %c0_267, %c0_268] : memref<9x8x16xbf16, #tpu.memory_space<vmem>>, vector<1x8x16xbf16>
    %230 = vector.shape_cast %229 : vector<1x8x16xbf16> to vector<8x16xbf16>
    %cst_269 = arith.constant dense<0.000000e+00> : vector<4x16xf32>
    %231 = tpu.matmul %228, %230, %cst_269 {dimension_numbers = #tpu.dot_dimension_numbers<[1], [0], [0], [1], [0, 0, 1, 1], [], []>} : vector<4x8xbf16>, vector<8x16xbf16>, vector<4x16xf32> -> vector<4x16xf32>
    %232 = arith.addf %226, %231 : vector<4x16xf32>
    %c3_270 = arith.constant 3 : index
    %c1_271 = arith.constant 1 : index
    %c1_272 = arith.constant 1 : index
    %c0_273 = arith.constant 0 : index
    %233 = vector.load %arg1[%c3_270, %c1_271, %c1_272, %c0_273] : memref<5x2x5x16xbf16, #tpu.memory_space<vmem>>, vector<1x1x4x8xbf16>
    %234 = vector.shape_cast %233 : vector<1x1x4x8xbf16> to vector<4x8xbf16>
    %c5_274 = arith.constant 5 : index
    %c0_275 = arith.constant 0 : index
    %c0_276 = arith.constant 0 : index
    %235 = vector.load %arg2[%c5_274, %c0_275, %c0_276] : memref<9x8x16xbf16, #tpu.memory_space<vmem>>, vector<1x8x16xbf16>
    %236 = vector.shape_cast %235 : vector<1x8x16xbf16> to vector<8x16xbf16>
    %cst_277 = arith.constant dense<0.000000e+00> : vector<4x16xf32>
    %237 = tpu.matmul %234, %236, %cst_277 {dimension_numbers = #tpu.dot_dimension_numbers<[1], [0], [0], [1], [0, 0, 1, 1], [], []>} : vector<4x8xbf16>, vector<8x16xbf16>, vector<4x16xf32> -> vector<4x16xf32>
    %238 = arith.addf %232, %237 : vector<4x16xf32>
    %c4_278 = arith.constant 4 : index
    %c0_279 = arith.constant 0 : index
    %c0_280 = arith.constant 0 : index
    %c0_281 = arith.constant 0 : index
    %239 = vector.load %arg1[%c4_278, %c0_279, %c0_280, %c0_281] : memref<5x2x5x16xbf16, #tpu.memory_space<vmem>>, vector<1x1x4x8xbf16>
    %240 = vector.shape_cast %239 : vector<1x1x4x8xbf16> to vector<4x8xbf16>
    %c6_282 = arith.constant 6 : index
    %c0_283 = arith.constant 0 : index
    %c0_284 = arith.constant 0 : index
    %241 = vector.load %arg2[%c6_282, %c0_283, %c0_284] : memref<9x8x16xbf16, #tpu.memory_space<vmem>>, vector<1x8x16xbf16>
    %242 = vector.shape_cast %241 : vector<1x8x16xbf16> to vector<8x16xbf16>
    %cst_285 = arith.constant dense<0.000000e+00> : vector<4x16xf32>
    %243 = tpu.matmul %240, %242, %cst_285 {dimension_numbers = #tpu.dot_dimension_numbers<[1], [0], [0], [1], [0, 0, 1, 1], [], []>} : vector<4x8xbf16>, vector<8x16xbf16>, vector<4x16xf32> -> vector<4x16xf32>
    %244 = arith.addf %238, %243 : vector<4x16xf32>
    %c4_286 = arith.constant 4 : index
    %c0_287 = arith.constant 0 : index
    %c0_288 = arith.constant 0 : index
    %c8_289 = arith.constant 8 : index
    %245 = vector.load %arg1[%c4_286, %c0_287, %c0_288, %c8_289] : memref<5x2x5x16xbf16, #tpu.memory_space<vmem>>, vector<1x1x4x8xbf16>
    %246 = vector.shape_cast %245 : vector<1x1x4x8xbf16> to vector<4x8xbf16>
    %c7_290 = arith.constant 7 : index
    %c0_291 = arith.constant 0 : index
    %c0_292 = arith.constant 0 : index
    %247 = vector.load %arg2[%c7_290, %c0_291, %c0_292] : memref<9x8x16xbf16, #tpu.memory_space<vmem>>, vector<1x8x16xbf16>
    %248 = vector.shape_cast %247 : vector<1x8x16xbf16> to vector<8x16xbf16>
    %cst_293 = arith.constant dense<0.000000e+00> : vector<4x16xf32>
    %249 = tpu.matmul %246, %248, %cst_293 {dimension_numbers = #tpu.dot_dimension_numbers<[1], [0], [0], [1], [0, 0, 1, 1], [], []>} : vector<4x8xbf16>, vector<8x16xbf16>, vector<4x16xf32> -> vector<4x16xf32>
    %250 = arith.addf %244, %249 : vector<4x16xf32>
    %c4_294 = arith.constant 4 : index
    %c0_295 = arith.constant 0 : index
    %c1_296 = arith.constant 1 : index
    %c0_297 = arith.constant 0 : index
    %251 = vector.load %arg1[%c4_294, %c0_295, %c1_296, %c0_297] : memref<5x2x5x16xbf16, #tpu.memory_space<vmem>>, vector<1x1x4x8xbf16>
    %252 = vector.shape_cast %251 : vector<1x1x4x8xbf16> to vector<4x8xbf16>
    %c8_298 = arith.constant 8 : index
    %c0_299 = arith.constant 0 : index
    %c0_300 = arith.constant 0 : index
    %253 = vector.load %arg2[%c8_298, %c0_299, %c0_300] : memref<9x8x16xbf16, #tpu.memory_space<vmem>>, vector<1x8x16xbf16>
    %254 = vector.shape_cast %253 : vector<1x8x16xbf16> to vector<8x16xbf16>
    %cst_301 = arith.constant dense<0.000000e+00> : vector<4x16xf32>
    %255 = tpu.matmul %252, %254, %cst_301 {dimension_numbers = #tpu.dot_dimension_numbers<[1], [0], [0], [1], [0, 0, 1, 1], [], []>} : vector<4x8xbf16>, vector<8x16xbf16>, vector<4x16xf32> -> vector<4x16xf32>
    %256 = arith.addf %250, %255 : vector<4x16xf32>
    %257 = vector.broadcast %0 : vector<1x16xf32> to vector<4x16xf32>
    %258 = arith.addf %256, %257 : vector<4x16xf32>
    %cst_302 = arith.constant 0.000000e+00 : f32
    %259 = vector.broadcast %cst_302 : f32 to vector<4x16xf32>
    %260 = arith.subf %259, %258 : vector<4x16xf32>
    %261 = math.exp %260 : vector<4x16xf32>
    %cst_303 = arith.constant 1.000000e+00 : f32
    %262 = vector.broadcast %cst_303 : f32 to vector<4x16xf32>
    %263 = arith.addf %262, %261 : vector<4x16xf32>
    %264 = tpu.reciprocal %263 {approx = true} : vector<4x16xf32> -> vector<4x16xf32>
    %265 = arith.mulf %258, %264 : vector<4x16xf32>
    %c0_304 = arith.constant 0 : index
    %c3_305 = arith.constant 3 : index
    %c0_306 = arith.constant 0 : index
    %c0_307 = arith.constant 0 : index
    %266 = vector.load %arg4[%c0_304, %c3_305, %c0_306, %c0_307] : memref<1x4x4x16xf32, #tpu.memory_space<vmem>>, vector<1x1x4x16xf32>
    %267 = vector.shape_cast %266 : vector<1x1x4x16xf32> to vector<4x16xf32>
    %268 = vector.shape_cast %265 : vector<4x16xf32> to vector<1x1x4x16xf32>
    tpu.vector_store %arg4[%c0_304, %c3_305, %c0_306, %c0_307], %268 {strides = array<i32>} : memref<1x4x4x16xf32, #tpu.memory_space<vmem>>, vector<1x1x4x16xf32>,
    return
  }
  func.func @transform_0(%arg0: i32) -> (i32, i32, i32, i32) {
    %c0_i32 = arith.constant 0 : i32
    %c0_i32_0 = arith.constant 0 : i32
    %c0_i32_1 = arith.constant 0 : i32
    %c0_i32_2 = arith.constant 0 : i32
    return %arg0, %c0_i32, %c0_i32_0, %c0_i32_1 : i32, i32, i32, i32
  }
  func.func @transform_1(%arg0: i32) -> (i32, i32, i32) {
    %c0_i32 = arith.constant 0 : i32
    %c0_i32_0 = arith.constant 0 : i32
    %c0_i32_1 = arith.constant 0 : i32
    %c0_i32_2 = arith.constant 0 : i32
    return %c0_i32, %c0_i32_0, %c0_i32_1 : i32, i32, i32
  }
  func.func @transform_2(%arg0: i32) -> (i32, i32) {
    %c0_i32 = arith.constant 0 : i32
    %c0_i32_0 = arith.constant 0 : i32
    %c0_i32_1 = arith.constant 0 : i32
    return %c0_i32, %c0_i32_0 : i32, i32
  }
  func.func @transform_3(%arg0: i32) -> (i32, i32, i32, i32) {
    %c0_i32 = arith.constant 0 : i32
    %c0_i32_0 = arith.constant 0 : i32
    %c0_i32_1 = arith.constant 0 : i32
    %c0_i32_2 = arith.constant 0 : i32
    return %arg0, %c0_i32, %c0_i32_0, %c0_i32_1 : i32, i32, i32, i32
  }
}

module attributes {stable_mosaic.version = 11 : i64} {
  func.func @_conv_taps_silu_kernel(%arg0: i32, %arg1: memref<9x2x9x6xbf16, #tpu.memory_space<vmem>>, %arg2: memref<9x3x8xbf16, #tpu.memory_space<vmem>>, %arg3: memref<1x8xf32, #tpu.memory_space<vmem>>, %arg4: memref<1x8x8x8xf32, #tpu.memory_space<vmem>>) attributes {dimension_semantics = [#tpu.dimension_semantics<parallel>], iteration_bounds = array<i64: 2>, scalar_prefetch = 0 : i64, scratch_operands = 0 : i64, tpu.core_type = #tpu.core_type<tc>, window_params = [{transform_indices = @transform_0, window_bounds = array<i64: 9, 2, 9, 6>}, {pipeline_mode = #tpu.pipeline_mode<synchronous>, transform_indices = @transform_1, window_bounds = array<i64: 9, 3, 8>}, {pipeline_mode = #tpu.pipeline_mode<synchronous>, transform_indices = @transform_2, window_bounds = array<i64: 1, 8>}, {transform_indices = @transform_3, window_bounds = array<i64: 1, 8, 8, 8>}]} {
    %c0 = arith.constant 0 : index
    %c0_0 = arith.constant 0 : index
    %0 = vector.load %arg3[%c0, %c0_0] : memref<1x8xf32, #tpu.memory_space<vmem>>, vector<1x8xf32>
    %cst = arith.constant 0.000000e+00 : f32
    %1 = vector.broadcast %cst : f32 to vector<8x8xf32>
    %c0_1 = arith.constant 0 : index
    %c0_2 = arith.constant 0 : index
    %c0_3 = arith.constant 0 : index
    %c0_4 = arith.constant 0 : index
    %2 = vector.load %arg1[%c0_1, %c0_2, %c0_3, %c0_4] : memref<9x2x9x6xbf16, #tpu.memory_space<vmem>>, vector<1x1x8x3xbf16>
    %3 = vector.shape_cast %2 : vector<1x1x8x3xbf16> to vector<8x3xbf16>
    %c0_5 = arith.constant 0 : index
    %c0_6 = arith.constant 0 : index
    %c0_7 = arith.constant 0 : index
    %4 = vector.load %arg2[%c0_5, %c0_6, %c0_7] : memref<9x3x8xbf16, #tpu.memory_space<vmem>>, vector<1x3x8xbf16>
    %5 = vector.shape_cast %4 : vector<1x3x8xbf16> to vector<3x8xbf16>
    %cst_8 = arith.constant dense<0.000000e+00> : vector<8x8xf32>
    %6 = tpu.matmul %3, %5, %cst_8 {dimension_numbers = #tpu.dot_dimension_numbers<[1], [0], [0], [1], [0, 0, 1, 1], [], []>} : vector<8x3xbf16>, vector<3x8xbf16>, vector<8x8xf32> -> vector<8x8xf32>
    %7 = arith.addf %1, %6 : vector<8x8xf32>
    %c0_9 = arith.constant 0 : index
    %c0_10 = arith.constant 0 : index
    %c0_11 = arith.constant 0 : index
    %c3 = arith.constant 3 : index
    %8 = vector.load %arg1[%c0_9, %c0_10, %c0_11, %c3] : memref<9x2x9x6xbf16, #tpu.memory_space<vmem>>, vector<1x1x8x3xbf16>
    %9 = vector.shape_cast %8 : vector<1x1x8x3xbf16> to vector<8x3xbf16>
    %c1 = arith.constant 1 : index
    %c0_12 = arith.constant 0 : index
    %c0_13 = arith.constant 0 : index
    %10 = vector.load %arg2[%c1, %c0_12, %c0_13] : memref<9x3x8xbf16, #tpu.memory_space<vmem>>, vector<1x3x8xbf16>
    %11 = vector.shape_cast %10 : vector<1x3x8xbf16> to vector<3x8xbf16>
    %cst_14 = arith.constant dense<0.000000e+00> : vector<8x8xf32>
    %12 = tpu.matmul %9, %11, %cst_14 {dimension_numbers = #tpu.dot_dimension_numbers<[1], [0], [0], [1], [0, 0, 1, 1], [], []>} : vector<8x3xbf16>, vector<3x8xbf16>, vector<8x8xf32> -> vector<8x8xf32>
    %13 = arith.addf %7, %12 : vector<8x8xf32>
    %c0_15 = arith.constant 0 : index
    %c0_16 = arith.constant 0 : index
    %c1_17 = arith.constant 1 : index
    %c0_18 = arith.constant 0 : index
    %14 = vector.load %arg1[%c0_15, %c0_16, %c1_17, %c0_18] : memref<9x2x9x6xbf16, #tpu.memory_space<vmem>>, vector<1x1x8x3xbf16>
    %15 = vector.shape_cast %14 : vector<1x1x8x3xbf16> to vector<8x3xbf16>
    %c2 = arith.constant 2 : index
    %c0_19 = arith.constant 0 : index
    %c0_20 = arith.constant 0 : index
    %16 = vector.load %arg2[%c2, %c0_19, %c0_20] : memref<9x3x8xbf16, #tpu.memory_space<vmem>>, vector<1x3x8xbf16>
    %17 = vector.shape_cast %16 : vector<1x3x8xbf16> to vector<3x8xbf16>
    %cst_21 = arith.constant dense<0.000000e+00> : vector<8x8xf32>
    %18 = tpu.matmul %15, %17, %cst_21 {dimension_numbers = #tpu.dot_dimension_numbers<[1], [0], [0], [1], [0, 0, 1, 1], [], []>} : vector<8x3xbf16>, vector<3x8xbf16>, vector<8x8xf32> -> vector<8x8xf32>
    %19 = arith.addf %13, %18 : vector<8x8xf32>
    %c0_22 = arith.constant 0 : index
    %c1_23 = arith.constant 1 : index
    %c0_24 = arith.constant 0 : index
    %c0_25 = arith.constant 0 : index
    %20 = vector.load %arg1[%c0_22, %c1_23, %c0_24, %c0_25] : memref<9x2x9x6xbf16, #tpu.memory_space<vmem>>, vector<1x1x8x3xbf16>
    %21 = vector.shape_cast %20 : vector<1x1x8x3xbf16> to vector<8x3xbf16>
    %c3_26 = arith.constant 3 : index
    %c0_27 = arith.constant 0 : index
    %c0_28 = arith.constant 0 : index
    %22 = vector.load %arg2[%c3_26, %c0_27, %c0_28] : memref<9x3x8xbf16, #tpu.memory_space<vmem>>, vector<1x3x8xbf16>
    %23 = vector.shape_cast %22 : vector<1x3x8xbf16> to vector<3x8xbf16>
    %cst_29 = arith.constant dense<0.000000e+00> : vector<8x8xf32>
    %24 = tpu.matmul %21, %23, %cst_29 {dimension_numbers = #tpu.dot_dimension_numbers<[1], [0], [0], [1], [0, 0, 1, 1], [], []>} : vector<8x3xbf16>, vector<3x8xbf16>, vector<8x8xf32> -> vector<8x8xf32>
    %25 = arith.addf %19, %24 : vector<8x8xf32>
    %c0_30 = arith.constant 0 : index
    %c1_31 = arith.constant 1 : index
    %c0_32 = arith.constant 0 : index
    %c3_33 = arith.constant 3 : index
    %26 = vector.load %arg1[%c0_30, %c1_31, %c0_32, %c3_33] : memref<9x2x9x6xbf16, #tpu.memory_space<vmem>>, vector<1x1x8x3xbf16>
    %27 = vector.shape_cast %26 : vector<1x1x8x3xbf16> to vector<8x3xbf16>
    %c4 = arith.constant 4 : index
    %c0_34 = arith.constant 0 : index
    %c0_35 = arith.constant 0 : index
    %28 = vector.load %arg2[%c4, %c0_34, %c0_35] : memref<9x3x8xbf16, #tpu.memory_space<vmem>>, vector<1x3x8xbf16>
    %29 = vector.shape_cast %28 : vector<1x3x8xbf16> to vector<3x8xbf16>
    %cst_36 = arith.constant dense<0.000000e+00> : vector<8x8xf32>
    %30 = tpu.matmul %27, %29, %cst_36 {dimension_numbers = #tpu.dot_dimension_numbers<[1], [0], [0], [1], [0, 0, 1, 1], [], []>} : vector<8x3xbf16>, vector<3x8xbf16>, vector<8x8xf32> -> vector<8x8xf32>
    %31 = arith.addf %25, %30 : vector<8x8xf32>
    %c0_37 = arith.constant 0 : index
    %c1_38 = arith.constant 1 : index
    %c1_39 = arith.constant 1 : index
    %c0_40 = arith.constant 0 : index
    %32 = vector.load %arg1[%c0_37, %c1_38, %c1_39, %c0_40] : memref<9x2x9x6xbf16, #tpu.memory_space<vmem>>, vector<1x1x8x3xbf16>
    %33 = vector.shape_cast %32 : vector<1x1x8x3xbf16> to vector<8x3xbf16>
    %c5 = arith.constant 5 : index
    %c0_41 = arith.constant 0 : index
    %c0_42 = arith.constant 0 : index
    %34 = vector.load %arg2[%c5, %c0_41, %c0_42] : memref<9x3x8xbf16, #tpu.memory_space<vmem>>, vector<1x3x8xbf16>
    %35 = vector.shape_cast %34 : vector<1x3x8xbf16> to vector<3x8xbf16>
    %cst_43 = arith.constant dense<0.000000e+00> : vector<8x8xf32>
    %36 = tpu.matmul %33, %35, %cst_43 {dimension_numbers = #tpu.dot_dimension_numbers<[1], [0], [0], [1], [0, 0, 1, 1], [], []>} : vector<8x3xbf16>, vector<3x8xbf16>, vector<8x8xf32> -> vector<8x8xf32>
    %37 = arith.addf %31, %36 : vector<8x8xf32>
    %c1_44 = arith.constant 1 : index
    %c0_45 = arith.constant 0 : index
    %c0_46 = arith.constant 0 : index
    %c0_47 = arith.constant 0 : index
    %38 = vector.load %arg1[%c1_44, %c0_45, %c0_46, %c0_47] : memref<9x2x9x6xbf16, #tpu.memory_space<vmem>>, vector<1x1x8x3xbf16>
    %39 = vector.shape_cast %38 : vector<1x1x8x3xbf16> to vector<8x3xbf16>
    %c6 = arith.constant 6 : index
    %c0_48 = arith.constant 0 : index
    %c0_49 = arith.constant 0 : index
    %40 = vector.load %arg2[%c6, %c0_48, %c0_49] : memref<9x3x8xbf16, #tpu.memory_space<vmem>>, vector<1x3x8xbf16>
    %41 = vector.shape_cast %40 : vector<1x3x8xbf16> to vector<3x8xbf16>
    %cst_50 = arith.constant dense<0.000000e+00> : vector<8x8xf32>
    %42 = tpu.matmul %39, %41, %cst_50 {dimension_numbers = #tpu.dot_dimension_numbers<[1], [0], [0], [1], [0, 0, 1, 1], [], []>} : vector<8x3xbf16>, vector<3x8xbf16>, vector<8x8xf32> -> vector<8x8xf32>
    %43 = arith.addf %37, %42 : vector<8x8xf32>
    %c1_51 = arith.constant 1 : index
    %c0_52 = arith.constant 0 : index
    %c0_53 = arith.constant 0 : index
    %c3_54 = arith.constant 3 : index
    %44 = vector.load %arg1[%c1_51, %c0_52, %c0_53, %c3_54] : memref<9x2x9x6xbf16, #tpu.memory_space<vmem>>, vector<1x1x8x3xbf16>
    %45 = vector.shape_cast %44 : vector<1x1x8x3xbf16> to vector<8x3xbf16>
    %c7 = arith.constant 7 : index
    %c0_55 = arith.constant 0 : index
    %c0_56 = arith.constant 0 : index
    %46 = vector.load %arg2[%c7, %c0_55, %c0_56] : memref<9x3x8xbf16, #tpu.memory_space<vmem>>, vector<1x3x8xbf16>
    %47 = vector.shape_cast %46 : vector<1x3x8xbf16> to vector<3x8xbf16>
    %cst_57 = arith.constant dense<0.000000e+00> : vector<8x8xf32>
    %48 = tpu.matmul %45, %47, %cst_57 {dimension_numbers = #tpu.dot_dimension_numbers<[1], [0], [0], [1], [0, 0, 1, 1], [], []>} : vector<8x3xbf16>, vector<3x8xbf16>, vector<8x8xf32> -> vector<8x8xf32>
    %49 = arith.addf %43, %48 : vector<8x8xf32>
    %c1_58 = arith.constant 1 : index
    %c0_59 = arith.constant 0 : index
    %c1_60 = arith.constant 1 : index
    %c0_61 = arith.constant 0 : index
    %50 = vector.load %arg1[%c1_58, %c0_59, %c1_60, %c0_61] : memref<9x2x9x6xbf16, #tpu.memory_space<vmem>>, vector<1x1x8x3xbf16>
    %51 = vector.shape_cast %50 : vector<1x1x8x3xbf16> to vector<8x3xbf16>
    %c8 = arith.constant 8 : index
    %c0_62 = arith.constant 0 : index
    %c0_63 = arith.constant 0 : index
    %52 = vector.load %arg2[%c8, %c0_62, %c0_63] : memref<9x3x8xbf16, #tpu.memory_space<vmem>>, vector<1x3x8xbf16>
    %53 = vector.shape_cast %52 : vector<1x3x8xbf16> to vector<3x8xbf16>
    %cst_64 = arith.constant dense<0.000000e+00> : vector<8x8xf32>
    %54 = tpu.matmul %51, %53, %cst_64 {dimension_numbers = #tpu.dot_dimension_numbers<[1], [0], [0], [1], [0, 0, 1, 1], [], []>} : vector<8x3xbf16>, vector<3x8xbf16>, vector<8x8xf32> -> vector<8x8xf32>
    %55 = arith.addf %49, %54 : vector<8x8xf32>
    %56 = vector.broadcast %0 : vector<1x8xf32> to vector<8x8xf32>
    %57 = arith.addf %55, %56 : vector<8x8xf32>
    %cst_65 = arith.constant 0.000000e+00 : f32
    %58 = vector.broadcast %cst_65 : f32 to vector<8x8xf32>
    %59 = arith.subf %58, %57 : vector<8x8xf32>
    %60 = math.exp %59 : vector<8x8xf32>
    %cst_66 = arith.constant 1.000000e+00 : f32
    %61 = vector.broadcast %cst_66 : f32 to vector<8x8xf32>
    %62 = arith.addf %61, %60 : vector<8x8xf32>
    %63 = tpu.reciprocal %62 {approx = true} : vector<8x8xf32> -> vector<8x8xf32>
    %64 = arith.mulf %57, %63 : vector<8x8xf32>
    %c0_67 = arith.constant 0 : index
    %c0_68 = arith.constant 0 : index
    %c0_69 = arith.constant 0 : index
    %c0_70 = arith.constant 0 : index
    %65 = vector.load %arg4[%c0_67, %c0_68, %c0_69, %c0_70] : memref<1x8x8x8xf32, #tpu.memory_space<vmem>>, vector<1x1x8x8xf32>
    %66 = vector.shape_cast %65 : vector<1x1x8x8xf32> to vector<8x8xf32>
    %67 = vector.shape_cast %64 : vector<8x8xf32> to vector<1x1x8x8xf32>
    tpu.vector_store %arg4[%c0_67, %c0_68, %c0_69, %c0_70], %67 {strides = array<i32>} : memref<1x8x8x8xf32, #tpu.memory_space<vmem>>, vector<1x1x8x8xf32>,
    %cst_71 = arith.constant 0.000000e+00 : f32
    %68 = vector.broadcast %cst_71 : f32 to vector<8x8xf32>
    %c1_72 = arith.constant 1 : index
    %c0_73 = arith.constant 0 : index
    %c0_74 = arith.constant 0 : index
    %c0_75 = arith.constant 0 : index
    %69 = vector.load %arg1[%c1_72, %c0_73, %c0_74, %c0_75] : memref<9x2x9x6xbf16, #tpu.memory_space<vmem>>, vector<1x1x8x3xbf16>
    %70 = vector.shape_cast %69 : vector<1x1x8x3xbf16> to vector<8x3xbf16>
    %c0_76 = arith.constant 0 : index
    %c0_77 = arith.constant 0 : index
    %c0_78 = arith.constant 0 : index
    %71 = vector.load %arg2[%c0_76, %c0_77, %c0_78] : memref<9x3x8xbf16, #tpu.memory_space<vmem>>, vector<1x3x8xbf16>
    %72 = vector.shape_cast %71 : vector<1x3x8xbf16> to vector<3x8xbf16>
    %cst_79 = arith.constant dense<0.000000e+00> : vector<8x8xf32>
    %73 = tpu.matmul %70, %72, %cst_79 {dimension_numbers = #tpu.dot_dimension_numbers<[1], [0], [0], [1], [0, 0, 1, 1], [], []>} : vector<8x3xbf16>, vector<3x8xbf16>, vector<8x8xf32> -> vector<8x8xf32>
    %74 = arith.addf %68, %73 : vector<8x8xf32>
    %c1_80 = arith.constant 1 : index
    %c0_81 = arith.constant 0 : index
    %c0_82 = arith.constant 0 : index
    %c3_83 = arith.constant 3 : index
    %75 = vector.load %arg1[%c1_80, %c0_81, %c0_82, %c3_83] : memref<9x2x9x6xbf16, #tpu.memory_space<vmem>>, vector<1x1x8x3xbf16>
    %76 = vector.shape_cast %75 : vector<1x1x8x3xbf16> to vector<8x3xbf16>
    %c1_84 = arith.constant 1 : index
    %c0_85 = arith.constant 0 : index
    %c0_86 = arith.constant 0 : index
    %77 = vector.load %arg2[%c1_84, %c0_85, %c0_86] : memref<9x3x8xbf16, #tpu.memory_space<vmem>>, vector<1x3x8xbf16>
    %78 = vector.shape_cast %77 : vector<1x3x8xbf16> to vector<3x8xbf16>
    %cst_87 = arith.constant dense<0.000000e+00> : vector<8x8xf32>
    %79 = tpu.matmul %76, %78, %cst_87 {dimension_numbers = #tpu.dot_dimension_numbers<[1], [0], [0], [1], [0, 0, 1, 1], [], []>} : vector<8x3xbf16>, vector<3x8xbf16>, vector<8x8xf32> -> vector<8x8xf32>
    %80 = arith.addf %74, %79 : vector<8x8xf32>
    %c1_88 = arith.constant 1 : index
    %c0_89 = arith.constant 0 : index
    %c1_90 = arith.constant 1 : index
    %c0_91 = arith.constant 0 : index
    %81 = vector.load %arg1[%c1_88, %c0_89, %c1_90, %c0_91] : memref<9x2x9x6xbf16, #tpu.memory_space<vmem>>, vector<1x1x8x3xbf16>
    %82 = vector.shape_cast %81 : vector<1x1x8x3xbf16> to vector<8x3xbf16>
    %c2_92 = arith.constant 2 : index
    %c0_93 = arith.constant 0 : index
    %c0_94 = arith.constant 0 : index
    %83 = vector.load %arg2[%c2_92, %c0_93, %c0_94] : memref<9x3x8xbf16, #tpu.memory_space<vmem>>, vector<1x3x8xbf16>
    %84 = vector.shape_cast %83 : vector<1x3x8xbf16> to vector<3x8xbf16>
    %cst_95 = arith.constant dense<0.000000e+00> : vector<8x8xf32>
    %85 = tpu.matmul %82, %84, %cst_95 {dimension_numbers = #tpu.dot_dimension_numbers<[1], [0], [0], [1], [0, 0, 1, 1], [], []>} : vector<8x3xbf16>, vector<3x8xbf16>, vector<8x8xf32> -> vector<8x8xf32>
    %86 = arith.addf %80, %85 : vector<8x8xf32>
    %c1_96 = arith.constant 1 : index
    %c1_97 = arith.constant 1 : index
    %c0_98 = arith.constant 0 : index
    %c0_99 = arith.constant 0 : index
    %87 = vector.load %arg1[%c1_96, %c1_97, %c0_98, %c0_99] : memref<9x2x9x6xbf16, #tpu.memory_space<vmem>>, vector<1x1x8x3xbf16>
    %88 = vector.shape_cast %87 : vector<1x1x8x3xbf16> to vector<8x3xbf16>
    %c3_100 = arith.constant 3 : index
    %c0_101 = arith.constant 0 : index
    %c0_102 = arith.constant 0 : index
    %89 = vector.load %arg2[%c3_100, %c0_101, %c0_102] : memref<9x3x8xbf16, #tpu.memory_space<vmem>>, vector<1x3x8xbf16>
    %90 = vector.shape_cast %89 : vector<1x3x8xbf16> to vector<3x8xbf16>
    %cst_103 = arith.constant dense<0.000000e+00> : vector<8x8xf32>
    %91 = tpu.matmul %88, %90, %cst_103 {dimension_numbers = #tpu.dot_dimension_numbers<[1], [0], [0], [1], [0, 0, 1, 1], [], []>} : vector<8x3xbf16>, vector<3x8xbf16>, vector<8x8xf32> -> vector<8x8xf32>
    %92 = arith.addf %86, %91 : vector<8x8xf32>
    %c1_104 = arith.constant 1 : index
    %c1_105 = arith.constant 1 : index
    %c0_106 = arith.constant 0 : index
    %c3_107 = arith.constant 3 : index
    %93 = vector.load %arg1[%c1_104, %c1_105, %c0_106, %c3_107] : memref<9x2x9x6xbf16, #tpu.memory_space<vmem>>, vector<1x1x8x3xbf16>
    %94 = vector.shape_cast %93 : vector<1x1x8x3xbf16> to vector<8x3xbf16>
    %c4_108 = arith.constant 4 : index
    %c0_109 = arith.constant 0 : index
    %c0_110 = arith.constant 0 : index
    %95 = vector.load %arg2[%c4_108, %c0_109, %c0_110] : memref<9x3x8xbf16, #tpu.memory_space<vmem>>, vector<1x3x8xbf16>
    %96 = vector.shape_cast %95 : vector<1x3x8xbf16> to vector<3x8xbf16>
    %cst_111 = arith.constant dense<0.000000e+00> : vector<8x8xf32>
    %97 = tpu.matmul %94, %96, %cst_111 {dimension_numbers = #tpu.dot_dimension_numbers<[1], [0], [0], [1], [0, 0, 1, 1], [], []>} : vector<8x3xbf16>, vector<3x8xbf16>, vector<8x8xf32> -> vector<8x8xf32>
    %98 = arith.addf %92, %97 : vector<8x8xf32>
    %c1_112 = arith.constant 1 : index
    %c1_113 = arith.constant 1 : index
    %c1_114 = arith.constant 1 : index
    %c0_115 = arith.constant 0 : index
    %99 = vector.load %arg1[%c1_112, %c1_113, %c1_114, %c0_115] : memref<9x2x9x6xbf16, #tpu.memory_space<vmem>>, vector<1x1x8x3xbf16>
    %100 = vector.shape_cast %99 : vector<1x1x8x3xbf16> to vector<8x3xbf16>
    %c5_116 = arith.constant 5 : index
    %c0_117 = arith.constant 0 : index
    %c0_118 = arith.constant 0 : index
    %101 = vector.load %arg2[%c5_116, %c0_117, %c0_118] : memref<9x3x8xbf16, #tpu.memory_space<vmem>>, vector<1x3x8xbf16>
    %102 = vector.shape_cast %101 : vector<1x3x8xbf16> to vector<3x8xbf16>
    %cst_119 = arith.constant dense<0.000000e+00> : vector<8x8xf32>
    %103 = tpu.matmul %100, %102, %cst_119 {dimension_numbers = #tpu.dot_dimension_numbers<[1], [0], [0], [1], [0, 0, 1, 1], [], []>} : vector<8x3xbf16>, vector<3x8xbf16>, vector<8x8xf32> -> vector<8x8xf32>
    %104 = arith.addf %98, %103 : vector<8x8xf32>
    %c2_120 = arith.constant 2 : index
    %c0_121 = arith.constant 0 : index
    %c0_122 = arith.constant 0 : index
    %c0_123 = arith.constant 0 : index
    %105 = vector.load %arg1[%c2_120, %c0_121, %c0_122, %c0_123] : memref<9x2x9x6xbf16, #tpu.memory_space<vmem>>, vector<1x1x8x3xbf16>
    %106 = vector.shape_cast %105 : vector<1x1x8x3xbf16> to vector<8x3xbf16>
    %c6_124 = arith.constant 6 : index
    %c0_125 = arith.constant 0 : index
    %c0_126 = arith.constant 0 : index
    %107 = vector.load %arg2[%c6_124, %c0_125, %c0_126] : memref<9x3x8xbf16, #tpu.memory_space<vmem>>, vector<1x3x8xbf16>
    %108 = vector.shape_cast %107 : vector<1x3x8xbf16> to vector<3x8xbf16>
    %cst_127 = arith.constant dense<0.000000e+00> : vector<8x8xf32>
    %109 = tpu.matmul %106, %108, %cst_127 {dimension_numbers = #tpu.dot_dimension_numbers<[1], [0], [0], [1], [0, 0, 1, 1], [], []>} : vector<8x3xbf16>, vector<3x8xbf16>, vector<8x8xf32> -> vector<8x8xf32>
    %110 = arith.addf %104, %109 : vector<8x8xf32>
    %c2_128 = arith.constant 2 : index
    %c0_129 = arith.constant 0 : index
    %c0_130 = arith.constant 0 : index
    %c3_131 = arith.constant 3 : index
    %111 = vector.load %arg1[%c2_128, %c0_129, %c0_130, %c3_131] : memref<9x2x9x6xbf16, #tpu.memory_space<vmem>>, vector<1x1x8x3xbf16>
    %112 = vector.shape_cast %111 : vector<1x1x8x3xbf16> to vector<8x3xbf16>
    %c7_132 = arith.constant 7 : index
    %c0_133 = arith.constant 0 : index
    %c0_134 = arith.constant 0 : index
    %113 = vector.load %arg2[%c7_132, %c0_133, %c0_134] : memref<9x3x8xbf16, #tpu.memory_space<vmem>>, vector<1x3x8xbf16>
    %114 = vector.shape_cast %113 : vector<1x3x8xbf16> to vector<3x8xbf16>
    %cst_135 = arith.constant dense<0.000000e+00> : vector<8x8xf32>
    %115 = tpu.matmul %112, %114, %cst_135 {dimension_numbers = #tpu.dot_dimension_numbers<[1], [0], [0], [1], [0, 0, 1, 1], [], []>} : vector<8x3xbf16>, vector<3x8xbf16>, vector<8x8xf32> -> vector<8x8xf32>
    %116 = arith.addf %110, %115 : vector<8x8xf32>
    %c2_136 = arith.constant 2 : index
    %c0_137 = arith.constant 0 : index
    %c1_138 = arith.constant 1 : index
    %c0_139 = arith.constant 0 : index
    %117 = vector.load %arg1[%c2_136, %c0_137, %c1_138, %c0_139] : memref<9x2x9x6xbf16, #tpu.memory_space<vmem>>, vector<1x1x8x3xbf16>
    %118 = vector.shape_cast %117 : vector<1x1x8x3xbf16> to vector<8x3xbf16>
    %c8_140 = arith.constant 8 : index
    %c0_141 = arith.constant 0 : index
    %c0_142 = arith.constant 0 : index
    %119 = vector.load %arg2[%c8_140, %c0_141, %c0_142] : memref<9x3x8xbf16, #tpu.memory_space<vmem>>, vector<1x3x8xbf16>
    %120 = vector.shape_cast %119 : vector<1x3x8xbf16> to vector<3x8xbf16>
    %cst_143 = arith.constant dense<0.000000e+00> : vector<8x8xf32>
    %121 = tpu.matmul %118, %120, %cst_143 {dimension_numbers = #tpu.dot_dimension_numbers<[1], [0], [0], [1], [0, 0, 1, 1], [], []>} : vector<8x3xbf16>, vector<3x8xbf16>, vector<8x8xf32> -> vector<8x8xf32>
    %122 = arith.addf %116, %121 : vector<8x8xf32>
    %123 = vector.broadcast %0 : vector<1x8xf32> to vector<8x8xf32>
    %124 = arith.addf %122, %123 : vector<8x8xf32>
    %cst_144 = arith.constant 0.000000e+00 : f32
    %125 = vector.broadcast %cst_144 : f32 to vector<8x8xf32>
    %126 = arith.subf %125, %124 : vector<8x8xf32>
    %127 = math.exp %126 : vector<8x8xf32>
    %cst_145 = arith.constant 1.000000e+00 : f32
    %128 = vector.broadcast %cst_145 : f32 to vector<8x8xf32>
    %129 = arith.addf %128, %127 : vector<8x8xf32>
    %130 = tpu.reciprocal %129 {approx = true} : vector<8x8xf32> -> vector<8x8xf32>
    %131 = arith.mulf %124, %130 : vector<8x8xf32>
    %c0_146 = arith.constant 0 : index
    %c1_147 = arith.constant 1 : index
    %c0_148 = arith.constant 0 : index
    %c0_149 = arith.constant 0 : index
    %132 = vector.load %arg4[%c0_146, %c1_147, %c0_148, %c0_149] : memref<1x8x8x8xf32, #tpu.memory_space<vmem>>, vector<1x1x8x8xf32>
    %133 = vector.shape_cast %132 : vector<1x1x8x8xf32> to vector<8x8xf32>
    %134 = vector.shape_cast %131 : vector<8x8xf32> to vector<1x1x8x8xf32>
    tpu.vector_store %arg4[%c0_146, %c1_147, %c0_148, %c0_149], %134 {strides = array<i32>} : memref<1x8x8x8xf32, #tpu.memory_space<vmem>>, vector<1x1x8x8xf32>,
    %cst_150 = arith.constant 0.000000e+00 : f32
    %135 = vector.broadcast %cst_150 : f32 to vector<8x8xf32>
    %c2_151 = arith.constant 2 : index
    %c0_152 = arith.constant 0 : index
    %c0_153 = arith.constant 0 : index
    %c0_154 = arith.constant 0 : index
    %136 = vector.load %arg1[%c2_151, %c0_152, %c0_153, %c0_154] : memref<9x2x9x6xbf16, #tpu.memory_space<vmem>>, vector<1x1x8x3xbf16>
    %137 = vector.shape_cast %136 : vector<1x1x8x3xbf16> to vector<8x3xbf16>
    %c0_155 = arith.constant 0 : index
    %c0_156 = arith.constant 0 : index
    %c0_157 = arith.constant 0 : index
    %138 = vector.load %arg2[%c0_155, %c0_156, %c0_157] : memref<9x3x8xbf16, #tpu.memory_space<vmem>>, vector<1x3x8xbf16>
    %139 = vector.shape_cast %138 : vector<1x3x8xbf16> to vector<3x8xbf16>
    %cst_158 = arith.constant dense<0.000000e+00> : vector<8x8xf32>
    %140 = tpu.matmul %137, %139, %cst_158 {dimension_numbers = #tpu.dot_dimension_numbers<[1], [0], [0], [1], [0, 0, 1, 1], [], []>} : vector<8x3xbf16>, vector<3x8xbf16>, vector<8x8xf32> -> vector<8x8xf32>
    %141 = arith.addf %135, %140 : vector<8x8xf32>
    %c2_159 = arith.constant 2 : index
    %c0_160 = arith.constant 0 : index
    %c0_161 = arith.constant 0 : index
    %c3_162 = arith.constant 3 : index
    %142 = vector.load %arg1[%c2_159, %c0_160, %c0_161, %c3_162] : memref<9x2x9x6xbf16, #tpu.memory_space<vmem>>, vector<1x1x8x3xbf16>
    %143 = vector.shape_cast %142 : vector<1x1x8x3xbf16> to vector<8x3xbf16>
    %c1_163 = arith.constant 1 : index
    %c0_164 = arith.constant 0 : index
    %c0_165 = arith.constant 0 : index
    %144 = vector.load %arg2[%c1_163, %c0_164, %c0_165] : memref<9x3x8xbf16, #tpu.memory_space<vmem>>, vector<1x3x8xbf16>
    %145 = vector.shape_cast %144 : vector<1x3x8xbf16> to vector<3x8xbf16>
    %cst_166 = arith.constant dense<0.000000e+00> : vector<8x8xf32>
    %146 = tpu.matmul %143, %145, %cst_166 {dimension_numbers = #tpu.dot_dimension_numbers<[1], [0], [0], [1], [0, 0, 1, 1], [], []>} : vector<8x3xbf16>, vector<3x8xbf16>, vector<8x8xf32> -> vector<8x8xf32>
    %147 = arith.addf %141, %146 : vector<8x8xf32>
    %c2_167 = arith.constant 2 : index
    %c0_168 = arith.constant 0 : index
    %c1_169 = arith.constant 1 : index
    %c0_170 = arith.constant 0 : index
    %148 = vector.load %arg1[%c2_167, %c0_168, %c1_169, %c0_170] : memref<9x2x9x6xbf16, #tpu.memory_space<vmem>>, vector<1x1x8x3xbf16>
    %149 = vector.shape_cast %148 : vector<1x1x8x3xbf16> to vector<8x3xbf16>
    %c2_171 = arith.constant 2 : index
    %c0_172 = arith.constant 0 : index
    %c0_173 = arith.constant 0 : index
    %150 = vector.load %arg2[%c2_171, %c0_172, %c0_173] : memref<9x3x8xbf16, #tpu.memory_space<vmem>>, vector<1x3x8xbf16>
    %151 = vector.shape_cast %150 : vector<1x3x8xbf16> to vector<3x8xbf16>
    %cst_174 = arith.constant dense<0.000000e+00> : vector<8x8xf32>
    %152 = tpu.matmul %149, %151, %cst_174 {dimension_numbers = #tpu.dot_dimension_numbers<[1], [0], [0], [1], [0, 0, 1, 1], [], []>} : vector<8x3xbf16>, vector<3x8xbf16>, vector<8x8xf32> -> vector<8x8xf32>
    %153 = arith.addf %147, %152 : vector<8x8xf32>
    %c2_175 = arith.constant 2 : index
    %c1_176 = arith.constant 1 : index
    %c0_177 = arith.constant 0 : index
    %c0_178 = arith.constant 0 : index
    %154 = vector.load %arg1[%c2_175, %c1_176, %c0_177, %c0_178] : memref<9x2x9x6xbf16, #tpu.memory_space<vmem>>, vector<1x1x8x3xbf16>
    %155 = vector.shape_cast %154 : vector<1x1x8x3xbf16> to vector<8x3xbf16>
    %c3_179 = arith.constant 3 : index
    %c0_180 = arith.constant 0 : index
    %c0_181 = arith.constant 0 : index
    %156 = vector.load %arg2[%c3_179, %c0_180, %c0_181] : memref<9x3x8xbf16, #tpu.memory_space<vmem>>, vector<1x3x8xbf16>
    %157 = vector.shape_cast %156 : vector<1x3x8xbf16> to vector<3x8xbf16>
    %cst_182 = arith.constant dense<0.000000e+00> : vector<8x8xf32>
    %158 = tpu.matmul %155, %157, %cst_182 {dimension_numbers = #tpu.dot_dimension_numbers<[1], [0], [0], [1], [0, 0, 1, 1], [], []>} : vector<8x3xbf16>, vector<3x8xbf16>, vector<8x8xf32> -> vector<8x8xf32>
    %159 = arith.addf %153, %158 : vector<8x8xf32>
    %c2_183 = arith.constant 2 : index
    %c1_184 = arith.constant 1 : index
    %c0_185 = arith.constant 0 : index
    %c3_186 = arith.constant 3 : index
    %160 = vector.load %arg1[%c2_183, %c1_184, %c0_185, %c3_186] : memref<9x2x9x6xbf16, #tpu.memory_space<vmem>>, vector<1x1x8x3xbf16>
    %161 = vector.shape_cast %160 : vector<1x1x8x3xbf16> to vector<8x3xbf16>
    %c4_187 = arith.constant 4 : index
    %c0_188 = arith.constant 0 : index
    %c0_189 = arith.constant 0 : index
    %162 = vector.load %arg2[%c4_187, %c0_188, %c0_189] : memref<9x3x8xbf16, #tpu.memory_space<vmem>>, vector<1x3x8xbf16>
    %163 = vector.shape_cast %162 : vector<1x3x8xbf16> to vector<3x8xbf16>
    %cst_190 = arith.constant dense<0.000000e+00> : vector<8x8xf32>
    %164 = tpu.matmul %161, %163, %cst_190 {dimension_numbers = #tpu.dot_dimension_numbers<[1], [0], [0], [1], [0, 0, 1, 1], [], []>} : vector<8x3xbf16>, vector<3x8xbf16>, vector<8x8xf32> -> vector<8x8xf32>
    %165 = arith.addf %159, %164 : vector<8x8xf32>
    %c2_191 = arith.constant 2 : index
    %c1_192 = arith.constant 1 : index
    %c1_193 = arith.constant 1 : index
    %c0_194 = arith.constant 0 : index
    %166 = vector.load %arg1[%c2_191, %c1_192, %c1_193, %c0_194] : memref<9x2x9x6xbf16, #tpu.memory_space<vmem>>, vector<1x1x8x3xbf16>
    %167 = vector.shape_cast %166 : vector<1x1x8x3xbf16> to vector<8x3xbf16>
    %c5_195 = arith.constant 5 : index
    %c0_196 = arith.constant 0 : index
    %c0_197 = arith.constant 0 : index
    %168 = vector.load %arg2[%c5_195, %c0_196, %c0_197] : memref<9x3x8xbf16, #tpu.memory_space<vmem>>, vector<1x3x8xbf16>
    %169 = vector.shape_cast %168 : vector<1x3x8xbf16> to vector<3x8xbf16>
    %cst_198 = arith.constant dense<0.000000e+00> : vector<8x8xf32>
    %170 = tpu.matmul %167, %169, %cst_198 {dimension_numbers = #tpu.dot_dimension_numbers<[1], [0], [0], [1], [0, 0, 1, 1], [], []>} : vector<8x3xbf16>, vector<3x8xbf16>, vector<8x8xf32> -> vector<8x8xf32>
    %171 = arith.addf %165, %170 : vector<8x8xf32>
    %c3_199 = arith.constant 3 : index
    %c0_200 = arith.constant 0 : index
    %c0_201 = arith.constant 0 : index
    %c0_202 = arith.constant 0 : index
    %172 = vector.load %arg1[%c3_199, %c0_200, %c0_201, %c0_202] : memref<9x2x9x6xbf16, #tpu.memory_space<vmem>>, vector<1x1x8x3xbf16>
    %173 = vector.shape_cast %172 : vector<1x1x8x3xbf16> to vector<8x3xbf16>
    %c6_203 = arith.constant 6 : index
    %c0_204 = arith.constant 0 : index
    %c0_205 = arith.constant 0 : index
    %174 = vector.load %arg2[%c6_203, %c0_204, %c0_205] : memref<9x3x8xbf16, #tpu.memory_space<vmem>>, vector<1x3x8xbf16>
    %175 = vector.shape_cast %174 : vector<1x3x8xbf16> to vector<3x8xbf16>
    %cst_206 = arith.constant dense<0.000000e+00> : vector<8x8xf32>
    %176 = tpu.matmul %173, %175, %cst_206 {dimension_numbers = #tpu.dot_dimension_numbers<[1], [0], [0], [1], [0, 0, 1, 1], [], []>} : vector<8x3xbf16>, vector<3x8xbf16>, vector<8x8xf32> -> vector<8x8xf32>
    %177 = arith.addf %171, %176 : vector<8x8xf32>
    %c3_207 = arith.constant 3 : index
    %c0_208 = arith.constant 0 : index
    %c0_209 = arith.constant 0 : index
    %c3_210 = arith.constant 3 : index
    %178 = vector.load %arg1[%c3_207, %c0_208, %c0_209, %c3_210] : memref<9x2x9x6xbf16, #tpu.memory_space<vmem>>, vector<1x1x8x3xbf16>
    %179 = vector.shape_cast %178 : vector<1x1x8x3xbf16> to vector<8x3xbf16>
    %c7_211 = arith.constant 7 : index
    %c0_212 = arith.constant 0 : index
    %c0_213 = arith.constant 0 : index
    %180 = vector.load %arg2[%c7_211, %c0_212, %c0_213] : memref<9x3x8xbf16, #tpu.memory_space<vmem>>, vector<1x3x8xbf16>
    %181 = vector.shape_cast %180 : vector<1x3x8xbf16> to vector<3x8xbf16>
    %cst_214 = arith.constant dense<0.000000e+00> : vector<8x8xf32>
    %182 = tpu.matmul %179, %181, %cst_214 {dimension_numbers = #tpu.dot_dimension_numbers<[1], [0], [0], [1], [0, 0, 1, 1], [], []>} : vector<8x3xbf16>, vector<3x8xbf16>, vector<8x8xf32> -> vector<8x8xf32>
    %183 = arith.addf %177, %182 : vector<8x8xf32>
    %c3_215 = arith.constant 3 : index
    %c0_216 = arith.constant 0 : index
    %c1_217 = arith.constant 1 : index
    %c0_218 = arith.constant 0 : index
    %184 = vector.load %arg1[%c3_215, %c0_216, %c1_217, %c0_218] : memref<9x2x9x6xbf16, #tpu.memory_space<vmem>>, vector<1x1x8x3xbf16>
    %185 = vector.shape_cast %184 : vector<1x1x8x3xbf16> to vector<8x3xbf16>
    %c8_219 = arith.constant 8 : index
    %c0_220 = arith.constant 0 : index
    %c0_221 = arith.constant 0 : index
    %186 = vector.load %arg2[%c8_219, %c0_220, %c0_221] : memref<9x3x8xbf16, #tpu.memory_space<vmem>>, vector<1x3x8xbf16>
    %187 = vector.shape_cast %186 : vector<1x3x8xbf16> to vector<3x8xbf16>
    %cst_222 = arith.constant dense<0.000000e+00> : vector<8x8xf32>
    %188 = tpu.matmul %185, %187, %cst_222 {dimension_numbers = #tpu.dot_dimension_numbers<[1], [0], [0], [1], [0, 0, 1, 1], [], []>} : vector<8x3xbf16>, vector<3x8xbf16>, vector<8x8xf32> -> vector<8x8xf32>
    %189 = arith.addf %183, %188 : vector<8x8xf32>
    %190 = vector.broadcast %0 : vector<1x8xf32> to vector<8x8xf32>
    %191 = arith.addf %189, %190 : vector<8x8xf32>
    %cst_223 = arith.constant 0.000000e+00 : f32
    %192 = vector.broadcast %cst_223 : f32 to vector<8x8xf32>
    %193 = arith.subf %192, %191 : vector<8x8xf32>
    %194 = math.exp %193 : vector<8x8xf32>
    %cst_224 = arith.constant 1.000000e+00 : f32
    %195 = vector.broadcast %cst_224 : f32 to vector<8x8xf32>
    %196 = arith.addf %195, %194 : vector<8x8xf32>
    %197 = tpu.reciprocal %196 {approx = true} : vector<8x8xf32> -> vector<8x8xf32>
    %198 = arith.mulf %191, %197 : vector<8x8xf32>
    %c0_225 = arith.constant 0 : index
    %c2_226 = arith.constant 2 : index
    %c0_227 = arith.constant 0 : index
    %c0_228 = arith.constant 0 : index
    %199 = vector.load %arg4[%c0_225, %c2_226, %c0_227, %c0_228] : memref<1x8x8x8xf32, #tpu.memory_space<vmem>>, vector<1x1x8x8xf32>
    %200 = vector.shape_cast %199 : vector<1x1x8x8xf32> to vector<8x8xf32>
    %201 = vector.shape_cast %198 : vector<8x8xf32> to vector<1x1x8x8xf32>
    tpu.vector_store %arg4[%c0_225, %c2_226, %c0_227, %c0_228], %201 {strides = array<i32>} : memref<1x8x8x8xf32, #tpu.memory_space<vmem>>, vector<1x1x8x8xf32>,
    %cst_229 = arith.constant 0.000000e+00 : f32
    %202 = vector.broadcast %cst_229 : f32 to vector<8x8xf32>
    %c3_230 = arith.constant 3 : index
    %c0_231 = arith.constant 0 : index
    %c0_232 = arith.constant 0 : index
    %c0_233 = arith.constant 0 : index
    %203 = vector.load %arg1[%c3_230, %c0_231, %c0_232, %c0_233] : memref<9x2x9x6xbf16, #tpu.memory_space<vmem>>, vector<1x1x8x3xbf16>
    %204 = vector.shape_cast %203 : vector<1x1x8x3xbf16> to vector<8x3xbf16>
    %c0_234 = arith.constant 0 : index
    %c0_235 = arith.constant 0 : index
    %c0_236 = arith.constant 0 : index
    %205 = vector.load %arg2[%c0_234, %c0_235, %c0_236] : memref<9x3x8xbf16, #tpu.memory_space<vmem>>, vector<1x3x8xbf16>
    %206 = vector.shape_cast %205 : vector<1x3x8xbf16> to vector<3x8xbf16>
    %cst_237 = arith.constant dense<0.000000e+00> : vector<8x8xf32>
    %207 = tpu.matmul %204, %206, %cst_237 {dimension_numbers = #tpu.dot_dimension_numbers<[1], [0], [0], [1], [0, 0, 1, 1], [], []>} : vector<8x3xbf16>, vector<3x8xbf16>, vector<8x8xf32> -> vector<8x8xf32>
    %208 = arith.addf %202, %207 : vector<8x8xf32>
    %c3_238 = arith.constant 3 : index
    %c0_239 = arith.constant 0 : index
    %c0_240 = arith.constant 0 : index
    %c3_241 = arith.constant 3 : index
    %209 = vector.load %arg1[%c3_238, %c0_239, %c0_240, %c3_241] : memref<9x2x9x6xbf16, #tpu.memory_space<vmem>>, vector<1x1x8x3xbf16>
    %210 = vector.shape_cast %209 : vector<1x1x8x3xbf16> to vector<8x3xbf16>
    %c1_242 = arith.constant 1 : index
    %c0_243 = arith.constant 0 : index
    %c0_244 = arith.constant 0 : index
    %211 = vector.load %arg2[%c1_242, %c0_243, %c0_244] : memref<9x3x8xbf16, #tpu.memory_space<vmem>>, vector<1x3x8xbf16>
    %212 = vector.shape_cast %211 : vector<1x3x8xbf16> to vector<3x8xbf16>
    %cst_245 = arith.constant dense<0.000000e+00> : vector<8x8xf32>
    %213 = tpu.matmul %210, %212, %cst_245 {dimension_numbers = #tpu.dot_dimension_numbers<[1], [0], [0], [1], [0, 0, 1, 1], [], []>} : vector<8x3xbf16>, vector<3x8xbf16>, vector<8x8xf32> -> vector<8x8xf32>
    %214 = arith.addf %208, %213 : vector<8x8xf32>
    %c3_246 = arith.constant 3 : index
    %c0_247 = arith.constant 0 : index
    %c1_248 = arith.constant 1 : index
    %c0_249 = arith.constant 0 : index
    %215 = vector.load %arg1[%c3_246, %c0_247, %c1_248, %c0_249] : memref<9x2x9x6xbf16, #tpu.memory_space<vmem>>, vector<1x1x8x3xbf16>
    %216 = vector.shape_cast %215 : vector<1x1x8x3xbf16> to vector<8x3xbf16>
    %c2_250 = arith.constant 2 : index
    %c0_251 = arith.constant 0 : index
    %c0_252 = arith.constant 0 : index
    %217 = vector.load %arg2[%c2_250, %c0_251, %c0_252] : memref<9x3x8xbf16, #tpu.memory_space<vmem>>, vector<1x3x8xbf16>
    %218 = vector.shape_cast %217 : vector<1x3x8xbf16> to vector<3x8xbf16>
    %cst_253 = arith.constant dense<0.000000e+00> : vector<8x8xf32>
    %219 = tpu.matmul %216, %218, %cst_253 {dimension_numbers = #tpu.dot_dimension_numbers<[1], [0], [0], [1], [0, 0, 1, 1], [], []>} : vector<8x3xbf16>, vector<3x8xbf16>, vector<8x8xf32> -> vector<8x8xf32>
    %220 = arith.addf %214, %219 : vector<8x8xf32>
    %c3_254 = arith.constant 3 : index
    %c1_255 = arith.constant 1 : index
    %c0_256 = arith.constant 0 : index
    %c0_257 = arith.constant 0 : index
    %221 = vector.load %arg1[%c3_254, %c1_255, %c0_256, %c0_257] : memref<9x2x9x6xbf16, #tpu.memory_space<vmem>>, vector<1x1x8x3xbf16>
    %222 = vector.shape_cast %221 : vector<1x1x8x3xbf16> to vector<8x3xbf16>
    %c3_258 = arith.constant 3 : index
    %c0_259 = arith.constant 0 : index
    %c0_260 = arith.constant 0 : index
    %223 = vector.load %arg2[%c3_258, %c0_259, %c0_260] : memref<9x3x8xbf16, #tpu.memory_space<vmem>>, vector<1x3x8xbf16>
    %224 = vector.shape_cast %223 : vector<1x3x8xbf16> to vector<3x8xbf16>
    %cst_261 = arith.constant dense<0.000000e+00> : vector<8x8xf32>
    %225 = tpu.matmul %222, %224, %cst_261 {dimension_numbers = #tpu.dot_dimension_numbers<[1], [0], [0], [1], [0, 0, 1, 1], [], []>} : vector<8x3xbf16>, vector<3x8xbf16>, vector<8x8xf32> -> vector<8x8xf32>
    %226 = arith.addf %220, %225 : vector<8x8xf32>
    %c3_262 = arith.constant 3 : index
    %c1_263 = arith.constant 1 : index
    %c0_264 = arith.constant 0 : index
    %c3_265 = arith.constant 3 : index
    %227 = vector.load %arg1[%c3_262, %c1_263, %c0_264, %c3_265] : memref<9x2x9x6xbf16, #tpu.memory_space<vmem>>, vector<1x1x8x3xbf16>
    %228 = vector.shape_cast %227 : vector<1x1x8x3xbf16> to vector<8x3xbf16>
    %c4_266 = arith.constant 4 : index
    %c0_267 = arith.constant 0 : index
    %c0_268 = arith.constant 0 : index
    %229 = vector.load %arg2[%c4_266, %c0_267, %c0_268] : memref<9x3x8xbf16, #tpu.memory_space<vmem>>, vector<1x3x8xbf16>
    %230 = vector.shape_cast %229 : vector<1x3x8xbf16> to vector<3x8xbf16>
    %cst_269 = arith.constant dense<0.000000e+00> : vector<8x8xf32>
    %231 = tpu.matmul %228, %230, %cst_269 {dimension_numbers = #tpu.dot_dimension_numbers<[1], [0], [0], [1], [0, 0, 1, 1], [], []>} : vector<8x3xbf16>, vector<3x8xbf16>, vector<8x8xf32> -> vector<8x8xf32>
    %232 = arith.addf %226, %231 : vector<8x8xf32>
    %c3_270 = arith.constant 3 : index
    %c1_271 = arith.constant 1 : index
    %c1_272 = arith.constant 1 : index
    %c0_273 = arith.constant 0 : index
    %233 = vector.load %arg1[%c3_270, %c1_271, %c1_272, %c0_273] : memref<9x2x9x6xbf16, #tpu.memory_space<vmem>>, vector<1x1x8x3xbf16>
    %234 = vector.shape_cast %233 : vector<1x1x8x3xbf16> to vector<8x3xbf16>
    %c5_274 = arith.constant 5 : index
    %c0_275 = arith.constant 0 : index
    %c0_276 = arith.constant 0 : index
    %235 = vector.load %arg2[%c5_274, %c0_275, %c0_276] : memref<9x3x8xbf16, #tpu.memory_space<vmem>>, vector<1x3x8xbf16>
    %236 = vector.shape_cast %235 : vector<1x3x8xbf16> to vector<3x8xbf16>
    %cst_277 = arith.constant dense<0.000000e+00> : vector<8x8xf32>
    %237 = tpu.matmul %234, %236, %cst_277 {dimension_numbers = #tpu.dot_dimension_numbers<[1], [0], [0], [1], [0, 0, 1, 1], [], []>} : vector<8x3xbf16>, vector<3x8xbf16>, vector<8x8xf32> -> vector<8x8xf32>
    %238 = arith.addf %232, %237 : vector<8x8xf32>
    %c4_278 = arith.constant 4 : index
    %c0_279 = arith.constant 0 : index
    %c0_280 = arith.constant 0 : index
    %c0_281 = arith.constant 0 : index
    %239 = vector.load %arg1[%c4_278, %c0_279, %c0_280, %c0_281] : memref<9x2x9x6xbf16, #tpu.memory_space<vmem>>, vector<1x1x8x3xbf16>
    %240 = vector.shape_cast %239 : vector<1x1x8x3xbf16> to vector<8x3xbf16>
    %c6_282 = arith.constant 6 : index
    %c0_283 = arith.constant 0 : index
    %c0_284 = arith.constant 0 : index
    %241 = vector.load %arg2[%c6_282, %c0_283, %c0_284] : memref<9x3x8xbf16, #tpu.memory_space<vmem>>, vector<1x3x8xbf16>
    %242 = vector.shape_cast %241 : vector<1x3x8xbf16> to vector<3x8xbf16>
    %cst_285 = arith.constant dense<0.000000e+00> : vector<8x8xf32>
    %243 = tpu.matmul %240, %242, %cst_285 {dimension_numbers = #tpu.dot_dimension_numbers<[1], [0], [0], [1], [0, 0, 1, 1], [], []>} : vector<8x3xbf16>, vector<3x8xbf16>, vector<8x8xf32> -> vector<8x8xf32>
    %244 = arith.addf %238, %243 : vector<8x8xf32>
    %c4_286 = arith.constant 4 : index
    %c0_287 = arith.constant 0 : index
    %c0_288 = arith.constant 0 : index
    %c3_289 = arith.constant 3 : index
    %245 = vector.load %arg1[%c4_286, %c0_287, %c0_288, %c3_289] : memref<9x2x9x6xbf16, #tpu.memory_space<vmem>>, vector<1x1x8x3xbf16>
    %246 = vector.shape_cast %245 : vector<1x1x8x3xbf16> to vector<8x3xbf16>
    %c7_290 = arith.constant 7 : index
    %c0_291 = arith.constant 0 : index
    %c0_292 = arith.constant 0 : index
    %247 = vector.load %arg2[%c7_290, %c0_291, %c0_292] : memref<9x3x8xbf16, #tpu.memory_space<vmem>>, vector<1x3x8xbf16>
    %248 = vector.shape_cast %247 : vector<1x3x8xbf16> to vector<3x8xbf16>
    %cst_293 = arith.constant dense<0.000000e+00> : vector<8x8xf32>
    %249 = tpu.matmul %246, %248, %cst_293 {dimension_numbers = #tpu.dot_dimension_numbers<[1], [0], [0], [1], [0, 0, 1, 1], [], []>} : vector<8x3xbf16>, vector<3x8xbf16>, vector<8x8xf32> -> vector<8x8xf32>
    %250 = arith.addf %244, %249 : vector<8x8xf32>
    %c4_294 = arith.constant 4 : index
    %c0_295 = arith.constant 0 : index
    %c1_296 = arith.constant 1 : index
    %c0_297 = arith.constant 0 : index
    %251 = vector.load %arg1[%c4_294, %c0_295, %c1_296, %c0_297] : memref<9x2x9x6xbf16, #tpu.memory_space<vmem>>, vector<1x1x8x3xbf16>
    %252 = vector.shape_cast %251 : vector<1x1x8x3xbf16> to vector<8x3xbf16>
    %c8_298 = arith.constant 8 : index
    %c0_299 = arith.constant 0 : index
    %c0_300 = arith.constant 0 : index
    %253 = vector.load %arg2[%c8_298, %c0_299, %c0_300] : memref<9x3x8xbf16, #tpu.memory_space<vmem>>, vector<1x3x8xbf16>
    %254 = vector.shape_cast %253 : vector<1x3x8xbf16> to vector<3x8xbf16>
    %cst_301 = arith.constant dense<0.000000e+00> : vector<8x8xf32>
    %255 = tpu.matmul %252, %254, %cst_301 {dimension_numbers = #tpu.dot_dimension_numbers<[1], [0], [0], [1], [0, 0, 1, 1], [], []>} : vector<8x3xbf16>, vector<3x8xbf16>, vector<8x8xf32> -> vector<8x8xf32>
    %256 = arith.addf %250, %255 : vector<8x8xf32>
    %257 = vector.broadcast %0 : vector<1x8xf32> to vector<8x8xf32>
    %258 = arith.addf %256, %257 : vector<8x8xf32>
    %cst_302 = arith.constant 0.000000e+00 : f32
    %259 = vector.broadcast %cst_302 : f32 to vector<8x8xf32>
    %260 = arith.subf %259, %258 : vector<8x8xf32>
    %261 = math.exp %260 : vector<8x8xf32>
    %cst_303 = arith.constant 1.000000e+00 : f32
    %262 = vector.broadcast %cst_303 : f32 to vector<8x8xf32>
    %263 = arith.addf %262, %261 : vector<8x8xf32>
    %264 = tpu.reciprocal %263 {approx = true} : vector<8x8xf32> -> vector<8x8xf32>
    %265 = arith.mulf %258, %264 : vector<8x8xf32>
    %c0_304 = arith.constant 0 : index
    %c3_305 = arith.constant 3 : index
    %c0_306 = arith.constant 0 : index
    %c0_307 = arith.constant 0 : index
    %266 = vector.load %arg4[%c0_304, %c3_305, %c0_306, %c0_307] : memref<1x8x8x8xf32, #tpu.memory_space<vmem>>, vector<1x1x8x8xf32>
    %267 = vector.shape_cast %266 : vector<1x1x8x8xf32> to vector<8x8xf32>
    %268 = vector.shape_cast %265 : vector<8x8xf32> to vector<1x1x8x8xf32>
    tpu.vector_store %arg4[%c0_304, %c3_305, %c0_306, %c0_307], %268 {strides = array<i32>} : memref<1x8x8x8xf32, #tpu.memory_space<vmem>>, vector<1x1x8x8xf32>,
    %cst_308 = arith.constant 0.000000e+00 : f32
    %269 = vector.broadcast %cst_308 : f32 to vector<8x8xf32>
    %c4_309 = arith.constant 4 : index
    %c0_310 = arith.constant 0 : index
    %c0_311 = arith.constant 0 : index
    %c0_312 = arith.constant 0 : index
    %270 = vector.load %arg1[%c4_309, %c0_310, %c0_311, %c0_312] : memref<9x2x9x6xbf16, #tpu.memory_space<vmem>>, vector<1x1x8x3xbf16>
    %271 = vector.shape_cast %270 : vector<1x1x8x3xbf16> to vector<8x3xbf16>
    %c0_313 = arith.constant 0 : index
    %c0_314 = arith.constant 0 : index
    %c0_315 = arith.constant 0 : index
    %272 = vector.load %arg2[%c0_313, %c0_314, %c0_315] : memref<9x3x8xbf16, #tpu.memory_space<vmem>>, vector<1x3x8xbf16>
    %273 = vector.shape_cast %272 : vector<1x3x8xbf16> to vector<3x8xbf16>
    %cst_316 = arith.constant dense<0.000000e+00> : vector<8x8xf32>
    %274 = tpu.matmul %271, %273, %cst_316 {dimension_numbers = #tpu.dot_dimension_numbers<[1], [0], [0], [1], [0, 0, 1, 1], [], []>} : vector<8x3xbf16>, vector<3x8xbf16>, vector<8x8xf32> -> vector<8x8xf32>
    %275 = arith.addf %269, %274 : vector<8x8xf32>
    %c4_317 = arith.constant 4 : index
    %c0_318 = arith.constant 0 : index
    %c0_319 = arith.constant 0 : index
    %c3_320 = arith.constant 3 : index
    %276 = vector.load %arg1[%c4_317, %c0_318, %c0_319, %c3_320] : memref<9x2x9x6xbf16, #tpu.memory_space<vmem>>, vector<1x1x8x3xbf16>
    %277 = vector.shape_cast %276 : vector<1x1x8x3xbf16> to vector<8x3xbf16>
    %c1_321 = arith.constant 1 : index
    %c0_322 = arith.constant 0 : index
    %c0_323 = arith.constant 0 : index
    %278 = vector.load %arg2[%c1_321, %c0_322, %c0_323] : memref<9x3x8xbf16, #tpu.memory_space<vmem>>, vector<1x3x8xbf16>
    %279 = vector.shape_cast %278 : vector<1x3x8xbf16> to vector<3x8xbf16>
    %cst_324 = arith.constant dense<0.000000e+00> : vector<8x8xf32>
    %280 = tpu.matmul %277, %279, %cst_324 {dimension_numbers = #tpu.dot_dimension_numbers<[1], [0], [0], [1], [0, 0, 1, 1], [], []>} : vector<8x3xbf16>, vector<3x8xbf16>, vector<8x8xf32> -> vector<8x8xf32>
    %281 = arith.addf %275, %280 : vector<8x8xf32>
    %c4_325 = arith.constant 4 : index
    %c0_326 = arith.constant 0 : index
    %c1_327 = arith.constant 1 : index
    %c0_328 = arith.constant 0 : index
    %282 = vector.load %arg1[%c4_325, %c0_326, %c1_327, %c0_328] : memref<9x2x9x6xbf16, #tpu.memory_space<vmem>>, vector<1x1x8x3xbf16>
    %283 = vector.shape_cast %282 : vector<1x1x8x3xbf16> to vector<8x3xbf16>
    %c2_329 = arith.constant 2 : index
    %c0_330 = arith.constant 0 : index
    %c0_331 = arith.constant 0 : index
    %284 = vector.load %arg2[%c2_329, %c0_330, %c0_331] : memref<9x3x8xbf16, #tpu.memory_space<vmem>>, vector<1x3x8xbf16>
    %285 = vector.shape_cast %284 : vector<1x3x8xbf16> to vector<3x8xbf16>
    %cst_332 = arith.constant dense<0.000000e+00> : vector<8x8xf32>
    %286 = tpu.matmul %283, %285, %cst_332 {dimension_numbers = #tpu.dot_dimension_numbers<[1], [0], [0], [1], [0, 0, 1, 1], [], []>} : vector<8x3xbf16>, vector<3x8xbf16>, vector<8x8xf32> -> vector<8x8xf32>
    %287 = arith.addf %281, %286 : vector<8x8xf32>
    %c4_333 = arith.constant 4 : index
    %c1_334 = arith.constant 1 : index
    %c0_335 = arith.constant 0 : index
    %c0_336 = arith.constant 0 : index
    %288 = vector.load %arg1[%c4_333, %c1_334, %c0_335, %c0_336] : memref<9x2x9x6xbf16, #tpu.memory_space<vmem>>, vector<1x1x8x3xbf16>
    %289 = vector.shape_cast %288 : vector<1x1x8x3xbf16> to vector<8x3xbf16>
    %c3_337 = arith.constant 3 : index
    %c0_338 = arith.constant 0 : index
    %c0_339 = arith.constant 0 : index
    %290 = vector.load %arg2[%c3_337, %c0_338, %c0_339] : memref<9x3x8xbf16, #tpu.memory_space<vmem>>, vector<1x3x8xbf16>
    %291 = vector.shape_cast %290 : vector<1x3x8xbf16> to vector<3x8xbf16>
    %cst_340 = arith.constant dense<0.000000e+00> : vector<8x8xf32>
    %292 = tpu.matmul %289, %291, %cst_340 {dimension_numbers = #tpu.dot_dimension_numbers<[1], [0], [0], [1], [0, 0, 1, 1], [], []>} : vector<8x3xbf16>, vector<3x8xbf16>, vector<8x8xf32> -> vector<8x8xf32>
    %293 = arith.addf %287, %292 : vector<8x8xf32>
    %c4_341 = arith.constant 4 : index
    %c1_342 = arith.constant 1 : index
    %c0_343 = arith.constant 0 : index
    %c3_344 = arith.constant 3 : index
    %294 = vector.load %arg1[%c4_341, %c1_342, %c0_343, %c3_344] : memref<9x2x9x6xbf16, #tpu.memory_space<vmem>>, vector<1x1x8x3xbf16>
    %295 = vector.shape_cast %294 : vector<1x1x8x3xbf16> to vector<8x3xbf16>
    %c4_345 = arith.constant 4 : index
    %c0_346 = arith.constant 0 : index
    %c0_347 = arith.constant 0 : index
    %296 = vector.load %arg2[%c4_345, %c0_346, %c0_347] : memref<9x3x8xbf16, #tpu.memory_space<vmem>>, vector<1x3x8xbf16>
    %297 = vector.shape_cast %296 : vector<1x3x8xbf16> to vector<3x8xbf16>
    %cst_348 = arith.constant dense<0.000000e+00> : vector<8x8xf32>
    %298 = tpu.matmul %295, %297, %cst_348 {dimension_numbers = #tpu.dot_dimension_numbers<[1], [0], [0], [1], [0, 0, 1, 1], [], []>} : vector<8x3xbf16>, vector<3x8xbf16>, vector<8x8xf32> -> vector<8x8xf32>
    %299 = arith.addf %293, %298 : vector<8x8xf32>
    %c4_349 = arith.constant 4 : index
    %c1_350 = arith.constant 1 : index
    %c1_351 = arith.constant 1 : index
    %c0_352 = arith.constant 0 : index
    %300 = vector.load %arg1[%c4_349, %c1_350, %c1_351, %c0_352] : memref<9x2x9x6xbf16, #tpu.memory_space<vmem>>, vector<1x1x8x3xbf16>
    %301 = vector.shape_cast %300 : vector<1x1x8x3xbf16> to vector<8x3xbf16>
    %c5_353 = arith.constant 5 : index
    %c0_354 = arith.constant 0 : index
    %c0_355 = arith.constant 0 : index
    %302 = vector.load %arg2[%c5_353, %c0_354, %c0_355] : memref<9x3x8xbf16, #tpu.memory_space<vmem>>, vector<1x3x8xbf16>
    %303 = vector.shape_cast %302 : vector<1x3x8xbf16> to vector<3x8xbf16>
    %cst_356 = arith.constant dense<0.000000e+00> : vector<8x8xf32>
    %304 = tpu.matmul %301, %303, %cst_356 {dimension_numbers = #tpu.dot_dimension_numbers<[1], [0], [0], [1], [0, 0, 1, 1], [], []>} : vector<8x3xbf16>, vector<3x8xbf16>, vector<8x8xf32> -> vector<8x8xf32>
    %305 = arith.addf %299, %304 : vector<8x8xf32>
    %c5_357 = arith.constant 5 : index
    %c0_358 = arith.constant 0 : index
    %c0_359 = arith.constant 0 : index
    %c0_360 = arith.constant 0 : index
    %306 = vector.load %arg1[%c5_357, %c0_358, %c0_359, %c0_360] : memref<9x2x9x6xbf16, #tpu.memory_space<vmem>>, vector<1x1x8x3xbf16>
    %307 = vector.shape_cast %306 : vector<1x1x8x3xbf16> to vector<8x3xbf16>
    %c6_361 = arith.constant 6 : index
    %c0_362 = arith.constant 0 : index
    %c0_363 = arith.constant 0 : index
    %308 = vector.load %arg2[%c6_361, %c0_362, %c0_363] : memref<9x3x8xbf16, #tpu.memory_space<vmem>>, vector<1x3x8xbf16>
    %309 = vector.shape_cast %308 : vector<1x3x8xbf16> to vector<3x8xbf16>
    %cst_364 = arith.constant dense<0.000000e+00> : vector<8x8xf32>
    %310 = tpu.matmul %307, %309, %cst_364 {dimension_numbers = #tpu.dot_dimension_numbers<[1], [0], [0], [1], [0, 0, 1, 1], [], []>} : vector<8x3xbf16>, vector<3x8xbf16>, vector<8x8xf32> -> vector<8x8xf32>
    %311 = arith.addf %305, %310 : vector<8x8xf32>
    %c5_365 = arith.constant 5 : index
    %c0_366 = arith.constant 0 : index
    %c0_367 = arith.constant 0 : index
    %c3_368 = arith.constant 3 : index
    %312 = vector.load %arg1[%c5_365, %c0_366, %c0_367, %c3_368] : memref<9x2x9x6xbf16, #tpu.memory_space<vmem>>, vector<1x1x8x3xbf16>
    %313 = vector.shape_cast %312 : vector<1x1x8x3xbf16> to vector<8x3xbf16>
    %c7_369 = arith.constant 7 : index
    %c0_370 = arith.constant 0 : index
    %c0_371 = arith.constant 0 : index
    %314 = vector.load %arg2[%c7_369, %c0_370, %c0_371] : memref<9x3x8xbf16, #tpu.memory_space<vmem>>, vector<1x3x8xbf16>
    %315 = vector.shape_cast %314 : vector<1x3x8xbf16> to vector<3x8xbf16>
    %cst_372 = arith.constant dense<0.000000e+00> : vector<8x8xf32>
    %316 = tpu.matmul %313, %315, %cst_372 {dimension_numbers = #tpu.dot_dimension_numbers<[1], [0], [0], [1], [0, 0, 1, 1], [], []>} : vector<8x3xbf16>, vector<3x8xbf16>, vector<8x8xf32> -> vector<8x8xf32>
    %317 = arith.addf %311, %316 : vector<8x8xf32>
    %c5_373 = arith.constant 5 : index
    %c0_374 = arith.constant 0 : index
    %c1_375 = arith.constant 1 : index
    %c0_376 = arith.constant 0 : index
    %318 = vector.load %arg1[%c5_373, %c0_374, %c1_375, %c0_376] : memref<9x2x9x6xbf16, #tpu.memory_space<vmem>>, vector<1x1x8x3xbf16>
    %319 = vector.shape_cast %318 : vector<1x1x8x3xbf16> to vector<8x3xbf16>
    %c8_377 = arith.constant 8 : index
    %c0_378 = arith.constant 0 : index
    %c0_379 = arith.constant 0 : index
    %320 = vector.load %arg2[%c8_377, %c0_378, %c0_379] : memref<9x3x8xbf16, #tpu.memory_space<vmem>>, vector<1x3x8xbf16>
    %321 = vector.shape_cast %320 : vector<1x3x8xbf16> to vector<3x8xbf16>
    %cst_380 = arith.constant dense<0.000000e+00> : vector<8x8xf32>
    %322 = tpu.matmul %319, %321, %cst_380 {dimension_numbers = #tpu.dot_dimension_numbers<[1], [0], [0], [1], [0, 0, 1, 1], [], []>} : vector<8x3xbf16>, vector<3x8xbf16>, vector<8x8xf32> -> vector<8x8xf32>
    %323 = arith.addf %317, %322 : vector<8x8xf32>
    %324 = vector.broadcast %0 : vector<1x8xf32> to vector<8x8xf32>
    %325 = arith.addf %323, %324 : vector<8x8xf32>
    %cst_381 = arith.constant 0.000000e+00 : f32
    %326 = vector.broadcast %cst_381 : f32 to vector<8x8xf32>
    %327 = arith.subf %326, %325 : vector<8x8xf32>
    %328 = math.exp %327 : vector<8x8xf32>
    %cst_382 = arith.constant 1.000000e+00 : f32
    %329 = vector.broadcast %cst_382 : f32 to vector<8x8xf32>
    %330 = arith.addf %329, %328 : vector<8x8xf32>
    %331 = tpu.reciprocal %330 {approx = true} : vector<8x8xf32> -> vector<8x8xf32>
    %332 = arith.mulf %325, %331 : vector<8x8xf32>
    %c0_383 = arith.constant 0 : index
    %c4_384 = arith.constant 4 : index
    %c0_385 = arith.constant 0 : index
    %c0_386 = arith.constant 0 : index
    %333 = vector.load %arg4[%c0_383, %c4_384, %c0_385, %c0_386] : memref<1x8x8x8xf32, #tpu.memory_space<vmem>>, vector<1x1x8x8xf32>
    %334 = vector.shape_cast %333 : vector<1x1x8x8xf32> to vector<8x8xf32>
    %335 = vector.shape_cast %332 : vector<8x8xf32> to vector<1x1x8x8xf32>
    tpu.vector_store %arg4[%c0_383, %c4_384, %c0_385, %c0_386], %335 {strides = array<i32>} : memref<1x8x8x8xf32, #tpu.memory_space<vmem>>, vector<1x1x8x8xf32>,
    %cst_387 = arith.constant 0.000000e+00 : f32
    %336 = vector.broadcast %cst_387 : f32 to vector<8x8xf32>
    %c5_388 = arith.constant 5 : index
    %c0_389 = arith.constant 0 : index
    %c0_390 = arith.constant 0 : index
    %c0_391 = arith.constant 0 : index
    %337 = vector.load %arg1[%c5_388, %c0_389, %c0_390, %c0_391] : memref<9x2x9x6xbf16, #tpu.memory_space<vmem>>, vector<1x1x8x3xbf16>
    %338 = vector.shape_cast %337 : vector<1x1x8x3xbf16> to vector<8x3xbf16>
    %c0_392 = arith.constant 0 : index
    %c0_393 = arith.constant 0 : index
    %c0_394 = arith.constant 0 : index
    %339 = vector.load %arg2[%c0_392, %c0_393, %c0_394] : memref<9x3x8xbf16, #tpu.memory_space<vmem>>, vector<1x3x8xbf16>
    %340 = vector.shape_cast %339 : vector<1x3x8xbf16> to vector<3x8xbf16>
    %cst_395 = arith.constant dense<0.000000e+00> : vector<8x8xf32>
    %341 = tpu.matmul %338, %340, %cst_395 {dimension_numbers = #tpu.dot_dimension_numbers<[1], [0], [0], [1], [0, 0, 1, 1], [], []>} : vector<8x3xbf16>, vector<3x8xbf16>, vector<8x8xf32> -> vector<8x8xf32>
    %342 = arith.addf %336, %341 : vector<8x8xf32>
    %c5_396 = arith.constant 5 : index
    %c0_397 = arith.constant 0 : index
    %c0_398 = arith.constant 0 : index
    %c3_399 = arith.constant 3 : index
    %343 = vector.load %arg1[%c5_396, %c0_397, %c0_398, %c3_399] : memref<9x2x9x6xbf16, #tpu.memory_space<vmem>>, vector<1x1x8x3xbf16>
    %344 = vector.shape_cast %343 : vector<1x1x8x3xbf16> to vector<8x3xbf16>
    %c1_400 = arith.constant 1 : index
    %c0_401 = arith.constant 0 : index
    %c0_402 = arith.constant 0 : index
    %345 = vector.load %arg2[%c1_400, %c0_401, %c0_402] : memref<9x3x8xbf16, #tpu.memory_space<vmem>>, vector<1x3x8xbf16>
    %346 = vector.shape_cast %345 : vector<1x3x8xbf16> to vector<3x8xbf16>
    %cst_403 = arith.constant dense<0.000000e+00> : vector<8x8xf32>
    %347 = tpu.matmul %344, %346, %cst_403 {dimension_numbers = #tpu.dot_dimension_numbers<[1], [0], [0], [1], [0, 0, 1, 1], [], []>} : vector<8x3xbf16>, vector<3x8xbf16>, vector<8x8xf32> -> vector<8x8xf32>
    %348 = arith.addf %342, %347 : vector<8x8xf32>
    %c5_404 = arith.constant 5 : index
    %c0_405 = arith.constant 0 : index
    %c1_406 = arith.constant 1 : index
    %c0_407 = arith.constant 0 : index
    %349 = vector.load %arg1[%c5_404, %c0_405, %c1_406, %c0_407] : memref<9x2x9x6xbf16, #tpu.memory_space<vmem>>, vector<1x1x8x3xbf16>
    %350 = vector.shape_cast %349 : vector<1x1x8x3xbf16> to vector<8x3xbf16>
    %c2_408 = arith.constant 2 : index
    %c0_409 = arith.constant 0 : index
    %c0_410 = arith.constant 0 : index
    %351 = vector.load %arg2[%c2_408, %c0_409, %c0_410] : memref<9x3x8xbf16, #tpu.memory_space<vmem>>, vector<1x3x8xbf16>
    %352 = vector.shape_cast %351 : vector<1x3x8xbf16> to vector<3x8xbf16>
    %cst_411 = arith.constant dense<0.000000e+00> : vector<8x8xf32>
    %353 = tpu.matmul %350, %352, %cst_411 {dimension_numbers = #tpu.dot_dimension_numbers<[1], [0], [0], [1], [0, 0, 1, 1], [], []>} : vector<8x3xbf16>, vector<3x8xbf16>, vector<8x8xf32> -> vector<8x8xf32>
    %354 = arith.addf %348, %353 : vector<8x8xf32>
    %c5_412 = arith.constant 5 : index
    %c1_413 = arith.constant 1 : index
    %c0_414 = arith.constant 0 : index
    %c0_415 = arith.constant 0 : index
    %355 = vector.load %arg1[%c5_412, %c1_413, %c0_414, %c0_415] : memref<9x2x9x6xbf16, #tpu.memory_space<vmem>>, vector<1x1x8x3xbf16>
    %356 = vector.shape_cast %355 : vector<1x1x8x3xbf16> to vector<8x3xbf16>
    %c3_416 = arith.constant 3 : index
    %c0_417 = arith.constant 0 : index
    %c0_418 = arith.constant 0 : index
    %357 = vector.load %arg2[%c3_416, %c0_417, %c0_418] : memref<9x3x8xbf16, #tpu.memory_space<vmem>>, vector<1x3x8xbf16>
    %358 = vector.shape_cast %357 : vector<1x3x8xbf16> to vector<3x8xbf16>
    %cst_419 = arith.constant dense<0.000000e+00> : vector<8x8xf32>
    %359 = tpu.matmul %356, %358, %cst_419 {dimension_numbers = #tpu.dot_dimension_numbers<[1], [0], [0], [1], [0, 0, 1, 1], [], []>} : vector<8x3xbf16>, vector<3x8xbf16>, vector<8x8xf32> -> vector<8x8xf32>
    %360 = arith.addf %354, %359 : vector<8x8xf32>
    %c5_420 = arith.constant 5 : index
    %c1_421 = arith.constant 1 : index
    %c0_422 = arith.constant 0 : index
    %c3_423 = arith.constant 3 : index
    %361 = vector.load %arg1[%c5_420, %c1_421, %c0_422, %c3_423] : memref<9x2x9x6xbf16, #tpu.memory_space<vmem>>, vector<1x1x8x3xbf16>
    %362 = vector.shape_cast %361 : vector<1x1x8x3xbf16> to vector<8x3xbf16>
    %c4_424 = arith.constant 4 : index
    %c0_425 = arith.constant 0 : index
    %c0_426 = arith.constant 0 : index
    %363 = vector.load %arg2[%c4_424, %c0_425, %c0_426] : memref<9x3x8xbf16, #tpu.memory_space<vmem>>, vector<1x3x8xbf16>
    %364 = vector.shape_cast %363 : vector<1x3x8xbf16> to vector<3x8xbf16>
    %cst_427 = arith.constant dense<0.000000e+00> : vector<8x8xf32>
    %365 = tpu.matmul %362, %364, %cst_427 {dimension_numbers = #tpu.dot_dimension_numbers<[1], [0], [0], [1], [0, 0, 1, 1], [], []>} : vector<8x3xbf16>, vector<3x8xbf16>, vector<8x8xf32> -> vector<8x8xf32>
    %366 = arith.addf %360, %365 : vector<8x8xf32>
    %c5_428 = arith.constant 5 : index
    %c1_429 = arith.constant 1 : index
    %c1_430 = arith.constant 1 : index
    %c0_431 = arith.constant 0 : index
    %367 = vector.load %arg1[%c5_428, %c1_429, %c1_430, %c0_431] : memref<9x2x9x6xbf16, #tpu.memory_space<vmem>>, vector<1x1x8x3xbf16>
    %368 = vector.shape_cast %367 : vector<1x1x8x3xbf16> to vector<8x3xbf16>
    %c5_432 = arith.constant 5 : index
    %c0_433 = arith.constant 0 : index
    %c0_434 = arith.constant 0 : index
    %369 = vector.load %arg2[%c5_432, %c0_433, %c0_434] : memref<9x3x8xbf16, #tpu.memory_space<vmem>>, vector<1x3x8xbf16>
    %370 = vector.shape_cast %369 : vector<1x3x8xbf16> to vector<3x8xbf16>
    %cst_435 = arith.constant dense<0.000000e+00> : vector<8x8xf32>
    %371 = tpu.matmul %368, %370, %cst_435 {dimension_numbers = #tpu.dot_dimension_numbers<[1], [0], [0], [1], [0, 0, 1, 1], [], []>} : vector<8x3xbf16>, vector<3x8xbf16>, vector<8x8xf32> -> vector<8x8xf32>
    %372 = arith.addf %366, %371 : vector<8x8xf32>
    %c6_436 = arith.constant 6 : index
    %c0_437 = arith.constant 0 : index
    %c0_438 = arith.constant 0 : index
    %c0_439 = arith.constant 0 : index
    %373 = vector.load %arg1[%c6_436, %c0_437, %c0_438, %c0_439] : memref<9x2x9x6xbf16, #tpu.memory_space<vmem>>, vector<1x1x8x3xbf16>
    %374 = vector.shape_cast %373 : vector<1x1x8x3xbf16> to vector<8x3xbf16>
    %c6_440 = arith.constant 6 : index
    %c0_441 = arith.constant 0 : index
    %c0_442 = arith.constant 0 : index
    %375 = vector.load %arg2[%c6_440, %c0_441, %c0_442] : memref<9x3x8xbf16, #tpu.memory_space<vmem>>, vector<1x3x8xbf16>
    %376 = vector.shape_cast %375 : vector<1x3x8xbf16> to vector<3x8xbf16>
    %cst_443 = arith.constant dense<0.000000e+00> : vector<8x8xf32>
    %377 = tpu.matmul %374, %376, %cst_443 {dimension_numbers = #tpu.dot_dimension_numbers<[1], [0], [0], [1], [0, 0, 1, 1], [], []>} : vector<8x3xbf16>, vector<3x8xbf16>, vector<8x8xf32> -> vector<8x8xf32>
    %378 = arith.addf %372, %377 : vector<8x8xf32>
    %c6_444 = arith.constant 6 : index
    %c0_445 = arith.constant 0 : index
    %c0_446 = arith.constant 0 : index
    %c3_447 = arith.constant 3 : index
    %379 = vector.load %arg1[%c6_444, %c0_445, %c0_446, %c3_447] : memref<9x2x9x6xbf16, #tpu.memory_space<vmem>>, vector<1x1x8x3xbf16>
    %380 = vector.shape_cast %379 : vector<1x1x8x3xbf16> to vector<8x3xbf16>
    %c7_448 = arith.constant 7 : index
    %c0_449 = arith.constant 0 : index
    %c0_450 = arith.constant 0 : index
    %381 = vector.load %arg2[%c7_448, %c0_449, %c0_450] : memref<9x3x8xbf16, #tpu.memory_space<vmem>>, vector<1x3x8xbf16>
    %382 = vector.shape_cast %381 : vector<1x3x8xbf16> to vector<3x8xbf16>
    %cst_451 = arith.constant dense<0.000000e+00> : vector<8x8xf32>
    %383 = tpu.matmul %380, %382, %cst_451 {dimension_numbers = #tpu.dot_dimension_numbers<[1], [0], [0], [1], [0, 0, 1, 1], [], []>} : vector<8x3xbf16>, vector<3x8xbf16>, vector<8x8xf32> -> vector<8x8xf32>
    %384 = arith.addf %378, %383 : vector<8x8xf32>
    %c6_452 = arith.constant 6 : index
    %c0_453 = arith.constant 0 : index
    %c1_454 = arith.constant 1 : index
    %c0_455 = arith.constant 0 : index
    %385 = vector.load %arg1[%c6_452, %c0_453, %c1_454, %c0_455] : memref<9x2x9x6xbf16, #tpu.memory_space<vmem>>, vector<1x1x8x3xbf16>
    %386 = vector.shape_cast %385 : vector<1x1x8x3xbf16> to vector<8x3xbf16>
    %c8_456 = arith.constant 8 : index
    %c0_457 = arith.constant 0 : index
    %c0_458 = arith.constant 0 : index
    %387 = vector.load %arg2[%c8_456, %c0_457, %c0_458] : memref<9x3x8xbf16, #tpu.memory_space<vmem>>, vector<1x3x8xbf16>
    %388 = vector.shape_cast %387 : vector<1x3x8xbf16> to vector<3x8xbf16>
    %cst_459 = arith.constant dense<0.000000e+00> : vector<8x8xf32>
    %389 = tpu.matmul %386, %388, %cst_459 {dimension_numbers = #tpu.dot_dimension_numbers<[1], [0], [0], [1], [0, 0, 1, 1], [], []>} : vector<8x3xbf16>, vector<3x8xbf16>, vector<8x8xf32> -> vector<8x8xf32>
    %390 = arith.addf %384, %389 : vector<8x8xf32>
    %391 = vector.broadcast %0 : vector<1x8xf32> to vector<8x8xf32>
    %392 = arith.addf %390, %391 : vector<8x8xf32>
    %cst_460 = arith.constant 0.000000e+00 : f32
    %393 = vector.broadcast %cst_460 : f32 to vector<8x8xf32>
    %394 = arith.subf %393, %392 : vector<8x8xf32>
    %395 = math.exp %394 : vector<8x8xf32>
    %cst_461 = arith.constant 1.000000e+00 : f32
    %396 = vector.broadcast %cst_461 : f32 to vector<8x8xf32>
    %397 = arith.addf %396, %395 : vector<8x8xf32>
    %398 = tpu.reciprocal %397 {approx = true} : vector<8x8xf32> -> vector<8x8xf32>
    %399 = arith.mulf %392, %398 : vector<8x8xf32>
    %c0_462 = arith.constant 0 : index
    %c5_463 = arith.constant 5 : index
    %c0_464 = arith.constant 0 : index
    %c0_465 = arith.constant 0 : index
    %400 = vector.load %arg4[%c0_462, %c5_463, %c0_464, %c0_465] : memref<1x8x8x8xf32, #tpu.memory_space<vmem>>, vector<1x1x8x8xf32>
    %401 = vector.shape_cast %400 : vector<1x1x8x8xf32> to vector<8x8xf32>
    %402 = vector.shape_cast %399 : vector<8x8xf32> to vector<1x1x8x8xf32>
    tpu.vector_store %arg4[%c0_462, %c5_463, %c0_464, %c0_465], %402 {strides = array<i32>} : memref<1x8x8x8xf32, #tpu.memory_space<vmem>>, vector<1x1x8x8xf32>,
    %cst_466 = arith.constant 0.000000e+00 : f32
    %403 = vector.broadcast %cst_466 : f32 to vector<8x8xf32>
    %c6_467 = arith.constant 6 : index
    %c0_468 = arith.constant 0 : index
    %c0_469 = arith.constant 0 : index
    %c0_470 = arith.constant 0 : index
    %404 = vector.load %arg1[%c6_467, %c0_468, %c0_469, %c0_470] : memref<9x2x9x6xbf16, #tpu.memory_space<vmem>>, vector<1x1x8x3xbf16>
    %405 = vector.shape_cast %404 : vector<1x1x8x3xbf16> to vector<8x3xbf16>
    %c0_471 = arith.constant 0 : index
    %c0_472 = arith.constant 0 : index
    %c0_473 = arith.constant 0 : index
    %406 = vector.load %arg2[%c0_471, %c0_472, %c0_473] : memref<9x3x8xbf16, #tpu.memory_space<vmem>>, vector<1x3x8xbf16>
    %407 = vector.shape_cast %406 : vector<1x3x8xbf16> to vector<3x8xbf16>
    %cst_474 = arith.constant dense<0.000000e+00> : vector<8x8xf32>
    %408 = tpu.matmul %405, %407, %cst_474 {dimension_numbers = #tpu.dot_dimension_numbers<[1], [0], [0], [1], [0, 0, 1, 1], [], []>} : vector<8x3xbf16>, vector<3x8xbf16>, vector<8x8xf32> -> vector<8x8xf32>
    %409 = arith.addf %403, %408 : vector<8x8xf32>
    %c6_475 = arith.constant 6 : index
    %c0_476 = arith.constant 0 : index
    %c0_477 = arith.constant 0 : index
    %c3_478 = arith.constant 3 : index
    %410 = vector.load %arg1[%c6_475, %c0_476, %c0_477, %c3_478] : memref<9x2x9x6xbf16, #tpu.memory_space<vmem>>, vector<1x1x8x3xbf16>
    %411 = vector.shape_cast %410 : vector<1x1x8x3xbf16> to vector<8x3xbf16>
    %c1_479 = arith.constant 1 : index
    %c0_480 = arith.constant 0 : index
    %c0_481 = arith.constant 0 : index
    %412 = vector.load %arg2[%c1_479, %c0_480, %c0_481] : memref<9x3x8xbf16, #tpu.memory_space<vmem>>, vector<1x3x8xbf16>
    %413 = vector.shape_cast %412 : vector<1x3x8xbf16> to vector<3x8xbf16>
    %cst_482 = arith.constant dense<0.000000e+00> : vector<8x8xf32>
    %414 = tpu.matmul %411, %413, %cst_482 {dimension_numbers = #tpu.dot_dimension_numbers<[1], [0], [0], [1], [0, 0, 1, 1], [], []>} : vector<8x3xbf16>, vector<3x8xbf16>, vector<8x8xf32> -> vector<8x8xf32>
    %415 = arith.addf %409, %414 : vector<8x8xf32>
    %c6_483 = arith.constant 6 : index
    %c0_484 = arith.constant 0 : index
    %c1_485 = arith.constant 1 : index
    %c0_486 = arith.constant 0 : index
    %416 = vector.load %arg1[%c6_483, %c0_484, %c1_485, %c0_486] : memref<9x2x9x6xbf16, #tpu.memory_space<vmem>>, vector<1x1x8x3xbf16>
    %417 = vector.shape_cast %416 : vector<1x1x8x3xbf16> to vector<8x3xbf16>
    %c2_487 = arith.constant 2 : index
    %c0_488 = arith.constant 0 : index
    %c0_489 = arith.constant 0 : index
    %418 = vector.load %arg2[%c2_487, %c0_488, %c0_489] : memref<9x3x8xbf16, #tpu.memory_space<vmem>>, vector<1x3x8xbf16>
    %419 = vector.shape_cast %418 : vector<1x3x8xbf16> to vector<3x8xbf16>
    %cst_490 = arith.constant dense<0.000000e+00> : vector<8x8xf32>
    %420 = tpu.matmul %417, %419, %cst_490 {dimension_numbers = #tpu.dot_dimension_numbers<[1], [0], [0], [1], [0, 0, 1, 1], [], []>} : vector<8x3xbf16>, vector<3x8xbf16>, vector<8x8xf32> -> vector<8x8xf32>
    %421 = arith.addf %415, %420 : vector<8x8xf32>
    %c6_491 = arith.constant 6 : index
    %c1_492 = arith.constant 1 : index
    %c0_493 = arith.constant 0 : index
    %c0_494 = arith.constant 0 : index
    %422 = vector.load %arg1[%c6_491, %c1_492, %c0_493, %c0_494] : memref<9x2x9x6xbf16, #tpu.memory_space<vmem>>, vector<1x1x8x3xbf16>
    %423 = vector.shape_cast %422 : vector<1x1x8x3xbf16> to vector<8x3xbf16>
    %c3_495 = arith.constant 3 : index
    %c0_496 = arith.constant 0 : index
    %c0_497 = arith.constant 0 : index
    %424 = vector.load %arg2[%c3_495, %c0_496, %c0_497] : memref<9x3x8xbf16, #tpu.memory_space<vmem>>, vector<1x3x8xbf16>
    %425 = vector.shape_cast %424 : vector<1x3x8xbf16> to vector<3x8xbf16>
    %cst_498 = arith.constant dense<0.000000e+00> : vector<8x8xf32>
    %426 = tpu.matmul %423, %425, %cst_498 {dimension_numbers = #tpu.dot_dimension_numbers<[1], [0], [0], [1], [0, 0, 1, 1], [], []>} : vector<8x3xbf16>, vector<3x8xbf16>, vector<8x8xf32> -> vector<8x8xf32>
    %427 = arith.addf %421, %426 : vector<8x8xf32>
    %c6_499 = arith.constant 6 : index
    %c1_500 = arith.constant 1 : index
    %c0_501 = arith.constant 0 : index
    %c3_502 = arith.constant 3 : index
    %428 = vector.load %arg1[%c6_499, %c1_500, %c0_501, %c3_502] : memref<9x2x9x6xbf16, #tpu.memory_space<vmem>>, vector<1x1x8x3xbf16>
    %429 = vector.shape_cast %428 : vector<1x1x8x3xbf16> to vector<8x3xbf16>
    %c4_503 = arith.constant 4 : index
    %c0_504 = arith.constant 0 : index
    %c0_505 = arith.constant 0 : index
    %430 = vector.load %arg2[%c4_503, %c0_504, %c0_505] : memref<9x3x8xbf16, #tpu.memory_space<vmem>>, vector<1x3x8xbf16>
    %431 = vector.shape_cast %430 : vector<1x3x8xbf16> to vector<3x8xbf16>
    %cst_506 = arith.constant dense<0.000000e+00> : vector<8x8xf32>
    %432 = tpu.matmul %429, %431, %cst_506 {dimension_numbers = #tpu.dot_dimension_numbers<[1], [0], [0], [1], [0, 0, 1, 1], [], []>} : vector<8x3xbf16>, vector<3x8xbf16>, vector<8x8xf32> -> vector<8x8xf32>
    %433 = arith.addf %427, %432 : vector<8x8xf32>
    %c6_507 = arith.constant 6 : index
    %c1_508 = arith.constant 1 : index
    %c1_509 = arith.constant 1 : index
    %c0_510 = arith.constant 0 : index
    %434 = vector.load %arg1[%c6_507, %c1_508, %c1_509, %c0_510] : memref<9x2x9x6xbf16, #tpu.memory_space<vmem>>, vector<1x1x8x3xbf16>
    %435 = vector.shape_cast %434 : vector<1x1x8x3xbf16> to vector<8x3xbf16>
    %c5_511 = arith.constant 5 : index
    %c0_512 = arith.constant 0 : index
    %c0_513 = arith.constant 0 : index
    %436 = vector.load %arg2[%c5_511, %c0_512, %c0_513] : memref<9x3x8xbf16, #tpu.memory_space<vmem>>, vector<1x3x8xbf16>
    %437 = vector.shape_cast %436 : vector<1x3x8xbf16> to vector<3x8xbf16>
    %cst_514 = arith.constant dense<0.000000e+00> : vector<8x8xf32>
    %438 = tpu.matmul %435, %437, %cst_514 {dimension_numbers = #tpu.dot_dimension_numbers<[1], [0], [0], [1], [0, 0, 1, 1], [], []>} : vector<8x3xbf16>, vector<3x8xbf16>, vector<8x8xf32> -> vector<8x8xf32>
    %439 = arith.addf %433, %438 : vector<8x8xf32>
    %c7_515 = arith.constant 7 : index
    %c0_516 = arith.constant 0 : index
    %c0_517 = arith.constant 0 : index
    %c0_518 = arith.constant 0 : index
    %440 = vector.load %arg1[%c7_515, %c0_516, %c0_517, %c0_518] : memref<9x2x9x6xbf16, #tpu.memory_space<vmem>>, vector<1x1x8x3xbf16>
    %441 = vector.shape_cast %440 : vector<1x1x8x3xbf16> to vector<8x3xbf16>
    %c6_519 = arith.constant 6 : index
    %c0_520 = arith.constant 0 : index
    %c0_521 = arith.constant 0 : index
    %442 = vector.load %arg2[%c6_519, %c0_520, %c0_521] : memref<9x3x8xbf16, #tpu.memory_space<vmem>>, vector<1x3x8xbf16>
    %443 = vector.shape_cast %442 : vector<1x3x8xbf16> to vector<3x8xbf16>
    %cst_522 = arith.constant dense<0.000000e+00> : vector<8x8xf32>
    %444 = tpu.matmul %441, %443, %cst_522 {dimension_numbers = #tpu.dot_dimension_numbers<[1], [0], [0], [1], [0, 0, 1, 1], [], []>} : vector<8x3xbf16>, vector<3x8xbf16>, vector<8x8xf32> -> vector<8x8xf32>
    %445 = arith.addf %439, %444 : vector<8x8xf32>
    %c7_523 = arith.constant 7 : index
    %c0_524 = arith.constant 0 : index
    %c0_525 = arith.constant 0 : index
    %c3_526 = arith.constant 3 : index
    %446 = vector.load %arg1[%c7_523, %c0_524, %c0_525, %c3_526] : memref<9x2x9x6xbf16, #tpu.memory_space<vmem>>, vector<1x1x8x3xbf16>
    %447 = vector.shape_cast %446 : vector<1x1x8x3xbf16> to vector<8x3xbf16>
    %c7_527 = arith.constant 7 : index
    %c0_528 = arith.constant 0 : index
    %c0_529 = arith.constant 0 : index
    %448 = vector.load %arg2[%c7_527, %c0_528, %c0_529] : memref<9x3x8xbf16, #tpu.memory_space<vmem>>, vector<1x3x8xbf16>
    %449 = vector.shape_cast %448 : vector<1x3x8xbf16> to vector<3x8xbf16>
    %cst_530 = arith.constant dense<0.000000e+00> : vector<8x8xf32>
    %450 = tpu.matmul %447, %449, %cst_530 {dimension_numbers = #tpu.dot_dimension_numbers<[1], [0], [0], [1], [0, 0, 1, 1], [], []>} : vector<8x3xbf16>, vector<3x8xbf16>, vector<8x8xf32> -> vector<8x8xf32>
    %451 = arith.addf %445, %450 : vector<8x8xf32>
    %c7_531 = arith.constant 7 : index
    %c0_532 = arith.constant 0 : index
    %c1_533 = arith.constant 1 : index
    %c0_534 = arith.constant 0 : index
    %452 = vector.load %arg1[%c7_531, %c0_532, %c1_533, %c0_534] : memref<9x2x9x6xbf16, #tpu.memory_space<vmem>>, vector<1x1x8x3xbf16>
    %453 = vector.shape_cast %452 : vector<1x1x8x3xbf16> to vector<8x3xbf16>
    %c8_535 = arith.constant 8 : index
    %c0_536 = arith.constant 0 : index
    %c0_537 = arith.constant 0 : index
    %454 = vector.load %arg2[%c8_535, %c0_536, %c0_537] : memref<9x3x8xbf16, #tpu.memory_space<vmem>>, vector<1x3x8xbf16>
    %455 = vector.shape_cast %454 : vector<1x3x8xbf16> to vector<3x8xbf16>
    %cst_538 = arith.constant dense<0.000000e+00> : vector<8x8xf32>
    %456 = tpu.matmul %453, %455, %cst_538 {dimension_numbers = #tpu.dot_dimension_numbers<[1], [0], [0], [1], [0, 0, 1, 1], [], []>} : vector<8x3xbf16>, vector<3x8xbf16>, vector<8x8xf32> -> vector<8x8xf32>
    %457 = arith.addf %451, %456 : vector<8x8xf32>
    %458 = vector.broadcast %0 : vector<1x8xf32> to vector<8x8xf32>
    %459 = arith.addf %457, %458 : vector<8x8xf32>
    %cst_539 = arith.constant 0.000000e+00 : f32
    %460 = vector.broadcast %cst_539 : f32 to vector<8x8xf32>
    %461 = arith.subf %460, %459 : vector<8x8xf32>
    %462 = math.exp %461 : vector<8x8xf32>
    %cst_540 = arith.constant 1.000000e+00 : f32
    %463 = vector.broadcast %cst_540 : f32 to vector<8x8xf32>
    %464 = arith.addf %463, %462 : vector<8x8xf32>
    %465 = tpu.reciprocal %464 {approx = true} : vector<8x8xf32> -> vector<8x8xf32>
    %466 = arith.mulf %459, %465 : vector<8x8xf32>
    %c0_541 = arith.constant 0 : index
    %c6_542 = arith.constant 6 : index
    %c0_543 = arith.constant 0 : index
    %c0_544 = arith.constant 0 : index
    %467 = vector.load %arg4[%c0_541, %c6_542, %c0_543, %c0_544] : memref<1x8x8x8xf32, #tpu.memory_space<vmem>>, vector<1x1x8x8xf32>
    %468 = vector.shape_cast %467 : vector<1x1x8x8xf32> to vector<8x8xf32>
    %469 = vector.shape_cast %466 : vector<8x8xf32> to vector<1x1x8x8xf32>
    tpu.vector_store %arg4[%c0_541, %c6_542, %c0_543, %c0_544], %469 {strides = array<i32>} : memref<1x8x8x8xf32, #tpu.memory_space<vmem>>, vector<1x1x8x8xf32>,
    %cst_545 = arith.constant 0.000000e+00 : f32
    %470 = vector.broadcast %cst_545 : f32 to vector<8x8xf32>
    %c7_546 = arith.constant 7 : index
    %c0_547 = arith.constant 0 : index
    %c0_548 = arith.constant 0 : index
    %c0_549 = arith.constant 0 : index
    %471 = vector.load %arg1[%c7_546, %c0_547, %c0_548, %c0_549] : memref<9x2x9x6xbf16, #tpu.memory_space<vmem>>, vector<1x1x8x3xbf16>
    %472 = vector.shape_cast %471 : vector<1x1x8x3xbf16> to vector<8x3xbf16>
    %c0_550 = arith.constant 0 : index
    %c0_551 = arith.constant 0 : index
    %c0_552 = arith.constant 0 : index
    %473 = vector.load %arg2[%c0_550, %c0_551, %c0_552] : memref<9x3x8xbf16, #tpu.memory_space<vmem>>, vector<1x3x8xbf16>
    %474 = vector.shape_cast %473 : vector<1x3x8xbf16> to vector<3x8xbf16>
    %cst_553 = arith.constant dense<0.000000e+00> : vector<8x8xf32>
    %475 = tpu.matmul %472, %474, %cst_553 {dimension_numbers = #tpu.dot_dimension_numbers<[1], [0], [0], [1], [0, 0, 1, 1], [], []>} : vector<8x3xbf16>, vector<3x8xbf16>, vector<8x8xf32> -> vector<8x8xf32>
    %476 = arith.addf %470, %475 : vector<8x8xf32>
    %c7_554 = arith.constant 7 : index
    %c0_555 = arith.constant 0 : index
    %c0_556 = arith.constant 0 : index
    %c3_557 = arith.constant 3 : index
    %477 = vector.load %arg1[%c7_554, %c0_555, %c0_556, %c3_557] : memref<9x2x9x6xbf16, #tpu.memory_space<vmem>>, vector<1x1x8x3xbf16>
    %478 = vector.shape_cast %477 : vector<1x1x8x3xbf16> to vector<8x3xbf16>
    %c1_558 = arith.constant 1 : index
    %c0_559 = arith.constant 0 : index
    %c0_560 = arith.constant 0 : index
    %479 = vector.load %arg2[%c1_558, %c0_559, %c0_560] : memref<9x3x8xbf16, #tpu.memory_space<vmem>>, vector<1x3x8xbf16>
    %480 = vector.shape_cast %479 : vector<1x3x8xbf16> to vector<3x8xbf16>
    %cst_561 = arith.constant dense<0.000000e+00> : vector<8x8xf32>
    %481 = tpu.matmul %478, %480, %cst_561 {dimension_numbers = #tpu.dot_dimension_numbers<[1], [0], [0], [1], [0, 0, 1, 1], [], []>} : vector<8x3xbf16>, vector<3x8xbf16>, vector<8x8xf32> -> vector<8x8xf32>
    %482 = arith.addf %476, %481 : vector<8x8xf32>
    %c7_562 = arith.constant 7 : index
    %c0_563 = arith.constant 0 : index
    %c1_564 = arith.constant 1 : index
    %c0_565 = arith.constant 0 : index
    %483 = vector.load %arg1[%c7_562, %c0_563, %c1_564, %c0_565] : memref<9x2x9x6xbf16, #tpu.memory_space<vmem>>, vector<1x1x8x3xbf16>
    %484 = vector.shape_cast %483 : vector<1x1x8x3xbf16> to vector<8x3xbf16>
    %c2_566 = arith.constant 2 : index
    %c0_567 = arith.constant 0 : index
    %c0_568 = arith.constant 0 : index
    %485 = vector.load %arg2[%c2_566, %c0_567, %c0_568] : memref<9x3x8xbf16, #tpu.memory_space<vmem>>, vector<1x3x8xbf16>
    %486 = vector.shape_cast %485 : vector<1x3x8xbf16> to vector<3x8xbf16>
    %cst_569 = arith.constant dense<0.000000e+00> : vector<8x8xf32>
    %487 = tpu.matmul %484, %486, %cst_569 {dimension_numbers = #tpu.dot_dimension_numbers<[1], [0], [0], [1], [0, 0, 1, 1], [], []>} : vector<8x3xbf16>, vector<3x8xbf16>, vector<8x8xf32> -> vector<8x8xf32>
    %488 = arith.addf %482, %487 : vector<8x8xf32>
    %c7_570 = arith.constant 7 : index
    %c1_571 = arith.constant 1 : index
    %c0_572 = arith.constant 0 : index
    %c0_573 = arith.constant 0 : index
    %489 = vector.load %arg1[%c7_570, %c1_571, %c0_572, %c0_573] : memref<9x2x9x6xbf16, #tpu.memory_space<vmem>>, vector<1x1x8x3xbf16>
    %490 = vector.shape_cast %489 : vector<1x1x8x3xbf16> to vector<8x3xbf16>
    %c3_574 = arith.constant 3 : index
    %c0_575 = arith.constant 0 : index
    %c0_576 = arith.constant 0 : index
    %491 = vector.load %arg2[%c3_574, %c0_575, %c0_576] : memref<9x3x8xbf16, #tpu.memory_space<vmem>>, vector<1x3x8xbf16>
    %492 = vector.shape_cast %491 : vector<1x3x8xbf16> to vector<3x8xbf16>
    %cst_577 = arith.constant dense<0.000000e+00> : vector<8x8xf32>
    %493 = tpu.matmul %490, %492, %cst_577 {dimension_numbers = #tpu.dot_dimension_numbers<[1], [0], [0], [1], [0, 0, 1, 1], [], []>} : vector<8x3xbf16>, vector<3x8xbf16>, vector<8x8xf32> -> vector<8x8xf32>
    %494 = arith.addf %488, %493 : vector<8x8xf32>
    %c7_578 = arith.constant 7 : index
    %c1_579 = arith.constant 1 : index
    %c0_580 = arith.constant 0 : index
    %c3_581 = arith.constant 3 : index
    %495 = vector.load %arg1[%c7_578, %c1_579, %c0_580, %c3_581] : memref<9x2x9x6xbf16, #tpu.memory_space<vmem>>, vector<1x1x8x3xbf16>
    %496 = vector.shape_cast %495 : vector<1x1x8x3xbf16> to vector<8x3xbf16>
    %c4_582 = arith.constant 4 : index
    %c0_583 = arith.constant 0 : index
    %c0_584 = arith.constant 0 : index
    %497 = vector.load %arg2[%c4_582, %c0_583, %c0_584] : memref<9x3x8xbf16, #tpu.memory_space<vmem>>, vector<1x3x8xbf16>
    %498 = vector.shape_cast %497 : vector<1x3x8xbf16> to vector<3x8xbf16>
    %cst_585 = arith.constant dense<0.000000e+00> : vector<8x8xf32>
    %499 = tpu.matmul %496, %498, %cst_585 {dimension_numbers = #tpu.dot_dimension_numbers<[1], [0], [0], [1], [0, 0, 1, 1], [], []>} : vector<8x3xbf16>, vector<3x8xbf16>, vector<8x8xf32> -> vector<8x8xf32>
    %500 = arith.addf %494, %499 : vector<8x8xf32>
    %c7_586 = arith.constant 7 : index
    %c1_587 = arith.constant 1 : index
    %c1_588 = arith.constant 1 : index
    %c0_589 = arith.constant 0 : index
    %501 = vector.load %arg1[%c7_586, %c1_587, %c1_588, %c0_589] : memref<9x2x9x6xbf16, #tpu.memory_space<vmem>>, vector<1x1x8x3xbf16>
    %502 = vector.shape_cast %501 : vector<1x1x8x3xbf16> to vector<8x3xbf16>
    %c5_590 = arith.constant 5 : index
    %c0_591 = arith.constant 0 : index
    %c0_592 = arith.constant 0 : index
    %503 = vector.load %arg2[%c5_590, %c0_591, %c0_592] : memref<9x3x8xbf16, #tpu.memory_space<vmem>>, vector<1x3x8xbf16>
    %504 = vector.shape_cast %503 : vector<1x3x8xbf16> to vector<3x8xbf16>
    %cst_593 = arith.constant dense<0.000000e+00> : vector<8x8xf32>
    %505 = tpu.matmul %502, %504, %cst_593 {dimension_numbers = #tpu.dot_dimension_numbers<[1], [0], [0], [1], [0, 0, 1, 1], [], []>} : vector<8x3xbf16>, vector<3x8xbf16>, vector<8x8xf32> -> vector<8x8xf32>
    %506 = arith.addf %500, %505 : vector<8x8xf32>
    %c8_594 = arith.constant 8 : index
    %c0_595 = arith.constant 0 : index
    %c0_596 = arith.constant 0 : index
    %c0_597 = arith.constant 0 : index
    %507 = vector.load %arg1[%c8_594, %c0_595, %c0_596, %c0_597] : memref<9x2x9x6xbf16, #tpu.memory_space<vmem>>, vector<1x1x8x3xbf16>
    %508 = vector.shape_cast %507 : vector<1x1x8x3xbf16> to vector<8x3xbf16>
    %c6_598 = arith.constant 6 : index
    %c0_599 = arith.constant 0 : index
    %c0_600 = arith.constant 0 : index
    %509 = vector.load %arg2[%c6_598, %c0_599, %c0_600] : memref<9x3x8xbf16, #tpu.memory_space<vmem>>, vector<1x3x8xbf16>
    %510 = vector.shape_cast %509 : vector<1x3x8xbf16> to vector<3x8xbf16>
    %cst_601 = arith.constant dense<0.000000e+00> : vector<8x8xf32>
    %511 = tpu.matmul %508, %510, %cst_601 {dimension_numbers = #tpu.dot_dimension_numbers<[1], [0], [0], [1], [0, 0, 1, 1], [], []>} : vector<8x3xbf16>, vector<3x8xbf16>, vector<8x8xf32> -> vector<8x8xf32>
    %512 = arith.addf %506, %511 : vector<8x8xf32>
    %c8_602 = arith.constant 8 : index
    %c0_603 = arith.constant 0 : index
    %c0_604 = arith.constant 0 : index
    %c3_605 = arith.constant 3 : index
    %513 = vector.load %arg1[%c8_602, %c0_603, %c0_604, %c3_605] : memref<9x2x9x6xbf16, #tpu.memory_space<vmem>>, vector<1x1x8x3xbf16>
    %514 = vector.shape_cast %513 : vector<1x1x8x3xbf16> to vector<8x3xbf16>
    %c7_606 = arith.constant 7 : index
    %c0_607 = arith.constant 0 : index
    %c0_608 = arith.constant 0 : index
    %515 = vector.load %arg2[%c7_606, %c0_607, %c0_608] : memref<9x3x8xbf16, #tpu.memory_space<vmem>>, vector<1x3x8xbf16>
    %516 = vector.shape_cast %515 : vector<1x3x8xbf16> to vector<3x8xbf16>
    %cst_609 = arith.constant dense<0.000000e+00> : vector<8x8xf32>
    %517 = tpu.matmul %514, %516, %cst_609 {dimension_numbers = #tpu.dot_dimension_numbers<[1], [0], [0], [1], [0, 0, 1, 1], [], []>} : vector<8x3xbf16>, vector<3x8xbf16>, vector<8x8xf32> -> vector<8x8xf32>
    %518 = arith.addf %512, %517 : vector<8x8xf32>
    %c8_610 = arith.constant 8 : index
    %c0_611 = arith.constant 0 : index
    %c1_612 = arith.constant 1 : index
    %c0_613 = arith.constant 0 : index
    %519 = vector.load %arg1[%c8_610, %c0_611, %c1_612, %c0_613] : memref<9x2x9x6xbf16, #tpu.memory_space<vmem>>, vector<1x1x8x3xbf16>
    %520 = vector.shape_cast %519 : vector<1x1x8x3xbf16> to vector<8x3xbf16>
    %c8_614 = arith.constant 8 : index
    %c0_615 = arith.constant 0 : index
    %c0_616 = arith.constant 0 : index
    %521 = vector.load %arg2[%c8_614, %c0_615, %c0_616] : memref<9x3x8xbf16, #tpu.memory_space<vmem>>, vector<1x3x8xbf16>
    %522 = vector.shape_cast %521 : vector<1x3x8xbf16> to vector<3x8xbf16>
    %cst_617 = arith.constant dense<0.000000e+00> : vector<8x8xf32>
    %523 = tpu.matmul %520, %522, %cst_617 {dimension_numbers = #tpu.dot_dimension_numbers<[1], [0], [0], [1], [0, 0, 1, 1], [], []>} : vector<8x3xbf16>, vector<3x8xbf16>, vector<8x8xf32> -> vector<8x8xf32>
    %524 = arith.addf %518, %523 : vector<8x8xf32>
    %525 = vector.broadcast %0 : vector<1x8xf32> to vector<8x8xf32>
    %526 = arith.addf %524, %525 : vector<8x8xf32>
    %cst_618 = arith.constant 0.000000e+00 : f32
    %527 = vector.broadcast %cst_618 : f32 to vector<8x8xf32>
    %528 = arith.subf %527, %526 : vector<8x8xf32>
    %529 = math.exp %528 : vector<8x8xf32>
    %cst_619 = arith.constant 1.000000e+00 : f32
    %530 = vector.broadcast %cst_619 : f32 to vector<8x8xf32>
    %531 = arith.addf %530, %529 : vector<8x8xf32>
    %532 = tpu.reciprocal %531 {approx = true} : vector<8x8xf32> -> vector<8x8xf32>
    %533 = arith.mulf %526, %532 : vector<8x8xf32>
    %c0_620 = arith.constant 0 : index
    %c7_621 = arith.constant 7 : index
    %c0_622 = arith.constant 0 : index
    %c0_623 = arith.constant 0 : index
    %534 = vector.load %arg4[%c0_620, %c7_621, %c0_622, %c0_623] : memref<1x8x8x8xf32, #tpu.memory_space<vmem>>, vector<1x1x8x8xf32>
    %535 = vector.shape_cast %534 : vector<1x1x8x8xf32> to vector<8x8xf32>
    %536 = vector.shape_cast %533 : vector<8x8xf32> to vector<1x1x8x8xf32>
    tpu.vector_store %arg4[%c0_620, %c7_621, %c0_622, %c0_623], %536 {strides = array<i32>} : memref<1x8x8x8xf32, #tpu.memory_space<vmem>>, vector<1x1x8x8xf32>,
    return
  }
  func.func @transform_0(%arg0: i32) -> (i32, i32, i32, i32) {
    %c0_i32 = arith.constant 0 : i32
    %c0_i32_0 = arith.constant 0 : i32
    %c0_i32_1 = arith.constant 0 : i32
    %c0_i32_2 = arith.constant 0 : i32
    return %arg0, %c0_i32, %c0_i32_0, %c0_i32_1 : i32, i32, i32, i32
  }
  func.func @transform_1(%arg0: i32) -> (i32, i32, i32) {
    %c0_i32 = arith.constant 0 : i32
    %c0_i32_0 = arith.constant 0 : i32
    %c0_i32_1 = arith.constant 0 : i32
    %c0_i32_2 = arith.constant 0 : i32
    return %c0_i32, %c0_i32_0, %c0_i32_1 : i32, i32, i32
  }
  func.func @transform_2(%arg0: i32) -> (i32, i32) {
    %c0_i32 = arith.constant 0 : i32
    %c0_i32_0 = arith.constant 0 : i32
    %c0_i32_1 = arith.constant 0 : i32
    return %c0_i32, %c0_i32_0 : i32, i32
  }
  func.func @transform_3(%arg0: i32) -> (i32, i32, i32, i32) {
    %c0_i32 = arith.constant 0 : i32
    %c0_i32_0 = arith.constant 0 : i32
    %c0_i32_1 = arith.constant 0 : i32
    %c0_i32_2 = arith.constant 0 : i32
    return %arg0, %c0_i32, %c0_i32_0, %c0_i32_1 : i32, i32, i32, i32
  }
}

module attributes {stable_mosaic.version = 11 : i64} {
  func.func @_conv_taps_silu_kernel(%arg0: i32, %arg1: memref<3x2x3x32xbf16, #tpu.memory_space<vmem>>, %arg2: memref<9x16x32xbf16, #tpu.memory_space<vmem>>, %arg3: memref<1x32xf32, #tpu.memory_space<vmem>>, %arg4: memref<1x2x2x32xf32, #tpu.memory_space<vmem>>) attributes {dimension_semantics = [#tpu.dimension_semantics<parallel>], iteration_bounds = array<i64: 2>, scalar_prefetch = 0 : i64, scratch_operands = 0 : i64, tpu.core_type = #tpu.core_type<tc>, window_params = [{transform_indices = @transform_0, window_bounds = array<i64: 3, 2, 3, 32>}, {pipeline_mode = #tpu.pipeline_mode<synchronous>, transform_indices = @transform_1, window_bounds = array<i64: 9, 16, 32>}, {pipeline_mode = #tpu.pipeline_mode<synchronous>, transform_indices = @transform_2, window_bounds = array<i64: 1, 32>}, {transform_indices = @transform_3, window_bounds = array<i64: 1, 2, 2, 32>}]} {
    %c0 = arith.constant 0 : index
    %c0_0 = arith.constant 0 : index
    %0 = vector.load %arg3[%c0, %c0_0] : memref<1x32xf32, #tpu.memory_space<vmem>>, vector<1x32xf32>
    %cst = arith.constant 0.000000e+00 : f32
    %1 = vector.broadcast %cst : f32 to vector<2x32xf32>
    %c0_1 = arith.constant 0 : index
    %c0_2 = arith.constant 0 : index
    %c0_3 = arith.constant 0 : index
    %c0_4 = arith.constant 0 : index
    %2 = vector.load %arg1[%c0_1, %c0_2, %c0_3, %c0_4] : memref<3x2x3x32xbf16, #tpu.memory_space<vmem>>, vector<1x1x2x16xbf16>
    %3 = vector.shape_cast %2 : vector<1x1x2x16xbf16> to vector<2x16xbf16>
    %c0_5 = arith.constant 0 : index
    %c0_6 = arith.constant 0 : index
    %c0_7 = arith.constant 0 : index
    %4 = vector.load %arg2[%c0_5, %c0_6, %c0_7] : memref<9x16x32xbf16, #tpu.memory_space<vmem>>, vector<1x16x32xbf16>
    %5 = vector.shape_cast %4 : vector<1x16x32xbf16> to vector<16x32xbf16>
    %cst_8 = arith.constant dense<0.000000e+00> : vector<2x32xf32>
    %6 = tpu.matmul %3, %5, %cst_8 {dimension_numbers = #tpu.dot_dimension_numbers<[1], [0], [0], [1], [0, 0, 1, 1], [], []>} : vector<2x16xbf16>, vector<16x32xbf16>, vector<2x32xf32> -> vector<2x32xf32>
    %7 = arith.addf %1, %6 : vector<2x32xf32>
    %c0_9 = arith.constant 0 : index
    %c0_10 = arith.constant 0 : index
    %c0_11 = arith.constant 0 : index
    %c16 = arith.constant 16 : index
    %8 = vector.load %arg1[%c0_9, %c0_10, %c0_11, %c16] : memref<3x2x3x32xbf16, #tpu.memory_space<vmem>>, vector<1x1x2x16xbf16>
    %9 = vector.shape_cast %8 : vector<1x1x2x16xbf16> to vector<2x16xbf16>
    %c1 = arith.constant 1 : index
    %c0_12 = arith.constant 0 : index
    %c0_13 = arith.constant 0 : index
    %10 = vector.load %arg2[%c1, %c0_12, %c0_13] : memref<9x16x32xbf16, #tpu.memory_space<vmem>>, vector<1x16x32xbf16>
    %11 = vector.shape_cast %10 : vector<1x16x32xbf16> to vector<16x32xbf16>
    %cst_14 = arith.constant dense<0.000000e+00> : vector<2x32xf32>
    %12 = tpu.matmul %9, %11, %cst_14 {dimension_numbers = #tpu.dot_dimension_numbers<[1], [0], [0], [1], [0, 0, 1, 1], [], []>} : vector<2x16xbf16>, vector<16x32xbf16>, vector<2x32xf32> -> vector<2x32xf32>
    %13 = arith.addf %7, %12 : vector<2x32xf32>
    %c0_15 = arith.constant 0 : index
    %c0_16 = arith.constant 0 : index
    %c1_17 = arith.constant 1 : index
    %c0_18 = arith.constant 0 : index
    %14 = vector.load %arg1[%c0_15, %c0_16, %c1_17, %c0_18] : memref<3x2x3x32xbf16, #tpu.memory_space<vmem>>, vector<1x1x2x16xbf16>
    %15 = vector.shape_cast %14 : vector<1x1x2x16xbf16> to vector<2x16xbf16>
    %c2 = arith.constant 2 : index
    %c0_19 = arith.constant 0 : index
    %c0_20 = arith.constant 0 : index
    %16 = vector.load %arg2[%c2, %c0_19, %c0_20] : memref<9x16x32xbf16, #tpu.memory_space<vmem>>, vector<1x16x32xbf16>
    %17 = vector.shape_cast %16 : vector<1x16x32xbf16> to vector<16x32xbf16>
    %cst_21 = arith.constant dense<0.000000e+00> : vector<2x32xf32>
    %18 = tpu.matmul %15, %17, %cst_21 {dimension_numbers = #tpu.dot_dimension_numbers<[1], [0], [0], [1], [0, 0, 1, 1], [], []>} : vector<2x16xbf16>, vector<16x32xbf16>, vector<2x32xf32> -> vector<2x32xf32>
    %19 = arith.addf %13, %18 : vector<2x32xf32>
    %c0_22 = arith.constant 0 : index
    %c1_23 = arith.constant 1 : index
    %c0_24 = arith.constant 0 : index
    %c0_25 = arith.constant 0 : index
    %20 = vector.load %arg1[%c0_22, %c1_23, %c0_24, %c0_25] : memref<3x2x3x32xbf16, #tpu.memory_space<vmem>>, vector<1x1x2x16xbf16>
    %21 = vector.shape_cast %20 : vector<1x1x2x16xbf16> to vector<2x16xbf16>
    %c3 = arith.constant 3 : index
    %c0_26 = arith.constant 0 : index
    %c0_27 = arith.constant 0 : index
    %22 = vector.load %arg2[%c3, %c0_26, %c0_27] : memref<9x16x32xbf16, #tpu.memory_space<vmem>>, vector<1x16x32xbf16>
    %23 = vector.shape_cast %22 : vector<1x16x32xbf16> to vector<16x32xbf16>
    %cst_28 = arith.constant dense<0.000000e+00> : vector<2x32xf32>
    %24 = tpu.matmul %21, %23, %cst_28 {dimension_numbers = #tpu.dot_dimension_numbers<[1], [0], [0], [1], [0, 0, 1, 1], [], []>} : vector<2x16xbf16>, vector<16x32xbf16>, vector<2x32xf32> -> vector<2x32xf32>
    %25 = arith.addf %19, %24 : vector<2x32xf32>
    %c0_29 = arith.constant 0 : index
    %c1_30 = arith.constant 1 : index
    %c0_31 = arith.constant 0 : index
    %c16_32 = arith.constant 16 : index
    %26 = vector.load %arg1[%c0_29, %c1_30, %c0_31, %c16_32] : memref<3x2x3x32xbf16, #tpu.memory_space<vmem>>, vector<1x1x2x16xbf16>
    %27 = vector.shape_cast %26 : vector<1x1x2x16xbf16> to vector<2x16xbf16>
    %c4 = arith.constant 4 : index
    %c0_33 = arith.constant 0 : index
    %c0_34 = arith.constant 0 : index
    %28 = vector.load %arg2[%c4, %c0_33, %c0_34] : memref<9x16x32xbf16, #tpu.memory_space<vmem>>, vector<1x16x32xbf16>
    %29 = vector.shape_cast %28 : vector<1x16x32xbf16> to vector<16x32xbf16>
    %cst_35 = arith.constant dense<0.000000e+00> : vector<2x32xf32>
    %30 = tpu.matmul %27, %29, %cst_35 {dimension_numbers = #tpu.dot_dimension_numbers<[1], [0], [0], [1], [0, 0, 1, 1], [], []>} : vector<2x16xbf16>, vector<16x32xbf16>, vector<2x32xf32> -> vector<2x32xf32>
    %31 = arith.addf %25, %30 : vector<2x32xf32>
    %c0_36 = arith.constant 0 : index
    %c1_37 = arith.constant 1 : index
    %c1_38 = arith.constant 1 : index
    %c0_39 = arith.constant 0 : index
    %32 = vector.load %arg1[%c0_36, %c1_37, %c1_38, %c0_39] : memref<3x2x3x32xbf16, #tpu.memory_space<vmem>>, vector<1x1x2x16xbf16>
    %33 = vector.shape_cast %32 : vector<1x1x2x16xbf16> to vector<2x16xbf16>
    %c5 = arith.constant 5 : index
    %c0_40 = arith.constant 0 : index
    %c0_41 = arith.constant 0 : index
    %34 = vector.load %arg2[%c5, %c0_40, %c0_41] : memref<9x16x32xbf16, #tpu.memory_space<vmem>>, vector<1x16x32xbf16>
    %35 = vector.shape_cast %34 : vector<1x16x32xbf16> to vector<16x32xbf16>
    %cst_42 = arith.constant dense<0.000000e+00> : vector<2x32xf32>
    %36 = tpu.matmul %33, %35, %cst_42 {dimension_numbers = #tpu.dot_dimension_numbers<[1], [0], [0], [1], [0, 0, 1, 1], [], []>} : vector<2x16xbf16>, vector<16x32xbf16>, vector<2x32xf32> -> vector<2x32xf32>
    %37 = arith.addf %31, %36 : vector<2x32xf32>
    %c1_43 = arith.constant 1 : index
    %c0_44 = arith.constant 0 : index
    %c0_45 = arith.constant 0 : index
    %c0_46 = arith.constant 0 : index
    %38 = vector.load %arg1[%c1_43, %c0_44, %c0_45, %c0_46] : memref<3x2x3x32xbf16, #tpu.memory_space<vmem>>, vector<1x1x2x16xbf16>
    %39 = vector.shape_cast %38 : vector<1x1x2x16xbf16> to vector<2x16xbf16>
    %c6 = arith.constant 6 : index
    %c0_47 = arith.constant 0 : index
    %c0_48 = arith.constant 0 : index
    %40 = vector.load %arg2[%c6, %c0_47, %c0_48] : memref<9x16x32xbf16, #tpu.memory_space<vmem>>, vector<1x16x32xbf16>
    %41 = vector.shape_cast %40 : vector<1x16x32xbf16> to vector<16x32xbf16>
    %cst_49 = arith.constant dense<0.000000e+00> : vector<2x32xf32>
    %42 = tpu.matmul %39, %41, %cst_49 {dimension_numbers = #tpu.dot_dimension_numbers<[1], [0], [0], [1], [0, 0, 1, 1], [], []>} : vector<2x16xbf16>, vector<16x32xbf16>, vector<2x32xf32> -> vector<2x32xf32>
    %43 = arith.addf %37, %42 : vector<2x32xf32>
    %c1_50 = arith.constant 1 : index
    %c0_51 = arith.constant 0 : index
    %c0_52 = arith.constant 0 : index
    %c16_53 = arith.constant 16 : index
    %44 = vector.load %arg1[%c1_50, %c0_51, %c0_52, %c16_53] : memref<3x2x3x32xbf16, #tpu.memory_space<vmem>>, vector<1x1x2x16xbf16>
    %45 = vector.shape_cast %44 : vector<1x1x2x16xbf16> to vector<2x16xbf16>
    %c7 = arith.constant 7 : index
    %c0_54 = arith.constant 0 : index
    %c0_55 = arith.constant 0 : index
    %46 = vector.load %arg2[%c7, %c0_54, %c0_55] : memref<9x16x32xbf16, #tpu.memory_space<vmem>>, vector<1x16x32xbf16>
    %47 = vector.shape_cast %46 : vector<1x16x32xbf16> to vector<16x32xbf16>
    %cst_56 = arith.constant dense<0.000000e+00> : vector<2x32xf32>
    %48 = tpu.matmul %45, %47, %cst_56 {dimension_numbers = #tpu.dot_dimension_numbers<[1], [0], [0], [1], [0, 0, 1, 1], [], []>} : vector<2x16xbf16>, vector<16x32xbf16>, vector<2x32xf32> -> vector<2x32xf32>
    %49 = arith.addf %43, %48 : vector<2x32xf32>
    %c1_57 = arith.constant 1 : index
    %c0_58 = arith.constant 0 : index
    %c1_59 = arith.constant 1 : index
    %c0_60 = arith.constant 0 : index
    %50 = vector.load %arg1[%c1_57, %c0_58, %c1_59, %c0_60] : memref<3x2x3x32xbf16, #tpu.memory_space<vmem>>, vector<1x1x2x16xbf16>
    %51 = vector.shape_cast %50 : vector<1x1x2x16xbf16> to vector<2x16xbf16>
    %c8 = arith.constant 8 : index
    %c0_61 = arith.constant 0 : index
    %c0_62 = arith.constant 0 : index
    %52 = vector.load %arg2[%c8, %c0_61, %c0_62] : memref<9x16x32xbf16, #tpu.memory_space<vmem>>, vector<1x16x32xbf16>
    %53 = vector.shape_cast %52 : vector<1x16x32xbf16> to vector<16x32xbf16>
    %cst_63 = arith.constant dense<0.000000e+00> : vector<2x32xf32>
    %54 = tpu.matmul %51, %53, %cst_63 {dimension_numbers = #tpu.dot_dimension_numbers<[1], [0], [0], [1], [0, 0, 1, 1], [], []>} : vector<2x16xbf16>, vector<16x32xbf16>, vector<2x32xf32> -> vector<2x32xf32>
    %55 = arith.addf %49, %54 : vector<2x32xf32>
    %56 = vector.broadcast %0 : vector<1x32xf32> to vector<2x32xf32>
    %57 = arith.addf %55, %56 : vector<2x32xf32>
    %cst_64 = arith.constant 0.000000e+00 : f32
    %58 = vector.broadcast %cst_64 : f32 to vector<2x32xf32>
    %59 = arith.subf %58, %57 : vector<2x32xf32>
    %60 = math.exp %59 : vector<2x32xf32>
    %cst_65 = arith.constant 1.000000e+00 : f32
    %61 = vector.broadcast %cst_65 : f32 to vector<2x32xf32>
    %62 = arith.addf %61, %60 : vector<2x32xf32>
    %63 = tpu.reciprocal %62 {approx = true} : vector<2x32xf32> -> vector<2x32xf32>
    %64 = arith.mulf %57, %63 : vector<2x32xf32>
    %c0_66 = arith.constant 0 : index
    %c0_67 = arith.constant 0 : index
    %c0_68 = arith.constant 0 : index
    %c0_69 = arith.constant 0 : index
    %65 = vector.load %arg4[%c0_66, %c0_67, %c0_68, %c0_69] : memref<1x2x2x32xf32, #tpu.memory_space<vmem>>, vector<1x1x2x32xf32>
    %66 = vector.shape_cast %65 : vector<1x1x2x32xf32> to vector<2x32xf32>
    %67 = vector.shape_cast %64 : vector<2x32xf32> to vector<1x1x2x32xf32>
    tpu.vector_store %arg4[%c0_66, %c0_67, %c0_68, %c0_69], %67 {strides = array<i32>} : memref<1x2x2x32xf32, #tpu.memory_space<vmem>>, vector<1x1x2x32xf32>,
    %cst_70 = arith.constant 0.000000e+00 : f32
    %68 = vector.broadcast %cst_70 : f32 to vector<2x32xf32>
    %c1_71 = arith.constant 1 : index
    %c0_72 = arith.constant 0 : index
    %c0_73 = arith.constant 0 : index
    %c0_74 = arith.constant 0 : index
    %69 = vector.load %arg1[%c1_71, %c0_72, %c0_73, %c0_74] : memref<3x2x3x32xbf16, #tpu.memory_space<vmem>>, vector<1x1x2x16xbf16>
    %70 = vector.shape_cast %69 : vector<1x1x2x16xbf16> to vector<2x16xbf16>
    %c0_75 = arith.constant 0 : index
    %c0_76 = arith.constant 0 : index
    %c0_77 = arith.constant 0 : index
    %71 = vector.load %arg2[%c0_75, %c0_76, %c0_77] : memref<9x16x32xbf16, #tpu.memory_space<vmem>>, vector<1x16x32xbf16>
    %72 = vector.shape_cast %71 : vector<1x16x32xbf16> to vector<16x32xbf16>
    %cst_78 = arith.constant dense<0.000000e+00> : vector<2x32xf32>
    %73 = tpu.matmul %70, %72, %cst_78 {dimension_numbers = #tpu.dot_dimension_numbers<[1], [0], [0], [1], [0, 0, 1, 1], [], []>} : vector<2x16xbf16>, vector<16x32xbf16>, vector<2x32xf32> -> vector<2x32xf32>
    %74 = arith.addf %68, %73 : vector<2x32xf32>
    %c1_79 = arith.constant 1 : index
    %c0_80 = arith.constant 0 : index
    %c0_81 = arith.constant 0 : index
    %c16_82 = arith.constant 16 : index
    %75 = vector.load %arg1[%c1_79, %c0_80, %c0_81, %c16_82] : memref<3x2x3x32xbf16, #tpu.memory_space<vmem>>, vector<1x1x2x16xbf16>
    %76 = vector.shape_cast %75 : vector<1x1x2x16xbf16> to vector<2x16xbf16>
    %c1_83 = arith.constant 1 : index
    %c0_84 = arith.constant 0 : index
    %c0_85 = arith.constant 0 : index
    %77 = vector.load %arg2[%c1_83, %c0_84, %c0_85] : memref<9x16x32xbf16, #tpu.memory_space<vmem>>, vector<1x16x32xbf16>
    %78 = vector.shape_cast %77 : vector<1x16x32xbf16> to vector<16x32xbf16>
    %cst_86 = arith.constant dense<0.000000e+00> : vector<2x32xf32>
    %79 = tpu.matmul %76, %78, %cst_86 {dimension_numbers = #tpu.dot_dimension_numbers<[1], [0], [0], [1], [0, 0, 1, 1], [], []>} : vector<2x16xbf16>, vector<16x32xbf16>, vector<2x32xf32> -> vector<2x32xf32>
    %80 = arith.addf %74, %79 : vector<2x32xf32>
    %c1_87 = arith.constant 1 : index
    %c0_88 = arith.constant 0 : index
    %c1_89 = arith.constant 1 : index
    %c0_90 = arith.constant 0 : index
    %81 = vector.load %arg1[%c1_87, %c0_88, %c1_89, %c0_90] : memref<3x2x3x32xbf16, #tpu.memory_space<vmem>>, vector<1x1x2x16xbf16>
    %82 = vector.shape_cast %81 : vector<1x1x2x16xbf16> to vector<2x16xbf16>
    %c2_91 = arith.constant 2 : index
    %c0_92 = arith.constant 0 : index
    %c0_93 = arith.constant 0 : index
    %83 = vector.load %arg2[%c2_91, %c0_92, %c0_93] : memref<9x16x32xbf16, #tpu.memory_space<vmem>>, vector<1x16x32xbf16>
    %84 = vector.shape_cast %83 : vector<1x16x32xbf16> to vector<16x32xbf16>
    %cst_94 = arith.constant dense<0.000000e+00> : vector<2x32xf32>
    %85 = tpu.matmul %82, %84, %cst_94 {dimension_numbers = #tpu.dot_dimension_numbers<[1], [0], [0], [1], [0, 0, 1, 1], [], []>} : vector<2x16xbf16>, vector<16x32xbf16>, vector<2x32xf32> -> vector<2x32xf32>
    %86 = arith.addf %80, %85 : vector<2x32xf32>
    %c1_95 = arith.constant 1 : index
    %c1_96 = arith.constant 1 : index
    %c0_97 = arith.constant 0 : index
    %c0_98 = arith.constant 0 : index
    %87 = vector.load %arg1[%c1_95, %c1_96, %c0_97, %c0_98] : memref<3x2x3x32xbf16, #tpu.memory_space<vmem>>, vector<1x1x2x16xbf16>
    %88 = vector.shape_cast %87 : vector<1x1x2x16xbf16> to vector<2x16xbf16>
    %c3_99 = arith.constant 3 : index
    %c0_100 = arith.constant 0 : index
    %c0_101 = arith.constant 0 : index
    %89 = vector.load %arg2[%c3_99, %c0_100, %c0_101] : memref<9x16x32xbf16, #tpu.memory_space<vmem>>, vector<1x16x32xbf16>
    %90 = vector.shape_cast %89 : vector<1x16x32xbf16> to vector<16x32xbf16>
    %cst_102 = arith.constant dense<0.000000e+00> : vector<2x32xf32>
    %91 = tpu.matmul %88, %90, %cst_102 {dimension_numbers = #tpu.dot_dimension_numbers<[1], [0], [0], [1], [0, 0, 1, 1], [], []>} : vector<2x16xbf16>, vector<16x32xbf16>, vector<2x32xf32> -> vector<2x32xf32>
    %92 = arith.addf %86, %91 : vector<2x32xf32>
    %c1_103 = arith.constant 1 : index
    %c1_104 = arith.constant 1 : index
    %c0_105 = arith.constant 0 : index
    %c16_106 = arith.constant 16 : index
    %93 = vector.load %arg1[%c1_103, %c1_104, %c0_105, %c16_106] : memref<3x2x3x32xbf16, #tpu.memory_space<vmem>>, vector<1x1x2x16xbf16>
    %94 = vector.shape_cast %93 : vector<1x1x2x16xbf16> to vector<2x16xbf16>
    %c4_107 = arith.constant 4 : index
    %c0_108 = arith.constant 0 : index
    %c0_109 = arith.constant 0 : index
    %95 = vector.load %arg2[%c4_107, %c0_108, %c0_109] : memref<9x16x32xbf16, #tpu.memory_space<vmem>>, vector<1x16x32xbf16>
    %96 = vector.shape_cast %95 : vector<1x16x32xbf16> to vector<16x32xbf16>
    %cst_110 = arith.constant dense<0.000000e+00> : vector<2x32xf32>
    %97 = tpu.matmul %94, %96, %cst_110 {dimension_numbers = #tpu.dot_dimension_numbers<[1], [0], [0], [1], [0, 0, 1, 1], [], []>} : vector<2x16xbf16>, vector<16x32xbf16>, vector<2x32xf32> -> vector<2x32xf32>
    %98 = arith.addf %92, %97 : vector<2x32xf32>
    %c1_111 = arith.constant 1 : index
    %c1_112 = arith.constant 1 : index
    %c1_113 = arith.constant 1 : index
    %c0_114 = arith.constant 0 : index
    %99 = vector.load %arg1[%c1_111, %c1_112, %c1_113, %c0_114] : memref<3x2x3x32xbf16, #tpu.memory_space<vmem>>, vector<1x1x2x16xbf16>
    %100 = vector.shape_cast %99 : vector<1x1x2x16xbf16> to vector<2x16xbf16>
    %c5_115 = arith.constant 5 : index
    %c0_116 = arith.constant 0 : index
    %c0_117 = arith.constant 0 : index
    %101 = vector.load %arg2[%c5_115, %c0_116, %c0_117] : memref<9x16x32xbf16, #tpu.memory_space<vmem>>, vector<1x16x32xbf16>
    %102 = vector.shape_cast %101 : vector<1x16x32xbf16> to vector<16x32xbf16>
    %cst_118 = arith.constant dense<0.000000e+00> : vector<2x32xf32>
    %103 = tpu.matmul %100, %102, %cst_118 {dimension_numbers = #tpu.dot_dimension_numbers<[1], [0], [0], [1], [0, 0, 1, 1], [], []>} : vector<2x16xbf16>, vector<16x32xbf16>, vector<2x32xf32> -> vector<2x32xf32>
    %104 = arith.addf %98, %103 : vector<2x32xf32>
    %c2_119 = arith.constant 2 : index
    %c0_120 = arith.constant 0 : index
    %c0_121 = arith.constant 0 : index
    %c0_122 = arith.constant 0 : index
    %105 = vector.load %arg1[%c2_119, %c0_120, %c0_121, %c0_122] : memref<3x2x3x32xbf16, #tpu.memory_space<vmem>>, vector<1x1x2x16xbf16>
    %106 = vector.shape_cast %105 : vector<1x1x2x16xbf16> to vector<2x16xbf16>
    %c6_123 = arith.constant 6 : index
    %c0_124 = arith.constant 0 : index
    %c0_125 = arith.constant 0 : index
    %107 = vector.load %arg2[%c6_123, %c0_124, %c0_125] : memref<9x16x32xbf16, #tpu.memory_space<vmem>>, vector<1x16x32xbf16>
    %108 = vector.shape_cast %107 : vector<1x16x32xbf16> to vector<16x32xbf16>
    %cst_126 = arith.constant dense<0.000000e+00> : vector<2x32xf32>
    %109 = tpu.matmul %106, %108, %cst_126 {dimension_numbers = #tpu.dot_dimension_numbers<[1], [0], [0], [1], [0, 0, 1, 1], [], []>} : vector<2x16xbf16>, vector<16x32xbf16>, vector<2x32xf32> -> vector<2x32xf32>
    %110 = arith.addf %104, %109 : vector<2x32xf32>
    %c2_127 = arith.constant 2 : index
    %c0_128 = arith.constant 0 : index
    %c0_129 = arith.constant 0 : index
    %c16_130 = arith.constant 16 : index
    %111 = vector.load %arg1[%c2_127, %c0_128, %c0_129, %c16_130] : memref<3x2x3x32xbf16, #tpu.memory_space<vmem>>, vector<1x1x2x16xbf16>
    %112 = vector.shape_cast %111 : vector<1x1x2x16xbf16> to vector<2x16xbf16>
    %c7_131 = arith.constant 7 : index
    %c0_132 = arith.constant 0 : index
    %c0_133 = arith.constant 0 : index
    %113 = vector.load %arg2[%c7_131, %c0_132, %c0_133] : memref<9x16x32xbf16, #tpu.memory_space<vmem>>, vector<1x16x32xbf16>
    %114 = vector.shape_cast %113 : vector<1x16x32xbf16> to vector<16x32xbf16>
    %cst_134 = arith.constant dense<0.000000e+00> : vector<2x32xf32>
    %115 = tpu.matmul %112, %114, %cst_134 {dimension_numbers = #tpu.dot_dimension_numbers<[1], [0], [0], [1], [0, 0, 1, 1], [], []>} : vector<2x16xbf16>, vector<16x32xbf16>, vector<2x32xf32> -> vector<2x32xf32>
    %116 = arith.addf %110, %115 : vector<2x32xf32>
    %c2_135 = arith.constant 2 : index
    %c0_136 = arith.constant 0 : index
    %c1_137 = arith.constant 1 : index
    %c0_138 = arith.constant 0 : index
    %117 = vector.load %arg1[%c2_135, %c0_136, %c1_137, %c0_138] : memref<3x2x3x32xbf16, #tpu.memory_space<vmem>>, vector<1x1x2x16xbf16>
    %118 = vector.shape_cast %117 : vector<1x1x2x16xbf16> to vector<2x16xbf16>
    %c8_139 = arith.constant 8 : index
    %c0_140 = arith.constant 0 : index
    %c0_141 = arith.constant 0 : index
    %119 = vector.load %arg2[%c8_139, %c0_140, %c0_141] : memref<9x16x32xbf16, #tpu.memory_space<vmem>>, vector<1x16x32xbf16>
    %120 = vector.shape_cast %119 : vector<1x16x32xbf16> to vector<16x32xbf16>
    %cst_142 = arith.constant dense<0.000000e+00> : vector<2x32xf32>
    %121 = tpu.matmul %118, %120, %cst_142 {dimension_numbers = #tpu.dot_dimension_numbers<[1], [0], [0], [1], [0, 0, 1, 1], [], []>} : vector<2x16xbf16>, vector<16x32xbf16>, vector<2x32xf32> -> vector<2x32xf32>
    %122 = arith.addf %116, %121 : vector<2x32xf32>
    %123 = vector.broadcast %0 : vector<1x32xf32> to vector<2x32xf32>
    %124 = arith.addf %122, %123 : vector<2x32xf32>
    %cst_143 = arith.constant 0.000000e+00 : f32
    %125 = vector.broadcast %cst_143 : f32 to vector<2x32xf32>
    %126 = arith.subf %125, %124 : vector<2x32xf32>
    %127 = math.exp %126 : vector<2x32xf32>
    %cst_144 = arith.constant 1.000000e+00 : f32
    %128 = vector.broadcast %cst_144 : f32 to vector<2x32xf32>
    %129 = arith.addf %128, %127 : vector<2x32xf32>
    %130 = tpu.reciprocal %129 {approx = true} : vector<2x32xf32> -> vector<2x32xf32>
    %131 = arith.mulf %124, %130 : vector<2x32xf32>
    %c0_145 = arith.constant 0 : index
    %c1_146 = arith.constant 1 : index
    %c0_147 = arith.constant 0 : index
    %c0_148 = arith.constant 0 : index
    %132 = vector.load %arg4[%c0_145, %c1_146, %c0_147, %c0_148] : memref<1x2x2x32xf32, #tpu.memory_space<vmem>>, vector<1x1x2x32xf32>
    %133 = vector.shape_cast %132 : vector<1x1x2x32xf32> to vector<2x32xf32>
    %134 = vector.shape_cast %131 : vector<2x32xf32> to vector<1x1x2x32xf32>
    tpu.vector_store %arg4[%c0_145, %c1_146, %c0_147, %c0_148], %134 {strides = array<i32>} : memref<1x2x2x32xf32, #tpu.memory_space<vmem>>, vector<1x1x2x32xf32>,
    return
  }
  func.func @transform_0(%arg0: i32) -> (i32, i32, i32, i32) {
    %c0_i32 = arith.constant 0 : i32
    %c0_i32_0 = arith.constant 0 : i32
    %c0_i32_1 = arith.constant 0 : i32
    %c0_i32_2 = arith.constant 0 : i32
    return %arg0, %c0_i32, %c0_i32_0, %c0_i32_1 : i32, i32, i32, i32
  }
  func.func @transform_1(%arg0: i32) -> (i32, i32, i32) {
    %c0_i32 = arith.constant 0 : i32
    %c0_i32_0 = arith.constant 0 : i32
    %c0_i32_1 = arith.constant 0 : i32
    %c0_i32_2 = arith.constant 0 : i32
    return %c0_i32, %c0_i32_0, %c0_i32_1 : i32, i32, i32
  }
  func.func @transform_2(%arg0: i32) -> (i32, i32) {
    %c0_i32 = arith.constant 0 : i32
    %c0_i32_0 = arith.constant 0 : i32
    %c0_i32_1 = arith.constant 0 : i32
    return %c0_i32, %c0_i32_0 : i32, i32
  }
  func.func @transform_3(%arg0: i32) -> (i32, i32, i32, i32) {
    %c0_i32 = arith.constant 0 : i32
    %c0_i32_0 = arith.constant 0 : i32
    %c0_i32_1 = arith.constant 0 : i32
    %c0_i32_2 = arith.constant 0 : i32
    return %arg0, %c0_i32, %c0_i32_0, %c0_i32_1 : i32, i32, i32, i32
  }
}

module attributes {stable_mosaic.version = 11 : i64} {
  func.func @_conv_taps_silu_kernel(%arg0: i32, %arg1: memref<4x1x4x32xbf16, #tpu.memory_space<vmem>>, %arg2: memref<9x32x32xbf16, #tpu.memory_space<vmem>>, %arg3: memref<1x32xf32, #tpu.memory_space<vmem>>, %arg4: memref<1x2x2x32xf32, #tpu.memory_space<vmem>>) attributes {dimension_semantics = [#tpu.dimension_semantics<parallel>], iteration_bounds = array<i64: 2>, scalar_prefetch = 0 : i64, scratch_operands = 0 : i64, tpu.core_type = #tpu.core_type<tc>, window_params = [{transform_indices = @transform_0, window_bounds = array<i64: 4, 1, 4, 32>}, {pipeline_mode = #tpu.pipeline_mode<synchronous>, transform_indices = @transform_1, window_bounds = array<i64: 9, 32, 32>}, {pipeline_mode = #tpu.pipeline_mode<synchronous>, transform_indices = @transform_2, window_bounds = array<i64: 1, 32>}, {transform_indices = @transform_3, window_bounds = array<i64: 1, 2, 2, 32>}]} {
    %c0 = arith.constant 0 : index
    %c0_0 = arith.constant 0 : index
    %0 = vector.load %arg3[%c0, %c0_0] : memref<1x32xf32, #tpu.memory_space<vmem>>, vector<1x32xf32>
    %cst = arith.constant 0.000000e+00 : f32
    %1 = vector.broadcast %cst : f32 to vector<2x32xf32>
    %c0_1 = arith.constant 0 : index
    %c0_2 = arith.constant 0 : index
    %c0_3 = arith.constant 0 : index
    %c0_4 = arith.constant 0 : index
    %2 = vector.load %arg1[%c0_1, %c0_2, %c0_3, %c0_4] : memref<4x1x4x32xbf16, #tpu.memory_space<vmem>>, vector<1x1x2x32xbf16>
    %3 = vector.shape_cast %2 : vector<1x1x2x32xbf16> to vector<2x32xbf16>
    %c0_5 = arith.constant 0 : index
    %c0_6 = arith.constant 0 : index
    %c0_7 = arith.constant 0 : index
    %4 = vector.load %arg2[%c0_5, %c0_6, %c0_7] : memref<9x32x32xbf16, #tpu.memory_space<vmem>>, vector<1x32x32xbf16>
    %5 = vector.shape_cast %4 : vector<1x32x32xbf16> to vector<32x32xbf16>
    %cst_8 = arith.constant dense<0.000000e+00> : vector<2x32xf32>
    %6 = tpu.matmul %3, %5, %cst_8 {dimension_numbers = #tpu.dot_dimension_numbers<[1], [0], [0], [1], [0, 0, 1, 1], [], []>} : vector<2x32xbf16>, vector<32x32xbf16>, vector<2x32xf32> -> vector<2x32xf32>
    %7 = arith.addf %1, %6 : vector<2x32xf32>
    %c0_9 = arith.constant 0 : index
    %c0_10 = arith.constant 0 : index
    %c1 = arith.constant 1 : index
    %c0_11 = arith.constant 0 : index
    %8 = vector.load %arg1[%c0_9, %c0_10, %c1, %c0_11] : memref<4x1x4x32xbf16, #tpu.memory_space<vmem>>, vector<1x1x2x32xbf16>
    %9 = vector.shape_cast %8 : vector<1x1x2x32xbf16> to vector<2x32xbf16>
    %c1_12 = arith.constant 1 : index
    %c0_13 = arith.constant 0 : index
    %c0_14 = arith.constant 0 : index
    %10 = vector.load %arg2[%c1_12, %c0_13, %c0_14] : memref<9x32x32xbf16, #tpu.memory_space<vmem>>, vector<1x32x32xbf16>
    %11 = vector.shape_cast %10 : vector<1x32x32xbf16> to vector<32x32xbf16>
    %cst_15 = arith.constant dense<0.000000e+00> : vector<2x32xf32>
    %12 = tpu.matmul %9, %11, %cst_15 {dimension_numbers = #tpu.dot_dimension_numbers<[1], [0], [0], [1], [0, 0, 1, 1], [], []>} : vector<2x32xbf16>, vector<32x32xbf16>, vector<2x32xf32> -> vector<2x32xf32>
    %13 = arith.addf %7, %12 : vector<2x32xf32>
    %c0_16 = arith.constant 0 : index
    %c0_17 = arith.constant 0 : index
    %c2 = arith.constant 2 : index
    %c0_18 = arith.constant 0 : index
    %14 = vector.load %arg1[%c0_16, %c0_17, %c2, %c0_18] : memref<4x1x4x32xbf16, #tpu.memory_space<vmem>>, vector<1x1x2x32xbf16>
    %15 = vector.shape_cast %14 : vector<1x1x2x32xbf16> to vector<2x32xbf16>
    %c2_19 = arith.constant 2 : index
    %c0_20 = arith.constant 0 : index
    %c0_21 = arith.constant 0 : index
    %16 = vector.load %arg2[%c2_19, %c0_20, %c0_21] : memref<9x32x32xbf16, #tpu.memory_space<vmem>>, vector<1x32x32xbf16>
    %17 = vector.shape_cast %16 : vector<1x32x32xbf16> to vector<32x32xbf16>
    %cst_22 = arith.constant dense<0.000000e+00> : vector<2x32xf32>
    %18 = tpu.matmul %15, %17, %cst_22 {dimension_numbers = #tpu.dot_dimension_numbers<[1], [0], [0], [1], [0, 0, 1, 1], [], []>} : vector<2x32xbf16>, vector<32x32xbf16>, vector<2x32xf32> -> vector<2x32xf32>
    %19 = arith.addf %13, %18 : vector<2x32xf32>
    %c1_23 = arith.constant 1 : index
    %c0_24 = arith.constant 0 : index
    %c0_25 = arith.constant 0 : index
    %c0_26 = arith.constant 0 : index
    %20 = vector.load %arg1[%c1_23, %c0_24, %c0_25, %c0_26] : memref<4x1x4x32xbf16, #tpu.memory_space<vmem>>, vector<1x1x2x32xbf16>
    %21 = vector.shape_cast %20 : vector<1x1x2x32xbf16> to vector<2x32xbf16>
    %c3 = arith.constant 3 : index
    %c0_27 = arith.constant 0 : index
    %c0_28 = arith.constant 0 : index
    %22 = vector.load %arg2[%c3, %c0_27, %c0_28] : memref<9x32x32xbf16, #tpu.memory_space<vmem>>, vector<1x32x32xbf16>
    %23 = vector.shape_cast %22 : vector<1x32x32xbf16> to vector<32x32xbf16>
    %cst_29 = arith.constant dense<0.000000e+00> : vector<2x32xf32>
    %24 = tpu.matmul %21, %23, %cst_29 {dimension_numbers = #tpu.dot_dimension_numbers<[1], [0], [0], [1], [0, 0, 1, 1], [], []>} : vector<2x32xbf16>, vector<32x32xbf16>, vector<2x32xf32> -> vector<2x32xf32>
    %25 = arith.addf %19, %24 : vector<2x32xf32>
    %c1_30 = arith.constant 1 : index
    %c0_31 = arith.constant 0 : index
    %c1_32 = arith.constant 1 : index
    %c0_33 = arith.constant 0 : index
    %26 = vector.load %arg1[%c1_30, %c0_31, %c1_32, %c0_33] : memref<4x1x4x32xbf16, #tpu.memory_space<vmem>>, vector<1x1x2x32xbf16>
    %27 = vector.shape_cast %26 : vector<1x1x2x32xbf16> to vector<2x32xbf16>
    %c4 = arith.constant 4 : index
    %c0_34 = arith.constant 0 : index
    %c0_35 = arith.constant 0 : index
    %28 = vector.load %arg2[%c4, %c0_34, %c0_35] : memref<9x32x32xbf16, #tpu.memory_space<vmem>>, vector<1x32x32xbf16>
    %29 = vector.shape_cast %28 : vector<1x32x32xbf16> to vector<32x32xbf16>
    %cst_36 = arith.constant dense<0.000000e+00> : vector<2x32xf32>
    %30 = tpu.matmul %27, %29, %cst_36 {dimension_numbers = #tpu.dot_dimension_numbers<[1], [0], [0], [1], [0, 0, 1, 1], [], []>} : vector<2x32xbf16>, vector<32x32xbf16>, vector<2x32xf32> -> vector<2x32xf32>
    %31 = arith.addf %25, %30 : vector<2x32xf32>
    %c1_37 = arith.constant 1 : index
    %c0_38 = arith.constant 0 : index
    %c2_39 = arith.constant 2 : index
    %c0_40 = arith.constant 0 : index
    %32 = vector.load %arg1[%c1_37, %c0_38, %c2_39, %c0_40] : memref<4x1x4x32xbf16, #tpu.memory_space<vmem>>, vector<1x1x2x32xbf16>
    %33 = vector.shape_cast %32 : vector<1x1x2x32xbf16> to vector<2x32xbf16>
    %c5 = arith.constant 5 : index
    %c0_41 = arith.constant 0 : index
    %c0_42 = arith.constant 0 : index
    %34 = vector.load %arg2[%c5, %c0_41, %c0_42] : memref<9x32x32xbf16, #tpu.memory_space<vmem>>, vector<1x32x32xbf16>
    %35 = vector.shape_cast %34 : vector<1x32x32xbf16> to vector<32x32xbf16>
    %cst_43 = arith.constant dense<0.000000e+00> : vector<2x32xf32>
    %36 = tpu.matmul %33, %35, %cst_43 {dimension_numbers = #tpu.dot_dimension_numbers<[1], [0], [0], [1], [0, 0, 1, 1], [], []>} : vector<2x32xbf16>, vector<32x32xbf16>, vector<2x32xf32> -> vector<2x32xf32>
    %37 = arith.addf %31, %36 : vector<2x32xf32>
    %c2_44 = arith.constant 2 : index
    %c0_45 = arith.constant 0 : index
    %c0_46 = arith.constant 0 : index
    %c0_47 = arith.constant 0 : index
    %38 = vector.load %arg1[%c2_44, %c0_45, %c0_46, %c0_47] : memref<4x1x4x32xbf16, #tpu.memory_space<vmem>>, vector<1x1x2x32xbf16>
    %39 = vector.shape_cast %38 : vector<1x1x2x32xbf16> to vector<2x32xbf16>
    %c6 = arith.constant 6 : index
    %c0_48 = arith.constant 0 : index
    %c0_49 = arith.constant 0 : index
    %40 = vector.load %arg2[%c6, %c0_48, %c0_49] : memref<9x32x32xbf16, #tpu.memory_space<vmem>>, vector<1x32x32xbf16>
    %41 = vector.shape_cast %40 : vector<1x32x32xbf16> to vector<32x32xbf16>
    %cst_50 = arith.constant dense<0.000000e+00> : vector<2x32xf32>
    %42 = tpu.matmul %39, %41, %cst_50 {dimension_numbers = #tpu.dot_dimension_numbers<[1], [0], [0], [1], [0, 0, 1, 1], [], []>} : vector<2x32xbf16>, vector<32x32xbf16>, vector<2x32xf32> -> vector<2x32xf32>
    %43 = arith.addf %37, %42 : vector<2x32xf32>
    %c2_51 = arith.constant 2 : index
    %c0_52 = arith.constant 0 : index
    %c1_53 = arith.constant 1 : index
    %c0_54 = arith.constant 0 : index
    %44 = vector.load %arg1[%c2_51, %c0_52, %c1_53, %c0_54] : memref<4x1x4x32xbf16, #tpu.memory_space<vmem>>, vector<1x1x2x32xbf16>
    %45 = vector.shape_cast %44 : vector<1x1x2x32xbf16> to vector<2x32xbf16>
    %c7 = arith.constant 7 : index
    %c0_55 = arith.constant 0 : index
    %c0_56 = arith.constant 0 : index
    %46 = vector.load %arg2[%c7, %c0_55, %c0_56] : memref<9x32x32xbf16, #tpu.memory_space<vmem>>, vector<1x32x32xbf16>
    %47 = vector.shape_cast %46 : vector<1x32x32xbf16> to vector<32x32xbf16>
    %cst_57 = arith.constant dense<0.000000e+00> : vector<2x32xf32>
    %48 = tpu.matmul %45, %47, %cst_57 {dimension_numbers = #tpu.dot_dimension_numbers<[1], [0], [0], [1], [0, 0, 1, 1], [], []>} : vector<2x32xbf16>, vector<32x32xbf16>, vector<2x32xf32> -> vector<2x32xf32>
    %49 = arith.addf %43, %48 : vector<2x32xf32>
    %c2_58 = arith.constant 2 : index
    %c0_59 = arith.constant 0 : index
    %c2_60 = arith.constant 2 : index
    %c0_61 = arith.constant 0 : index
    %50 = vector.load %arg1[%c2_58, %c0_59, %c2_60, %c0_61] : memref<4x1x4x32xbf16, #tpu.memory_space<vmem>>, vector<1x1x2x32xbf16>
    %51 = vector.shape_cast %50 : vector<1x1x2x32xbf16> to vector<2x32xbf16>
    %c8 = arith.constant 8 : index
    %c0_62 = arith.constant 0 : index
    %c0_63 = arith.constant 0 : index
    %52 = vector.load %arg2[%c8, %c0_62, %c0_63] : memref<9x32x32xbf16, #tpu.memory_space<vmem>>, vector<1x32x32xbf16>
    %53 = vector.shape_cast %52 : vector<1x32x32xbf16> to vector<32x32xbf16>
    %cst_64 = arith.constant dense<0.000000e+00> : vector<2x32xf32>
    %54 = tpu.matmul %51, %53, %cst_64 {dimension_numbers = #tpu.dot_dimension_numbers<[1], [0], [0], [1], [0, 0, 1, 1], [], []>} : vector<2x32xbf16>, vector<32x32xbf16>, vector<2x32xf32> -> vector<2x32xf32>
    %55 = arith.addf %49, %54 : vector<2x32xf32>
    %56 = vector.broadcast %0 : vector<1x32xf32> to vector<2x32xf32>
    %57 = arith.addf %55, %56 : vector<2x32xf32>
    %cst_65 = arith.constant 0.000000e+00 : f32
    %58 = vector.broadcast %cst_65 : f32 to vector<2x32xf32>
    %59 = arith.subf %58, %57 : vector<2x32xf32>
    %60 = math.exp %59 : vector<2x32xf32>
    %cst_66 = arith.constant 1.000000e+00 : f32
    %61 = vector.broadcast %cst_66 : f32 to vector<2x32xf32>
    %62 = arith.addf %61, %60 : vector<2x32xf32>
    %63 = tpu.reciprocal %62 {approx = true} : vector<2x32xf32> -> vector<2x32xf32>
    %64 = arith.mulf %57, %63 : vector<2x32xf32>
    %c0_67 = arith.constant 0 : index
    %c0_68 = arith.constant 0 : index
    %c0_69 = arith.constant 0 : index
    %c0_70 = arith.constant 0 : index
    %65 = vector.load %arg4[%c0_67, %c0_68, %c0_69, %c0_70] : memref<1x2x2x32xf32, #tpu.memory_space<vmem>>, vector<1x1x2x32xf32>
    %66 = vector.shape_cast %65 : vector<1x1x2x32xf32> to vector<2x32xf32>
    %67 = vector.shape_cast %64 : vector<2x32xf32> to vector<1x1x2x32xf32>
    tpu.vector_store %arg4[%c0_67, %c0_68, %c0_69, %c0_70], %67 {strides = array<i32>} : memref<1x2x2x32xf32, #tpu.memory_space<vmem>>, vector<1x1x2x32xf32>,
    %cst_71 = arith.constant 0.000000e+00 : f32
    %68 = vector.broadcast %cst_71 : f32 to vector<2x32xf32>
    %c1_72 = arith.constant 1 : index
    %c0_73 = arith.constant 0 : index
    %c0_74 = arith.constant 0 : index
    %c0_75 = arith.constant 0 : index
    %69 = vector.load %arg1[%c1_72, %c0_73, %c0_74, %c0_75] : memref<4x1x4x32xbf16, #tpu.memory_space<vmem>>, vector<1x1x2x32xbf16>
    %70 = vector.shape_cast %69 : vector<1x1x2x32xbf16> to vector<2x32xbf16>
    %c0_76 = arith.constant 0 : index
    %c0_77 = arith.constant 0 : index
    %c0_78 = arith.constant 0 : index
    %71 = vector.load %arg2[%c0_76, %c0_77, %c0_78] : memref<9x32x32xbf16, #tpu.memory_space<vmem>>, vector<1x32x32xbf16>
    %72 = vector.shape_cast %71 : vector<1x32x32xbf16> to vector<32x32xbf16>
    %cst_79 = arith.constant dense<0.000000e+00> : vector<2x32xf32>
    %73 = tpu.matmul %70, %72, %cst_79 {dimension_numbers = #tpu.dot_dimension_numbers<[1], [0], [0], [1], [0, 0, 1, 1], [], []>} : vector<2x32xbf16>, vector<32x32xbf16>, vector<2x32xf32> -> vector<2x32xf32>
    %74 = arith.addf %68, %73 : vector<2x32xf32>
    %c1_80 = arith.constant 1 : index
    %c0_81 = arith.constant 0 : index
    %c1_82 = arith.constant 1 : index
    %c0_83 = arith.constant 0 : index
    %75 = vector.load %arg1[%c1_80, %c0_81, %c1_82, %c0_83] : memref<4x1x4x32xbf16, #tpu.memory_space<vmem>>, vector<1x1x2x32xbf16>
    %76 = vector.shape_cast %75 : vector<1x1x2x32xbf16> to vector<2x32xbf16>
    %c1_84 = arith.constant 1 : index
    %c0_85 = arith.constant 0 : index
    %c0_86 = arith.constant 0 : index
    %77 = vector.load %arg2[%c1_84, %c0_85, %c0_86] : memref<9x32x32xbf16, #tpu.memory_space<vmem>>, vector<1x32x32xbf16>
    %78 = vector.shape_cast %77 : vector<1x32x32xbf16> to vector<32x32xbf16>
    %cst_87 = arith.constant dense<0.000000e+00> : vector<2x32xf32>
    %79 = tpu.matmul %76, %78, %cst_87 {dimension_numbers = #tpu.dot_dimension_numbers<[1], [0], [0], [1], [0, 0, 1, 1], [], []>} : vector<2x32xbf16>, vector<32x32xbf16>, vector<2x32xf32> -> vector<2x32xf32>
    %80 = arith.addf %74, %79 : vector<2x32xf32>
    %c1_88 = arith.constant 1 : index
    %c0_89 = arith.constant 0 : index
    %c2_90 = arith.constant 2 : index
    %c0_91 = arith.constant 0 : index
    %81 = vector.load %arg1[%c1_88, %c0_89, %c2_90, %c0_91] : memref<4x1x4x32xbf16, #tpu.memory_space<vmem>>, vector<1x1x2x32xbf16>
    %82 = vector.shape_cast %81 : vector<1x1x2x32xbf16> to vector<2x32xbf16>
    %c2_92 = arith.constant 2 : index
    %c0_93 = arith.constant 0 : index
    %c0_94 = arith.constant 0 : index
    %83 = vector.load %arg2[%c2_92, %c0_93, %c0_94] : memref<9x32x32xbf16, #tpu.memory_space<vmem>>, vector<1x32x32xbf16>
    %84 = vector.shape_cast %83 : vector<1x32x32xbf16> to vector<32x32xbf16>
    %cst_95 = arith.constant dense<0.000000e+00> : vector<2x32xf32>
    %85 = tpu.matmul %82, %84, %cst_95 {dimension_numbers = #tpu.dot_dimension_numbers<[1], [0], [0], [1], [0, 0, 1, 1], [], []>} : vector<2x32xbf16>, vector<32x32xbf16>, vector<2x32xf32> -> vector<2x32xf32>
    %86 = arith.addf %80, %85 : vector<2x32xf32>
    %c2_96 = arith.constant 2 : index
    %c0_97 = arith.constant 0 : index
    %c0_98 = arith.constant 0 : index
    %c0_99 = arith.constant 0 : index
    %87 = vector.load %arg1[%c2_96, %c0_97, %c0_98, %c0_99] : memref<4x1x4x32xbf16, #tpu.memory_space<vmem>>, vector<1x1x2x32xbf16>
    %88 = vector.shape_cast %87 : vector<1x1x2x32xbf16> to vector<2x32xbf16>
    %c3_100 = arith.constant 3 : index
    %c0_101 = arith.constant 0 : index
    %c0_102 = arith.constant 0 : index
    %89 = vector.load %arg2[%c3_100, %c0_101, %c0_102] : memref<9x32x32xbf16, #tpu.memory_space<vmem>>, vector<1x32x32xbf16>
    %90 = vector.shape_cast %89 : vector<1x32x32xbf16> to vector<32x32xbf16>
    %cst_103 = arith.constant dense<0.000000e+00> : vector<2x32xf32>
    %91 = tpu.matmul %88, %90, %cst_103 {dimension_numbers = #tpu.dot_dimension_numbers<[1], [0], [0], [1], [0, 0, 1, 1], [], []>} : vector<2x32xbf16>, vector<32x32xbf16>, vector<2x32xf32> -> vector<2x32xf32>
    %92 = arith.addf %86, %91 : vector<2x32xf32>
    %c2_104 = arith.constant 2 : index
    %c0_105 = arith.constant 0 : index
    %c1_106 = arith.constant 1 : index
    %c0_107 = arith.constant 0 : index
    %93 = vector.load %arg1[%c2_104, %c0_105, %c1_106, %c0_107] : memref<4x1x4x32xbf16, #tpu.memory_space<vmem>>, vector<1x1x2x32xbf16>
    %94 = vector.shape_cast %93 : vector<1x1x2x32xbf16> to vector<2x32xbf16>
    %c4_108 = arith.constant 4 : index
    %c0_109 = arith.constant 0 : index
    %c0_110 = arith.constant 0 : index
    %95 = vector.load %arg2[%c4_108, %c0_109, %c0_110] : memref<9x32x32xbf16, #tpu.memory_space<vmem>>, vector<1x32x32xbf16>
    %96 = vector.shape_cast %95 : vector<1x32x32xbf16> to vector<32x32xbf16>
    %cst_111 = arith.constant dense<0.000000e+00> : vector<2x32xf32>
    %97 = tpu.matmul %94, %96, %cst_111 {dimension_numbers = #tpu.dot_dimension_numbers<[1], [0], [0], [1], [0, 0, 1, 1], [], []>} : vector<2x32xbf16>, vector<32x32xbf16>, vector<2x32xf32> -> vector<2x32xf32>
    %98 = arith.addf %92, %97 : vector<2x32xf32>
    %c2_112 = arith.constant 2 : index
    %c0_113 = arith.constant 0 : index
    %c2_114 = arith.constant 2 : index
    %c0_115 = arith.constant 0 : index
    %99 = vector.load %arg1[%c2_112, %c0_113, %c2_114, %c0_115] : memref<4x1x4x32xbf16, #tpu.memory_space<vmem>>, vector<1x1x2x32xbf16>
    %100 = vector.shape_cast %99 : vector<1x1x2x32xbf16> to vector<2x32xbf16>
    %c5_116 = arith.constant 5 : index
    %c0_117 = arith.constant 0 : index
    %c0_118 = arith.constant 0 : index
    %101 = vector.load %arg2[%c5_116, %c0_117, %c0_118] : memref<9x32x32xbf16, #tpu.memory_space<vmem>>, vector<1x32x32xbf16>
    %102 = vector.shape_cast %101 : vector<1x32x32xbf16> to vector<32x32xbf16>
    %cst_119 = arith.constant dense<0.000000e+00> : vector<2x32xf32>
    %103 = tpu.matmul %100, %102, %cst_119 {dimension_numbers = #tpu.dot_dimension_numbers<[1], [0], [0], [1], [0, 0, 1, 1], [], []>} : vector<2x32xbf16>, vector<32x32xbf16>, vector<2x32xf32> -> vector<2x32xf32>
    %104 = arith.addf %98, %103 : vector<2x32xf32>
    %c3_120 = arith.constant 3 : index
    %c0_121 = arith.constant 0 : index
    %c0_122 = arith.constant 0 : index
    %c0_123 = arith.constant 0 : index
    %105 = vector.load %arg1[%c3_120, %c0_121, %c0_122, %c0_123] : memref<4x1x4x32xbf16, #tpu.memory_space<vmem>>, vector<1x1x2x32xbf16>
    %106 = vector.shape_cast %105 : vector<1x1x2x32xbf16> to vector<2x32xbf16>
    %c6_124 = arith.constant 6 : index
    %c0_125 = arith.constant 0 : index
    %c0_126 = arith.constant 0 : index
    %107 = vector.load %arg2[%c6_124, %c0_125, %c0_126] : memref<9x32x32xbf16, #tpu.memory_space<vmem>>, vector<1x32x32xbf16>
    %108 = vector.shape_cast %107 : vector<1x32x32xbf16> to vector<32x32xbf16>
    %cst_127 = arith.constant dense<0.000000e+00> : vector<2x32xf32>
    %109 = tpu.matmul %106, %108, %cst_127 {dimension_numbers = #tpu.dot_dimension_numbers<[1], [0], [0], [1], [0, 0, 1, 1], [], []>} : vector<2x32xbf16>, vector<32x32xbf16>, vector<2x32xf32> -> vector<2x32xf32>
    %110 = arith.addf %104, %109 : vector<2x32xf32>
    %c3_128 = arith.constant 3 : index
    %c0_129 = arith.constant 0 : index
    %c1_130 = arith.constant 1 : index
    %c0_131 = arith.constant 0 : index
    %111 = vector.load %arg1[%c3_128, %c0_129, %c1_130, %c0_131] : memref<4x1x4x32xbf16, #tpu.memory_space<vmem>>, vector<1x1x2x32xbf16>
    %112 = vector.shape_cast %111 : vector<1x1x2x32xbf16> to vector<2x32xbf16>
    %c7_132 = arith.constant 7 : index
    %c0_133 = arith.constant 0 : index
    %c0_134 = arith.constant 0 : index
    %113 = vector.load %arg2[%c7_132, %c0_133, %c0_134] : memref<9x32x32xbf16, #tpu.memory_space<vmem>>, vector<1x32x32xbf16>
    %114 = vector.shape_cast %113 : vector<1x32x32xbf16> to vector<32x32xbf16>
    %cst_135 = arith.constant dense<0.000000e+00> : vector<2x32xf32>
    %115 = tpu.matmul %112, %114, %cst_135 {dimension_numbers = #tpu.dot_dimension_numbers<[1], [0], [0], [1], [0, 0, 1, 1], [], []>} : vector<2x32xbf16>, vector<32x32xbf16>, vector<2x32xf32> -> vector<2x32xf32>
    %116 = arith.addf %110, %115 : vector<2x32xf32>
    %c3_136 = arith.constant 3 : index
    %c0_137 = arith.constant 0 : index
    %c2_138 = arith.constant 2 : index
    %c0_139 = arith.constant 0 : index
    %117 = vector.load %arg1[%c3_136, %c0_137, %c2_138, %c0_139] : memref<4x1x4x32xbf16, #tpu.memory_space<vmem>>, vector<1x1x2x32xbf16>
    %118 = vector.shape_cast %117 : vector<1x1x2x32xbf16> to vector<2x32xbf16>
    %c8_140 = arith.constant 8 : index
    %c0_141 = arith.constant 0 : index
    %c0_142 = arith.constant 0 : index
    %119 = vector.load %arg2[%c8_140, %c0_141, %c0_142] : memref<9x32x32xbf16, #tpu.memory_space<vmem>>, vector<1x32x32xbf16>
    %120 = vector.shape_cast %119 : vector<1x32x32xbf16> to vector<32x32xbf16>
    %cst_143 = arith.constant dense<0.000000e+00> : vector<2x32xf32>
    %121 = tpu.matmul %118, %120, %cst_143 {dimension_numbers = #tpu.dot_dimension_numbers<[1], [0], [0], [1], [0, 0, 1, 1], [], []>} : vector<2x32xbf16>, vector<32x32xbf16>, vector<2x32xf32> -> vector<2x32xf32>
    %122 = arith.addf %116, %121 : vector<2x32xf32>
    %123 = vector.broadcast %0 : vector<1x32xf32> to vector<2x32xf32>
    %124 = arith.addf %122, %123 : vector<2x32xf32>
    %cst_144 = arith.constant 0.000000e+00 : f32
    %125 = vector.broadcast %cst_144 : f32 to vector<2x32xf32>
    %126 = arith.subf %125, %124 : vector<2x32xf32>
    %127 = math.exp %126 : vector<2x32xf32>
    %cst_145 = arith.constant 1.000000e+00 : f32
    %128 = vector.broadcast %cst_145 : f32 to vector<2x32xf32>
    %129 = arith.addf %128, %127 : vector<2x32xf32>
    %130 = tpu.reciprocal %129 {approx = true} : vector<2x32xf32> -> vector<2x32xf32>
    %131 = arith.mulf %124, %130 : vector<2x32xf32>
    %c0_146 = arith.constant 0 : index
    %c1_147 = arith.constant 1 : index
    %c0_148 = arith.constant 0 : index
    %c0_149 = arith.constant 0 : index
    %132 = vector.load %arg4[%c0_146, %c1_147, %c0_148, %c0_149] : memref<1x2x2x32xf32, #tpu.memory_space<vmem>>, vector<1x1x2x32xf32>
    %133 = vector.shape_cast %132 : vector<1x1x2x32xf32> to vector<2x32xf32>
    %134 = vector.shape_cast %131 : vector<2x32xf32> to vector<1x1x2x32xf32>
    tpu.vector_store %arg4[%c0_146, %c1_147, %c0_148, %c0_149], %134 {strides = array<i32>} : memref<1x2x2x32xf32, #tpu.memory_space<vmem>>, vector<1x1x2x32xf32>,
    return
  }
  func.func @transform_0(%arg0: i32) -> (i32, i32, i32, i32) {
    %c0_i32 = arith.constant 0 : i32
    %c0_i32_0 = arith.constant 0 : i32
    %c0_i32_1 = arith.constant 0 : i32
    %c0_i32_2 = arith.constant 0 : i32
    return %arg0, %c0_i32, %c0_i32_0, %c0_i32_1 : i32, i32, i32, i32
  }
  func.func @transform_1(%arg0: i32) -> (i32, i32, i32) {
    %c0_i32 = arith.constant 0 : i32
    %c0_i32_0 = arith.constant 0 : i32
    %c0_i32_1 = arith.constant 0 : i32
    %c0_i32_2 = arith.constant 0 : i32
    return %c0_i32, %c0_i32_0, %c0_i32_1 : i32, i32, i32
  }
  func.func @transform_2(%arg0: i32) -> (i32, i32) {
    %c0_i32 = arith.constant 0 : i32
    %c0_i32_0 = arith.constant 0 : i32
    %c0_i32_1 = arith.constant 0 : i32
    return %c0_i32, %c0_i32_0 : i32, i32
  }
  func.func @transform_3(%arg0: i32) -> (i32, i32, i32, i32) {
    %c0_i32 = arith.constant 0 : i32
    %c0_i32_0 = arith.constant 0 : i32
    %c0_i32_1 = arith.constant 0 : i32
    %c0_i32_2 = arith.constant 0 : i32
    return %arg0, %c0_i32, %c0_i32_0, %c0_i32_1 : i32, i32, i32, i32
  }
}

module attributes {stable_mosaic.version = 11 : i64} {
  func.func @_gemm_bias_silu_kernel(%arg0: i32, %arg1: memref<32x48xbf16, #tpu.memory_space<vmem>>, %arg2: memref<48x16xbf16, #tpu.memory_space<vmem>>, %arg3: memref<1x16xf32, #tpu.memory_space<vmem>>, %arg4: memref<32x16xf32, #tpu.memory_space<vmem>>) attributes {dimension_semantics = [#tpu.dimension_semantics<parallel>], iteration_bounds = array<i64: 1>, scalar_prefetch = 0 : i64, scratch_operands = 0 : i64, tpu.core_type = #tpu.core_type<tc>, window_params = [{transform_indices = @transform_0, window_bounds = array<i64: 32, 48>}, {pipeline_mode = #tpu.pipeline_mode<synchronous>, transform_indices = @transform_1, window_bounds = array<i64: 48, 16>}, {pipeline_mode = #tpu.pipeline_mode<synchronous>, transform_indices = @transform_2, window_bounds = array<i64: 1, 16>}, {transform_indices = @transform_3, window_bounds = array<i64: 32, 16>}]} {
    %c0 = arith.constant 0 : index
    %c0_0 = arith.constant 0 : index
    %0 = vector.load %arg1[%c0, %c0_0] : memref<32x48xbf16, #tpu.memory_space<vmem>>, vector<32x48xbf16>
    %c0_1 = arith.constant 0 : index
    %c0_2 = arith.constant 0 : index
    %1 = vector.load %arg2[%c0_1, %c0_2] : memref<48x16xbf16, #tpu.memory_space<vmem>>, vector<48x16xbf16>
    %cst = arith.constant dense<0.000000e+00> : vector<32x16xf32>
    %2 = tpu.matmul %0, %1, %cst {dimension_numbers = #tpu.dot_dimension_numbers<[1], [0], [0], [1], [0, 0, 1, 1], [], []>} : vector<32x48xbf16>, vector<48x16xbf16>, vector<32x16xf32> -> vector<32x16xf32>
    %c0_3 = arith.constant 0 : index
    %c0_4 = arith.constant 0 : index
    %3 = vector.load %arg3[%c0_3, %c0_4] : memref<1x16xf32, #tpu.memory_space<vmem>>, vector<1x16xf32>
    %4 = vector.broadcast %3 : vector<1x16xf32> to vector<32x16xf32>
    %5 = arith.addf %2, %4 : vector<32x16xf32>
    %cst_5 = arith.constant 0.000000e+00 : f32
    %6 = vector.broadcast %cst_5 : f32 to vector<32x16xf32>
    %7 = arith.subf %6, %5 : vector<32x16xf32>
    %8 = math.exp %7 : vector<32x16xf32>
    %cst_6 = arith.constant 1.000000e+00 : f32
    %9 = vector.broadcast %cst_6 : f32 to vector<32x16xf32>
    %10 = arith.addf %9, %8 : vector<32x16xf32>
    %11 = tpu.reciprocal %10 {approx = true} : vector<32x16xf32> -> vector<32x16xf32>
    %12 = arith.mulf %5, %11 : vector<32x16xf32>
    %c0_7 = arith.constant 0 : index
    %c0_8 = arith.constant 0 : index
    %13 = vector.load %arg4[%c0_7, %c0_8] : memref<32x16xf32, #tpu.memory_space<vmem>>, vector<32x16xf32>
    tpu.vector_store %arg4[%c0_7, %c0_8], %12 {strides = array<i32>} : memref<32x16xf32, #tpu.memory_space<vmem>>, vector<32x16xf32>,
    return
  }
  func.func @transform_0(%arg0: i32) -> (i32, i32) {
    %c0_i32 = arith.constant 0 : i32
    %c0_i32_0 = arith.constant 0 : i32
    return %arg0, %c0_i32 : i32, i32
  }
  func.func @transform_1(%arg0: i32) -> (i32, i32) {
    %c0_i32 = arith.constant 0 : i32
    %c0_i32_0 = arith.constant 0 : i32
    %c0_i32_1 = arith.constant 0 : i32
    return %c0_i32, %c0_i32_0 : i32, i32
  }
  func.func @transform_2(%arg0: i32) -> (i32, i32) {
    %c0_i32 = arith.constant 0 : i32
    %c0_i32_0 = arith.constant 0 : i32
    %c0_i32_1 = arith.constant 0 : i32
    return %c0_i32, %c0_i32_0 : i32, i32
  }
  func.func @transform_3(%arg0: i32) -> (i32, i32) {
    %c0_i32 = arith.constant 0 : i32
    %c0_i32_0 = arith.constant 0 : i32
    return %arg0, %c0_i32 : i32, i32
  }
}

module attributes {stable_mosaic.version = 11 : i64} {
  func.func @_gemm_bias_silu_kernel(%arg0: i32, %arg1: memref<8x32xbf16, #tpu.memory_space<vmem>>, %arg2: memref<32x32xbf16, #tpu.memory_space<vmem>>, %arg3: memref<1x32xf32, #tpu.memory_space<vmem>>, %arg4: memref<8x32xf32, #tpu.memory_space<vmem>>) attributes {dimension_semantics = [#tpu.dimension_semantics<parallel>], iteration_bounds = array<i64: 1>, scalar_prefetch = 0 : i64, scratch_operands = 0 : i64, tpu.core_type = #tpu.core_type<tc>, window_params = [{transform_indices = @transform_0, window_bounds = array<i64: 8, 32>}, {pipeline_mode = #tpu.pipeline_mode<synchronous>, transform_indices = @transform_1, window_bounds = array<i64: 32, 32>}, {pipeline_mode = #tpu.pipeline_mode<synchronous>, transform_indices = @transform_2, window_bounds = array<i64: 1, 32>}, {transform_indices = @transform_3, window_bounds = array<i64: 8, 32>}]} {
    %c0 = arith.constant 0 : index
    %c0_0 = arith.constant 0 : index
    %0 = vector.load %arg1[%c0, %c0_0] : memref<8x32xbf16, #tpu.memory_space<vmem>>, vector<8x32xbf16>
    %c0_1 = arith.constant 0 : index
    %c0_2 = arith.constant 0 : index
    %1 = vector.load %arg2[%c0_1, %c0_2] : memref<32x32xbf16, #tpu.memory_space<vmem>>, vector<32x32xbf16>
    %cst = arith.constant dense<0.000000e+00> : vector<8x32xf32>
    %2 = tpu.matmul %0, %1, %cst {dimension_numbers = #tpu.dot_dimension_numbers<[1], [0], [0], [1], [0, 0, 1, 1], [], []>} : vector<8x32xbf16>, vector<32x32xbf16>, vector<8x32xf32> -> vector<8x32xf32>
    %c0_3 = arith.constant 0 : index
    %c0_4 = arith.constant 0 : index
    %3 = vector.load %arg3[%c0_3, %c0_4] : memref<1x32xf32, #tpu.memory_space<vmem>>, vector<1x32xf32>
    %4 = vector.broadcast %3 : vector<1x32xf32> to vector<8x32xf32>
    %5 = arith.addf %2, %4 : vector<8x32xf32>
    %cst_5 = arith.constant 0.000000e+00 : f32
    %6 = vector.broadcast %cst_5 : f32 to vector<8x32xf32>
    %7 = arith.subf %6, %5 : vector<8x32xf32>
    %8 = math.exp %7 : vector<8x32xf32>
    %cst_6 = arith.constant 1.000000e+00 : f32
    %9 = vector.broadcast %cst_6 : f32 to vector<8x32xf32>
    %10 = arith.addf %9, %8 : vector<8x32xf32>
    %11 = tpu.reciprocal %10 {approx = true} : vector<8x32xf32> -> vector<8x32xf32>
    %12 = arith.mulf %5, %11 : vector<8x32xf32>
    %c0_7 = arith.constant 0 : index
    %c0_8 = arith.constant 0 : index
    %13 = vector.load %arg4[%c0_7, %c0_8] : memref<8x32xf32, #tpu.memory_space<vmem>>, vector<8x32xf32>
    tpu.vector_store %arg4[%c0_7, %c0_8], %12 {strides = array<i32>} : memref<8x32xf32, #tpu.memory_space<vmem>>, vector<8x32xf32>,
    return
  }
  func.func @transform_0(%arg0: i32) -> (i32, i32) {
    %c0_i32 = arith.constant 0 : i32
    %c0_i32_0 = arith.constant 0 : i32
    return %arg0, %c0_i32 : i32, i32
  }
  func.func @transform_1(%arg0: i32) -> (i32, i32) {
    %c0_i32 = arith.constant 0 : i32
    %c0_i32_0 = arith.constant 0 : i32
    %c0_i32_1 = arith.constant 0 : i32
    return %c0_i32, %c0_i32_0 : i32, i32
  }
  func.func @transform_2(%arg0: i32) -> (i32, i32) {
    %c0_i32 = arith.constant 0 : i32
    %c0_i32_0 = arith.constant 0 : i32
    %c0_i32_1 = arith.constant 0 : i32
    return %c0_i32, %c0_i32_0 : i32, i32
  }
  func.func @transform_3(%arg0: i32) -> (i32, i32) {
    %c0_i32 = arith.constant 0 : i32
    %c0_i32_0 = arith.constant 0 : i32
    return %arg0, %c0_i32 : i32, i32
  }
}

</mosaic_0001>

<bundles_post_ra>
// kernel: _lambda_.8
= control target key start
LH: loop header
LB: loop body
LE: loop exit
PB: predicated region body
PF: predicated region fallthrough
CT: control target
= control target key end

     0   :  { %s1677_s12 = smov 0   ;;  %s1857_s0 = inlined_call_operand.vmem [shape: bf16[6,2,3,32], index: 0, kind: input, shape index: {}]   ;;  %s1858_s1 = inlined_call_operand.vmem [shape: bf16[9,16,32], index: 1, kind: input, shape index: {}]   ;;  %s1859_s2 = inlined_call_operand.vmem [shape: f32[1,32], index: 2, kind: input, shape index: {}]   ;;  %s1860_s3 = inlined_call_operand.vmem [shape: f32[2,2,2,32], index: 3, kind: output, shape index: {}]  }
   0x1 LB: > { %s1683_s13 = sadd.s32 4294967295, %s1651_s12   ;;  %p1368_p0 = scmp.ge.s32.totalorder %s1651_s12, 1  ;;  %s1651_s12 = sphi %s1677_s12, %s13_s12  }
   0x2   : > { %p139_p1 = scmp.lt.s32.totalorder %s1651_s12, 3 }
   0x4   : > { %p140_p2 = pnand %p1368_p0, %p139_p1 }
   0x5   : > { %s164_s14 = smul.u32 (!%p140_p2), 3, %s1683_s13  ;;  %s1656_s25 = smov (!%p140_p2), 112  }
   0x6   : > { %143 = sbr.rel (%p140_p2) target bundleno = 435 (0x1b3), region = 32  ;;  %p171_p4 = scmp.lt.s32.totalorder (!%p140_p2), %s1683_s13, 1 }
   0x7   : > { %p165_p3 = scmp.lt.s32.totalorder (!%p140_p2), %s164_s14, 5 }
   0xb   : > { %v188_v0 = vlaneseq  ;;  %v1619_v1 = vld [vmem:[%s1858_s1] sm:$0xff]   ;;  %v1653_v2 = vmov 1983009808   ;;  %v1654_v4 = vmov 0.0   ;;  %v1620_v5 = vld [vmem:[%s1858_s1 + $0x8] sm:$0xff]   ;;  %vm1655_vm0 = vmmov 0  }
   0xc   : > { %v186_v3 = vunpack.c.l.s4 %v1653_v2  ;;  %1505 = vmatprep.subr.bf16.mxu1 %v1654_v4  ;;  %1499 = vmatprep.subr.bf16.mxu0 %v1654_v4  ;;  %s1862_s14 = smov (!%p165_p3, %s164_s14), 5  ;;  %vm200_vm1 = vcmask 130048   ;;  %v1622_v9 = vld [vmem:[%s1858_s1 + $0x18] sm:$0xff]   ;;  %v1624_v22 = vld [vmem:[%s1858_s1 + $0x28] sm:$0xff]   ;;  %v1621_v31 = vld [vmem:[%s1858_s1 + $0x10] sm:$0xff]   ;;  %s1864_s13 = smov (!%p171_p4, %s1683_s13), 1 }
   0xd   : > { %v189_v6 = vshrl.u32 %v188_v0, 7  ;;  %1506 = vmatpush3.bf16.msra.mxu1 %v1619_v1  ;;  %1507 = vmatprep.mubr.msk.bf16.mxu1 %vm1655_vm0, %v1654_v4  ;;  %s1461_s19 = sshll.u32 %s1862_s14, 2  ;;  %v1626_v28 = vld [vmem:[%s1858_s1 + $0x38] sm:$0xff]   ;;  %v1628_v32 = vld [vmem:[%s1858_s1 + $0x8] sm:$0xff]   ;;  %v1623_v39 = vld [vmem:[%s1858_s1 + $0x20] sm:$0xff]   ;;  %s1462_s6 = sshll.u32 %s1864_s13, 2 }
   0xe   : > { %v187_v7 = vunpack.c.0.s8 %v186_v3  ;;  %1500 = vmatpush3.bf16.msra.mxu0 %v1620_v5  ;;  %1501 = vmatprep.mubr.msk.bf16.mxu0 %vm1655_vm0, %v1654_v4  ;;  %s1708_s24 = scalar_lea.vmem %s1857_s0, %s1461_s19  ;;  %v1630_v42 = vld [vmem:[%s1858_s1 + $0x10] sm:$0xff]   ;;  %v1632_v48 = vld [vmem:[%s1858_s1 + $0x20] sm:$0xff]   ;;  %v1631_v59 = vld [vmem:[%s1858_s1 + $0x18] sm:$0xff]   ;;  %s175_s9 = scalar_lea.vmem %s1860_s3, %s1462_s6  ;;  %vm749_vm2 = vcmask 254976  }
   0xf   : > { %1511 = vmatprep.subr.bf16.mxu0 %v1654_v4  ;;  %1517 = vmatprep.subr.bf16.mxu1 %v1654_v4  ;;  %v178_v10 = vld [vmem:[%s1708_s24] sm:$0x1]  ;;  %v1384_v11 = vld [vmem:[%s1708_s24 + $0x2] sm:$0x1]  ;;  %v1713_v12 = vld [vmem:[%s1708_s24 + $0x4] sm:$0x1] }
  0x10   : > { %v190_v8 = vsub.s32 %v187_v7, %v189_v6  ;;  %v1717_v15 = vld [vmem:[%s1708_s24 + $0x4] sm:$0x1]  ;;  %1508 = vmatmul.mubr.msk.bf16.vlgmr.msra.gmra.mxu1 %vm200_vm1, %v178_v10  ;;  %v1721_v16 = vld [vmem:[%s1708_s24 + $0x6] sm:$0x1]  ;;  %v1727_v19 = vld [vmem:[%s1708_s24 + $0x8] sm:$0x1] }
  0x11   : > { %1518 = vmatpush3.bf16.msra.mxu1 %v1622_v9  ;;  %1519 = vmatprep.mubr.msk.bf16.mxu1 %vm1655_vm0, %v1654_v4  ;;  %v1396_v20 = vld.sshfl [vmem:[%s1708_s24 + $0x2] sm:$0x3 pattern:$0x76325410]  ;;  %v1625_v46 = vld [vmem:[%s1858_s1 + $0x30] sm:$0xff]   ;;  %v1633_v62 = vld [vmem:[%s1858_s1 + $0x28] sm:$0xff]  }
  0x12   : > { %v191_v13 = vrot.slane %v178_v10, %v190_v8  ;;  %v614_v14 = vrot.slane %v1713_v12, %v190_v8  ;;  %v427_v17 = vrot.slane %v1384_v11, %v190_v8  ;;  %v763_v18 = vrot.slane %v1717_v15, %v190_v8  ;;  %1529 = vmatprep.subr.bf16.mxu1 %v1654_v4  ;;  %v1381_v29 = vld.sshfl [vmem:[%s1708_s24] sm:$0x3 pattern:$0x76325410]  ;;  %v1634_v51 = vld [vmem:[%s1858_s1 + $0x30] sm:$0xff]   ;;  %v1635_v2 = vld [vmem:[%s1858_s1 + $0x38] sm:$0xff]  }
  0x13   : > { %v495_v21 = vshll.u32 %v1396_v20, 16  ;;  %v995_v23 = vrot.slane %v1721_v16, %v190_v8  ;;  %v1179_v24 = vrot.slane %v1727_v19, %v190_v8  ;;  %v493_v25 = vshrl.u32 %v1396_v20, 16  ;;  %v1411_v37 = vld.sshfl [vmem:[%s1708_s24 + $0x4] sm:$0x3 pattern:$0x76325410] }
  0x14   : > { %192 = vrot.lane.b32.xlu0 %v191_v13, %s1656_s25  ;;  %615 = vrot.lane.b32.xlu1 %v614_v14, %s1656_s25  ;;  %v308_v30 = vshll.u32 %v1381_v29, 16  ;;  %v306_v35 = vshrl.u32 %v1381_v29, 16  ;;  %v682_v41 = vshll.u32 %v1411_v37, 16  ;;  %v680_v43 = vshrl.u32 %v1411_v37, 16  ;;  %v1627_v49 = vld [vmem:[%s1858_s1 + $0x40] sm:$0xff]  }
  0x15   : > { %v497_v26 = vrot.slane %v495_v21, 1  ;;  %v1455_v52 = vld.sshfl [vmem:[%s1708_s24 + $0x8] sm:$0x3 pattern:$0x76325410]  ;;  %v1629_v54 = vld [vmem:[%s1858_s1] sm:$0xff]  }
  0x16   : > { %v310_v36 = vrot.slane %v308_v30, 1  ;;  %v684_v44 = vrot.slane %v682_v41, 1  ;;  %v1246_v53 = vshll.u32 %v1455_v52, 16  ;;  %v1636_v55 = vld [vmem:[%s1858_s1 + $0x40] sm:$0xff]   ;;  %v1244_v56 = vshrl.u32 %v1455_v52, 16 }
  0x17   : > { %v498_v27 = vor.u32 %v497_v26, %v493_v25  ;;  %v1440_v60 = vld.sshfl [vmem:[%s1708_s24 + $0x6] sm:$0x3 pattern:$0x76325410] }
  0x18   : > { %428 = vrot.lane.b32.xlu0 %v427_v17, %s1656_s25  ;;  %764 = vrot.lane.b32.xlu1 %v763_v18, %s1656_s25  ;;  %v311_v38 = vor.u32 %v310_v36, %v306_v35  ;;  %v685_v47 = vor.u32 %v684_v44, %v680_v43  ;;  %v1248_v57 = vrot.slane %v1246_v53, 1  ;;  %v1062_v61 = vshll.u32 %v1440_v60, 16 }
  0x19   : > { %1520 = vmatmul.mubr.msk.bf16.vlgmr.msra.gmra.mxu1 %vm200_vm1, %v1384_v11  ;;  %v1060_v63 = vshrl.u32 %v1440_v60, 16 }
  0x1a   : > { %1530 = vmatpush3.bf16.msra.mxu1 %v1624_v22  ;;  %1531 = vmatprep.mubr.msk.bf16.mxu1 %vm1655_vm0, %v1654_v4  ;;  %v1249_v58 = vor.u32 %v1248_v57, %v1244_v56  ;;  %v1064_v0 = vrot.slane %v1062_v61, 1 }
  0x1b   : > { %1541 = vmatprep.subr.bf16.mxu1 %v1654_v4 }
  0x1c   : > { %996 = vrot.lane.b32.xlu0 %v995_v23, %s1656_s25  ;;  %1180 = vrot.lane.b32.xlu1 %v1179_v24, %s1656_s25  ;;  %v1065_v1 = vor.u32 %v1064_v0, %v1060_v63 }
  0x21   : > { %1532 = vmatmul.mubr.msk.bf16.vlgmr.msra.gmra.mxu1 %vm200_vm1, %v498_v27 }
  0x22   : > { %1542 = vmatpush3.bf16.msra.mxu1 %v1626_v28  ;;  %1543 = vmatprep.mubr.msk.bf16.mxu1 %vm1655_vm0, %v1654_v4 }
  0x23   : > { %1553 = vmatprep.subr.bf16.mxu1 %v1654_v4 }
  0x86   : > { %v193_v33 = vpop.permute.xlu0 %192  ;;  %v616_v34 = vpop.permute.xlu1 %615 }
  0x87   : > { %1502 = vmatmul.mubr.msk.bf16.vlgmr.msra.gmra.mxu0 %vm200_vm1, %v193_v33  ;;  %1544 = vmatmul.mubr.msk.bf16.vlgmr.msra.gmra.mxu1 %vm200_vm1, %v616_v34 }
  0x88   : > { %1512 = vmatpush3.bf16.msra.mxu0 %v1621_v31  ;;  %1513 = vmatprep.mubr.msk.bf16.mxu0 %vm1655_vm0, %v1654_v4 }
  0x89   : > { %1523 = vmatprep.subr.bf16.mxu0 %v1654_v4  ;;  %1554 = vmatpush3.bf16.msra.mxu1 %v1628_v32 }
  0x8a   : > { %1555 = vmatprep.mubr.msk.bf16.mxu1 %vm1655_vm0, %v1654_v4  ;;  %1565 = vmatprep.subr.bf16.mxu1 %v1654_v4  ;;  %v765_v40 = vpop.permute.xlu1 %764  ;;  %v429_v45 = vpop.permute.xlu0 %428 }
  0x8e   : > { %v997_v50 = vpop.permute.xlu0 %996  ;;  %v1181_v3 = vpop.permute.xlu1 %1180 }
  0x8f   : > { %1514 = vmatmul.mubr.msk.bf16.vlgmr.msra.gmra.mxu0 %vm200_vm1, %v311_v38  ;;  %1556 = vmatmul.mubr.msk.bf16.vlgmr.msra.gmra.mxu1 %vm200_vm1, %v765_v40 }
  0x90   : > { %1524 = vmatpush3.bf16.msra.mxu0 %v1623_v39  ;;  %1525 = vmatprep.mubr.msk.bf16.mxu0 %vm1655_vm0, %v1654_v4 }
  0x91   : > { %1535 = vmatprep.subr.bf16.mxu0 %v1654_v4  ;;  %1566 = vmatpush3.bf16.msra.mxu1 %v1630_v42 }
  0x92   : > { %1567 = vmatprep.mubr.msk.bf16.mxu1 %vm1655_vm0, %v1654_v4  ;;  %1577 = vmatprep.subr.bf16.mxu1 %v1654_v4 }
  0x97   : > { %1526 = vmatmul.mubr.msk.bf16.vlgmr.msra.gmra.mxu0 %vm200_vm1, %v429_v45  ;;  %1568 = vmatmul.mubr.msk.bf16.vlgmr.msra.gmra.mxu1 %vm200_vm1, %v685_v47 }
  0x98   : > { %1536 = vmatpush3.bf16.msra.mxu0 %v1625_v46  ;;  %1537 = vmatprep.mubr.msk.bf16.mxu0 %vm1655_vm0, %v1654_v4 }
  0x99   : > { %1547 = vmatprep.subr.bf16.mxu0 %v1654_v4  ;;  %1578 = vmatpush3.bf16.msra.mxu1 %v1632_v48 }
  0x9a   : > { %1579 = vmatprep.mubr.msk.bf16.mxu1 %vm1655_vm0, %v1654_v4  ;;  %1589 = vmatprep.subr.bf16.mxu1 %v1654_v4 }
  0x9f   : > { %1538 = vmatmul.mubr.msk.bf16.vlgmr.msra.gmra.mxu0 %vm200_vm1, %v1713_v12  ;;  %1580 = vmatmul.mubr.msk.bf16.vlgmr.msra.gmra.mxu1 %vm200_vm1, %v997_v50 }
  0xa0   : > { %1548 = vmatpush3.bf16.msra.mxu0 %v1627_v49  ;;  %1549 = vmatprep.mubr.msk.bf16.mxu0 %vm1655_vm0, %v1654_v4 }
  0xa1   : > { %1559 = vmatprep.subr.bf16.mxu0 %v1654_v4  ;;  %1590 = vmatpush3.bf16.msra.mxu1 %v1634_v51 }
  0xa2   : > { %1591 = vmatprep.mubr.msk.bf16.mxu1 %vm1655_vm0, %v1654_v4  ;;  %1601 = vmatprep.subr.bf16.mxu1 %v1654_v4 }
  0xa7   : > { %1550 = vmatmul.mubr.msk.bf16.vlgmr.msra.gmra.mxu0 %vm200_vm1, %v685_v47  ;;  %1592 = vmatmul.mubr.msk.bf16.vlgmr.msra.gmra.mxu1 %vm200_vm1, %v1727_v19 }
  0xa8   : > { %1560 = vmatpush3.bf16.msra.mxu0 %v1629_v54  ;;  %1561 = vmatprep.mubr.msk.bf16.mxu0 %vm1655_vm0, %v1654_v4 }
  0xa9   : > { %1571 = vmatprep.subr.bf16.mxu0 %v1654_v4  ;;  %1602 = vmatpush3.bf16.msra.mxu1 %v1636_v55  ;;  %v1414_v55 = vld [vmem:[%s1859_s2] ss:$0 sm:$0xff] }
  0xaa   : > { %1603 = vmatprep.mubr.msk.bf16.mxu1 %vm1655_vm0, %v1654_v4 }
  0xaf   : > { %1562 = vmatmul.mubr.msk.bf16.vlgmr.msra.gmra.mxu0 %vm200_vm1, %v1717_v15  ;;  %1604 = vmatmul.mubr.msk.bf16.vlgmr.msra.gmra.mxu1 %vm200_vm1, %v1249_v58 }
  0xb0   : > { %1572 = vmatpush3.bf16.msra.mxu0 %v1631_v59  ;;  %1573 = vmatprep.mubr.msk.bf16.mxu0 %vm1655_vm0, %v1654_v4 }
  0xb1   : > { %1583 = vmatprep.subr.bf16.mxu0 %v1654_v4 }
  0xb7   : > { %1574 = vmatmul.mubr.msk.bf16.vlgmr.msra.gmra.mxu0 %vm200_vm1, %v1721_v16 }
  0xb8   : > { %1584 = vmatpush3.bf16.msra.mxu0 %v1633_v62  ;;  %1585 = vmatprep.mubr.msk.bf16.mxu0 %vm1655_vm0, %v1654_v4 }
  0xb9   : > { %1595 = vmatprep.subr.bf16.mxu0 %v1654_v4 }
  0xbf   : > { %1586 = vmatmul.mubr.msk.bf16.vlgmr.msra.gmra.mxu0 %vm200_vm1, %v1065_v1 }
  0xc0   : > { %1596 = vmatpush3.bf16.msra.mxu0 %v1635_v2  ;;  %1597 = vmatprep.mubr.msk.bf16.mxu0 %vm1655_vm0, %v1654_v4 }
  0xc7   : > { %1598 = vmatmul.mubr.msk.bf16.vlgmr.msra.gmra.mxu0 %vm200_vm1, %v1181_v3 }
  0xd0   : > { %v287_v5 = vpop.f32.mrf.mxu1 }
  0xd2   : > { %v1509_v6 = vpop.f32.mrf.mxu1 }
  0xd4   : > { %v290_v7 = vpop.f32.mrf.mxu1 }
  0xd6   : > { %v1510_v8 = vpop.f32.mrf.mxu1 }
  0xd9   : > { %v410_v9 = vpop.f32.mrf.mxu1 }
  0xdb   : > { %v1521_v10 = vpop.f32.mrf.mxu1 }
  0xdd   : > { %v413_v11 = vpop.f32.mrf.mxu1 }
  0xdf   : > { %v1522_v12 = vpop.f32.mrf.mxu1 }
  0xe1   : > { %v542_v13 = vpop.f32.mrf.mxu1 }
  0xe3   : > { %v1533_v14 = vpop.f32.mrf.mxu1 }
  0xe5   : > { %v545_v15 = vpop.f32.mrf.mxu1 }
  0xe7   : > { %v1534_v16 = vpop.f32.mrf.mxu1 }
 0x147   : > { %v238_v17 = vpop.f32.mrf.mxu0  ;;  %v660_v18 = vpop.f32.mrf.mxu1 }
 0x148   : > { %v288_v30 = vadd.f32 %v287_v5, %v238_v17 }
 0x149   : > { %v1503_v19 = vpop.f32.mrf.mxu0  ;;  %v1545_v20 = vpop.f32.mrf.mxu1 }
 0x14b   : > { %v241_v4 = vpop.f32.mrf.mxu0  ;;  %v663_v21 = vpop.f32.mrf.mxu1 }
 0x14d   : > { %v1504_v22 = vpop.f32.mrf.mxu0  ;;  %v1546_v23 = vpop.f32.mrf.mxu1 }
 0x14f   : > { %v355_v24 = vpop.f32.mrf.mxu0  ;;  %v809_v25 = vpop.f32.mrf.mxu1 }
 0x150   : > { %v361_v33 = vadd.f32 %v355_v24, %v288_v30 }
 0x151   : > { %v1515_v26 = vpop.f32.mrf.mxu0  ;;  %v1557_v27 = vpop.f32.mrf.mxu1 }
 0x152   : > { %v416_v38 = vadd.f32 %v410_v9, %v361_v33 }
 0x153   : > { %v358_v28 = vpop.f32.mrf.mxu0  ;;  %v812_v29 = vpop.f32.mrf.mxu1 }
 0x155   : > { %v1516_v31 = vpop.f32.mrf.mxu0  ;;  %v1558_v32 = vpop.f32.mrf.mxu1 }
 0x157   : > { %v473_v34 = vpop.f32.mrf.mxu0  ;;  %v925_v35 = vpop.f32.mrf.mxu1 }
 0x158   : > { %v479_v41 = vadd.f32 %v473_v34, %v416_v38 }
 0x159   : > { %v1527_v36 = vpop.f32.mrf.mxu0  ;;  %v1569_v37 = vpop.f32.mrf.mxu1 }
 0x15a   : > { %v548_v46 = vadd.f32 %v542_v13, %v479_v41 }
 0x15b   : > { %v476_v39 = vpop.f32.mrf.mxu0  ;;  %v928_v40 = vpop.f32.mrf.mxu1 }
 0x15d   : > { %v1528_v42 = vpop.f32.mrf.mxu0  ;;  %v1570_v43 = vpop.f32.mrf.mxu1 }
 0x15f   : > { %v597_v44 = vpop.f32.mrf.mxu0  ;;  %v1041_v45 = vpop.f32.mrf.mxu1 }
 0x160   : > { %v603_v49 = vadd.f32 %v597_v44, %v548_v46 }
 0x161   : > { %v1539_v47 = vpop.f32.mrf.mxu0  ;;  %v1581_v48 = vpop.f32.mrf.mxu1 }
 0x162   : > { %v666_v54 = vadd.f32 %v660_v18, %v603_v49 }
 0x163   : > { %v600_v50 = vpop.f32.mrf.mxu0  ;;  %v1044_v51 = vpop.f32.mrf.mxu1 }
 0x165   : > { %v1540_v52 = vpop.f32.mrf.mxu0  ;;  %v1582_v53 = vpop.f32.mrf.mxu1 }
 0x167   : > { %v729_v56 = vpop.f32.mrf.mxu0  ;;  %v1163_v57 = vpop.f32.mrf.mxu1 }
 0x168   : > { %v735_v58 = vadd.f32 %v729_v56, %v666_v54 }
 0x169   : > { %v1551_v59 = vpop.f32.mrf.mxu0  ;;  %v1593_v60 = vpop.f32.mrf.mxu1 }
 0x16a   : > { %v742_v61 = vadd.f32 %v1414_v55, %v735_v58 }
 0x16b   : > { %v732_v62 = vpop.f32.mrf.mxu0  ;;  %v1166_v63 = vpop.f32.mrf.mxu1 }
 0x16c   : > { %v743_v0 = vsub.f32 0.0, %v742_v61 }
 0x16d   : > { %v1552_v1 = vpop.f32.mrf.mxu0  ;;  %v1594_v2 = vpop.f32.mrf.mxu1 }
 0x16e   : > { %v744_v3 = vmul.f32 1.442695, %v743_v0 }
 0x16f   : > { %v858_v5 = vpop.f32.mrf.mxu0  ;;  %v1293_v6 = vpop.f32.mrf.mxu1 }
 0x170   : > { %1637 = vpow2.f32 %v744_v3  ;;  %v859_v13 = vadd.f32 %v858_v5, %v809_v25 }
 0x171   : > { %v1563_v7 = vpop.f32.mrf.mxu0  ;;  %v1605_v8 = vpop.f32.mrf.mxu1 }
 0x172   : > { %v931_v16 = vadd.f32 %v925_v35, %v859_v13 }
 0x173   : > { %v861_v9 = vpop.f32.mrf.mxu0  ;;  %v1296_v10 = vpop.f32.mrf.mxu1 }
 0x175   : > { %v1564_v11 = vpop.f32.mrf.mxu0  ;;  %v1606_v12 = vpop.f32.mrf.mxu1 }
 0x177   : > { %v979_v14 = vpop.f32.mrf.mxu0 }
 0x178   : > { %v985_v18 = vadd.f32 %v979_v14, %v931_v16 }
 0x179   : > { %v1575_v15 = vpop.f32.mrf.mxu0 }
 0x17a   : > { %v1047_v22 = vadd.f32 %v1041_v45, %v985_v18 }
 0x17b   : > { %v982_v17 = vpop.f32.mrf.mxu0 }
 0x17d   : > { %v1638_v19 = vpop.eup %1637  ;;  %v1576_v20 = vpop.f32.mrf.mxu0 }
 0x17e   : > { %v746_v4 = vadd.f32 1.0, %v1638_v19 }
 0x17f   : > { %v1109_v21 = vpop.f32.mrf.mxu0 }
 0x180   : > { %1639 = vrcp.f32 %v746_v4  ;;  %v1115_v24 = vadd.f32 %v1109_v21, %v1047_v22 }
 0x181   : > { %v1587_v23 = vpop.f32.mrf.mxu0 }
 0x182   : > { %v1169_v28 = vadd.f32 %v1163_v57, %v1115_v24 }
 0x183   : > { %v1112_v26 = vpop.f32.mrf.mxu0 }
 0x185   : > { %v1588_v27 = vpop.f32.mrf.mxu0 }
 0x187   : > { %v1225_v25 = vpop.f32.mrf.mxu0 }
 0x188   : > { %v1231_v29 = vadd.f32 %v1225_v25, %v1169_v28 }
 0x189   : > { %v1599_v30 = vpop.f32.mrf.mxu0 }
 0x18a   : > { %v1299_v31 = vadd.f32 %v1293_v6, %v1231_v29 }
 0x18b   : > { %v1228_v32 = vpop.f32.mrf.mxu0 }
 0x18c   : > { %v1300_v33 = vadd.f32 %v1414_v55, %v1299_v31 }
 0x18d   : > { %v1640_v34 = vpop.eup %1639  ;;  %v1600_v35 = vpop.f32.mrf.mxu0 }
 0x18e   : > { %v748_v36 = vmul.f32 %v1640_v34, %v742_v61  ;;  %v1301_v37 = vsub.f32 0.0, %v1300_v33 }
 0x190   : > { %750 = vst.msk [vmem:[%s175_s9] sm:$0x3] %vm749_vm2, %v748_v36  ;;  %v1302_v38 = vmul.f32 1.442695, %v1301_v37 }
 0x192   : > { %1641 = vpow2.f32 %v1302_v38 }
 0x19f   : > { %v1642_v39 = vpop.eup %1641 }
 0x1a0   : > { %v1304_v40 = vadd.f32 1.0, %v1642_v39 }
 0x1a2   : > { %1643 = vrcp.f32 %v1304_v40 }
 0x1af   : > { %v1644_v41 = vpop.eup %1643 }
 0x1b0   : > { %v1306_v42 = vmul.f32 %v1644_v41, %v1300_v33 }
 0x1b2   : > { %1458 = vst.msk [vmem:[%s175_s9 + $0x2] sm:$0x3] %vm749_vm2, %v1306_v42 }
 0x1b3 PF: > { %s13_s12 = sadd.s32 1, %s1651_s12  }
 0x1b4   : > { %p10_p5 = scmp.ge.s32.totalorder %s13_s12, 4  }
 0x1b6   :  { %12 = sbr.rel (!%p10_p5) target bundleno = 1 (0x1), region = 75 }

// kernel: _lambda_.9
= control target key start
LH: loop header
LB: loop body
LE: loop exit
PB: predicated region body
PF: predicated region fallthrough
CT: control target
= control target key end

     0   :  { %s1945_s12 = smov 0   ;;  %s2194_s0 = inlined_call_operand.vmem [shape: bf16[8,1,4,32], index: 0, kind: input, shape index: {}]   ;;  %s2195_s1 = inlined_call_operand.vmem [shape: bf16[9,32,32], index: 1, kind: input, shape index: {}]   ;;  %s2196_s2 = inlined_call_operand.vmem [shape: f32[1,32], index: 2, kind: input, shape index: {}]   ;;  %s2197_s3 = inlined_call_operand.vmem [shape: f32[2,2,2,32], index: 3, kind: output, shape index: {}]  }
   0x1 LB: > { %s1951_s13 = sadd.s32 4294967295, %s1921_s12   ;;  %p1508_p0 = scmp.ge.s32.totalorder %s1921_s12, 1  ;;  %s1921_s12 = sphi %s1945_s12, %s13_s12  }
   0x2   : > { %p138_p1 = scmp.lt.s32.totalorder %s1921_s12, 3 }
   0x4   : > { %p139_p2 = pnand %p1508_p0, %p138_p1 }
   0x5   : > { %s1509_s20 = sshll.u32 (!%p139_p2), %s1951_s13, 2  ;;  %p168_p4 = scmp.lt.s32.totalorder (!%p139_p2), %s1951_s13, 1 }
   0x6   : > { %142 = sbr.rel (%p139_p2) target bundleno = 323 (0x143), region = 32  ;;  %p163_p3 = scmp.lt.s32.totalorder (!%p139_p2), %s1509_s20, 7 }
   0xb   : > { %v1871_v0 = vld [vmem:[%s2195_s1 + $0x8] sm:$0xff]   ;;  %v1923_v1 = vmov 0.0   ;;  %v1872_v2 = vld [vmem:[%s2195_s1 + $0x18] sm:$0xff]   ;;  %v1873_v3 = vld [vmem:[%s2195_s1] sm:$0xff]   ;;  %vm1924_vm0 = vmmov 0   ;;  %s2199_s20 = smov (!%p163_p3, %s1509_s20), 7 }
   0xc   : > { %1725 = vmatprep.subr.bf16.mxu1 %v1923_v1  ;;  %1717 = vmatprep.subr.bf16.mxu0 %v1923_v1  ;;  %v1874_v4 = vld [vmem:[%s2195_s1 + $0x10] sm:$0xff]   ;;  %vm213_vm1 = vcmask 261120   ;;  %s1510_s23 = sshll.u32 %s2199_s20, 1  ;;  %v1875_v5 = vld [vmem:[%s2195_s1 + $0x38] sm:$0xff]   ;;  %v1876_v12 = vld [vmem:[%s2195_s1 + $0x28] sm:$0xff]   ;;  %s2201_s13 = smov (!%p168_p4, %s1951_s13), 1 }
   0xd   : > { %1726 = vmatpush3.bf16.msra.mxu1 %v1871_v0  ;;  %1729 = vmatprep.mubr.msk.bf16.mxu1 %vm1924_vm0, %v1923_v1  ;;  %s1983_s28 = scalar_lea.vmem %s2194_s0, %s1510_s23  ;;  %v1877_v10 = vld [vmem:[%s2195_s1 + $0x30] sm:$0xff]   ;;  %v1879_v14 = vld [vmem:[%s2195_s1 + $0x58] sm:$0xff]   ;;  %v1878_v19 = vld [vmem:[%s2195_s1 + $0x20] sm:$0xff]   ;;  %s1662_s19 = sshll.u32 %s2201_s13, 2  ;;  %vm818_vm2 = vcmask 254976  }
   0xe   : > { %1718 = vmatpush3.bf16.msra.mxu0 %v1872_v2  ;;  %1727 = vmatprep.subr.bf16.mxu1 %v1923_v1  ;;  %v175_v6 = vld [vmem:[%s1983_s28] sm:$0x1]  ;;  %v1528_v15 = vld.sshfl [vmem:[%s1983_s28] sm:$0x2 pattern:$0x76325410]  ;;  %s172_s22 = scalar_lea.vmem %s2197_s3, %s1662_s19 }
   0xf   : > { %1719 = vmatprep.subr.bf16.mxu0 %v1923_v1  ;;  %1721 = vmatprep.mubr.msk.bf16.mxu0 %vm1924_vm0, %v1923_v1  ;;  %v1517_v7 = vld.sshfl [vmem:[%s1983_s28] sm:$0x3 pattern:$0x76325410]  ;;  %v1532_v16 = vld [vmem:[%s1983_s28 + $0x2] sm:$0x1] }
  0x10   : > { %v195_v8 = vshrl.u32 %v1517_v7, 16  ;;  %v197_v9 = vshll.u32 %v1517_v7, 16  ;;  %v2006_v17 = vld.sshfl [vmem:[%s1983_s28 + $0x2] sm:$0x2 pattern:$0x76325410] }
  0x11   : > { %1728 = vmatpush3.bf16.msra.mxu1 %v1873_v3  ;;  %v1545_v18 = vld.sshfl [vmem:[%s1983_s28 + $0x2] sm:$0x3 pattern:$0x76325410]  ;;  %v326_v20 = vrot.slane %v1528_v15, 1  ;;  %v1881_v21 = vld [vmem:[%s2195_s1 + $0x50] sm:$0xff]  }
  0x12   : > { %1720 = vmatpush3.bf16.msra.mxu0 %v1874_v4  ;;  %1741 = vmatprep.subr.bf16.mxu1 %v1923_v1  ;;  %v199_v11 = vrot.slane %v197_v9, 1  ;;  %v463_v22 = vshll.u32 %v1545_v18, 16  ;;  %v1571_v23 = vld.sshfl [vmem:[%s1983_s28 + $0x4] sm:$0x3 pattern:$0x76325410] }
  0x13   : > { %1733 = vmatprep.subr.bf16.mxu0 %v1923_v1  ;;  %v1880_v24 = vld [vmem:[%s2195_s1 + $0x48] sm:$0xff]   ;;  %v537_v25 = vrot.slane %v2006_v17, 1  ;;  %v674_v26 = vshll.u32 %v1571_v23, 16  ;;  %v1883_v27 = vld [vmem:[%s2195_s1 + $0x78] sm:$0xff]   ;;  %v461_v28 = vshrl.u32 %v1545_v18, 16  ;;  %v1882_v30 = vld [vmem:[%s2195_s1 + $0x40] sm:$0xff]  }
  0x14   : > { %1730 = vmatmul.mubr.msk.bf16.vlgmr.msra.gmra.mxu1 %vm213_vm1, %v175_v6  ;;  %v200_v13 = vor.u32 %v199_v11, %v195_v8  ;;  %v465_v29 = vrot.slane %v463_v22, 1  ;;  %v672_v31 = vshrl.u32 %v1571_v23, 16  ;;  %v1885_v33 = vld [vmem:[%s2195_s1 + $0x70] sm:$0xff]   ;;  %v1884_v35 = vld [vmem:[%s2195_s1 + $0x68] sm:$0xff]   ;;  %v1887_v37 = vld [vmem:[%s2195_s1 + $0x18] sm:$0xff]  }
  0x15   : > { %1742 = vmatpush3.bf16.msra.mxu1 %v1875_v5  ;;  %1745 = vmatprep.mubr.msk.bf16.mxu1 %vm1924_vm0, %v1923_v1  ;;  %v676_v32 = vrot.slane %v674_v26, 1  ;;  %v1886_v38 = vld [vmem:[%s2195_s1 + $0x60] sm:$0xff]   ;;  %v1889_v39 = vld [vmem:[%s2195_s1 + $0x10] sm:$0xff]   ;;  %v1888_v41 = vld [vmem:[%s2195_s1 + $0x88] sm:$0xff]  }
  0x16   : > { %1743 = vmatprep.subr.bf16.mxu1 %v1923_v1  ;;  %1722 = vmatmul.mubr.msk.bf16.vlgmr.msra.gmra.mxu0 %vm213_vm1, %v200_v13  ;;  %v466_v34 = vor.u32 %v465_v29, %v461_v28  ;;  %v1558_v40 = vld [vmem:[%s1983_s28 + $0x4] sm:$0x1]  ;;  %v1891_v42 = vld [vmem:[%s2195_s1 + $0x28] sm:$0xff]   ;;  %v1585_v51 = vld [vmem:[%s1983_s28 + $0x2] sm:$0x1] }
  0x17   : > { %1734 = vmatpush3.bf16.msra.mxu0 %v1876_v12  ;;  %1737 = vmatprep.mubr.msk.bf16.mxu0 %vm1924_vm0, %v1923_v1  ;;  %v677_v36 = vor.u32 %v676_v32, %v672_v31  ;;  %v2079_v43 = vld.sshfl [vmem:[%s1983_s28 + $0x4] sm:$0x2 pattern:$0x76325410]  ;;  %v1892_v47 = vld [vmem:[%s2195_s1 + $0x8] sm:$0xff]   ;;  %v1896_v52 = vld [vmem:[%s2195_s1 + $0x38] sm:$0xff]  }
  0x18   : > { %1735 = vmatprep.subr.bf16.mxu0 %v1923_v1  ;;  %v1890_v44 = vld [vmem:[%s2195_s1 + $0x80] sm:$0xff]   ;;  %v748_v46 = vrot.slane %v2079_v43, 1  ;;  %v1895_v48 = vld [vmem:[%s2195_s1 + $0x48] sm:$0xff]   ;;  %v1898_v54 = vld [vmem:[%s2195_s1 + $0x30] sm:$0xff]  }
  0x19   : > { %1744 = vmatpush3.bf16.msra.mxu1 %v1877_v10  ;;  %v1893_v45 = vld [vmem:[%s2195_s1 + $0x20] sm:$0xff]   ;;  %v1899_v53 = vld [vmem:[%s2195_s1 + $0x68] sm:$0xff]   ;;  %v1900_v57 = vld [vmem:[%s2195_s1 + $0x58] sm:$0xff]  }
  0x1a   : > { %1757 = vmatprep.subr.bf16.mxu1 %v1923_v1  ;;  %v1894_v49 = vld [vmem:[%s2195_s1] sm:$0xff]   ;;  %v1903_v59 = vld [vmem:[%s2195_s1 + $0x88] sm:$0xff]   ;;  %v1902_v60 = vld [vmem:[%s2195_s1 + $0x50] sm:$0xff]  }
  0x1b   : > { %1736 = vmatpush3.bf16.msra.mxu0 %v1878_v19  ;;  %v1897_v50 = vld [vmem:[%s2195_s1 + $0x40] sm:$0xff]   ;;  %v1904_v2 = vld [vmem:[%s2195_s1 + $0x78] sm:$0xff]   ;;  %v1906_v6 = vld [vmem:[%s2195_s1 + $0x70] sm:$0xff]  }
  0x1c   : > { %1746 = vmatmul.mubr.msk.bf16.vlgmr.msra.gmra.mxu1 %vm213_vm1, %v1532_v16  ;;  %1749 = vmatprep.subr.bf16.mxu0 %v1923_v1  ;;  %v1901_v55 = vld [vmem:[%s2195_s1 + $0x60] sm:$0xff]  }
  0x1d   : > { %1758 = vmatpush3.bf16.msra.mxu1 %v1879_v14  ;;  %1761 = vmatprep.mubr.msk.bf16.mxu1 %vm1924_vm0, %v1923_v1  ;;  %v1607_v56 = vld [vmem:[%s1983_s28 + $0x4] sm:$0x1]  ;;  %v1633_v58 = vld [vmem:[%s1983_s28 + $0x6] sm:$0x1] }
  0x1e   : > { %1759 = vmatprep.subr.bf16.mxu1 %v1923_v1  ;;  %1738 = vmatmul.mubr.msk.bf16.vlgmr.msra.gmra.mxu0 %vm213_vm1, %v326_v20  ;;  %v1646_v61 = vld.sshfl [vmem:[%s1983_s28 + $0x6] sm:$0x3 pattern:$0x76325410] }
  0x1f   : > { %1750 = vmatpush3.bf16.msra.mxu0 %v1880_v24  ;;  %1753 = vmatprep.mubr.msk.bf16.mxu0 %vm1924_vm0, %v1923_v1  ;;  %v1905_v62 = vld [vmem:[%s2195_s1 + $0x80] sm:$0xff]   ;;  %v1310_v0 = vshll.u32 %v1646_v61, 16  ;;  %v1308_v4 = vshrl.u32 %v1646_v61, 16 }
  0x20   : > { %1751 = vmatprep.subr.bf16.mxu0 %v1923_v1  ;;  %v1655_v63 = vld.sshfl [vmem:[%s1983_s28 + $0x6] sm:$0x2 pattern:$0x76325410] }
  0x21   : > { %1760 = vmatpush3.bf16.msra.mxu1 %v1881_v21  ;;  %v1383_v3 = vrot.slane %v1655_v63, 1  ;;  %v1312_v5 = vrot.slane %v1310_v0, 1 }
  0x22   : > { %1773 = vmatprep.subr.bf16.mxu1 %v1923_v1 }
  0x23   : > { %1752 = vmatpush3.bf16.msra.mxu0 %v1882_v30  ;;  %v1313_v7 = vor.u32 %v1312_v5, %v1308_v4 }
  0x24   : > { %1762 = vmatmul.mubr.msk.bf16.vlgmr.msra.gmra.mxu1 %vm213_vm1, %v537_v25  ;;  %1765 = vmatprep.subr.bf16.mxu0 %v1923_v1 }
  0x25   : > { %1774 = vmatpush3.bf16.msra.mxu1 %v1883_v27  ;;  %1777 = vmatprep.mubr.msk.bf16.mxu1 %vm1924_vm0, %v1923_v1 }
  0x26   : > { %1775 = vmatprep.subr.bf16.mxu1 %v1923_v1  ;;  %1754 = vmatmul.mubr.msk.bf16.vlgmr.msra.gmra.mxu0 %vm213_vm1, %v466_v34 }
  0x27   : > { %1766 = vmatpush3.bf16.msra.mxu0 %v1884_v35  ;;  %1769 = vmatprep.mubr.msk.bf16.mxu0 %vm1924_vm0, %v1923_v1 }
  0x28   : > { %1767 = vmatprep.subr.bf16.mxu0 %v1923_v1 }
  0x29   : > { %1776 = vmatpush3.bf16.msra.mxu1 %v1885_v33 }
  0x2a   : > { %1789 = vmatprep.subr.bf16.mxu1 %v1923_v1 }
  0x2b   : > { %1768 = vmatpush3.bf16.msra.mxu0 %v1886_v38 }
  0x2c   : > { %1778 = vmatmul.mubr.msk.bf16.vlgmr.msra.gmra.mxu1 %vm213_vm1, %v677_v36  ;;  %1781 = vmatprep.subr.bf16.mxu0 %v1923_v1 }
  0x2d   : > { %1790 = vmatpush3.bf16.msra.mxu1 %v1887_v37  ;;  %1793 = vmatprep.mubr.msk.bf16.mxu1 %vm1924_vm0, %v1923_v1 }
  0x2e   : > { %1791 = vmatprep.subr.bf16.mxu1 %v1923_v1  ;;  %1770 = vmatmul.mubr.msk.bf16.vlgmr.msra.gmra.mxu0 %vm213_vm1, %v1558_v40 }
  0x2f   : > { %1782 = vmatpush3.bf16.msra.mxu0 %v1888_v41  ;;  %1785 = vmatprep.mubr.msk.bf16.mxu0 %vm1924_vm0, %v1923_v1 }
  0x30   : > { %1783 = vmatprep.subr.bf16.mxu0 %v1923_v1 }
  0x31   : > { %1792 = vmatpush3.bf16.msra.mxu1 %v1889_v39 }
  0x32   : > { %1805 = vmatprep.subr.bf16.mxu1 %v1923_v1 }
  0x33   : > { %1784 = vmatpush3.bf16.msra.mxu0 %v1890_v44 }
  0x34   : > { %1794 = vmatmul.mubr.msk.bf16.vlgmr.msra.gmra.mxu1 %vm213_vm1, %v466_v34  ;;  %1797 = vmatprep.subr.bf16.mxu0 %v1923_v1 }
  0x35   : > { %1806 = vmatpush3.bf16.msra.mxu1 %v1891_v42  ;;  %1809 = vmatprep.mubr.msk.bf16.mxu1 %vm1924_vm0, %v1923_v1 }
  0x36   : > { %1807 = vmatprep.subr.bf16.mxu1 %v1923_v1  ;;  %1786 = vmatmul.mubr.msk.bf16.vlgmr.msra.gmra.mxu0 %vm213_vm1, %v748_v46 }
  0x37   : > { %1798 = vmatpush3.bf16.msra.mxu0 %v1892_v47  ;;  %1801 = vmatprep.mubr.msk.bf16.mxu0 %vm1924_vm0, %v1923_v1 }
  0x38   : > { %1799 = vmatprep.subr.bf16.mxu0 %v1923_v1 }
  0x39   : > { %1808 = vmatpush3.bf16.msra.mxu1 %v1893_v45 }
  0x3a   : > { %1821 = vmatprep.subr.bf16.mxu1 %v1923_v1 }
  0x3b   : > { %1800 = vmatpush3.bf16.msra.mxu0 %v1894_v49  ;;  %v1584_v49 = vld [vmem:[%s2196_s2] ss:$0 sm:$0xff] }
  0x3c   : > { %1810 = vmatmul.mubr.msk.bf16.vlgmr.msra.gmra.mxu1 %vm213_vm1, %v537_v25  ;;  %1813 = vmatprep.subr.bf16.mxu0 %v1923_v1 }
  0x3d   : > { %1822 = vmatpush3.bf16.msra.mxu1 %v1895_v48  ;;  %1825 = vmatprep.mubr.msk.bf16.mxu1 %vm1924_vm0, %v1923_v1 }
  0x3e   : > { %1823 = vmatprep.subr.bf16.mxu1 %v1923_v1  ;;  %1802 = vmatmul.mubr.msk.bf16.vlgmr.msra.gmra.mxu0 %vm213_vm1, %v1585_v51 }
  0x3f   : > { %1814 = vmatpush3.bf16.msra.mxu0 %v1896_v52  ;;  %1817 = vmatprep.mubr.msk.bf16.mxu0 %vm1924_vm0, %v1923_v1 }
  0x40   : > { %1815 = vmatprep.subr.bf16.mxu0 %v1923_v1 }
  0x41   : > { %1824 = vmatpush3.bf16.msra.mxu1 %v1897_v50 }
  0x42   : > { %1837 = vmatprep.subr.bf16.mxu1 %v1923_v1 }
  0x43   : > { %1816 = vmatpush3.bf16.msra.mxu0 %v1898_v54 }
  0x44   : > { %1826 = vmatmul.mubr.msk.bf16.vlgmr.msra.gmra.mxu1 %vm213_vm1, %v677_v36  ;;  %1829 = vmatprep.subr.bf16.mxu0 %v1923_v1 }
  0x45   : > { %1838 = vmatpush3.bf16.msra.mxu1 %v1899_v53  ;;  %1841 = vmatprep.mubr.msk.bf16.mxu1 %vm1924_vm0, %v1923_v1 }
  0x46   : > { %1839 = vmatprep.subr.bf16.mxu1 %v1923_v1  ;;  %1818 = vmatmul.mubr.msk.bf16.vlgmr.msra.gmra.mxu0 %vm213_vm1, %v1607_v56 }
  0x47   : > { %1830 = vmatpush3.bf16.msra.mxu0 %v1900_v57  ;;  %1833 = vmatprep.mubr.msk.bf16.mxu0 %vm1924_vm0, %v1923_v1 }
  0x48   : > { %1831 = vmatprep.subr.bf16.mxu0 %v1923_v1 }
  0x49   : > { %1840 = vmatpush3.bf16.msra.mxu1 %v1901_v55 }
  0x4a   : > { %1853 = vmatprep.subr.bf16.mxu1 %v1923_v1 }
  0x4b   : > { %1832 = vmatpush3.bf16.msra.mxu0 %v1902_v60 }
  0x4c   : > { %1842 = vmatmul.mubr.msk.bf16.vlgmr.msra.gmra.mxu1 %vm213_vm1, %v1633_v58  ;;  %1845 = vmatprep.subr.bf16.mxu0 %v1923_v1 }
  0x4d   : > { %1854 = vmatpush3.bf16.msra.mxu1 %v1903_v59  ;;  %1857 = vmatprep.mubr.msk.bf16.mxu1 %vm1924_vm0, %v1923_v1 }
  0x4e   : > { %1855 = vmatprep.subr.bf16.mxu1 %v1923_v1  ;;  %1834 = vmatmul.mubr.msk.bf16.vlgmr.msra.gmra.mxu0 %vm213_vm1, %v748_v46 }
  0x4f   : > { %1846 = vmatpush3.bf16.msra.mxu0 %v1904_v2  ;;  %1849 = vmatprep.mubr.msk.bf16.mxu0 %vm1924_vm0, %v1923_v1 }
  0x50   : > { %1847 = vmatprep.subr.bf16.mxu0 %v1923_v1 }
  0x51   : > { %1856 = vmatpush3.bf16.msra.mxu1 %v1905_v62 }
  0x53   : > { %1848 = vmatpush3.bf16.msra.mxu0 %v1906_v6 }
  0x54   : > { %1858 = vmatmul.mubr.msk.bf16.vlgmr.msra.gmra.mxu1 %vm213_vm1, %v1383_v3 }
  0x56   : > { %1850 = vmatmul.mubr.msk.bf16.vlgmr.msra.gmra.mxu0 %vm213_vm1, %v1313_v7 }
  0xd4   : > { %v306_v8 = vpop.f32.mrf.mxu1 }
  0xd6   : > { %v1731_v9 = vpop.f32.mrf.mxu1  ;;  %v251_v11 = vpop.f32.mrf.mxu0 }
  0xd7   : > { %v307_v24 = vadd.f32 %v306_v8, %v251_v11 }
  0xd8   : > { %v309_v10 = vpop.f32.mrf.mxu1  ;;  %v1723_v13 = vpop.f32.mrf.mxu0 }
  0xda   : > { %v1732_v12 = vpop.f32.mrf.mxu1  ;;  %v254_v15 = vpop.f32.mrf.mxu0 }
  0xdc   : > { %v439_v14 = vpop.f32.mrf.mxu1  ;;  %v1724_v17 = vpop.f32.mrf.mxu0 }
  0xde   : > { %v1747_v16 = vpop.f32.mrf.mxu1  ;;  %v376_v19 = vpop.f32.mrf.mxu0 }
  0xdf   : > { %v382_v27 = vadd.f32 %v376_v19, %v307_v24 }
  0xe0   : > { %v442_v18 = vpop.f32.mrf.mxu1  ;;  %v1739_v1 = vpop.f32.mrf.mxu0 }
  0xe1   : > { %v445_v32 = vadd.f32 %v439_v14, %v382_v27 }
  0xe2   : > { %v1748_v20 = vpop.f32.mrf.mxu1  ;;  %v379_v22 = vpop.f32.mrf.mxu0 }
  0xe4   : > { %v587_v21 = vpop.f32.mrf.mxu1  ;;  %v1740_v25 = vpop.f32.mrf.mxu0 }
  0xe6   : > { %v1763_v23 = vpop.f32.mrf.mxu1  ;;  %v516_v28 = vpop.f32.mrf.mxu0 }
  0xe7   : > { %v522_v35 = vadd.f32 %v516_v28, %v445_v32 }
  0xe8   : > { %v590_v26 = vpop.f32.mrf.mxu1  ;;  %v1755_v30 = vpop.f32.mrf.mxu0 }
  0xe9   : > { %v593_v40 = vadd.f32 %v587_v21, %v522_v35 }
  0xea   : > { %v1764_v29 = vpop.f32.mrf.mxu1  ;;  %v519_v33 = vpop.f32.mrf.mxu0 }
  0xec   : > { %v727_v31 = vpop.f32.mrf.mxu1  ;;  %v1756_v36 = vpop.f32.mrf.mxu0 }
  0xee   : > { %v1779_v34 = vpop.f32.mrf.mxu1  ;;  %v650_v38 = vpop.f32.mrf.mxu0 }
  0xef   : > { %v656_v43 = vadd.f32 %v650_v38, %v593_v40 }
  0xf0   : > { %v730_v37 = vpop.f32.mrf.mxu1  ;;  %v1771_v41 = vpop.f32.mrf.mxu0 }
  0xf1   : > { %v733_v48 = vadd.f32 %v727_v31, %v656_v43 }
  0xf2   : > { %v1780_v39 = vpop.f32.mrf.mxu1  ;;  %v653_v44 = vpop.f32.mrf.mxu0 }
  0xf4   : > { %v894_v42 = vpop.f32.mrf.mxu1  ;;  %v1772_v46 = vpop.f32.mrf.mxu0 }
  0xf6   : > { %v1795_v45 = vpop.f32.mrf.mxu1  ;;  %v798_v50 = vpop.f32.mrf.mxu0 }
  0xf7   : > { %v804_v52 = vadd.f32 %v798_v50, %v733_v48 }
  0xf8   : > { %v897_v47 = vpop.f32.mrf.mxu1  ;;  %v1787_v53 = vpop.f32.mrf.mxu0 }
  0xf9   : > { %v811_v55 = vadd.f32 %v1584_v49, %v804_v52 }
  0xfa   : > { %v1796_v51 = vpop.f32.mrf.mxu1  ;;  %v801_v56 = vpop.f32.mrf.mxu0 }
  0xfb   : > { %v812_v58 = vsub.f32 0.0, %v811_v55 }
  0xfc   : > { %v1018_v54 = vpop.f32.mrf.mxu1  ;;  %v1788_v59 = vpop.f32.mrf.mxu0 }
  0xfd   : > { %v813_v61 = vmul.f32 1.442695, %v812_v58 }
  0xfe   : > { %v1811_v57 = vpop.f32.mrf.mxu1  ;;  %v949_v62 = vpop.f32.mrf.mxu0 }
  0xff   : > { %1907 = vpow2.f32 %v813_v61  ;;  %v950_v7 = vadd.f32 %v949_v62, %v894_v42 }
 0x100   : > { %v1021_v60 = vpop.f32.mrf.mxu1  ;;  %v1803_v0 = vpop.f32.mrf.mxu0 }
 0x101   : > { %v1024_v12 = vadd.f32 %v1018_v54, %v950_v7 }
 0x102   : > { %v1812_v63 = vpop.f32.mrf.mxu1  ;;  %v952_v3 = vpop.f32.mrf.mxu0 }
 0x104   : > { %v1155_v2 = vpop.f32.mrf.mxu1  ;;  %v1804_v5 = vpop.f32.mrf.mxu0 }
 0x106   : > { %v1827_v4 = vpop.f32.mrf.mxu1  ;;  %v1079_v8 = vpop.f32.mrf.mxu0 }
 0x107   : > { %v1085_v15 = vadd.f32 %v1079_v8, %v1024_v12 }
 0x108   : > { %v1158_v6 = vpop.f32.mrf.mxu1  ;;  %v1819_v10 = vpop.f32.mrf.mxu0 }
 0x109   : > { %v1161_v21 = vadd.f32 %v1155_v2, %v1085_v15 }
 0x10a   : > { %v1828_v9 = vpop.f32.mrf.mxu1  ;;  %v1082_v13 = vpop.f32.mrf.mxu0 }
 0x10c   : > { %v1287_v11 = vpop.f32.mrf.mxu1  ;;  %v1908_v16 = vpop.eup %1907 }
 0x10d   : > { %v1820_v17 = vpop.f32.mrf.mxu0  ;;  %v815_v19 = vadd.f32 1.0, %v1908_v16 }
 0x10e   : > { %v1843_v14 = vpop.f32.mrf.mxu1 }
 0x10f   : > { %v1225_v20 = vpop.f32.mrf.mxu0  ;;  %1909 = vrcp.f32 %v815_v19 }
 0x110   : > { %v1290_v18 = vpop.f32.mrf.mxu1  ;;  %v1231_v24 = vadd.f32 %v1225_v20, %v1161_v21 }
 0x111   : > { %v1835_v22 = vpop.f32.mrf.mxu0 }
 0x112   : > { %v1844_v1 = vpop.f32.mrf.mxu1  ;;  %v1293_v29 = vadd.f32 %v1287_v11, %v1231_v24 }
 0x113   : > { %v1228_v25 = vpop.f32.mrf.mxu0 }
 0x114   : > { %v1433_v23 = vpop.f32.mrf.mxu1 }
 0x115   : > { %v1836_v27 = vpop.f32.mrf.mxu0 }
 0x116   : > { %v1859_v26 = vpop.f32.mrf.mxu1 }
 0x117   : > { %v1363_v30 = vpop.f32.mrf.mxu0 }
 0x118   : > { %v1436_v28 = vpop.f32.mrf.mxu1  ;;  %v1369_v32 = vadd.f32 %v1363_v30, %v1293_v29 }
 0x119   : > { %v1851_v33 = vpop.f32.mrf.mxu0 }
 0x11a   : > { %v1860_v31 = vpop.f32.mrf.mxu1  ;;  %v1439_v34 = vadd.f32 %v1433_v23, %v1369_v32 }
 0x11b   : > { %v1366_v35 = vpop.f32.mrf.mxu0 }
 0x11c   : > { %v1440_v36 = vadd.f32 %v1584_v49, %v1439_v34  ;;  %v1910_v37 = vpop.eup %1909 }
 0x11d   : > { %v1852_v38 = vpop.f32.mrf.mxu0  ;;  %v817_v39 = vmul.f32 %v1910_v37, %v811_v55 }
 0x11e   : > { %v1441_v40 = vsub.f32 0.0, %v1440_v36 }
 0x11f   : > { %819 = vst.msk [vmem:[%s172_s22] sm:$0x3] %vm818_vm2, %v817_v39 }
 0x120   : > { %v1442_v41 = vmul.f32 1.442695, %v1441_v40 }
 0x122   : > { %1911 = vpow2.f32 %v1442_v41 }
 0x12f   : > { %v1912_v42 = vpop.eup %1911 }
 0x130   : > { %v1444_v43 = vadd.f32 1.0, %v1912_v42 }
 0x132   : > { %1913 = vrcp.f32 %v1444_v43 }
 0x13f   : > { %v1914_v44 = vpop.eup %1913 }
 0x140   : > { %v1446_v45 = vmul.f32 %v1914_v44, %v1440_v36 }
 0x142   : > { %1659 = vst.msk [vmem:[%s172_s22 + $0x2] sm:$0x3] %vm818_vm2, %v1446_v45 }
 0x143 PF: > { %s13_s12 = sadd.s32 1, %s1921_s12  }
 0x144   : > { %p10_p5 = scmp.ge.s32.totalorder %s13_s12, 4  }
 0x146   :  { %12 = sbr.rel (!%p10_p5) target bundleno = 1 (0x1), region = 74 }

// kernel: _lambda_.7
= control target key start
LH: loop header
LB: loop body
LE: loop exit
PB: predicated region body
PF: predicated region fallthrough
CT: control target
= control target key end

     0   :  { %s2718_s12 = smov 0   ;;  %s3144_s0 = inlined_call_operand.vmem [shape: bf16[10,2,5,16], index: 0, kind: input, shape index: {}]   ;;  %s3145_s1 = inlined_call_operand.vmem [shape: bf16[9,8,16], index: 1, kind: input, shape index: {}]   ;;  %s3146_s2 = inlined_call_operand.vmem [shape: f32[1,16], index: 2, kind: input, shape index: {}]   ;;  %s3147_s3 = inlined_call_operand.vmem [shape: f32[2,4,4,16], index: 3, kind: output, shape index: {}]  }
   0x1 LB: > { %s2724_s13 = sadd.s32 4294967295, %s2693_s12   ;;  %p2221_p0 = scmp.ge.s32.totalorder %s2693_s12, 1  ;;  %s2693_s12 = sphi %s2718_s12, %s13_s12  }
   0x2   : > { %p139_p1 = scmp.lt.s32.totalorder %s2693_s12, 3 }
   0x4   : > { %p140_p2 = pnand %p2221_p0, %p139_p1 }
   0x5   : > { %s164_s14 = smul.u32 (!%p140_p2), 5, %s2724_s13  ;;  %s2697_s25 = smov (!%p140_p2), 120  }
   0x6   : > { %143 = sbr.rel (%p140_p2) target bundleno = 505 (0x1f9), region = 32  ;;  %p171_p4 = scmp.lt.s32.totalorder (!%p140_p2), %s2724_s13, 1 }
   0x7   : > { %p165_p3 = scmp.lt.s32.totalorder (!%p140_p2), %s164_s14, 9 }
   0xb   : > { %v179_v0 = vld [vmem:[%s3145_s1] sm:$0xf]  ;;  %vm191_vm0 = vcmask 1043456   ;;  %v2695_v1 = vmov 0.0   ;;  %v2226_v3 = vld [vmem:[%s3145_s1 + $0x4] sm:$0xf] }
   0xc   : > { %2426 = vmatprep.subr.bf16.mxu1 %v2695_v1  ;;  %v239_v2 = vsel %vm191_vm0, %v179_v0, 0  ;;  %2420 = vmatprep.subr.bf16.mxu0 %v2695_v1  ;;  %vm2696_vm1 = vmmov 0   ;;  %v193_v4 = vsel %vm191_vm0, %v2226_v3, 0  ;;  %s3149_s14 = smov (!%p165_p3, %s164_s14), 9  ;;  %v2234_v5 = vld [vmem:[%s3145_s1 + $0xc] sm:$0xf] }
   0xd   : > { %2427 = vmatpush3.bf16.msra.mxu1 %v239_v2  ;;  %2428 = vmatprep.mubr.msk.bf16.mxu1 %vm2696_vm1, %v2695_v1  ;;  %s2346_s21 = sshll.u32 %s3149_s14, 3  ;;  %vm187_vm2 = vcmask 64512   ;;  %v349_v6 = vsel %vm191_vm0, %v2234_v5, 0  ;;  %v2240_v15 = vld [vmem:[%s3145_s1 + $0x14] sm:$0xf]  ;;  %s3151_s13 = smov (!%p171_p4, %s2724_s13), 1 }
   0xe   : > { %2421 = vmatpush3.bf16.msra.mxu0 %v193_v4  ;;  %2422 = vmatprep.mubr.msk.bf16.mxu0 %vm2696_vm1, %v2695_v1  ;;  %s2751_s24 = scalar_lea.vmem %s3144_s0, %s2346_s21  ;;  %v463_v22 = vsel %vm191_vm0, %v2240_v15, 0  ;;  %v2246_v31 = vld [vmem:[%s3145_s1 + $0x1c] sm:$0xf]  ;;  %v2230_v41 = vld [vmem:[%s3145_s1 + $0x8] sm:$0xf]  ;;  %s2347_s20 = sshll.u32 %s3151_s13, 4 }
   0xf   : > { %2432 = vmatprep.subr.bf16.mxu0 %v2695_v1  ;;  %2438 = vmatprep.subr.bf16.mxu1 %v2695_v1  ;;  %v178_v7 = vld [vmem:[%s2751_s24] sm:$0x3]  ;;  %v2233_v8 = vld [vmem:[%s2751_s24 + $0x4] sm:$0x3]  ;;  %v2757_v9 = vld [vmem:[%s2751_s24 + $0x8] sm:$0x3]  ;;  %s3129_s23 = scalar_lea.vmem %s3147_s3, %s2347_s20 }
  0x10   : > { %v2227_v10 = vcombine.low %v178_v7, %v178_v7  ;;  %v2247_v11 = vcombine.low %v2757_v9, %v2757_v9  ;;  %v2762_v12 = vld [vmem:[%s2751_s24 + $0x8] sm:$0x3]  ;;  %2429 = vmatmul.mubr.msk.bf16.vlgmr.msra.gmra.mxu1 %vm187_vm2, %v178_v7  ;;  %v2237_v13 = vcombine.low %v2233_v8, %v2233_v8  ;;  %v2775_v16 = vld [vmem:[%s2751_s24 + $0xc] sm:$0x3]  ;;  %v2778_v17 = vld [vmem:[%s2751_s24 + $0x10] sm:$0x3] }
  0x11   : > { %2439 = vmatpush3.bf16.msra.mxu1 %v349_v6  ;;  %2440 = vmatprep.mubr.msk.bf16.mxu1 %vm2696_vm1, %v2695_v1  ;;  %v2256_v14 = vcombine.low %v2762_v12, %v2762_v12  ;;  %v2659_v18 = vld [vmem:[%s2751_s24 + $0x4] ss:$0 sps:$4 sm:$0x77]   ;;  %v2267_v19 = vcombine.low %v2775_v16, %v2775_v16  ;;  %v2277_v20 = vcombine.low %v2778_v17, %v2778_v17  ;;  %v2789_v21 = vld [vmem:[%s2751_s24 + $0x10] sm:$0x3]  ;;  %v568_v35 = vsel %vm191_vm0, %v2246_v31, 0 }
  0x12   : > { %185 = vrot.lane.b32.xlu0 %v2227_v10, %s2697_s25  ;;  %562 = vrot.lane.b32.xlu1 %v2247_v11, %s2697_s25  ;;  %v455_v23 = vshll.u32 %v2659_v18, 16  ;;  %v2793_v24 = vld [vmem:[%s2751_s24 + $0x14] sm:$0x3]  ;;  %v453_v25 = vshrl.u32 %v2659_v18, 16  ;;  %v2797_v27 = vld [vmem:[%s2751_s24 + $0x18] sm:$0x3]  ;;  %v2286_v28 = vcombine.low %v2789_v21, %v2789_v21 }
  0x13   : > { %2450 = vmatprep.subr.bf16.mxu1 %v2695_v1  ;;  %v2297_v29 = vcombine.low %v2793_v24, %v2793_v24  ;;  %v2808_v30 = vld [vmem:[%s2751_s24 + $0x18] sm:$0x3]  ;;  %v2307_v33 = vcombine.low %v2797_v27, %v2797_v27  ;;  %v2822_v36 = vld [vmem:[%s2751_s24 + $0x1c] sm:$0x3]  ;;  %v2825_v37 = vld [vmem:[%s2751_s24 + $0x20] sm:$0x3] }
  0x14   : > { %v457_v26 = vrot.slane %v455_v23, 1  ;;  %v2316_v34 = vcombine.low %v2808_v30, %v2808_v30  ;;  %v2327_v38 = vcombine.low %v2822_v36, %v2822_v36  ;;  %v2337_v39 = vcombine.low %v2825_v37, %v2825_v37  ;;  %v2658_v40 = vld [vmem:[%s2751_s24] ss:$0 sps:$4 sm:$0x77]   ;;  %v2255_v43 = vld [vmem:[%s3145_s1 + $0x4] sm:$0xf] }
  0x15   : > { %v290_v42 = vshll.u32 %v2658_v40, 16  ;;  %v298_v44 = vsel %vm191_vm0, %v2230_v41, 0  ;;  %v698_v47 = vsel %vm191_vm0, %v2255_v43, 0  ;;  %v288_v48 = vshrl.u32 %v2658_v40, 16  ;;  %v2236_v51 = vld [vmem:[%s3145_s1 + $0x10] sm:$0xf] }
  0x16   : > { %397 = vrot.lane.b32.xlu0 %v2237_v13, %s2697_s25  ;;  %692 = vrot.lane.b32.xlu1 %v2256_v14, %s2697_s25  ;;  %v458_v32 = vor.u32 %v457_v26, %v453_v25  ;;  %v2662_v50 = vld [vmem:[%s2751_s24 + $0x8] ss:$0 sps:$4 sm:$0x77]   ;;  %v403_v56 = vsel %vm191_vm0, %v2236_v51, 0  ;;  %v2244_v60 = vld [vmem:[%s3145_s1 + $0x18] sm:$0xf] }
  0x17   : > { %v292_v49 = vrot.slane %v290_v42, 1  ;;  %v2260_v53 = vld [vmem:[%s3145_s1 + $0x8] sm:$0xf]  ;;  %v794_v54 = vshll.u32 %v2662_v50, 16  ;;  %v792_v58 = vshrl.u32 %v2662_v50, 16  ;;  %v514_v0 = vsel %vm191_vm0, %v2244_v60, 0 }
  0x18   : > { %2441 = vmatmul.mubr.msk.bf16.vlgmr.msra.gmra.mxu1 %vm187_vm2, %v2233_v8  ;;  %v802_v57 = vsel %vm191_vm0, %v2260_v53, 0  ;;  %v2266_v62 = vld [vmem:[%s3145_s1 + $0x10] sm:$0xf]  ;;  %v2661_v3 = vld [vmem:[%s2751_s24 + $0x8] ss:$0 sps:$4 sm:$0x77]  }
  0x19   : > { %2451 = vmatpush3.bf16.msra.mxu1 %v463_v22  ;;  %2452 = vmatprep.mubr.msk.bf16.mxu1 %vm2696_vm1, %v2695_v1  ;;  %v293_v52 = vor.u32 %v292_v49, %v288_v48  ;;  %v796_v59 = vrot.slane %v794_v54, 1  ;;  %v905_v2 = vsel %vm191_vm0, %v2266_v62, 0  ;;  %v2250_v4 = vld [vmem:[%s3145_s1 + $0x20] sm:$0xf]  ;;  %v620_v5 = vshll.u32 %v2661_v3, 16 }
  0x1a   : > { %899 = vrot.lane.b32.xlu0 %v2267_v19, %s2697_s25  ;;  %1061 = vrot.lane.b32.xlu1 %v2277_v20, %s2697_s25  ;;  %v2274_v6 = vld [vmem:[%s3145_s1 + $0x18] sm:$0xf]  ;;  %v628_v8 = vsel %vm191_vm0, %v2250_v4, 0  ;;  %v618_v11 = vshrl.u32 %v2661_v3, 16  ;;  %v687_v15 = vld [vmem:[%s3145_s1] sm:$0xf] }
  0x1b   : > { %2462 = vmatprep.subr.bf16.mxu1 %v2695_v1  ;;  %v797_v61 = vor.u32 %v796_v59, %v792_v58  ;;  %v1014_v10 = vsel %vm191_vm0, %v2274_v6, 0  ;;  %v622_v13 = vrot.slane %v620_v5, 1  ;;  %v2664_v14 = vld [vmem:[%s2751_s24 + $0x10] ss:$0 sps:$4 sm:$0x77]   ;;  %v744_v20 = vsel %vm191_vm0, %v687_v15, 0 }
  0x1c   : > { %v2280_v18 = vld [vmem:[%s3145_s1 + $0x20] sm:$0xf]  ;;  %v1118_v19 = vshll.u32 %v2664_v14, 16  ;;  %v1116_v23 = vshrl.u32 %v2664_v14, 16  ;;  %v2264_v26 = vld [vmem:[%s3145_s1 + $0xc] sm:$0xf] }
  0x1d   : > { %v1126_v22 = vsel %vm191_vm0, %v2280_v18, 0  ;;  %v2666_v41 = vld [vmem:[%s2751_s24 + $0x14] ss:$0 sps:$4 sm:$0x77]   ;;  %v2276_v42 = vld [vmem:[%s3145_s1 + $0x1c] sm:$0xf] }
  0x1e   : > { %1184 = vrot.lane.b32.xlu0 %v2286_v28, %s2697_s25  ;;  %1391 = vrot.lane.b32.xlu1 %v2297_v29, %s2697_s25  ;;  %v1120_v25 = vrot.slane %v1118_v19, 1  ;;  %v852_v29 = vsel %vm191_vm0, %v2264_v26, 0  ;;  %v1448_v43 = vshll.u32 %v2666_v41, 16  ;;  %v2285_v48 = vld [vmem:[%s3145_s1 + $0x4] sm:$0xf]  ;;  %vm684_vm3 = vcmask 125952  }
  0x1f   : > { %v2306_v49 = vld [vmem:[%s3145_s1 + $0x1c] sm:$0xf]  ;;  %v1190_v51 = vsel %vm191_vm0, %v2285_v48, 0  ;;  %v2665_v53 = vld [vmem:[%s2751_s24 + $0x10] ss:$0 sps:$4 sm:$0x77]  }
  0x20   : > { %2453 = vmatmul.mubr.msk.bf16.vlgmr.msra.gmra.mxu1 %vm187_vm2, %v458_v32  ;;  %v1121_v28 = vor.u32 %v1120_v25, %v1116_v23  ;;  %v2663_v32 = vld [vmem:[%s2751_s24 + $0xc] ss:$0 sps:$4 sm:$0x77]   ;;  %v2320_v5 = vld [vmem:[%s3145_s1 + $0x8] sm:$0xf] }
  0x21   : > { %2463 = vmatpush3.bf16.msra.mxu1 %v568_v35  ;;  %2464 = vmatprep.mubr.msk.bf16.mxu1 %vm2696_vm1, %v2695_v1  ;;  %v2304_v18 = vld [vmem:[%s3145_s1 + $0x18] sm:$0xf] }
  0x22   : > { %1553 = vrot.lane.b32.xlu0 %v2307_v33, %s2697_s25  ;;  %1676 = vrot.lane.b32.xlu1 %v2316_v34, %s2697_s25  ;;  %v2270_v33 = vld [vmem:[%s3145_s1 + $0x14] sm:$0xf]  ;;  %v2294_v34 = vld [vmem:[%s3145_s1 + $0xc] sm:$0xf]  ;;  %v1506_v25 = vsel %vm191_vm0, %v2304_v18, 0 }
  0x23   : > { %2474 = vmatprep.subr.bf16.mxu1 %v2695_v1  ;;  %v964_v35 = vsel %vm191_vm0, %v2270_v33, 0 }
  0x26   : > { %1883 = vrot.lane.b32.xlu0 %v2327_v38, %s2697_s25  ;;  %2045 = vrot.lane.b32.xlu1 %v2337_v39, %s2697_s25  ;;  %v1344_v38 = vsel %vm191_vm0, %v2294_v34, 0  ;;  %v954_v39 = vshrl.u32 %v2663_v32, 16 }
  0x84   : > { %v186_v45 = vpop.permute.xlu0 %185  ;;  %v563_v46 = vpop.permute.xlu1 %562 }
  0x85   : > { %2423 = vmatmul.mubr.msk.bf16.vlgmr.msra.gmra.mxu0 %vm187_vm2, %v186_v45  ;;  %2465 = vmatmul.mubr.msk.bf16.vlgmr.msra.gmra.mxu1 %vm187_vm2, %v563_v46  ;;  %v1446_v46 = vshrl.u32 %v2666_v41, 16 }
  0x86   : > { %2433 = vmatpush3.bf16.msra.mxu0 %v298_v44  ;;  %2434 = vmatprep.mubr.msk.bf16.mxu0 %vm2696_vm1, %v2695_v1  ;;  %v1067_v44 = vsel %vm191_vm0, %v2276_v42, 0 }
  0x87   : > { %2444 = vmatprep.subr.bf16.mxu0 %v2695_v1  ;;  %2475 = vmatpush3.bf16.msra.mxu1 %v698_v47  ;;  %v1450_v47 = vrot.slane %v1448_v43, 1  ;;  %v1671_v43 = vld [vmem:[%s3145_s1] sm:$0xf] }
  0x88   : > { %2476 = vmatprep.mubr.msk.bf16.mxu1 %vm2696_vm1, %v2695_v1  ;;  %2486 = vmatprep.subr.bf16.mxu1 %v2695_v1  ;;  %v693_v55 = vpop.permute.xlu1 %692  ;;  %v398_v63 = vpop.permute.xlu0 %397 }
  0x8c   : > { %v900_v7 = vpop.permute.xlu0 %899  ;;  %v1062_v50 = vpop.permute.xlu1 %1061 }
  0x8d   : > { %2435 = vmatmul.mubr.msk.bf16.vlgmr.msra.gmra.mxu0 %vm187_vm2, %v293_v52  ;;  %2477 = vmatmul.mubr.msk.bf16.vlgmr.msra.gmra.mxu1 %vm187_vm2, %v693_v55  ;;  %v1559_v52 = vsel %vm191_vm0, %v2306_v49, 0  ;;  %v2290_v55 = vld [vmem:[%s3145_s1 + $0x8] sm:$0xf]  ;;  %v2324_v49 = vld [vmem:[%s3145_s1 + $0xc] sm:$0xf] }
  0x8e   : > { %2445 = vmatpush3.bf16.msra.mxu0 %v403_v56  ;;  %2446 = vmatprep.mubr.msk.bf16.mxu0 %vm2696_vm1, %v2695_v1  ;;  %v1286_v56 = vshll.u32 %v2665_v53, 16  ;;  %v1294_v59 = vsel %vm191_vm0, %v2290_v55, 0 }
  0x8f   : > { %2456 = vmatprep.subr.bf16.mxu0 %v2695_v1  ;;  %2487 = vmatpush3.bf16.msra.mxu1 %v802_v57  ;;  %v2315_v57 = vld [vmem:[%s3145_s1 + $0x4] sm:$0xf] }
  0x90   : > { %2488 = vmatprep.mubr.msk.bf16.mxu1 %vm2696_vm1, %v2695_v1  ;;  %2498 = vmatprep.subr.bf16.mxu1 %v2695_v1  ;;  %v1185_v54 = vpop.permute.xlu0 %1184  ;;  %v1682_v60 = vsel %vm191_vm0, %v2315_v57, 0  ;;  %v1288_v62 = vrot.slane %v1286_v56, 1  ;;  %v2336_v56 = vld [vmem:[%s3145_s1 + $0x1c] sm:$0xf] }
  0x94   : > { %v1554_v58 = vpop.permute.xlu0 %1553 }
  0x95   : > { %2447 = vmatmul.mubr.msk.bf16.vlgmr.msra.gmra.mxu0 %vm187_vm2, %v398_v63  ;;  %2489 = vmatmul.mubr.msk.bf16.vlgmr.msra.gmra.mxu1 %vm187_vm2, %v797_v61  ;;  %v1284_v61 = vshrl.u32 %v2665_v53, 16  ;;  %v2668_v63 = vld [vmem:[%s2751_s24 + $0x18] ss:$0 sps:$4 sm:$0x77]  }
  0x96   : > { %2457 = vmatpush3.bf16.msra.mxu0 %v514_v0  ;;  %2458 = vmatprep.mubr.msk.bf16.mxu0 %vm2696_vm1, %v2695_v1  ;;  %v1392_v0 = vpop.permute.xlu1 %1391  ;;  %v1778_v6 = vshll.u32 %v2668_v63, 16  ;;  %v1776_v14 = vshrl.u32 %v2668_v63, 16 }
  0x97   : > { %2468 = vmatprep.subr.bf16.mxu0 %v2695_v1  ;;  %2499 = vmatpush3.bf16.msra.mxu1 %v905_v2  ;;  %v2296_v2 = vld [vmem:[%s3145_s1 + $0x10] sm:$0xf]  ;;  %v1289_v4 = vor.u32 %v1288_v62, %v1284_v61 }
  0x98   : > { %2500 = vmatprep.mubr.msk.bf16.mxu1 %vm2696_vm1, %v2695_v1  ;;  %2510 = vmatprep.subr.bf16.mxu1 %v2695_v1  ;;  %v1780_v15 = vrot.slane %v1778_v6, 1  ;;  %v1884_v34 = vpop.permute.xlu0 %1883 }
  0x9d   : > { %2459 = vmatmul.mubr.msk.bf16.vlgmr.msra.gmra.mxu0 %vm187_vm2, %v2757_v9  ;;  %2501 = vmatmul.mubr.msk.bf16.vlgmr.msra.gmra.mxu1 %vm187_vm2, %v900_v7  ;;  %v623_v9 = vor.u32 %v622_v13, %v618_v11  ;;  %v1677_v7 = vpop.permute.xlu1 %1676  ;;  %v1786_v11 = vsel %vm191_vm0, %v2320_v5, 0 }
  0x9e   : > { %2469 = vmatpush3.bf16.msra.mxu0 %v628_v8  ;;  %2470 = vmatprep.mubr.msk.bf16.mxu0 %vm2696_vm1, %v2695_v1 }
  0x9f   : > { %2480 = vmatprep.subr.bf16.mxu0 %v2695_v1  ;;  %2511 = vmatpush3.bf16.msra.mxu1 %v1014_v10  ;;  %v1397_v10 = vsel %vm191_vm0, %v2296_v2, 0 }
  0xa0   : > { %2512 = vmatprep.mubr.msk.bf16.mxu1 %vm2696_vm1, %v2695_v1  ;;  %2522 = vmatprep.subr.bf16.mxu1 %v2695_v1 }
  0xa5   : > { %2471 = vmatmul.mubr.msk.bf16.vlgmr.msra.gmra.mxu0 %vm187_vm2, %v623_v9  ;;  %2513 = vmatmul.mubr.msk.bf16.vlgmr.msra.gmra.mxu1 %vm187_vm2, %v2778_v17  ;;  %v1179_v17 = vld [vmem:[%s3145_s1] sm:$0xf] }
  0xa6   : > { %2481 = vmatpush3.bf16.msra.mxu0 %v744_v20  ;;  %2482 = vmatprep.mubr.msk.bf16.mxu0 %vm2696_vm1, %v2695_v1  ;;  %v1236_v31 = vsel %vm191_vm0, %v1179_v17, 0  ;;  %v1781_v20 = vor.u32 %v1780_v15, %v1776_v14  ;;  %v2667_v17 = vld [vmem:[%s2751_s24 + $0x18] ss:$0 sps:$4 sm:$0x77]  }
  0xa7   : > { %2492 = vmatprep.subr.bf16.mxu0 %v2695_v1  ;;  %2523 = vmatpush3.bf16.msra.mxu1 %v1126_v22  ;;  %v2326_v22 = vld [vmem:[%s3145_s1 + $0x10] sm:$0xf]  ;;  %v1610_v33 = vshll.u32 %v2667_v17, 16  ;;  %v1608_v41 = vshrl.u32 %v2667_v17, 16 }
  0xa8   : > { %2524 = vmatprep.mubr.msk.bf16.mxu1 %vm2696_vm1, %v2695_v1  ;;  %2534 = vmatprep.subr.bf16.mxu1 %v2695_v1  ;;  %v1889_v26 = vsel %vm191_vm0, %v2326_v22, 0 }
  0xa9   : > { %v1612_v42 = vrot.slane %v1610_v33, 1 }
  0xad   : > { %2483 = vmatmul.mubr.msk.bf16.vlgmr.msra.gmra.mxu0 %vm187_vm2, %v2762_v12  ;;  %2525 = vmatmul.mubr.msk.bf16.vlgmr.msra.gmra.mxu1 %vm187_vm2, %v1121_v28  ;;  %v956_v12 = vshll.u32 %v2663_v32, 16 }
  0xae   : > { %2493 = vmatpush3.bf16.msra.mxu0 %v852_v29  ;;  %2494 = vmatprep.mubr.msk.bf16.mxu0 %vm2696_vm1, %v2695_v1 }
  0xaf   : > { %2504 = vmatprep.subr.bf16.mxu0 %v2695_v1  ;;  %2535 = vmatpush3.bf16.msra.mxu1 %v1236_v31  ;;  %v958_v40 = vrot.slane %v956_v12, 1  ;;  %v2310_v31 = vld [vmem:[%s3145_s1 + $0x20] sm:$0xf]  ;;  %v2334_v12 = vld [vmem:[%s3145_s1 + $0x18] sm:$0xf] }
  0xb0   : > { %2536 = vmatprep.mubr.msk.bf16.mxu1 %vm2696_vm1, %v2695_v1  ;;  %2546 = vmatprep.subr.bf16.mxu1 %v2695_v1 }
  0xb5   : > { %2495 = vmatmul.mubr.msk.bf16.vlgmr.msra.gmra.mxu0 %vm187_vm2, %v2775_v16  ;;  %2537 = vmatmul.mubr.msk.bf16.vlgmr.msra.gmra.mxu1 %vm187_vm2, %v2789_v21  ;;  %v959_v16 = vor.u32 %v958_v40, %v954_v39  ;;  %v2300_v21 = vld [vmem:[%s3145_s1 + $0x14] sm:$0xf]  ;;  %v1998_v39 = vsel %vm191_vm0, %v2334_v12, 0 }
  0xb6   : > { %2505 = vmatpush3.bf16.msra.mxu0 %v964_v35  ;;  %2506 = vmatprep.mubr.msk.bf16.mxu0 %vm2696_vm1, %v2695_v1  ;;  %v1456_v45 = vsel %vm191_vm0, %v2300_v21, 0 }
  0xb7   : > { %2516 = vmatprep.subr.bf16.mxu0 %v2695_v1  ;;  %2547 = vmatpush3.bf16.msra.mxu1 %v1344_v38  ;;  %v1618_v38 = vsel %vm191_vm0, %v2310_v31, 0 }
  0xb8   : > { %2548 = vmatprep.mubr.msk.bf16.mxu1 %vm2696_vm1, %v2695_v1  ;;  %2558 = vmatprep.subr.bf16.mxu1 %v2695_v1 }
  0xbd   : > { %2507 = vmatmul.mubr.msk.bf16.vlgmr.msra.gmra.mxu0 %vm187_vm2, %v959_v16  ;;  %2549 = vmatmul.mubr.msk.bf16.vlgmr.msra.gmra.mxu1 %vm187_vm2, %v2793_v24  ;;  %v1451_v24 = vor.u32 %v1450_v47, %v1446_v46  ;;  %v2670_v16 = vld [vmem:[%s2751_s24 + $0x20] ss:$0 sps:$4 sm:$0x77]   ;;  %v1728_v46 = vsel %vm191_vm0, %v1671_v43, 0 }
  0xbe   : > { %2517 = vmatpush3.bf16.msra.mxu0 %v1067_v44  ;;  %2518 = vmatprep.mubr.msk.bf16.mxu0 %vm2696_vm1, %v2695_v1  ;;  %v2340_v44 = vld [vmem:[%s3145_s1 + $0x20] sm:$0xf]  ;;  %v2100_v48 = vshrl.u32 %v2670_v16, 16 }
  0xbf   : > { %2528 = vmatprep.subr.bf16.mxu0 %v2695_v1  ;;  %2559 = vmatpush3.bf16.msra.mxu1 %v1456_v45  ;;  %v2102_v45 = vshll.u32 %v2670_v16, 16  ;;  %v2110_v47 = vsel %vm191_vm0, %v2340_v44, 0 }
  0xc0   : > { %2560 = vmatprep.mubr.msk.bf16.mxu1 %vm2696_vm1, %v2695_v1  ;;  %2570 = vmatprep.subr.bf16.mxu1 %v2695_v1 }
  0xc5   : > { %2519 = vmatmul.mubr.msk.bf16.vlgmr.msra.gmra.mxu0 %vm187_vm2, %v1062_v50  ;;  %2561 = vmatmul.mubr.msk.bf16.vlgmr.msra.gmra.mxu1 %vm187_vm2, %v1451_v24  ;;  %v2104_v24 = vrot.slane %v2102_v45, 1 }
  0xc6   : > { %2529 = vmatpush3.bf16.msra.mxu0 %v1190_v51  ;;  %2530 = vmatprep.mubr.msk.bf16.mxu0 %vm2696_vm1, %v2695_v1  ;;  %v1836_v51 = vsel %vm191_vm0, %v2324_v49, 0 }
  0xc7   : > { %2540 = vmatprep.subr.bf16.mxu0 %v2695_v1  ;;  %2571 = vmatpush3.bf16.msra.mxu1 %v1559_v52  ;;  %v2105_v50 = vor.u32 %v2104_v24, %v2100_v48  ;;  %v2330_v52 = vld [vmem:[%s3145_s1 + $0x14] sm:$0xf] }
  0xc8   : > { %2572 = vmatprep.mubr.msk.bf16.mxu1 %vm2696_vm1, %v2695_v1  ;;  %2582 = vmatprep.subr.bf16.mxu1 %v2695_v1 }
  0xcd   : > { %2531 = vmatmul.mubr.msk.bf16.vlgmr.msra.gmra.mxu0 %vm187_vm2, %v1185_v54  ;;  %2573 = vmatmul.mubr.msk.bf16.vlgmr.msra.gmra.mxu1 %vm187_vm2, %v1554_v58  ;;  %v1948_v54 = vsel %vm191_vm0, %v2330_v52, 0  ;;  %v2051_v58 = vsel %vm191_vm0, %v2336_v56, 0 }
  0xce   : > { %2541 = vmatpush3.bf16.msra.mxu0 %v1294_v59  ;;  %2542 = vmatprep.mubr.msk.bf16.mxu0 %vm2696_vm1, %v2695_v1 }
  0xcf   : > { %2552 = vmatprep.subr.bf16.mxu0 %v2695_v1  ;;  %2583 = vmatpush3.bf16.msra.mxu1 %v1682_v60 }
  0xd0   : > { %2584 = vmatprep.mubr.msk.bf16.mxu1 %vm2696_vm1, %v2695_v1  ;;  %2594 = vmatprep.subr.bf16.mxu1 %v2695_v1  ;;  %v3016_v3 = vpop.f32.mrf.mxu1 }
  0xd2   : > { %v2430_v8 = vpop.f32.mrf.mxu1 }
  0xd4   : > { %v278_v13 = vpop.f32.mrf.mxu1 }
  0xd5   : > { %2543 = vmatmul.mubr.msk.bf16.vlgmr.msra.gmra.mxu0 %vm187_vm2, %v1289_v4  ;;  %2585 = vmatmul.mubr.msk.bf16.vlgmr.msra.gmra.mxu1 %vm187_vm2, %v1677_v7 }
  0xd6   : > { %2553 = vmatpush3.bf16.msra.mxu0 %v1397_v10  ;;  %2554 = vmatprep.mubr.msk.bf16.mxu0 %vm2696_vm1, %v2695_v1  ;;  %v2431_v9 = vpop.f32.mrf.mxu1 }
  0xd7   : > { %2564 = vmatprep.subr.bf16.mxu0 %v2695_v1  ;;  %2595 = vmatpush3.bf16.msra.mxu1 %v1786_v11 }
  0xd8   : > { %2596 = vmatprep.mubr.msk.bf16.mxu1 %vm2696_vm1, %v2695_v1  ;;  %2606 = vmatprep.subr.bf16.mxu1 %v2695_v1  ;;  %v3034_v19 = vpop.f32.mrf.mxu1 }
  0xda   : > { %v2442_v23 = vpop.f32.mrf.mxu1 }
  0xdc   : > { %v388_v28 = vpop.f32.mrf.mxu1 }
  0xdd   : > { %2555 = vmatmul.mubr.msk.bf16.vlgmr.msra.gmra.mxu0 %vm187_vm2, %v1392_v0  ;;  %2597 = vmatmul.mubr.msk.bf16.vlgmr.msra.gmra.mxu1 %vm187_vm2, %v1781_v20 }
  0xde   : > { %2565 = vmatpush3.bf16.msra.mxu0 %v1506_v25  ;;  %2566 = vmatprep.mubr.msk.bf16.mxu0 %vm2696_vm1, %v2695_v1  ;;  %v2443_v29 = vpop.f32.mrf.mxu1 }
  0xdf   : > { %2576 = vmatprep.subr.bf16.mxu0 %v2695_v1  ;;  %2607 = vmatpush3.bf16.msra.mxu1 %v1889_v26 }
  0xe0   : > { %2608 = vmatprep.mubr.msk.bf16.mxu1 %vm2696_vm1, %v2695_v1  ;;  %2618 = vmatprep.subr.bf16.mxu1 %v2695_v1  ;;  %v3053_v32 = vpop.f32.mrf.mxu1 }
  0xe2   : > { %v2454_v35 = vpop.f32.mrf.mxu1 }
  0xe4   : > { %v502_v40 = vpop.f32.mrf.mxu1 }
  0xe5   : > { %2567 = vmatmul.mubr.msk.bf16.vlgmr.msra.gmra.mxu0 %vm187_vm2, %v2797_v27  ;;  %2609 = vmatmul.mubr.msk.bf16.vlgmr.msra.gmra.mxu1 %vm187_vm2, %v1884_v34  ;;  %v1613_v27 = vor.u32 %v1612_v42, %v1608_v41 }
  0xe6   : > { %2577 = vmatpush3.bf16.msra.mxu0 %v1618_v38  ;;  %2578 = vmatprep.mubr.msk.bf16.mxu0 %vm2696_vm1, %v2695_v1  ;;  %v2455_v21 = vpop.f32.mrf.mxu1 }
  0xe7   : > { %2588 = vmatprep.subr.bf16.mxu0 %v2695_v1  ;;  %2619 = vmatpush3.bf16.msra.mxu1 %v1998_v39 }
  0xe8   : > { %2620 = vmatprep.mubr.msk.bf16.mxu1 %vm2696_vm1, %v2695_v1  ;;  %2630 = vmatprep.subr.bf16.mxu1 %v2695_v1 }
  0xed   : > { %2579 = vmatmul.mubr.msk.bf16.vlgmr.msra.gmra.mxu0 %vm187_vm2, %v1613_v27  ;;  %2621 = vmatmul.mubr.msk.bf16.vlgmr.msra.gmra.mxu1 %vm187_vm2, %v2825_v37  ;;  %v2669_v37 = vld [vmem:[%s2751_s24 + $0x1c] ss:$0 sps:$4 sm:$0x77]  }
  0xee   : > { %2589 = vmatpush3.bf16.msra.mxu0 %v1728_v46  ;;  %2590 = vmatprep.mubr.msk.bf16.mxu0 %vm2696_vm1, %v2695_v1  ;;  %v1940_v53 = vshll.u32 %v2669_v37, 16 }
  0xef   : > { %2600 = vmatprep.subr.bf16.mxu0 %v2695_v1  ;;  %2631 = vmatpush3.bf16.msra.mxu1 %v2110_v47 }
  0xf0   : > { %2632 = vmatprep.mubr.msk.bf16.mxu1 %vm2696_vm1, %v2695_v1  ;;  %v1942_v55 = vrot.slane %v1940_v53, 1 }
  0xf5   : > { %2591 = vmatmul.mubr.msk.bf16.vlgmr.msra.gmra.mxu0 %vm187_vm2, %v2808_v30  ;;  %2633 = vmatmul.mubr.msk.bf16.vlgmr.msra.gmra.mxu1 %vm187_vm2, %v2105_v50  ;;  %v1938_v30 = vshrl.u32 %v2669_v37, 16 }
  0xf6   : > { %2601 = vmatpush3.bf16.msra.mxu0 %v1836_v51  ;;  %2602 = vmatprep.mubr.msk.bf16.mxu0 %vm2696_vm1, %v2695_v1 }
  0xf7   : > { %2612 = vmatprep.subr.bf16.mxu0 %v2695_v1  ;;  %v1943_v57 = vor.u32 %v1942_v55, %v1938_v30 }
  0xfd   : > { %2603 = vmatmul.mubr.msk.bf16.vlgmr.msra.gmra.mxu0 %vm187_vm2, %v2822_v36  ;;  %v2046_v36 = vpop.permute.xlu1 %2045 }
  0xfe   : > { %2613 = vmatpush3.bf16.msra.mxu0 %v1948_v54  ;;  %2614 = vmatprep.mubr.msk.bf16.mxu0 %vm2696_vm1, %v2695_v1 }
  0xff   : > { %2624 = vmatprep.subr.bf16.mxu0 %v2695_v1 }
 0x105   : > { %2615 = vmatmul.mubr.msk.bf16.vlgmr.msra.gmra.mxu0 %vm187_vm2, %v1943_v57 }
 0x106   : > { %2625 = vmatpush3.bf16.msra.mxu0 %v2051_v58  ;;  %2626 = vmatprep.mubr.msk.bf16.mxu0 %vm2696_vm1, %v2695_v1 }
 0x10d   : > { %2627 = vmatmul.mubr.msk.bf16.vlgmr.msra.gmra.mxu0 %vm187_vm2, %v2046_v36 }
 0x145   : > { %v229_v59 = vpop.f32.mrf.mxu0  ;;  %v604_v60 = vpop.f32.mrf.mxu1 }
 0x146   : > { %v276_v13 = vadd.f32 %v3016_v3, %v229_v59 }
 0x147   : > { %v2424_v61 = vpop.f32.mrf.mxu0  ;;  %v2466_v62 = vpop.f32.mrf.mxu1 }
 0x149   : > { %v232_v63 = vpop.f32.mrf.mxu0  ;;  %v607_v0 = vpop.f32.mrf.mxu1 }
 0x14b   : > { %v2425_v2 = vpop.f32.mrf.mxu0  ;;  %v2467_v4 = vpop.f32.mrf.mxu1 }
 0x14d   : > { %v334_v5 = vpop.f32.mrf.mxu0  ;;  %v734_v6 = vpop.f32.mrf.mxu1 }
 0x14e   : > { %v340_v15 = vadd.f32 %v334_v5, %v276_v13 }
 0x14f   : > { %v2436_v7 = vpop.f32.mrf.mxu0  ;;  %v2478_v8 = vpop.f32.mrf.mxu1 }
 0x150   : > { %v391_v23 = vadd.f32 %v3034_v19, %v340_v15  ;;  %v3120_v19 = vld [vmem:[%s3146_s2] ss:$0 sm:$0xff] }
 0x151   : > { %v337_v10 = vpop.f32.mrf.mxu0  ;;  %v737_v11 = vpop.f32.mrf.mxu1 }
 0x153   : > { %v2437_v1 = vpop.f32.mrf.mxu0  ;;  %v2479_v14 = vpop.f32.mrf.mxu1 }
 0x155   : > { %v439_v9 = vpop.f32.mrf.mxu0  ;;  %v838_v18 = vpop.f32.mrf.mxu1 }
 0x156   : > { %v445_v28 = vadd.f32 %v439_v9, %v391_v23 }
 0x157   : > { %v2448_v20 = vpop.f32.mrf.mxu0  ;;  %v2490_v22 = vpop.f32.mrf.mxu1 }
 0x158   : > { %v505_v12 = vadd.f32 %v3053_v32, %v445_v28 }
 0x159   : > { %v442_v25 = vpop.f32.mrf.mxu0  ;;  %v841_v26 = vpop.f32.mrf.mxu1 }
 0x15b   : > { %v2449_v17 = vpop.f32.mrf.mxu0  ;;  %v2491_v29 = vpop.f32.mrf.mxu1 }
 0x15d   : > { %v550_v31 = vpop.f32.mrf.mxu0  ;;  %v941_v33 = vpop.f32.mrf.mxu1 }
 0x15e   : > { %v556_v35 = vadd.f32 %v550_v31, %v505_v12 }
 0x15f   : > { %v2460_v34 = vpop.f32.mrf.mxu0  ;;  %v2502_v3 = vpop.f32.mrf.mxu1 }
 0x160   : > { %v610_v42 = vadd.f32 %v604_v60, %v556_v35 }
 0x161   : > { %v553_v38 = vpop.f32.mrf.mxu0  ;;  %v944_v39 = vpop.f32.mrf.mxu1 }
 0x163   : > { %v2461_v40 = vpop.f32.mrf.mxu0  ;;  %v2503_v41 = vpop.f32.mrf.mxu1 }
 0x165   : > { %v664_v16 = vpop.f32.mrf.mxu0  ;;  %v1050_v21 = vpop.f32.mrf.mxu1 }
 0x166   : > { %v670_v43 = vadd.f32 %v664_v16, %v610_v42 }
 0x167   : > { %v2472_v27 = vpop.f32.mrf.mxu0  ;;  %v2514_v44 = vpop.f32.mrf.mxu1 }
 0x168   : > { %v677_v32 = vadd.f32 %v3120_v19, %v670_v43 }
 0x169   : > { %v667_v45 = vpop.f32.mrf.mxu0  ;;  %v1053_v46 = vpop.f32.mrf.mxu1 }
 0x16a   : > { %v678_v47 = vsub.f32 0.0, %v677_v32 }
 0x16b   : > { %v2473_v48 = vpop.f32.mrf.mxu0  ;;  %v2515_v24 = vpop.f32.mrf.mxu1 }
 0x16c   : > { %v679_v49 = vmul.f32 1.442695, %v678_v47 }
 0x16d   : > { %v780_v50 = vpop.f32.mrf.mxu0  ;;  %v1162_v51 = vpop.f32.mrf.mxu1 }
 0x16e   : > { %2671 = vpow2.f32 %v679_v49  ;;  %v781_v56 = vadd.f32 %v780_v50, %v734_v6 }
 0x16f   : > { %v2484_v37 = vpop.f32.mrf.mxu0  ;;  %v2526_v52 = vpop.f32.mrf.mxu1 }
 0x170   : > { %v844_v60 = vadd.f32 %v838_v18, %v781_v56 }
 0x171   : > { %v783_v53 = vpop.f32.mrf.mxu0  ;;  %v1165_v54 = vpop.f32.mrf.mxu1 }
 0x173   : > { %v2485_v30 = vpop.f32.mrf.mxu0  ;;  %v2527_v55 = vpop.f32.mrf.mxu1 }
 0x175   : > { %v888_v57 = vpop.f32.mrf.mxu0  ;;  %v1272_v58 = vpop.f32.mrf.mxu1 }
 0x176   : > { %v894_v63 = vadd.f32 %v888_v57, %v844_v60 }
 0x177   : > { %v2496_v36 = vpop.f32.mrf.mxu0  ;;  %v2538_v59 = vpop.f32.mrf.mxu1 }
 0x178   : > { %v947_v10 = vadd.f32 %v941_v33, %v894_v63 }
 0x179   : > { %v891_v61 = vpop.f32.mrf.mxu0  ;;  %v1275_v62 = vpop.f32.mrf.mxu1 }
 0x17b   : > { %v2672_v0 = vpop.eup %2671  ;;  %v2497_v2 = vpop.f32.mrf.mxu0 }
 0x17c   : > { %v2539_v4 = vpop.f32.mrf.mxu1  ;;  %v681_v5 = vadd.f32 1.0, %v2672_v0 }
 0x17d   : > { %v1000_v7 = vpop.f32.mrf.mxu0 }
 0x17e   : > { %v1380_v8 = vpop.f32.mrf.mxu1  ;;  %2673 = vrcp.f32 %v681_v5  ;;  %v1006_v13 = vadd.f32 %v1000_v7, %v947_v10 }
 0x17f   : > { %v2508_v11 = vpop.f32.mrf.mxu0 }
 0x180   : > { %v2550_v6 = vpop.f32.mrf.mxu1  ;;  %v1056_v18 = vadd.f32 %v1050_v21, %v1006_v13 }
 0x181   : > { %v1003_v1 = vpop.f32.mrf.mxu0 }
 0x182   : > { %v1383_v14 = vpop.f32.mrf.mxu1 }
 0x183   : > { %v2509_v15 = vpop.f32.mrf.mxu0 }
 0x184   : > { %v2551_v9 = vpop.f32.mrf.mxu1 }
 0x185   : > { %v1103_v20 = vpop.f32.mrf.mxu0 }
 0x186   : > { %v1492_v22 = vpop.f32.mrf.mxu1  ;;  %v1109_v23 = vadd.f32 %v1103_v20, %v1056_v18 }
 0x187   : > { %v2520_v25 = vpop.f32.mrf.mxu0 }
 0x188   : > { %v2562_v26 = vpop.f32.mrf.mxu1  ;;  %v1168_v28 = vadd.f32 %v1162_v51, %v1109_v23 }
 0x189   : > { %v1106_v17 = vpop.f32.mrf.mxu0 }
 0x18a   : > { %v1495_v29 = vpop.f32.mrf.mxu1  ;;  %v1169_v31 = vadd.f32 %v3120_v19, %v1168_v28 }
 0x18b   : > { %v2674_v33 = vpop.eup %2673  ;;  %v2521_v12 = vpop.f32.mrf.mxu0 }
 0x18c   : > { %v2563_v34 = vpop.f32.mrf.mxu1  ;;  %v683_v3 = vmul.f32 %v2674_v33, %v677_v32  ;;  %v1170_v35 = vsub.f32 0.0, %v1169_v31 }
 0x18d   : > { %v1226_v38 = vpop.f32.mrf.mxu0 }
 0x18e   : > { %v1595_v39 = vpop.f32.mrf.mxu1  ;;  %685 = vst.msk [vmem:[%s3129_s23] sm:$0xf] %vm684_vm3, %v683_v3  ;;  %v1171_v40 = vmul.f32 1.442695, %v1170_v35  ;;  %v1273_v32 = vadd.f32 %v1272_v58, %v1226_v38 }
 0x18f   : > { %v2532_v41 = vpop.f32.mrf.mxu0 }
 0x190   : > { %v2574_v42 = vpop.f32.mrf.mxu1  ;;  %2675 = vpow2.f32 %v1171_v40 }
 0x191   : > { %v1229_v16 = vpop.f32.mrf.mxu0 }
 0x192   : > { %v1598_v21 = vpop.f32.mrf.mxu1 }
 0x193   : > { %v2533_v43 = vpop.f32.mrf.mxu0 }
 0x194   : > { %v2575_v27 = vpop.f32.mrf.mxu1 }
 0x195   : > { %v1330_v44 = vpop.f32.mrf.mxu0 }
 0x196   : > { %v1718_v45 = vpop.f32.mrf.mxu1  ;;  %v1336_v51 = vadd.f32 %v1330_v44, %v1273_v32 }
 0x197   : > { %v2544_v46 = vpop.f32.mrf.mxu0 }
 0x198   : > { %v2586_v47 = vpop.f32.mrf.mxu1  ;;  %v1386_v56 = vadd.f32 %v1380_v8, %v1336_v51 }
 0x199   : > { %v1333_v48 = vpop.f32.mrf.mxu0 }
 0x19a   : > { %v1721_v24 = vpop.f32.mrf.mxu1 }
 0x19b   : > { %v2545_v49 = vpop.f32.mrf.mxu0 }
 0x19c   : > { %v2587_v50 = vpop.f32.mrf.mxu1 }
 0x19d   : > { %v2676_v37 = vpop.eup %2675  ;;  %v1433_v52 = vpop.f32.mrf.mxu0 }
 0x19e   : > { %v1822_v53 = vpop.f32.mrf.mxu1  ;;  %v1173_v54 = vadd.f32 1.0, %v2676_v37  ;;  %v1439_v59 = vadd.f32 %v1433_v52, %v1386_v56 }
 0x19f   : > { %v2556_v30 = vpop.f32.mrf.mxu0 }
 0x1a0   : > { %v2598_v55 = vpop.f32.mrf.mxu1  ;;  %2677 = vrcp.f32 %v1173_v54  ;;  %v1498_v0 = vadd.f32 %v1492_v22, %v1439_v59 }
 0x1a1   : > { %v1436_v57 = vpop.f32.mrf.mxu0 }
 0x1a2   : > { %v1825_v36 = vpop.f32.mrf.mxu1 }
 0x1a3   : > { %v2557_v60 = vpop.f32.mrf.mxu0 }
 0x1a4   : > { %v2599_v61 = vpop.f32.mrf.mxu1 }
 0x1a5   : > { %v1542_v62 = vpop.f32.mrf.mxu0 }
 0x1a6   : > { %v1925_v63 = vpop.f32.mrf.mxu1  ;;  %v1548_v4 = vadd.f32 %v1542_v62, %v1498_v0 }
 0x1a7   : > { %v2568_v58 = vpop.f32.mrf.mxu0 }
 0x1a8   : > { %v2610_v2 = vpop.f32.mrf.mxu1  ;;  %v1601_v6 = vadd.f32 %v1595_v39, %v1548_v4 }
 0x1a9   : > { %v1545_v5 = vpop.f32.mrf.mxu0 }
 0x1aa   : > { %v1928_v7 = vpop.f32.mrf.mxu1 }
 0x1ab   : > { %v2569_v10 = vpop.f32.mrf.mxu0 }
 0x1ac   : > { %v2611_v11 = vpop.f32.mrf.mxu1 }
 0x1ad   : > { %v2678_v13 = vpop.eup %2677  ;;  %v1654_v1 = vpop.f32.mrf.mxu0 }
 0x1ae   : > { %v2034_v8 = vpop.f32.mrf.mxu1  ;;  %v1175_v14 = vmul.f32 %v2678_v13, %v1169_v31  ;;  %v1660_v15 = vadd.f32 %v1654_v1, %v1601_v6 }
 0x1af   : > { %v2580_v9 = vpop.f32.mrf.mxu0 }
 0x1b0   : > { %v2622_v18 = vpop.f32.mrf.mxu1  ;;  %2283 = vst.msk [vmem:[%s3129_s23 + $0x4] sm:$0xf] %vm684_vm3, %v1175_v14  ;;  %v1661_v20 = vadd.f32 %v3120_v19, %v1660_v15 }
 0x1b1   : > { %v1657_v22 = vpop.f32.mrf.mxu0 }
 0x1b2   : > { %v2037_v23 = vpop.f32.mrf.mxu1  ;;  %v1662_v25 = vsub.f32 0.0, %v1661_v20 }
 0x1b3   : > { %v2581_v26 = vpop.f32.mrf.mxu0 }
 0x1b4   : > { %v2623_v28 = vpop.f32.mrf.mxu1  ;;  %v1663_v17 = vmul.f32 1.442695, %v1662_v25 }
 0x1b5   : > { %v1764_v29 = vpop.f32.mrf.mxu0 }
 0x1b6   : > { %v2146_v33 = vpop.f32.mrf.mxu1  ;;  %2679 = vpow2.f32 %v1663_v17  ;;  %v1765_v39 = vadd.f32 %v1764_v29, %v1718_v45 }
 0x1b7   : > { %v2592_v12 = vpop.f32.mrf.mxu0 }
 0x1b8   : > { %v2634_v34 = vpop.f32.mrf.mxu1  ;;  %v1828_v42 = vadd.f32 %v1822_v53, %v1765_v39 }
 0x1b9   : > { %v1767_v3 = vpop.f32.mrf.mxu0 }
 0x1ba   : > { %v2149_v31 = vpop.f32.mrf.mxu1 }
 0x1bb   : > { %v2593_v35 = vpop.f32.mrf.mxu0 }
 0x1bc   : > { %v2635_v38 = vpop.f32.mrf.mxu1 }
 0x1bd   : > { %v1872_v40 = vpop.f32.mrf.mxu0 }
 0x1be   : > { %v1878_v21 = vadd.f32 %v1872_v40, %v1828_v42 }
 0x1bf   : > { %v2604_v41 = vpop.f32.mrf.mxu0 }
 0x1c0   : > { %v1931_v47 = vadd.f32 %v1925_v63, %v1878_v21 }
 0x1c1   : > { %v1875_v16 = vpop.f32.mrf.mxu0 }
 0x1c3   : > { %v2680_v43 = vpop.eup %2679  ;;  %v2605_v27 = vpop.f32.mrf.mxu0 }
 0x1c4   : > { %v1665_v44 = vadd.f32 1.0, %v2680_v43 }
 0x1c5   : > { %v1984_v46 = vpop.f32.mrf.mxu0 }
 0x1c6   : > { %2681 = vrcp.f32 %v1665_v44  ;;  %v1990_v24 = vadd.f32 %v1984_v46, %v1931_v47 }
 0x1c7   : > { %v2616_v48 = vpop.f32.mrf.mxu0 }
 0x1c8   : > { %v2040_v50 = vadd.f32 %v2034_v8, %v1990_v24 }
 0x1c9   : > { %v1987_v32 = vpop.f32.mrf.mxu0 }
 0x1cb   : > { %v2617_v49 = vpop.f32.mrf.mxu0 }
 0x1cd   : > { %v2087_v51 = vpop.f32.mrf.mxu0 }
 0x1ce   : > { %v2093_v37 = vadd.f32 %v2087_v51, %v2040_v50 }
 0x1cf   : > { %v2628_v45 = vpop.f32.mrf.mxu0 }
 0x1d0   : > { %v2152_v52 = vadd.f32 %v2146_v33, %v2093_v37 }
 0x1d1   : > { %v2090_v53 = vpop.f32.mrf.mxu0 }
 0x1d2   : > { %v2153_v54 = vadd.f32 %v3120_v19, %v2152_v52 }
 0x1d3   : > { %v2682_v30 = vpop.eup %2681  ;;  %v2629_v55 = vpop.f32.mrf.mxu0 }
 0x1d4   : > { %v1667_v56 = vmul.f32 %v2682_v30, %v1661_v20  ;;  %v2154_v57 = vsub.f32 0.0, %v2153_v54 }
 0x1d6   : > { %2313 = vst.msk [vmem:[%s3129_s23 + $0x8] sm:$0xf] %vm684_vm3, %v1667_v56  ;;  %v2155_v36 = vmul.f32 1.442695, %v2154_v57 }
 0x1d8   : > { %2683 = vpow2.f32 %v2155_v36 }
 0x1e5   : > { %v2684_v59 = vpop.eup %2683 }
 0x1e6   : > { %v2157_v60 = vadd.f32 1.0, %v2684_v59 }
 0x1e8   : > { %2685 = vrcp.f32 %v2157_v60 }
 0x1f5   : > { %v2686_v61 = vpop.eup %2685 }
 0x1f6   : > { %v2159_v62 = vmul.f32 %v2686_v61, %v2153_v54 }
 0x1f8   : > { %2343 = vst.msk [vmem:[%s3129_s23 + $0xc] sm:$0xf] %vm684_vm3, %v2159_v62 }
 0x1f9 PF: > { %s13_s12 = sadd.s32 1, %s2693_s12  }
 0x1fa   : > { %p10_p5 = scmp.ge.s32.totalorder %s13_s12, 4  }
 0x1fc   :  { %12 = sbr.rel (!%p10_p5) target bundleno = 1 (0x1), region = 81 }

// kernel: _lambda_.10
= control target key start
LH: loop header
LB: loop body
LE: loop exit
PB: predicated region body
PF: predicated region fallthrough
CT: control target
= control target key end

     0   :  { %vm61_vm0 = vcmask 392192   ;;  %s275_s0 = inlined_call_operand.vmem [shape: bf16[32,48], index: 0, kind: input, shape index: {}]   ;;  %s276_s1 = inlined_call_operand.vmem [shape: bf16[48,16], index: 1, kind: input, shape index: {}]   ;;  %s277_s2 = inlined_call_operand.vmem [shape: f32[1,16], index: 2, kind: input, shape index: {}]   ;;  %s278_s3 = inlined_call_operand.hbm [shape: f32[32,16], index: 3, kind: output, shape index: {}]  }
   0x1   :  { %v188_v0 = vld [vmem:[%s276_s1 + $0x10] sm:$0xff]   ;;  %v189_v1 = vld [vmem:[%s276_s1 + $0x8] sm:$0xff]   ;;  %v191_v2 = vld [vmem:[%s275_s0] sm:$0xff]  }
   0x2   :  { %175 = vmatprep.subr.bf16.mxu0 %v188_v0  ;;  %v190_v3 = vld [vmem:[%s276_s1] sm:$0xff]   ;;  %181 = vmatprep.mubr.msk.bf16.mxu0 %vm61_vm0, %v191_v2 }
   0x3   :  { %176 = vmatpush3.bf16.msra.mxu0 %v188_v0 }
   0x4   :  { %177 = vmatprep.subr.bf16.mxu0 %v189_v1 }
   0x5   :  { %8 = vsyncpa [#allocation3], 0  ;;  %v192_v4 = vld [vmem:[%s275_s0 + $0x8] sm:$0xff]   ;;  %v162_v5 = vld [vmem:[%s277_s2] ss:$0 sm:$0xff]  ;;  %vm141_vm1 = vcmask 130048  }
   0x6   :  { %s231_s0 = smov [#allocation2]  }
   0x7   :  { %178 = vmatpush3.bf16.msra.mxu0 %v189_v1  ;;  %s151_s1 = sshll.u32 %s231_s0, 4  ;;  %s152_s1 = int_to_ptr.vmem [resolvable:$true] %s151_s1 }
   0x8   :  { %179 = vmatprep.subr.bf16.mxu0 %v190_v3  ;;  %s209_s2 = scalar_lea.vmem %s152_s1, 512  ;;  %p214_p1 = scmp.lt.s32.totalorder %s152_s1, %s152_s1 }
   0x9   :  { %p210_p0 = scmp.ne.s32.totalorder %s152_s1, %s209_s2  ;;  %p215_p2 = scmp.lt.s32.totalorder %s209_s2, %s209_s2 }
   0xb   :  { %180 = vmatpush3.bf16.msra.mxu0 %v190_v3  ;;  %p216_p3 = por %p215_p2, %p214_p1 }
   0xd   :  { %p217_p4 = pnand %p216_p3, %p210_p0 }
   0xe   :  { %182 = vmatmul.mubr.msk.bf16.vlgmr.msra.gmra.mxu0 %vm61_vm0, %v192_v4 }
  0xce   :  { %v183_v6 = vpop.f32.mrf.mxu0 }
  0xcf   :  { %v111_v7 = vadd.f32 %v183_v6, %v162_v5 }
  0xd0   :  { %v102_v8 = vpop.f32.mrf.mxu0 }
  0xd1   :  { %v119_v9 = vsub.f32 0.0, %v111_v7  ;;  %v103_v10 = vadd.f32 %v162_v5, %v102_v8 }
  0xd2   :  { %v184_v11 = vpop.f32.mrf.mxu0 }
  0xd3   :  { %v125_v12 = vmul.f32 1.442695, %v119_v9  ;;  %v117_v13 = vsub.f32 0.0, %v103_v10  ;;  %v114_v14 = vadd.f32 %v184_v11, %v162_v5 }
  0xd4   :  { %v105_v15 = vpop.f32.mrf.mxu0 }
  0xd5   :  { %193 = vpow2.f32 %v125_v12  ;;  %v121_v16 = vmul.f32 1.442695, %v117_v13  ;;  %v120_v17 = vsub.f32 0.0, %v114_v14  ;;  %v106_v18 = vadd.f32 %v162_v5, %v105_v15 }
  0xd7   :  { %195 = vpow2.f32 %v121_v16  ;;  %v127_v19 = vmul.f32 1.442695, %v120_v17  ;;  %v118_v20 = vsub.f32 0.0, %v106_v18 }
  0xd9   :  { %197 = vpow2.f32 %v127_v19  ;;  %v123_v21 = vmul.f32 1.442695, %v118_v20 }
  0xdb   :  { %199 = vpow2.f32 %v123_v21 }
  0xe2   :  { %v194_v22 = vpop.eup %193 }
  0xe3   :  { %v131_v23 = vadd.f32 1.0, %v194_v22 }
  0xe4   :  { %v196_v24 = vpop.eup %195 }
  0xe5   :  { %201 = vrcp.f32 %v131_v23  ;;  %v129_v25 = vadd.f32 1.0, %v196_v24 }
  0xe6   :  { %v198_v26 = vpop.eup %197 }
  0xe7   :  { %203 = vrcp.f32 %v129_v25  ;;  %v132_v27 = vadd.f32 1.0, %v198_v26 }
  0xe8   :  { %v200_v28 = vpop.eup %199 }
  0xe9   :  { %205 = vrcp.f32 %v132_v27  ;;  %v130_v29 = vadd.f32 1.0, %v200_v28 }
  0xeb   :  { %207 = vrcp.f32 %v130_v29 }
  0xf2   :  { %v202_v30 = vpop.eup %201 }
  0xf3   :  { %v139_v31 = vmul.f32 %v202_v30, %v111_v7 }
  0xf4   :  { %v204_v32 = vpop.eup %203 }
  0xf5   :  { %144 = vst.msk [vmem:[#allocation2 + $0x10] sm:$0xff] %vm141_vm1, %v139_v31  ;;  %v137_v33 = vmul.f32 %v204_v32, %v103_v10 }
  0xf6   :  { %v206_v34 = vpop.eup %205 }
  0xf7   :  { %142 = vst.msk [vmem:[#allocation2] sm:$0xff] %vm141_vm1, %v137_v33  ;;  %v140_v35 = vmul.f32 %v206_v34, %v114_v14 }
  0xf8   :  { %v208_v36 = vpop.eup %207 }
  0xf9   :  { %145 = vst.msk [vmem:[#allocation2 + $0x18] sm:$0xff] %vm141_vm1, %v140_v35  ;;  %v138_v37 = vmul.f32 %v208_v36, %v106_v18 }
  0xfb   :  { %143 = vst.msk [vmem:[#allocation2 + $0x8] sm:$0xff] %vm141_vm1, %v138_v37 }
  0xfc   :  { %220 = shalt.err (!%p217_p4)
}
  0xfd   :  { %s232_s24 = smov 128   ;;  %s233_s25 = smov 8  }
  0xfe   :  { %157 = dma.vmem_to_hbm [thread:$0]  %s152_s1, 512, %s278_s3, [#allocation3], %s232_s24, %s232_s24, %s233_s25  }
  0xff   :  { %229 = dma.done.wait [#allocation3], 512  }
 0x100   :  { %230 = vsyncadd [#allocation3], 4294966784 }
 0x101   :  { %161 = vsyncpa [#allocation3], 1 }

// kernel: _lambda_.11
= control target key start
LH: loop header
LB: loop body
LE: loop exit
PB: predicated region body
PF: predicated region fallthrough
CT: control target
= control target key end

     0   :  { %v151_v1 = vmov 0.0   ;;  %vm152_vm0 = vmmov 0   ;;  %s191_s0 = inlined_call_operand.vmem [shape: bf16[8,32], index: 0, kind: input, shape index: {}]   ;;  %s192_s1 = inlined_call_operand.vmem [shape: bf16[32,32], index: 1, kind: input, shape index: {}]   ;;  %s193_s2 = inlined_call_operand.vmem [shape: f32[1,32], index: 2, kind: input, shape index: {}]   ;;  %s194_s3 = inlined_call_operand.hbm [shape: f32[8,32], index: 3, kind: output, shape index: {}]  }
   0x1   :  { %v123_v0 = vld [vmem:[%s192_s1 + $0x8] sm:$0xff]   ;;  %112 = vmatprep.subr.bf16.mxu0 %v151_v1  ;;  %v124_v2 = vld [vmem:[%s192_s1] sm:$0xff]   ;;  %116 = vmatprep.mubr.msk.bf16.mxu0 %vm152_vm0, %v151_v1 }
   0x2   :  { %113 = vmatpush3.bf16.msra.mxu0 %v123_v0 }
   0x3   :  { %114 = vmatprep.subr.bf16.mxu0 %v151_v1 }
   0x4   :  { %8 = vsyncpa [#allocation3], 0  ;;  %v16_v3 = vld [vmem:[%s191_s0] sm:$0xf]  ;;  %vm40_vm1 = vcmask 261120   ;;  %s153_s1 = smov [#allocation2]  }
   0x5   :  { %v105_v4 = vld [vmem:[%s193_s2] ss:$0 sm:$0xff]  ;;  %s97_s0 = sshll.u32 %s153_s1, 4  ;;  %s98_s0 = int_to_ptr.vmem [resolvable:$true] %s97_s0 }
   0x6   :  { %115 = vmatpush3.bf16.msra.mxu0 %v124_v2  ;;  %s129_s20 = scalar_lea.vmem %s98_s0, 128  ;;  %p134_p1 = scmp.lt.s32.totalorder %s98_s0, %s98_s0 }
   0x7   :  { %p130_p0 = scmp.ne.s32.totalorder %s98_s0, %s129_s20  ;;  %p135_p2 = scmp.lt.s32.totalorder %s129_s20, %s129_s20 }
   0x9   :  { %117 = vmatmul.mubr.msk.bf16.vlgmr.msra.gmra.mxu0 %vm40_vm1, %v16_v3  ;;  %p136_p3 = por %p135_p2, %p134_p1 }
   0xb   :  { %p137_p4 = pnand %p136_p3, %p130_p0 }
  0xc9   :  { %v78_v5 = vpop.f32.mrf.mxu0 }
  0xca   :  { %v79_v6 = vadd.f32 %v105_v4, %v78_v5 }
  0xcb   :  { %v118_v7 = vpop.f32.mrf.mxu0 }
  0xcc   :  { %v84_v8 = vsub.f32 0.0, %v79_v6 }
  0xcd   :  { %v81_v9 = vpop.f32.mrf.mxu0 }
  0xce   :  { %v85_v10 = vmul.f32 1.442695, %v84_v8 }
  0xcf   :  { %v119_v11 = vpop.f32.mrf.mxu0 }
  0xd0   :  { %125 = vpow2.f32 %v85_v10 }
  0xdd   :  { %v126_v12 = vpop.eup %125 }
  0xde   :  { %v87_v13 = vadd.f32 1.0, %v126_v12 }
  0xe0   :  { %127 = vrcp.f32 %v87_v13 }
  0xed   :  { %v128_v14 = vpop.eup %127 }
  0xee   :  { %v89_v15 = vmul.f32 %v128_v14, %v79_v6 }
  0xf0   :  { %90 = vst.msk [vmem:[#allocation2] sm:$0xff] %vm40_vm1, %v89_v15 }
  0xf1   :  { %140 = shalt.err (!%p137_p4)
}
  0xf2   :  { %100 = dma.vmem_to_hbm [thread:$0]  %s98_s0, 128, %s194_s3, [#allocation3]  }
  0xf3   :  { %149 = dma.done.wait [#allocation3], 128  }
  0xf4   :  { %150 = vsyncadd [#allocation3], 4294967168 }
  0xf5   :  { %104 = vsyncpa [#allocation3], 1 }

// kernel: _lambda_.6
= control target key start
LH: loop header
LB: loop body
LE: loop exit
PB: predicated region body
PF: predicated region fallthrough
CT: control target
= control target key end

     0   :  { %s5238_s12 = smov 0   ;;  %s6081_s0 = inlined_call_operand.vmem [shape: bf16[18,2,9,6], index: 0, kind: input, shape index: {}]   ;;  %s6082_s1 = inlined_call_operand.vmem [shape: bf16[9,3,8], index: 1, kind: input, shape index: {}]   ;;  %s6083_s2 = inlined_call_operand.vmem [shape: f32[1,8], index: 2, kind: input, shape index: {}]   ;;  %s6084_s3 = inlined_call_operand.vmem [shape: f32[2,8,8,8], index: 3, kind: output, shape index: {}]  }
   0x1 LB: > { %s5244_s13 = sadd.s32 4294967295, %s5212_s12   ;;  %p4264_p0 = scmp.ge.s32.totalorder %s5212_s12, 1  ;;  %s5212_s12 = sphi %s5238_s12, %s13_s12  }
   0x2   : > { %p139_p1 = scmp.lt.s32.totalorder %s5212_s12, 3 }
   0x4   : > { %p140_p2 = pnand %p4264_p0, %p139_p1 }
   0x5   : > { %s164_s14 = smul.u32 (!%p140_p2), 9, %s5244_s13  ;;  %s5217_s25 = smov (!%p140_p2), 125  }
   0x6   : > { %143 = sbr.rel (%p140_p2) target bundleno = 651 (0x28b), region = 32  ;;  %p171_p4 = scmp.lt.s32.totalorder (!%p140_p2), %s5244_s13, 1 }
   0x7   : > { %p165_p3 = scmp.lt.s32.totalorder (!%p140_p2), %s164_s14, 17 }
   0xb   : > { %v179_v0 = vld [vmem:[%s6082_s1] sm:$0x3]  ;;  %vm191_vm0 = vcmask 1040384   ;;  %v5214_v1 = vmov 0.0   ;;  %vm192_vm1 = vcmask 1041408   ;;  %v5215_v3 = vmov 65535  }
   0xc   : > { %4684 = vmatprep.subr.bf16.mxu1 %v5214_v1  ;;  %4678 = vmatprep.subr.bf16.mxu0 %v5214_v1  ;;  %v4269_v2 = vld [vmem:[%s6082_s1 + $0x2] sm:$0x3]  ;;  %v193_v4 = vsel %vm191_vm0, 4294967295, %v5215_v3  ;;  %vm5216_vm2 = vmmov 0   ;;  %v4277_v6 = vld [vmem:[%s6082_s1 + $0x6] sm:$0x3] }
   0xd   : > { %4686 = vmatprep.mubr.msk.bf16.mxu1 %vm5216_vm2, %v5214_v1  ;;  %4680 = vmatprep.mubr.msk.bf16.mxu0 %vm5216_vm2, %v5214_v1  ;;  %v5261_v5 = vsel %vm192_vm1, %v193_v4, 0  ;;  %s6086_s14 = smov (!%p165_p3, %s164_s14), 17  ;;  %vm187_vm3 = vcmask 23552   ;;  %v4284_v19 = vld [vmem:[%s6082_s1 + $0xa] sm:$0x3]  ;;  %s6088_s13 = smov (!%p171_p4, %s5244_s13), 1 }
   0xe   : > { %v242_v7 = vand.u32 %v5261_v5, %v179_v0  ;;  %v196_v8 = vand.u32 %v4269_v2, %v5261_v5  ;;  %s4532_s21 = sshll.u32 %s6086_s14, 4  ;;  %v355_v9 = vand.u32 %v4277_v6, %v5261_v5  ;;  %v472_v22 = vand.u32 %v4284_v19, %v5261_v5  ;;  %v4290_v30 = vld [vmem:[%s6082_s1 + $0xe] sm:$0x3]  ;;  %v4273_v62 = vld [vmem:[%s6082_s1 + $0x4] sm:$0x3]  ;;  %s4533_s19 = sshll.u32 %s6088_s13, 6 }
   0xf   : > { %s5272_s24 = scalar_lea.vmem %s6081_s0, %s4532_s21  ;;  %v577_v36 = vand.u32 %v4290_v30, %v5261_v5  ;;  %v4300_v63 = vld [vmem:[%s6082_s1 + $0x2] sm:$0x3]  ;;  %v304_v2 = vand.u32 %v4273_v62, %v5261_v5  ;;  %s6035_s22 = scalar_lea.vmem %s6084_s3, %s4533_s19  ;;  %vm696_vm4 = vcmask 64512  }
  0x10   : > { %4685 = vmatpush3.bf16.msra.mxu1 %v242_v7  ;;  %4679 = vmatpush3.bf16.msra.mxu0 %v196_v8  ;;  %v178_v10 = vld [vmem:[%s5272_s24] sm:$0xf]  ;;  %v4276_v11 = vld [vmem:[%s5272_s24 + $0x8] sm:$0xf]  ;;  %v5279_v12 = vld [vmem:[%s5272_s24 + $0x10] sm:$0xf]  ;;  %v710_v3 = vand.u32 %v4300_v63, %v5261_v5 }
  0x11   : > { %4690 = vmatprep.subr.bf16.mxu0 %v5214_v1  ;;  %4696 = vmatprep.subr.bf16.mxu1 %v5214_v1  ;;  %v4270_v13 = vcombine.low %v178_v10, %v178_v10  ;;  %v4291_v14 = vcombine.low %v5279_v12, %v5279_v12  ;;  %v5284_v15 = vld [vmem:[%s5272_s24 + $0x10] sm:$0xf]  ;;  %v4280_v16 = vcombine.low %v4276_v11, %v4276_v11  ;;  %v5294_v18 = vld [vmem:[%s5272_s24 + $0x18] sm:$0xf]  ;;  %v5300_v20 = vld [vmem:[%s5272_s24 + $0x20] sm:$0xf] }
  0x12   : > { %v4301_v17 = vcombine.low %v5284_v15, %v5284_v15  ;;  %v5134_v21 = vld [vmem:[%s5272_s24 + $0x8] sm:$0x1f]   ;;  %v4313_v23 = vcombine.low %v5294_v18, %v5294_v18  ;;  %v4324_v24 = vcombine.low %v5300_v20, %v5300_v20  ;;  %v5312_v25 = vld [vmem:[%s5272_s24 + $0x20] sm:$0xf]  ;;  %v5322_v31 = vld [vmem:[%s5272_s24 + $0x30] sm:$0xf] }
  0x13   : > { %4687 = vmatmul.mubr.msk.bf16.vlgmr.msra.gmra.mxu1 %vm187_vm3, %v178_v10  ;;  %185 = vrot.lane.b32.xlu0 %v4270_v13, %s5217_s25  ;;  %v464_v26 = vshll.u32 %v5134_v21, 16  ;;  %v5315_v27 = vld [vmem:[%s5272_s24 + $0x28] sm:$0xf]  ;;  %v462_v28 = vshrl.u32 %v5134_v21, 16  ;;  %v4334_v32 = vcombine.low %v5312_v25, %v5312_v25  ;;  %v5333_v34 = vld [vmem:[%s5272_s24 + $0x30] sm:$0xf]  ;;  %v4357_v37 = vcombine.low %v5322_v31, %v5322_v31 }
  0x14   : > { %4697 = vmatpush3.bf16.msra.mxu1 %v355_v9  ;;  %4698 = vmatprep.mubr.msk.bf16.mxu1 %vm5216_vm2, %v5214_v1  ;;  %v4346_v33 = vcombine.low %v5315_v27, %v5315_v27  ;;  %v4367_v38 = vcombine.low %v5333_v34, %v5333_v34  ;;  %v5344_v39 = vld [vmem:[%s5272_s24 + $0x38] sm:$0xf]  ;;  %v5347_v40 = vld [vmem:[%s5272_s24 + $0x40] sm:$0xf]  ;;  %v5368_v45 = vld [vmem:[%s5272_s24 + $0x48] sm:$0xf] }
  0x15   : > { %571 = vrot.lane.b32.xlu1 %v4291_v14, %s5217_s25  ;;  %4708 = vmatprep.subr.bf16.mxu1 %v5214_v1  ;;  %v466_v29 = vrot.slane %v464_v26, 1  ;;  %v4379_v41 = vcombine.low %v5344_v39, %v5344_v39  ;;  %v4390_v42 = vcombine.low %v5347_v40, %v5347_v40  ;;  %v5360_v43 = vld [vmem:[%s5272_s24 + $0x40] sm:$0xf]  ;;  %v4412_v46 = vcombine.low %v5368_v45, %v5368_v45  ;;  %v5374_v47 = vld [vmem:[%s5272_s24 + $0x50] sm:$0xf] }
  0x16   : > { %v4400_v44 = vcombine.low %v5360_v43, %v5360_v43  ;;  %v4423_v48 = vcombine.low %v5374_v47, %v5374_v47  ;;  %v5380_v49 = vld [vmem:[%s5272_s24 + $0x50] sm:$0xf]  ;;  %v5386_v51 = vld [vmem:[%s5272_s24 + $0x58] sm:$0xf]  ;;  %v5392_v53 = vld [vmem:[%s5272_s24 + $0x60] sm:$0xf] }
  0x17   : > { %403 = vrot.lane.b32.xlu0 %v4280_v16, %s5217_s25  ;;  %v467_v35 = vor.u32 %v466_v29, %v462_v28  ;;  %v4433_v50 = vcombine.low %v5380_v49, %v5380_v49  ;;  %v4445_v52 = vcombine.low %v5386_v51, %v5386_v51  ;;  %v4456_v54 = vcombine.low %v5392_v53, %v5392_v53  ;;  %v5398_v55 = vld [vmem:[%s5272_s24 + $0x60] sm:$0xf]  ;;  %v5404_v57 = vld [vmem:[%s5272_s24 + $0x68] sm:$0xf]  ;;  %v4485_v59 = vld [vmem:[%s5272_s24 + $0x70] sm:$0xf] }
  0x18   : > { %v4466_v56 = vcombine.low %v5398_v55, %v5398_v55  ;;  %v4478_v58 = vcombine.low %v5404_v57, %v5404_v57  ;;  %v4489_v60 = vcombine.low %v4485_v59, %v4485_v59  ;;  %v5133_v61 = vld [vmem:[%s5272_s24] sm:$0x1f]   ;;  %v4497_v4 = vld [vmem:[%s5272_s24 + $0x70] sm:$0xf]  ;;  %v4279_v13 = vld [vmem:[%s6082_s1 + $0x8] sm:$0x3] }
  0x19   : > { %704 = vrot.lane.b32.xlu1 %v4301_v17, %s5217_s25  ;;  %v296_v0 = vshll.u32 %v5133_v61, 16  ;;  %v294_v8 = vshrl.u32 %v5133_v61, 16  ;;  %v5138_v10 = vld [vmem:[%s5272_s24 + $0x10] sm:$0x1f]   ;;  %v4306_v14 = vld [vmem:[%s6082_s1 + $0x4] sm:$0x3]  ;;  %v409_v19 = vand.u32 %v4279_v13, %v5261_v5 }
  0x1a   : > { %v809_v17 = vshll.u32 %v5138_v10, 16  ;;  %v4288_v26 = vld [vmem:[%s6082_s1 + $0xc] sm:$0x3]  ;;  %v4312_v28 = vld [vmem:[%s6082_s1 + $0x8] sm:$0x3] }
  0x1b   : > { %4699 = vmatmul.mubr.msk.bf16.vlgmr.msra.gmra.mxu1 %vm187_vm3, %v4276_v11  ;;  %914 = vrot.lane.b32.xlu0 %v4313_v23, %s5217_s25  ;;  %v298_v9 = vrot.slane %v296_v0, 1  ;;  %v4499_v11 = vcombine.low %v4497_v4, %v4497_v4  ;;  %v807_v23 = vshrl.u32 %v5138_v10, 16  ;;  %v4518_v0 = vld [vmem:[%s5272_s24 + $0x80] sm:$0xf] }
  0x1c   : > { %4709 = vmatpush3.bf16.msra.mxu1 %v472_v22  ;;  %4710 = vmatprep.mubr.msk.bf16.mxu1 %vm5216_vm2, %v5214_v1  ;;  %v817_v22 = vand.u32 %v4306_v14, %v5261_v5 }
  0x1d   : > { %1079 = vrot.lane.b32.xlu1 %v4324_v24, %s5217_s25  ;;  %4720 = vmatprep.subr.bf16.mxu1 %v5214_v1  ;;  %v299_v16 = vor.u32 %v298_v9, %v294_v8  ;;  %v811_v24 = vrot.slane %v809_v17, 1  ;;  %v5141_v8 = vld [vmem:[%s5272_s24 + $0x18] sm:$0x1f]   ;;  %v4317_v9 = vld [vmem:[%s6082_s1 + $0xa] sm:$0x3] }
  0x1e   : > { %v974_v10 = vshll.u32 %v5141_v8, 16  ;;  %v972_v14 = vshrl.u32 %v5141_v8, 16  ;;  %v5146_v17 = vld [vmem:[%s5272_s24 + $0x28] sm:$0x1f]  }
  0x1f   : > { %1205 = vrot.lane.b32.xlu0 %v4334_v32, %s5217_s25  ;;  %v812_v29 = vor.u32 %v811_v24, %v807_v23  ;;  %v523_v32 = vand.u32 %v4288_v26, %v5261_v5  ;;  %v1473_v24 = vshrl.u32 %v5146_v17, 16 }
  0x21   : > { %1415 = vrot.lane.b32.xlu1 %v4346_v33, %s5217_s25  ;;  %v920_v33 = vand.u32 %v4312_v28, %v5261_v5  ;;  %v4333_v28 = vld [vmem:[%s6082_s1 + $0x2] sm:$0x3] }
  0x23   : > { %4711 = vmatmul.mubr.msk.bf16.vlgmr.msra.gmra.mxu1 %vm187_vm3, %v467_v35  ;;  %1580 = vrot.lane.b32.xlu0 %v4357_v37, %s5217_s25  ;;  %v4507_v35 = vld [vmem:[%s5272_s24 + $0x78] sm:$0xf] }
  0x24   : > { %4721 = vmatpush3.bf16.msra.mxu1 %v577_v36  ;;  %4722 = vmatprep.mubr.msk.bf16.mxu1 %vm5216_vm2, %v5214_v1  ;;  %v5137_v36 = vld [vmem:[%s5272_s24 + $0x10] sm:$0x1f]   ;;  %v4511_v37 = vcombine.low %v4507_v35, %v4507_v35  ;;  %v5145_v35 = vld [vmem:[%s5272_s24 + $0x20] sm:$0x1f]  }
  0x25   : > { %1706 = vrot.lane.b32.xlu1 %v4367_v38, %s5217_s25  ;;  %4732 = vmatprep.subr.bf16.mxu1 %v5214_v1  ;;  %v4295_v38 = vld [vmem:[%s6082_s1 + $0x10] sm:$0x3] }
  0x27   : > { %1916 = vrot.lane.b32.xlu0 %v4379_v41, %s5217_s25  ;;  %v4321_v41 = vld [vmem:[%s6082_s1 + $0xc] sm:$0x3] }
  0x29   : > { %2081 = vrot.lane.b32.xlu1 %v4390_v42, %s5217_s25  ;;  %v632_v42 = vshll.u32 %v5137_v36, 16 }
  0x2b   : > { %2207 = vrot.lane.b32.xlu0 %v4400_v44, %s5217_s25  ;;  %v640_v44 = vand.u32 %v4295_v38, %v5261_v5  ;;  %v4366_v38 = vld [vmem:[%s6082_s1 + $0x2] sm:$0x3] }
  0x2d   : > { %2417 = vrot.lane.b32.xlu1 %v4412_v46, %s5217_s25 }
  0x2f   : > { %2582 = vrot.lane.b32.xlu0 %v4423_v48, %s5217_s25  ;;  %v1032_v48 = vand.u32 %v4321_v41, %v5261_v5  ;;  %v1310_v41 = vshll.u32 %v5145_v35, 16 }
  0x31   : > { %2708 = vrot.lane.b32.xlu1 %v4433_v50, %s5217_s25  ;;  %v630_v50 = vshrl.u32 %v5137_v36, 16 }
  0x33   : > { %2918 = vrot.lane.b32.xlu0 %v4445_v52, %s5217_s25  ;;  %v634_v52 = vrot.slane %v632_v42, 1 }
  0x35   : > { %3083 = vrot.lane.b32.xlu1 %v4456_v54, %s5217_s25  ;;  %v5143_v54 = vld [vmem:[%s5272_s24 + $0x20] sm:$0x1f]  }
  0x36   : > { %v1139_v59 = vshll.u32 %v5143_v54, 16  ;;  %v1137_v62 = vshrl.u32 %v5143_v54, 16 }
  0x37   : > { %3209 = vrot.lane.b32.xlu0 %v4466_v56, %s5217_s25  ;;  %v699_v56 = vld [vmem:[%s6082_s1] sm:$0x3] }
  0x38   : > { %v1141_v63 = vrot.slane %v1139_v59, 1 }
  0x39   : > { %3419 = vrot.lane.b32.xlu1 %v4478_v58, %s5217_s25  ;;  %v635_v58 = vor.u32 %v634_v52, %v630_v50  ;;  %v1312_v50 = vrot.slane %v1310_v41, 1  ;;  %v5150_v52 = vld [vmem:[%s5272_s24 + $0x30] sm:$0x1f]  }
  0x3a   : > { %v1142_v4 = vor.u32 %v1141_v63, %v1137_v62 }
  0x3b   : > { %3584 = vrot.lane.b32.xlu0 %v4489_v60, %s5217_s25  ;;  %v756_v60 = vand.u32 %v699_v56, %v5261_v5  ;;  %v4345_v56 = vld [vmem:[%s6082_s1 + $0x8] sm:$0x3] }
  0x3d   : > { %3710 = vrot.lane.b32.xlu1 %v4499_v11, %s5217_s25  ;;  %v982_v11 = vand.u32 %v4317_v9, %v5261_v5 }
  0x3f   : > { %3920 = vrot.lane.b32.xlu0 %v4511_v37, %s5217_s25  ;;  %v4339_v37 = vld [vmem:[%s6082_s1 + $0x4] sm:$0x3] }
  0x40   : > { %v1318_v42 = vand.u32 %v4339_v37, %v5261_v5 }
  0x85   : > { %v186_v6 = vpop.permute.xlu0 %185 }
  0x86   : > { %4681 = vmatmul.mubr.msk.bf16.vlgmr.msra.gmra.mxu0 %vm187_vm3, %v186_v6 }
  0x87   : > { %v572_v7 = vpop.permute.xlu1 %571  ;;  %4691 = vmatpush3.bf16.msra.mxu0 %v304_v2  ;;  %4692 = vmatprep.mubr.msk.bf16.mxu0 %vm5216_vm2, %v5214_v1  ;;  %v4310_v2 = vld [vmem:[%s6082_s1 + $0x6] sm:$0x3] }
  0x88   : > { %4723 = vmatmul.mubr.msk.bf16.vlgmr.msra.gmra.mxu1 %vm187_vm3, %v572_v7  ;;  %4702 = vmatprep.subr.bf16.mxu0 %v5214_v1  ;;  %v867_v6 = vand.u32 %v4310_v2, %v5261_v5 }
  0x89   : > { %4733 = vmatpush3.bf16.msra.mxu1 %v710_v3  ;;  %4734 = vmatprep.mubr.msk.bf16.mxu1 %vm5216_vm2, %v5214_v1  ;;  %v404_v30 = vpop.permute.xlu0 %403  ;;  %v4522_v3 = vcombine.low %v4518_v0, %v4518_v0 }
  0x8a   : > { %4744 = vmatprep.subr.bf16.mxu1 %v5214_v1 }
  0x8b   : > { %v705_v21 = vpop.permute.xlu1 %704  ;;  %4085 = vrot.lane.b32.xlu1 %v4522_v3, %s5217_s25  ;;  %v1809_v3 = vshrl.u32 %v5150_v52, 16 }
  0x8d   : > { %v915_v46 = vpop.permute.xlu0 %914 }
  0x8e   : > { %4693 = vmatmul.mubr.msk.bf16.vlgmr.msra.gmra.mxu0 %vm187_vm3, %v299_v16  ;;  %v976_v16 = vrot.slane %v974_v10, 1 }
  0x8f   : > { %4703 = vmatpush3.bf16.msra.mxu0 %v409_v19  ;;  %4704 = vmatprep.mubr.msk.bf16.mxu0 %vm5216_vm2, %v5214_v1  ;;  %v4323_v19 = vld [vmem:[%s6082_s1 + $0xe] sm:$0x3] }
  0x90   : > { %4735 = vmatmul.mubr.msk.bf16.vlgmr.msra.gmra.mxu1 %vm187_vm3, %v705_v21  ;;  %4714 = vmatprep.subr.bf16.mxu0 %v5214_v1  ;;  %v1475_v21 = vshll.u32 %v5146_v17, 16  ;;  %v4361_v17 = vld [vmem:[%s6082_s1 + $0x10] sm:$0x3] }
  0x91   : > { %4745 = vmatpush3.bf16.msra.mxu1 %v817_v22  ;;  %4746 = vmatprep.mubr.msk.bf16.mxu1 %vm5216_vm2, %v5214_v1  ;;  %v1085_v22 = vand.u32 %v4323_v19, %v5261_v5  ;;  %v1206_v36 = vpop.permute.xlu0 %1205  ;;  %v4387_v19 = vld [vmem:[%s6082_s1 + $0xc] sm:$0x3] }
  0x92   : > { %4756 = vmatprep.subr.bf16.mxu1 %v5214_v1  ;;  %v1477_v26 = vrot.slane %v1475_v21, 1  ;;  %v1648_v21 = vand.u32 %v4361_v17, %v5261_v5 }
  0x96   : > { %4705 = vmatmul.mubr.msk.bf16.vlgmr.msra.gmra.mxu0 %vm187_vm3, %v404_v30  ;;  %v1080_v30 = vpop.permute.xlu1 %1079 }
  0x97   : > { %4715 = vmatpush3.bf16.msra.mxu0 %v523_v32  ;;  %4716 = vmatprep.mubr.msk.bf16.mxu0 %vm5216_vm2, %v5214_v1  ;;  %v1211_v32 = vand.u32 %v4333_v28, %v5261_v5 }
  0x98   : > { %4747 = vmatmul.mubr.msk.bf16.vlgmr.msra.gmra.mxu1 %vm187_vm3, %v812_v29  ;;  %4726 = vmatprep.subr.bf16.mxu0 %v5214_v1  ;;  %v1478_v29 = vor.u32 %v1477_v26, %v1473_v24  ;;  %v2034_v24 = vand.u32 %v4387_v19, %v5261_v5 }
  0x99   : > { %4757 = vmatpush3.bf16.msra.mxu1 %v920_v33  ;;  %4758 = vmatprep.mubr.msk.bf16.mxu1 %vm5216_vm2, %v5214_v1 }
  0x9a   : > { %4768 = vmatprep.subr.bf16.mxu1 %v5214_v1  ;;  %v1416_v54 = vpop.permute.xlu1 %1415 }
  0x9e   : > { %4717 = vmatmul.mubr.msk.bf16.vlgmr.msra.gmra.mxu0 %vm187_vm3, %v5279_v12  ;;  %v4328_v12 = vld [vmem:[%s6082_s1 + $0x10] sm:$0x3]  ;;  %v1707_v62 = vpop.permute.xlu1 %1706 }
  0x9f   : > { %4727 = vmatpush3.bf16.msra.mxu0 %v640_v44  ;;  %4728 = vmatprep.mubr.msk.bf16.mxu0 %vm5216_vm2, %v5214_v1  ;;  %v1147_v61 = vand.u32 %v4328_v12, %v5261_v5  ;;  %v1581_v44 = vpop.permute.xlu0 %1580  ;;  %v4372_v12 = vld [vmem:[%s6082_s1 + $0x4] sm:$0x3] }
  0xa0   : > { %4759 = vmatmul.mubr.msk.bf16.vlgmr.msra.gmra.mxu1 %vm187_vm3, %v915_v46  ;;  %4738 = vmatprep.subr.bf16.mxu0 %v5214_v1  ;;  %v1712_v46 = vand.u32 %v4366_v38, %v5261_v5  ;;  %v1819_v0 = vand.u32 %v4372_v12, %v5261_v5 }
  0xa1   : > { %4769 = vmatpush3.bf16.msra.mxu1 %v1032_v48  ;;  %4770 = vmatprep.mubr.msk.bf16.mxu1 %vm5216_vm2, %v5214_v1  ;;  %v1308_v48 = vshrl.u32 %v5145_v35, 16 }
  0xa2   : > { %4780 = vmatprep.subr.bf16.mxu1 %v5214_v1 }
  0xa3   : > { %v1313_v59 = vor.u32 %v1312_v50, %v1308_v48  ;;  %v5153_v50 = vld [vmem:[%s5272_s24 + $0x38] sm:$0x1f]  }
  0xa6   : > { %4729 = vmatmul.mubr.msk.bf16.vlgmr.msra.gmra.mxu0 %vm187_vm3, %v635_v58 }
  0xa7   : > { %4739 = vmatpush3.bf16.msra.mxu0 %v756_v60  ;;  %4740 = vmatprep.mubr.msk.bf16.mxu0 %vm5216_vm2, %v5214_v1  ;;  %v1811_v60 = vshll.u32 %v5150_v52, 16  ;;  %v4383_v52 = vld [vmem:[%s6082_s1 + $0xa] sm:$0x3] }
  0xa8   : > { %4771 = vmatmul.mubr.msk.bf16.vlgmr.msra.gmra.mxu1 %vm187_vm3, %v5300_v20  ;;  %4750 = vmatprep.subr.bf16.mxu0 %v5214_v1  ;;  %v1200_v20 = vld [vmem:[%s6082_s1] sm:$0x3] }
  0xa9   : > { %4781 = vmatpush3.bf16.msra.mxu1 %v1147_v61  ;;  %4782 = vmatprep.mubr.msk.bf16.mxu1 %vm5216_vm2, %v5214_v1  ;;  %v1257_v7 = vand.u32 %v1200_v20, %v5261_v5  ;;  %v1421_v61 = vand.u32 %v4345_v56, %v5261_v5  ;;  %v1813_v20 = vrot.slane %v1811_v60, 1  ;;  %v1984_v56 = vand.u32 %v4383_v52, %v5261_v5 }
  0xaa   : > { %4792 = vmatprep.subr.bf16.mxu1 %v5214_v1 }
  0xab   : > { %v1814_v9 = vor.u32 %v1813_v20, %v1809_v3 }
  0xae   : > { %4741 = vmatmul.mubr.msk.bf16.vlgmr.msra.gmra.mxu0 %vm187_vm3, %v5284_v15  ;;  %v4343_v15 = vld [vmem:[%s6082_s1 + $0x6] sm:$0x3] }
  0xaf   : > { %4751 = vmatpush3.bf16.msra.mxu0 %v867_v6  ;;  %4752 = vmatprep.mubr.msk.bf16.mxu0 %vm5216_vm2, %v5214_v1  ;;  %v1368_v13 = vand.u32 %v4343_v15, %v5261_v5  ;;  %v4354_v6 = vld [vmem:[%s6082_s1 + $0xc] sm:$0x3] }
  0xb0   : > { %4783 = vmatmul.mubr.msk.bf16.vlgmr.msra.gmra.mxu1 %vm187_vm3, %v1142_v4  ;;  %4762 = vmatprep.subr.bf16.mxu0 %v5214_v1  ;;  %v1533_v15 = vand.u32 %v4354_v6, %v5261_v5 }
  0xb1   : > { %4793 = vmatpush3.bf16.msra.mxu1 %v1257_v7  ;;  %4794 = vmatprep.mubr.msk.bf16.mxu1 %vm5216_vm2, %v5214_v1  ;;  %v4378_v7 = vld [vmem:[%s6082_s1 + $0x8] sm:$0x3] }
  0xb2   : > { %4804 = vmatprep.subr.bf16.mxu1 %v5214_v1 }
  0xb6   : > { %4753 = vmatmul.mubr.msk.bf16.vlgmr.msra.gmra.mxu0 %vm187_vm3, %v5294_v18  ;;  %v4350_v18 = vld [vmem:[%s6082_s1 + $0xa] sm:$0x3] }
  0xb7   : > { %4763 = vmatpush3.bf16.msra.mxu0 %v982_v11  ;;  %4764 = vmatprep.mubr.msk.bf16.mxu0 %vm5216_vm2, %v5214_v1  ;;  %v1483_v23 = vand.u32 %v4350_v18, %v5261_v5  ;;  %v1922_v11 = vand.u32 %v4378_v7, %v5261_v5  ;;  %v2082_v7 = vpop.permute.xlu1 %2081 }
  0xb8   : > { %4795 = vmatmul.mubr.msk.bf16.vlgmr.msra.gmra.mxu1 %vm187_vm3, %v5312_v25  ;;  %4774 = vmatprep.subr.bf16.mxu0 %v5214_v1  ;;  %v977_v25 = vor.u32 %v976_v16, %v972_v14  ;;  %v5149_v14 = vld [vmem:[%s5272_s24 + $0x30] sm:$0x1f]  }
  0xb9   : > { %4805 = vmatpush3.bf16.msra.mxu1 %v1368_v13  ;;  %4806 = vmatprep.mubr.msk.bf16.mxu1 %vm5216_vm2, %v5214_v1  ;;  %v1638_v28 = vshrl.u32 %v5149_v14, 16 }
  0xba   : > { %4816 = vmatprep.subr.bf16.mxu1 %v5214_v1 }
  0xbe   : > { %4765 = vmatmul.mubr.msk.bf16.vlgmr.msra.gmra.mxu0 %vm187_vm3, %v977_v25  ;;  %v1640_v25 = vshll.u32 %v5149_v14, 16  ;;  %v4432_v14 = vld [vmem:[%s6082_s1 + $0x2] sm:$0x3] }
  0xbf   : > { %4775 = vmatpush3.bf16.msra.mxu0 %v1085_v22  ;;  %4776 = vmatprep.mubr.msk.bf16.mxu0 %vm5216_vm2, %v5214_v1  ;;  %v1917_v22 = vpop.permute.xlu0 %1916 }
  0xc0   : > { %4807 = vmatmul.mubr.msk.bf16.vlgmr.msra.gmra.mxu1 %vm187_vm3, %v5315_v27  ;;  %4786 = vmatprep.subr.bf16.mxu0 %v5214_v1  ;;  %v4356_v27 = vld [vmem:[%s6082_s1 + $0xe] sm:$0x3] }
  0xc1   : > { %4817 = vmatpush3.bf16.msra.mxu1 %v1483_v23  ;;  %4818 = vmatprep.mubr.msk.bf16.mxu1 %vm5216_vm2, %v5214_v1  ;;  %v1586_v33 = vand.u32 %v4356_v27, %v5261_v5  ;;  %v1642_v27 = vrot.slane %v1640_v25, 1  ;;  %v2714_v25 = vand.u32 %v4432_v14, %v5261_v5  ;;  %v5165_v14 = vld [vmem:[%s5272_s24 + $0x68] sm:$0x1f]  }
  0xc2   : > { %4828 = vmatprep.subr.bf16.mxu1 %v5214_v1 }
  0xc6   : > { %4777 = vmatmul.mubr.msk.bf16.vlgmr.msra.gmra.mxu0 %vm187_vm3, %v1080_v30 }
  0xc7   : > { %4787 = vmatpush3.bf16.msra.mxu0 %v1211_v32  ;;  %4788 = vmatprep.mubr.msk.bf16.mxu0 %vm5216_vm2, %v5214_v1  ;;  %v1701_v32 = vld [vmem:[%s6082_s1] sm:$0x3] }
  0xc8   : > { %4819 = vmatmul.mubr.msk.bf16.vlgmr.msra.gmra.mxu1 %vm187_vm3, %v1478_v29  ;;  %4798 = vmatprep.subr.bf16.mxu0 %v5214_v1  ;;  %v5155_v29 = vld [vmem:[%s5272_s24 + $0x40] sm:$0x1f]  }
  0xc9   : > { %4829 = vmatpush3.bf16.msra.mxu1 %v1586_v33  ;;  %4830 = vmatprep.mubr.msk.bf16.mxu1 %vm5216_vm2, %v5214_v1  ;;  %v1643_v33 = vor.u32 %v1642_v27, %v1638_v28  ;;  %v2141_v35 = vshll.u32 %v5155_v29, 16  ;;  %v2139_v38 = vshrl.u32 %v5155_v29, 16  ;;  %v4438_v28 = vld [vmem:[%s6082_s1 + $0x4] sm:$0x3] }
  0xca   : > { %4840 = vmatprep.subr.bf16.mxu1 %v5214_v1 }
  0xcb   : > { %v2143_v41 = vrot.slane %v2141_v35, 1 }
  0xce   : > { %4789 = vmatmul.mubr.msk.bf16.vlgmr.msra.gmra.mxu0 %vm187_vm3, %v1206_v36  ;;  %v1758_v36 = vand.u32 %v1701_v32, %v5261_v5 }
  0xcf   : > { %4799 = vmatpush3.bf16.msra.mxu0 %v1318_v42  ;;  %4800 = vmatprep.mubr.msk.bf16.mxu0 %vm5216_vm2, %v5214_v1  ;;  %v4376_v42 = vld [vmem:[%s6082_s1 + $0x6] sm:$0x3] }
  0xd0   : > { %4831 = vmatmul.mubr.msk.bf16.vlgmr.msra.gmra.mxu1 %vm187_vm3, %v1581_v44  ;;  %4810 = vmatprep.subr.bf16.mxu0 %v5214_v1  ;;  %v2144_v44 = vor.u32 %v2143_v41, %v2139_v38 }
  0xd1   : > { %4841 = vmatpush3.bf16.msra.mxu1 %v1712_v46  ;;  %4842 = vmatprep.mubr.msk.bf16.mxu1 %vm5216_vm2, %v5214_v1  ;;  %v1869_v46 = vand.u32 %v4376_v42, %v5261_v5 }
  0xd2   : > { %4852 = vmatprep.subr.bf16.mxu1 %v5214_v1 }
  0xd3   : > { %v5597_v58 = vpop.f32.mrf.mxu1 }
  0xd5   : > { %v4688_v63 = vpop.f32.mrf.mxu1 }
  0xd6   : > { %4801 = vmatmul.mubr.msk.bf16.vlgmr.msra.gmra.mxu0 %vm187_vm3, %v1313_v59  ;;  %v1974_v59 = vshrl.u32 %v5153_v50, 16 }
  0xd7   : > { %v281_v2 = vpop.f32.mrf.mxu1  ;;  %4811 = vmatpush3.bf16.msra.mxu0 %v1421_v61  ;;  %4812 = vmatprep.mubr.msk.bf16.mxu0 %vm5216_vm2, %v5214_v1  ;;  %v5158_v61 = vld [vmem:[%s5272_s24 + $0x48] sm:$0x1f]  }
  0xd8   : > { %4843 = vmatmul.mubr.msk.bf16.vlgmr.msra.gmra.mxu1 %vm187_vm3, %v1707_v62  ;;  %4822 = vmatprep.subr.bf16.mxu0 %v5214_v1  ;;  %v4389_v62 = vld [vmem:[%s6082_s1 + $0xe] sm:$0x3]  ;;  %v2477_v63 = vshll.u32 %v5158_v61, 16  ;;  %v2475_v3 = vshrl.u32 %v5158_v61, 16 }
  0xd9   : > { %v4689_v4 = vpop.f32.mrf.mxu1  ;;  %4853 = vmatpush3.bf16.msra.mxu1 %v1819_v0  ;;  %4854 = vmatprep.mubr.msk.bf16.mxu1 %vm5216_vm2, %v5214_v1  ;;  %v2087_v0 = vand.u32 %v4389_v62, %v5261_v5 }
  0xda   : > { %4864 = vmatprep.subr.bf16.mxu1 %v5214_v1  ;;  %v2479_v20 = vrot.slane %v2477_v63, 1  ;;  %v4399_v4 = vld [vmem:[%s6082_s1 + $0x2] sm:$0x3] }
  0xdb   : > { %v5615_v8 = vpop.f32.mrf.mxu1 }
  0xdc   : > { %v2480_v6 = vor.u32 %v2479_v20, %v2475_v3 }
  0xdd   : > { %v4700_v10 = vpop.f32.mrf.mxu1 }
  0xde   : > { %4813 = vmatmul.mubr.msk.bf16.vlgmr.msra.gmra.mxu0 %vm187_vm3, %v1416_v54  ;;  %v1976_v54 = vshll.u32 %v5153_v50, 16  ;;  %v5157_v10 = vld [vmem:[%s5272_s24 + $0x40] sm:$0x1f]  }
  0xdf   : > { %v394_v13 = vpop.f32.mrf.mxu1  ;;  %4823 = vmatpush3.bf16.msra.mxu0 %v1533_v15  ;;  %4824 = vmatprep.mubr.msk.bf16.mxu0 %vm5216_vm2, %v5214_v1 }
  0xe0   : > { %4855 = vmatmul.mubr.msk.bf16.vlgmr.msra.gmra.mxu1 %vm187_vm3, %v1814_v9  ;;  %4834 = vmatprep.subr.bf16.mxu0 %v5214_v1  ;;  %v1978_v60 = vrot.slane %v1976_v54, 1  ;;  %v2213_v9 = vand.u32 %v4399_v4, %v5261_v5  ;;  %v4405_v13 = vld [vmem:[%s6082_s1 + $0x4] sm:$0x3]  ;;  %v5162_v4 = vld [vmem:[%s5272_s24 + $0x58] sm:$0x1f]  }
  0xe1   : > { %v4701_v16 = vpop.f32.mrf.mxu1  ;;  %4865 = vmatpush3.bf16.msra.mxu1 %v1922_v11  ;;  %4866 = vmatprep.mubr.msk.bf16.mxu1 %vm5216_vm2, %v5214_v1  ;;  %v2208_v11 = vpop.permute.xlu0 %2207  ;;  %v2320_v17 = vand.u32 %v4405_v13, %v5261_v5 }
  0xe2   : > { %4876 = vmatprep.subr.bf16.mxu1 %v5214_v1  ;;  %v2312_v16 = vshll.u32 %v5157_v10, 16 }
  0xe3   : > { %v5634_v18 = vpop.f32.mrf.mxu1 }
  0xe5   : > { %v4712_v23 = vpop.f32.mrf.mxu1  ;;  %v2583_v19 = vpop.permute.xlu0 %2582 }
  0xe6   : > { %4825 = vmatmul.mubr.msk.bf16.vlgmr.msra.gmra.mxu0 %vm187_vm3, %v5322_v31  ;;  %v4394_v31 = vld [vmem:[%s6082_s1 + $0x10] sm:$0x3] }
  0xe7   : > { %v511_v26 = vpop.f32.mrf.mxu1  ;;  %4835 = vmatpush3.bf16.msra.mxu0 %v1648_v21  ;;  %4836 = vmatprep.mubr.msk.bf16.mxu0 %vm5216_vm2, %v5214_v1  ;;  %v2149_v37 = vand.u32 %v4394_v31, %v5261_v5  ;;  %v2310_v21 = vshrl.u32 %v5157_v10, 16  ;;  %v5161_v23 = vld [vmem:[%s5272_s24 + $0x50] sm:$0x1f]   ;;  %v2821_v31 = vand.u32 %v4438_v28, %v5261_v5  ;;  %v2976_v10 = vshrl.u32 %v5162_v4, 16 }
  0xe8   : > { %4867 = vmatmul.mubr.msk.bf16.vlgmr.msra.gmra.mxu1 %vm187_vm3, %v1917_v22  ;;  %4846 = vmatprep.subr.bf16.mxu0 %v5214_v1  ;;  %v2314_v22 = vrot.slane %v2312_v16, 1  ;;  %v4411_v26 = vld [vmem:[%s6082_s1 + $0x8] sm:$0x3]  ;;  %v2813_v29 = vshll.u32 %v5161_v23, 16 }
  0xe9   : > { %v4713_v30 = vpop.f32.mrf.mxu1  ;;  %4877 = vmatpush3.bf16.msra.mxu1 %v2034_v24  ;;  %4878 = vmatprep.mubr.msk.bf16.mxu1 %vm5216_vm2, %v5214_v1  ;;  %v2418_v24 = vpop.permute.xlu1 %2417 }
  0xea   : > { %4888 = vmatprep.subr.bf16.mxu1 %v5214_v1  ;;  %v2315_v27 = vor.u32 %v2314_v22, %v2310_v21  ;;  %v2423_v30 = vand.u32 %v4411_v26, %v5261_v5  ;;  %v2815_v35 = vrot.slane %v2813_v29, 1  ;;  %v2919_v52 = vpop.permute.xlu0 %2918  ;;  %v3479_v22 = vshll.u32 %v5165_v14, 16 }
  0xed   : > { %v2709_v32 = vpop.permute.xlu1 %2708 }
  0xee   : > { %4837 = vmatmul.mubr.msk.bf16.vlgmr.msra.gmra.mxu0 %vm187_vm3, %v1643_v33  ;;  %v2811_v33 = vshrl.u32 %v5161_v23, 16 }
  0xef   : > { %4847 = vmatpush3.bf16.msra.mxu0 %v1758_v36  ;;  %4848 = vmatprep.mubr.msk.bf16.mxu0 %vm5216_vm2, %v5214_v1  ;;  %v4420_v36 = vld [vmem:[%s6082_s1 + $0xc] sm:$0x3] }
  0xf0   : > { %4879 = vmatmul.mubr.msk.bf16.vlgmr.msra.gmra.mxu1 %vm187_vm3, %v5347_v40  ;;  %4858 = vmatprep.subr.bf16.mxu0 %v5214_v1  ;;  %v2202_v40 = vld [vmem:[%s6082_s1] sm:$0x3]  ;;  %v2816_v38 = vor.u32 %v2815_v35, %v2811_v33  ;;  %v2535_v41 = vand.u32 %v4420_v36, %v5261_v5  ;;  %v4465_v33 = vld [vmem:[%s6082_s1 + $0x2] sm:$0x3] }
  0xf1   : > { %4889 = vmatpush3.bf16.msra.mxu1 %v2149_v37  ;;  %4890 = vmatprep.mubr.msk.bf16.mxu1 %vm5216_vm2, %v5214_v1  ;;  %v2259_v48 = vand.u32 %v2202_v40, %v5261_v5  ;;  %v4444_v37 = vld [vmem:[%s6082_s1 + $0x8] sm:$0x3]  ;;  %v5160_v40 = vld [vmem:[%s5272_s24 + $0x50] sm:$0x1f]  }
  0xf2   : > { %4900 = vmatprep.subr.bf16.mxu1 %v5214_v1  ;;  %v2924_v42 = vand.u32 %v4444_v37, %v5261_v5  ;;  %v2640_v54 = vshrl.u32 %v5160_v40, 16 }
  0xf6   : > { %4849 = vmatmul.mubr.msk.bf16.vlgmr.msra.gmra.mxu0 %vm187_vm3, %v5333_v34  ;;  %v4409_v34 = vld [vmem:[%s6082_s1 + $0x6] sm:$0x3] }
  0xf7   : > { %4859 = vmatpush3.bf16.msra.mxu0 %v1869_v46  ;;  %4860 = vmatprep.mubr.msk.bf16.mxu0 %vm5216_vm2, %v5214_v1  ;;  %v2370_v12 = vand.u32 %v4409_v34, %v5261_v5  ;;  %v4453_v46 = vld [vmem:[%s6082_s1 + $0xc] sm:$0x3] }
  0xf8   : > { %4891 = vmatmul.mubr.msk.bf16.vlgmr.msra.gmra.mxu1 %vm187_vm3, %v2144_v44  ;;  %4870 = vmatprep.subr.bf16.mxu0 %v5214_v1  ;;  %v4427_v44 = vld [vmem:[%s6082_s1 + $0x10] sm:$0x3]  ;;  %v3036_v34 = vand.u32 %v4453_v46, %v5261_v5 }
  0xf9   : > { %4901 = vmatpush3.bf16.msra.mxu1 %v2259_v48  ;;  %4902 = vmatprep.mubr.msk.bf16.mxu1 %vm5216_vm2, %v5214_v1  ;;  %v2642_v48 = vshll.u32 %v5160_v40, 16  ;;  %v2650_v50 = vand.u32 %v4427_v44, %v5261_v5  ;;  %v3215_v40 = vand.u32 %v4465_v33, %v5261_v5 }
  0xfa   : > { %4912 = vmatprep.subr.bf16.mxu1 %v5214_v1 }
  0xfe   : > { %4861 = vmatmul.mubr.msk.bf16.vlgmr.msra.gmra.mxu0 %vm187_vm3, %v5344_v39  ;;  %v4416_v39 = vld [vmem:[%s6082_s1 + $0xa] sm:$0x3] }
  0xff   : > { %4871 = vmatpush3.bf16.msra.mxu0 %v1984_v56  ;;  %4872 = vmatprep.mubr.msk.bf16.mxu0 %vm5216_vm2, %v5214_v1  ;;  %v2485_v2 = vand.u32 %v4416_v39, %v5261_v5  ;;  %v2644_v56 = vrot.slane %v2642_v48, 1 }
 0x100   : > { %4903 = vmatmul.mubr.msk.bf16.vlgmr.msra.gmra.mxu1 %vm187_vm3, %v5360_v43  ;;  %4882 = vmatprep.subr.bf16.mxu0 %v5214_v1  ;;  %v1979_v43 = vor.u32 %v1978_v60, %v1974_v59  ;;  %v2703_v59 = vld [vmem:[%s6082_s1] sm:$0x3] }
 0x101   : > { %4913 = vmatpush3.bf16.msra.mxu1 %v2370_v12  ;;  %4914 = vmatprep.mubr.msk.bf16.mxu1 %vm5216_vm2, %v5214_v1  ;;  %v5163_v12 = vld [vmem:[%s5272_s24 + $0x60] sm:$0x1f]   ;;  %v2645_v60 = vor.u32 %v2644_v56, %v2640_v54  ;;  %v2760_v62 = vand.u32 %v2703_v59, %v5261_v5 }
 0x102   : > { %4924 = vmatprep.subr.bf16.mxu1 %v5214_v1  ;;  %v3143_v61 = vshll.u32 %v5163_v12, 16 }
 0x104   : > { %v3145_v63 = vrot.slane %v3143_v61, 1 }
 0x106   : > { %4873 = vmatmul.mubr.msk.bf16.vlgmr.msra.gmra.mxu0 %vm187_vm3, %v1979_v43  ;;  %v3141_v43 = vshrl.u32 %v5163_v12, 16  ;;  %v4471_v12 = vld [vmem:[%s6082_s1 + $0x4] sm:$0x3] }
 0x107   : > { %4883 = vmatpush3.bf16.msra.mxu0 %v2087_v0  ;;  %4884 = vmatprep.mubr.msk.bf16.mxu0 %vm5216_vm2, %v5214_v1  ;;  %v4442_v0 = vld [vmem:[%s6082_s1 + $0x6] sm:$0x3] }
 0x108   : > { %4915 = vmatmul.mubr.msk.bf16.vlgmr.msra.gmra.mxu1 %vm187_vm3, %v5368_v45  ;;  %4894 = vmatprep.subr.bf16.mxu0 %v5214_v1  ;;  %v4422_v45 = vld [vmem:[%s6082_s1 + $0xe] sm:$0x3]  ;;  %v2871_v3 = vand.u32 %v4442_v0, %v5261_v5 }
 0x109   : > { %4925 = vmatpush3.bf16.msra.mxu1 %v2485_v2  ;;  %4926 = vmatprep.mubr.msk.bf16.mxu1 %vm5216_vm2, %v5214_v1  ;;  %v2588_v15 = vand.u32 %v4422_v45, %v5261_v5  ;;  %v3146_v2 = vor.u32 %v3145_v63, %v3141_v43  ;;  %v4449_v45 = vld [vmem:[%s6082_s1 + $0xa] sm:$0x3]  ;;  %v3322_v63 = vand.u32 %v4471_v12, %v5261_v5 }
 0x10a   : > { %4936 = vmatprep.subr.bf16.mxu1 %v5214_v1 }
 0x10e   : > { %4885 = vmatmul.mubr.msk.bf16.vlgmr.msra.gmra.mxu0 %vm187_vm3, %v2082_v7  ;;  %v2986_v7 = vand.u32 %v4449_v45, %v5261_v5 }
 0x10f   : > { %4895 = vmatpush3.bf16.msra.mxu0 %v2213_v9  ;;  %4896 = vmatprep.mubr.msk.bf16.mxu0 %vm5216_vm2, %v5214_v1 }
 0x110   : > { %4927 = vmatmul.mubr.msk.bf16.vlgmr.msra.gmra.mxu1 %vm187_vm3, %v2480_v6  ;;  %4906 = vmatprep.subr.bf16.mxu0 %v5214_v1  ;;  %v2978_v6 = vshll.u32 %v5162_v4, 16 }
 0x111   : > { %4937 = vmatpush3.bf16.msra.mxu1 %v2588_v15  ;;  %4938 = vmatprep.mubr.msk.bf16.mxu1 %vm5216_vm2, %v5214_v1 }
 0x112   : > { %4948 = vmatprep.subr.bf16.mxu1 %v5214_v1 }
 0x116   : > { %4897 = vmatmul.mubr.msk.bf16.vlgmr.msra.gmra.mxu0 %vm187_vm3, %v2208_v11  ;;  %v2980_v11 = vrot.slane %v2978_v6, 1 }
 0x117   : > { %4907 = vmatpush3.bf16.msra.mxu0 %v2320_v17  ;;  %4908 = vmatprep.mubr.msk.bf16.mxu0 %vm5216_vm2, %v5214_v1  ;;  %v4455_v17 = vld [vmem:[%s6082_s1 + $0xe] sm:$0x3] }
 0x118   : > { %4939 = vmatmul.mubr.msk.bf16.vlgmr.msra.gmra.mxu1 %vm187_vm3, %v2583_v19  ;;  %4918 = vmatprep.subr.bf16.mxu0 %v5214_v1  ;;  %v3089_v23 = vand.u32 %v4455_v17, %v5261_v5 }
 0x119   : > { %4949 = vmatpush3.bf16.msra.mxu1 %v2714_v25  ;;  %4950 = vmatprep.mubr.msk.bf16.mxu1 %vm5216_vm2, %v5214_v1  ;;  %v2981_v25 = vor.u32 %v2980_v11, %v2976_v10 }
 0x11a   : > { %4960 = vmatprep.subr.bf16.mxu1 %v5214_v1 }
 0x11e   : > { %4909 = vmatmul.mubr.msk.bf16.vlgmr.msra.gmra.mxu0 %vm187_vm3, %v2315_v27 }
 0x11f   : > { %4919 = vmatpush3.bf16.msra.mxu0 %v2423_v30  ;;  %4920 = vmatprep.mubr.msk.bf16.mxu0 %vm5216_vm2, %v5214_v1  ;;  %v3477_v30 = vshrl.u32 %v5165_v14, 16 }
 0x120   : > { %4951 = vmatmul.mubr.msk.bf16.vlgmr.msra.gmra.mxu1 %vm187_vm3, %v2709_v32  ;;  %4930 = vmatprep.subr.bf16.mxu0 %v5214_v1  ;;  %v3481_v32 = vrot.slane %v3479_v22, 1 }
 0x121   : > { %4961 = vmatpush3.bf16.msra.mxu1 %v2821_v31  ;;  %4962 = vmatprep.mubr.msk.bf16.mxu1 %vm5216_vm2, %v5214_v1 }
 0x122   : > { %4972 = vmatprep.subr.bf16.mxu1 %v5214_v1 }
 0x126   : > { %4921 = vmatmul.mubr.msk.bf16.vlgmr.msra.gmra.mxu0 %vm187_vm3, %v2418_v24 }
 0x127   : > { %4931 = vmatpush3.bf16.msra.mxu0 %v2535_v41  ;;  %4932 = vmatprep.mubr.msk.bf16.mxu0 %vm5216_vm2, %v5214_v1 }
 0x128   : > { %4963 = vmatmul.mubr.msk.bf16.vlgmr.msra.gmra.mxu1 %vm187_vm3, %v2816_v38  ;;  %4942 = vmatprep.subr.bf16.mxu0 %v5214_v1  ;;  %v3482_v38 = vor.u32 %v3481_v32, %v3477_v30 }
 0x129   : > { %4973 = vmatpush3.bf16.msra.mxu1 %v2924_v42  ;;  %4974 = vmatprep.mubr.msk.bf16.mxu1 %vm5216_vm2, %v5214_v1  ;;  %v3084_v42 = vpop.permute.xlu1 %3083 }
 0x12a   : > { %4984 = vmatprep.subr.bf16.mxu1 %v5214_v1 }
 0x12e   : > { %4933 = vmatmul.mubr.msk.bf16.vlgmr.msra.gmra.mxu0 %vm187_vm3, %v5374_v47  ;;  %v4460_v47 = vld [vmem:[%s6082_s1 + $0x10] sm:$0x3] }
 0x12f   : > { %4943 = vmatpush3.bf16.msra.mxu0 %v2650_v50  ;;  %4944 = vmatprep.mubr.msk.bf16.mxu0 %vm5216_vm2, %v5214_v1  ;;  %v3151_v39 = vand.u32 %v4460_v47, %v5261_v5 }
 0x130   : > { %4975 = vmatmul.mubr.msk.bf16.vlgmr.msra.gmra.mxu1 %vm187_vm3, %v2919_v52  ;;  %4954 = vmatprep.subr.bf16.mxu0 %v5214_v1 }
 0x131   : > { %4985 = vmatpush3.bf16.msra.mxu1 %v3036_v34  ;;  %4986 = vmatprep.mubr.msk.bf16.mxu1 %vm5216_vm2, %v5214_v1  ;;  %v5164_v34 = vld [vmem:[%s5272_s24 + $0x60] sm:$0x1f]  }
 0x132   : > { %4996 = vmatprep.subr.bf16.mxu1 %v5214_v1 }
 0x136   : > { %4945 = vmatmul.mubr.msk.bf16.vlgmr.msra.gmra.mxu0 %vm187_vm3, %v2645_v60  ;;  %v4498_v60 = vld [vmem:[%s6082_s1 + $0x2] sm:$0x3] }
 0x137   : > { %4955 = vmatpush3.bf16.msra.mxu0 %v2760_v62  ;;  %4956 = vmatprep.mubr.msk.bf16.mxu0 %vm5216_vm2, %v5214_v1  ;;  %v3314_v62 = vshll.u32 %v5164_v34, 16 }
 0x138   : > { %4987 = vmatmul.mubr.msk.bf16.vlgmr.msra.gmra.mxu1 %vm187_vm3, %v5392_v53  ;;  %4966 = vmatprep.subr.bf16.mxu0 %v5214_v1  ;;  %v3204_v53 = vld [vmem:[%s6082_s1] sm:$0x3] }
 0x139   : > { %4997 = vmatpush3.bf16.msra.mxu1 %v3151_v39  ;;  %4998 = vmatprep.mubr.msk.bf16.mxu1 %vm5216_vm2, %v5214_v1  ;;  %v3261_v20 = vand.u32 %v3204_v53, %v5261_v5  ;;  %v3316_v4 = vrot.slane %v3314_v62, 1 }
 0x13a   : > { %5008 = vmatprep.subr.bf16.mxu1 %v5214_v1 }
 0x13e   : > { %4957 = vmatmul.mubr.msk.bf16.vlgmr.msra.gmra.mxu0 %vm187_vm3, %v5380_v49  ;;  %v4475_v49 = vld [vmem:[%s6082_s1 + $0x6] sm:$0x3] }
 0x13f   : > { %4967 = vmatpush3.bf16.msra.mxu0 %v2871_v3  ;;  %4968 = vmatprep.mubr.msk.bf16.mxu0 %vm5216_vm2, %v5214_v1  ;;  %v3372_v9 = vand.u32 %v4475_v49, %v5261_v5  ;;  %v5167_v49 = vld [vmem:[%s5272_s24 + $0x70] sm:$0x1f]  }
 0x140   : > { %4999 = vmatmul.mubr.msk.bf16.vlgmr.msra.gmra.mxu1 %vm187_vm3, %v3146_v2  ;;  %4978 = vmatprep.subr.bf16.mxu0 %v5214_v1 }
 0x141   : > { %5009 = vmatpush3.bf16.msra.mxu1 %v3261_v20  ;;  %5010 = vmatprep.mubr.msk.bf16.mxu1 %vm5216_vm2, %v5214_v1  ;;  %v3312_v20 = vshrl.u32 %v5164_v34, 16 }
 0x142   : > { %5020 = vmatprep.subr.bf16.mxu1 %v5214_v1 }
 0x146   : > { %v232_v15 = vpop.f32.mrf.mxu0  ;;  %4969 = vmatmul.mubr.msk.bf16.vlgmr.msra.gmra.mxu0 %vm187_vm3, %v5386_v51 }
 0x147   : > { %4979 = vmatpush3.bf16.msra.mxu0 %v2986_v7  ;;  %4980 = vmatprep.mubr.msk.bf16.mxu0 %vm5216_vm2, %v5214_v1  ;;  %v279_v41 = vadd.f32 %v5597_v58, %v232_v15  ;;  %v3210_v58 = vpop.permute.xlu0 %3209  ;;  %v3420_v7 = vpop.permute.xlu1 %3419  ;;  %v4477_v15 = vld [vmem:[%s6082_s1 + $0x8] sm:$0x3] }
 0x148   : > { %v5849_v13 = vpop.f32.mrf.mxu1  ;;  %5011 = vmatmul.mubr.msk.bf16.vlgmr.msra.gmra.mxu1 %vm187_vm3, %v5398_v55  ;;  %v4682_v16 = vpop.f32.mrf.mxu0  ;;  %4990 = vmatprep.subr.bf16.mxu0 %v5214_v1  ;;  %v4482_v55 = vld [vmem:[%s6082_s1 + $0xa] sm:$0x3] }
 0x149   : > { %5021 = vmatpush3.bf16.msra.mxu1 %v3372_v9  ;;  %5022 = vmatprep.mubr.msk.bf16.mxu1 %vm5216_vm2, %v5214_v1  ;;  %v3487_v28 = vand.u32 %v4482_v55, %v5261_v5  ;;  %v3317_v16 = vor.u32 %v3316_v4, %v3312_v20  ;;  %v3425_v55 = vand.u32 %v4477_v15, %v5261_v5  ;;  %v4526_v15 = vld [vmem:[%s6082_s1 + $0x10] sm:$0x3] }
 0x14a   : > { %v4724_v51 = vpop.f32.mrf.mxu1  ;;  %5032 = vmatprep.subr.bf16.mxu1 %v5214_v1  ;;  %v235_v19 = vpop.f32.mrf.mxu0 }
 0x14b   : > { %v3585_v0 = vpop.permute.xlu0 %3584  ;;  %v3815_v51 = vshll.u32 %v5167_v49, 16  ;;  %v3711_v19 = vpop.permute.xlu1 %3710 }
 0x14c   : > { %v616_v21 = vpop.f32.mrf.mxu1  ;;  %v4683_v24 = vpop.f32.mrf.mxu0 }
 0x14d   : > { %v5932_v24 = vld [vmem:[%s6083_s2] ss:$0 sm:$0xff]  ;;  %v3817_v30 = vrot.slane %v3815_v51, 1 }
 0x14e   : > { %v4725_v26 = vpop.f32.mrf.mxu1  ;;  %v340_v27 = vpop.f32.mrf.mxu0  ;;  %4981 = vmatmul.mubr.msk.bf16.vlgmr.msra.gmra.mxu0 %vm187_vm3, %v2981_v25 }
 0x14f   : > { %4991 = vmatpush3.bf16.msra.mxu0 %v3089_v23  ;;  %4992 = vmatprep.mubr.msk.bf16.mxu0 %vm5216_vm2, %v5214_v1  ;;  %v346_v50 = vadd.f32 %v340_v27, %v279_v41  ;;  %v3813_v27 = vshrl.u32 %v5167_v49, 16  ;;  %v5169_v49 = vld [vmem:[%s5272_s24 + $0x80] sm:$0x1f]  }
 0x150   : > { %v5869_v29 = vpop.f32.mrf.mxu1  ;;  %5023 = vmatmul.mubr.msk.bf16.vlgmr.msra.gmra.mxu1 %vm187_vm3, %v5404_v57  ;;  %v4694_v31 = vpop.f32.mrf.mxu0  ;;  %5002 = vmatprep.subr.bf16.mxu0 %v5214_v1  ;;  %v4488_v57 = vld [vmem:[%s6082_s1 + $0xe] sm:$0x3] }
 0x151   : > { %5033 = vmatpush3.bf16.msra.mxu1 %v3487_v28  ;;  %5034 = vmatprep.mubr.msk.bf16.mxu1 %vm5216_vm2, %v5214_v1  ;;  %v3590_v48 = vand.u32 %v4488_v57, %v5261_v5  ;;  %v397_v47 = vadd.f32 %v5615_v8, %v346_v50  ;;  %v3716_v8 = vand.u32 %v4498_v60, %v5261_v5  ;;  %v4486_v31 = vld [vmem:[%s6082_s1 + $0xc] sm:$0x3]  ;;  %v4510_v57 = vld [vmem:[%s6082_s1 + $0x8] sm:$0x3] }
 0x152   : > { %v4736_v35 = vpop.f32.mrf.mxu1  ;;  %5044 = vmatprep.subr.bf16.mxu1 %v5214_v1  ;;  %v343_v36 = vpop.f32.mrf.mxu0 }
 0x154   : > { %v749_v37 = vpop.f32.mrf.mxu1  ;;  %v4695_v44 = vpop.f32.mrf.mxu0 }
 0x156   : > { %v4737_v46 = vpop.f32.mrf.mxu1  ;;  %v445_v52 = vpop.f32.mrf.mxu0  ;;  %4993 = vmatmul.mubr.msk.bf16.vlgmr.msra.gmra.mxu0 %vm187_vm3, %v3084_v42  ;;  %v3537_v42 = vand.u32 %v4486_v31, %v5261_v5 }
 0x157   : > { %5003 = vmatpush3.bf16.msra.mxu0 %v3215_v40  ;;  %5004 = vmatprep.mubr.msk.bf16.mxu0 %vm5216_vm2, %v5214_v1  ;;  %v451_v43 = vadd.f32 %v445_v52, %v397_v47  ;;  %v3926_v46 = vand.u32 %v4510_v57, %v5261_v5  ;;  %v5166_v52 = vld [vmem:[%s5272_s24 + $0x70] sm:$0x1f]  }
 0x158   : > { %v5890_v54 = vpop.f32.mrf.mxu1  ;;  %5035 = vmatmul.mubr.msk.bf16.vlgmr.msra.gmra.mxu1 %vm187_vm3, %v3482_v38  ;;  %v4706_v56 = vpop.f32.mrf.mxu0  ;;  %5014 = vmatprep.subr.bf16.mxu0 %v5214_v1  ;;  %v3818_v38 = vor.u32 %v3817_v30, %v3813_v27  ;;  %v3644_v60 = vshll.u32 %v5166_v52, 16 }
 0x159   : > { %5045 = vmatpush3.bf16.msra.mxu1 %v3590_v48  ;;  %5046 = vmatprep.mubr.msk.bf16.mxu1 %vm5216_vm2, %v5214_v1  ;;  %v514_v6 = vadd.f32 %v5634_v18, %v451_v43  ;;  %v4504_v18 = vld [vmem:[%s6082_s1 + $0x4] sm:$0x3]  ;;  %v4493_v56 = vld [vmem:[%s6082_s1 + $0x10] sm:$0x3] }
 0x15a   : > { %v4748_v59 = vpop.f32.mrf.mxu1  ;;  %5056 = vmatprep.subr.bf16.mxu1 %v5214_v1  ;;  %v448_v61 = vpop.f32.mrf.mxu0  ;;  %v3823_v22 = vand.u32 %v4504_v18, %v5261_v5  ;;  %v3652_v62 = vand.u32 %v4493_v56, %v5261_v5  ;;  %v3646_v20 = vrot.slane %v3644_v60, 1 }
 0x15b   : > { %v4519_v59 = vld [vmem:[%s6082_s1 + $0xc] sm:$0x3] }
 0x15c   : > { %v856_v39 = vpop.f32.mrf.mxu1  ;;  %v4707_v53 = vpop.f32.mrf.mxu0 }
 0x15d   : > { %v3921_v39 = vpop.permute.xlu0 %3920 }
 0x15e   : > { %v4749_v2 = vpop.f32.mrf.mxu1  ;;  %v559_v3 = vpop.f32.mrf.mxu0  ;;  %5005 = vmatmul.mubr.msk.bf16.vlgmr.msra.gmra.mxu0 %vm187_vm3, %v3210_v58 }
 0x15f   : > { %5015 = vmatpush3.bf16.msra.mxu0 %v3322_v63  ;;  %5016 = vmatprep.mubr.msk.bf16.mxu0 %vm5216_vm2, %v5214_v1  ;;  %v565_v11 = vadd.f32 %v559_v3, %v514_v6  ;;  %v3642_v3 = vshrl.u32 %v5166_v52, 16 }
 0x160   : > { %v5909_v45 = vpop.f32.mrf.mxu1  ;;  %5047 = vmatmul.mubr.msk.bf16.vlgmr.msra.gmra.mxu1 %vm187_vm3, %v3585_v0  ;;  %v4718_v9 = vpop.f32.mrf.mxu0  ;;  %5026 = vmatprep.subr.bf16.mxu0 %v5214_v1  ;;  %v4038_v0 = vand.u32 %v4519_v59, %v5261_v5 }
 0x161   : > { %5057 = vmatpush3.bf16.msra.mxu1 %v3716_v8  ;;  %5058 = vmatprep.mubr.msk.bf16.mxu1 %vm5216_vm2, %v5214_v1  ;;  %v619_v23 = vadd.f32 %v5849_v13, %v565_v11  ;;  %v5202_v8 = vld [vmem:[%s5272_s24 + $0x70] sm:$0xf]  ;;  %v3647_v11 = vor.u32 %v3646_v20, %v3642_v3 }
 0x162   : > { %v4760_v10 = vpop.f32.mrf.mxu1  ;;  %5068 = vmatprep.subr.bf16.mxu1 %v5214_v1  ;;  %v562_v14 = vpop.f32.mrf.mxu0 }
 0x163   : > { %v4145_v14 = vshll.u32 %v5169_v49, 16 }
 0x164   : > { %v959_v17 = vpop.f32.mrf.mxu1  ;;  %v4719_v25 = vpop.f32.mrf.mxu0 }
 0x165   : > { %v4147_v27 = vrot.slane %v4145_v14, 1 }
 0x166   : > { %v4761_v21 = vpop.f32.mrf.mxu1  ;;  %v676_v26 = vpop.f32.mrf.mxu0  ;;  %5017 = vmatmul.mubr.msk.bf16.vlgmr.msra.gmra.mxu0 %vm187_vm3, %v3317_v16 }
 0x167   : > { %v682_v32 = vadd.f32 %v676_v26, %v619_v23  ;;  %5027 = vmatpush3.bf16.msra.mxu0 %v3425_v55  ;;  %5028 = vmatprep.mubr.msk.bf16.mxu0 %vm5216_vm2, %v5214_v1  ;;  %v5203_v23 = vld [vmem:[%s5272_s24 + $0x80] sm:$0xf]  ;;  %v4143_v26 = vshrl.u32 %v5169_v49, 16 }
 0x168   : > { %v5935_v28 = vpop.f32.mrf.mxu1  ;;  %5059 = vmatmul.mubr.msk.bf16.vlgmr.msra.gmra.mxu1 %vm187_vm3, %v3711_v19  ;;  %v4730_v13 = vpop.f32.mrf.mxu0  ;;  %5038 = vmatprep.subr.bf16.mxu0 %v5214_v1  ;;  %v4153_v19 = vand.u32 %v4526_v15, %v5261_v5 }
 0x169   : > { %5069 = vmatpush3.bf16.msra.mxu1 %v3823_v22  ;;  %v5945_v35 = vadd.f32 %v5932_v24, %v682_v32  ;;  %5070 = vmatprep.mubr.msk.bf16.mxu1 %vm5216_vm2, %v5214_v1  ;;  %v4508_v13 = vld [vmem:[%s6082_s1 + $0x6] sm:$0x3] }
 0x16a   : > { %v4772_v33 = vpop.f32.mrf.mxu1  ;;  %5080 = vmatprep.subr.bf16.mxu1 %v5214_v1  ;;  %v679_v36 = vpop.f32.mrf.mxu0 }
 0x16b   : > { %v690_v41 = vsub.f32 0.0, %v5945_v35  ;;  %v4148_v36 = vor.u32 %v4147_v27, %v4143_v26 }
 0x16c   : > { %v1071_v37 = vpop.f32.mrf.mxu1  ;;  %v4731_v40 = vpop.f32.mrf.mxu0 }
 0x16d   : > { %v691_v48 = vmul.f32 1.442695, %v690_v41  ;;  %v3873_v37 = vand.u32 %v4508_v13, %v5261_v5 }
 0x16e   : > { %v4773_v44 = vpop.f32.mrf.mxu1  ;;  %v792_v50 = vpop.f32.mrf.mxu0  ;;  %5029 = vmatmul.mubr.msk.bf16.vlgmr.msra.gmra.mxu0 %vm187_vm3, %v3420_v7 }
 0x16f   : > { %5170 = vpow2.f32 %v691_v48  ;;  %5039 = vmatpush3.bf16.msra.mxu0 %v3537_v42  ;;  %5040 = vmatprep.mubr.msk.bf16.mxu0 %vm5216_vm2, %v5214_v1  ;;  %v793_v53 = vadd.f32 %v792_v50, %v5869_v29  ;;  %v3705_v29 = vld [vmem:[%s6082_s1] sm:$0x3]  ;;  %v5204_v44 = vld [vmem:[%s5272_s24 + $0x70] sm:$0xf] }
 0x170   : > { %v5958_v34 = vpop.f32.mrf.mxu1  ;;  %5071 = vmatmul.mubr.msk.bf16.vlgmr.msra.gmra.mxu1 %vm187_vm3, %v3818_v38  ;;  %v4742_v58 = vpop.f32.mrf.mxu0  ;;  %5050 = vmatprep.subr.bf16.mxu0 %v5214_v1  ;;  %v3762_v17 = vand.u32 %v3705_v29, %v5261_v5 }
 0x171   : > { %5081 = vmatpush3.bf16.msra.mxu1 %v3926_v46  ;;  %5082 = vmatprep.mubr.msk.bf16.mxu1 %vm5216_vm2, %v5214_v1  ;;  %v859_v9 = vadd.f32 %v5890_v54, %v793_v53  ;;  %v5168_v46 = vld [vmem:[%s5272_s24 + $0x78] sm:$0x1f]  }
 0x172   : > { %v4784_v12 = vpop.f32.mrf.mxu1  ;;  %5092 = vmatprep.subr.bf16.mxu1 %v5214_v1  ;;  %v795_v47 = vpop.f32.mrf.mxu0  ;;  %v3980_v59 = vshll.u32 %v5168_v46, 16  ;;  %v5205_v53 = vld [vmem:[%s5272_s24 + $0x78] sm:$0xf] }
 0x174   : > { %v1186_v61 = vpop.f32.mrf.mxu1  ;;  %v4743_v43 = vpop.f32.mrf.mxu0 }
 0x176   : > { %v4785_v63 = vpop.f32.mrf.mxu1  ;;  %v903_v2 = vpop.f32.mrf.mxu0  ;;  %5041 = vmatmul.mubr.msk.bf16.vlgmr.msra.gmra.mxu0 %vm187_vm3, %v5202_v8  ;;  %v3982_v8 = vrot.slane %v3980_v59, 1 }
 0x177   : > { %5051 = vmatpush3.bf16.msra.mxu0 %v3652_v62  ;;  %5052 = vmatprep.mubr.msk.bf16.mxu0 %vm5216_vm2, %v5214_v1  ;;  %v909_v16 = vadd.f32 %v903_v2, %v859_v9  ;;  %v3978_v2 = vshrl.u32 %v5168_v46, 16 }
 0x178   : > { %v5978_v4 = vpop.f32.mrf.mxu1  ;;  %5083 = vmatmul.mubr.msk.bf16.vlgmr.msra.gmra.mxu1 %vm187_vm3, %v3921_v39  ;;  %v4754_v6 = vpop.f32.mrf.mxu0  ;;  %5062 = vmatprep.subr.bf16.mxu0 %v5214_v1 }
 0x179   : > { %5093 = vmatpush3.bf16.msra.mxu1 %v4038_v0  ;;  %5094 = vmatprep.mubr.msk.bf16.mxu1 %vm5216_vm2, %v5214_v1  ;;  %v962_v30 = vadd.f32 %v5909_v45, %v909_v16 }
 0x17a   : > { %v4796_v7 = vpop.f32.mrf.mxu1  ;;  %5104 = vmatprep.subr.bf16.mxu1 %v5214_v1  ;;  %v906_v10 = vpop.f32.mrf.mxu0 }
 0x17b   : > { %v3983_v7 = vor.u32 %v3982_v8, %v3978_v2 }
 0x17c   : > { %v1296_v18 = vpop.f32.mrf.mxu1  ;;  %v5171_v51 = vpop.eup %5170 }
 0x17d   : > { %v4755_v55 = vpop.f32.mrf.mxu0  ;;  %v693_v25 = vadd.f32 1.0, %v5171_v51 }
 0x17e   : > { %v4797_v54 = vpop.f32.mrf.mxu1  ;;  %5053 = vmatmul.mubr.msk.bf16.vlgmr.msra.gmra.mxu0 %vm187_vm3, %v3647_v11 }
 0x17f   : > { %v1018_v21 = vpop.f32.mrf.mxu0  ;;  %5172 = vrcp.f32 %v693_v25  ;;  %5063 = vmatpush3.bf16.msra.mxu0 %v3762_v17  ;;  %5064 = vmatprep.mubr.msk.bf16.mxu0 %vm5216_vm2, %v5214_v1 }
 0x180   : > { %v5998_v22 = vpop.f32.mrf.mxu1  ;;  %5095 = vmatmul.mubr.msk.bf16.vlgmr.msra.gmra.mxu1 %vm187_vm3, %v5203_v23  ;;  %5074 = vmatprep.subr.bf16.mxu0 %v5214_v1  ;;  %v1024_v33 = vadd.f32 %v1018_v21, %v962_v30 }
 0x181   : > { %v4766_v32 = vpop.f32.mrf.mxu0  ;;  %5105 = vmatpush3.bf16.msra.mxu1 %v4153_v19  ;;  %5106 = vmatprep.mubr.msk.bf16.mxu1 %vm5216_vm2, %v5214_v1  ;;  %v4086_v19 = vpop.permute.xlu1 %4085 }
 0x182   : > { %v4808_v31 = vpop.f32.mrf.mxu1  ;;  %v1074_v42 = vadd.f32 %v5935_v28, %v1024_v33  ;;  %v4515_v28 = vld [vmem:[%s6082_s1 + $0xa] sm:$0x3] }
 0x183   : > { %v1021_v45 = vpop.f32.mrf.mxu0  ;;  %v3988_v61 = vand.u32 %v4515_v28, %v5261_v5 }
 0x184   : > { %v1407_v57 = vpop.f32.mrf.mxu1 }
 0x185   : > { %v4767_v38 = vpop.f32.mrf.mxu0 }
 0x186   : > { %v4809_v41 = vpop.f32.mrf.mxu1  ;;  %5065 = vmatmul.mubr.msk.bf16.vlgmr.msra.gmra.mxu0 %vm187_vm3, %v5204_v44 }
 0x187   : > { %v1121_v40 = vpop.f32.mrf.mxu0  ;;  %5075 = vmatpush3.bf16.msra.mxu0 %v3873_v37  ;;  %5076 = vmatprep.mubr.msk.bf16.mxu0 %vm5216_vm2, %v5214_v1 }
 0x188   : > { %v6018_v48 = vpop.f32.mrf.mxu1  ;;  %5107 = vmatmul.mubr.msk.bf16.vlgmr.msra.gmra.mxu1 %vm187_vm3, %v4148_v36  ;;  %v1127_v50 = vadd.f32 %v1121_v40, %v1074_v42  ;;  %5086 = vmatprep.subr.bf16.mxu0 %v5214_v1 }
 0x189   : > { %v4778_v52 = vpop.f32.mrf.mxu0 }
 0x18a   : > { %v4820_v58 = vpop.f32.mrf.mxu1  ;;  %v1189_v56 = vadd.f32 %v5958_v34, %v1127_v50 }
 0x18b   : > { %v1124_v12 = vpop.f32.mrf.mxu0 }
 0x18c   : > { %v1522_v47 = vpop.f32.mrf.mxu1  ;;  %v6029_v60 = vadd.f32 %v5932_v24, %v1189_v56  ;;  %v5173_v62 = vpop.eup %5172 }
 0x18d   : > { %v4779_v39 = vpop.f32.mrf.mxu0  ;;  %v695_v34 = vmul.f32 %v5173_v62, %v5945_v35  ;;  %v4521_v35 = vld [vmem:[%s6082_s1 + $0xe] sm:$0x3] }
 0x18e   : > { %v4821_v43 = vpop.f32.mrf.mxu1  ;;  %v1191_v63 = vsub.f32 0.0, %v6029_v60  ;;  %5077 = vmatmul.mubr.msk.bf16.vlgmr.msra.gmra.mxu0 %vm187_vm3, %v5205_v53  ;;  %v4091_v15 = vand.u32 %v4521_v35, %v5261_v5 }
 0x18f   : > { %v1247_v0 = vpop.f32.mrf.mxu0  ;;  %697 = vst.msk [vmem:[%s6035_s22] sm:$0xff] %vm696_vm4, %v695_v34  ;;  %5087 = vmatpush3.bf16.msra.mxu0 %v3988_v61  ;;  %5088 = vmatprep.mubr.msk.bf16.mxu0 %vm5216_vm2, %v5214_v1 }
 0x190   : > { %v1622_v3 = vpop.f32.mrf.mxu1  ;;  %v1192_v20 = vmul.f32 1.442695, %v1191_v63  ;;  %5098 = vmatprep.subr.bf16.mxu0 %v5214_v1  ;;  %v1294_v54 = vadd.f32 %v5978_v4, %v1247_v0 }
 0x191   : > { %v4790_v49 = vpop.f32.mrf.mxu0 }
 0x192   : > { %v4832_v6 = vpop.f32.mrf.mxu1  ;;  %5174 = vpow2.f32 %v1192_v20 }
 0x193   : > { %v1250_v29 = vpop.f32.mrf.mxu0 }
 0x194   : > { %v1625_v9 = vpop.f32.mrf.mxu1 }
 0x195   : > { %v4791_v10 = vpop.f32.mrf.mxu0 }
 0x196   : > { %v4833_v11 = vpop.f32.mrf.mxu1  ;;  %5089 = vmatmul.mubr.msk.bf16.vlgmr.msra.gmra.mxu0 %vm187_vm3, %v3983_v7 }
 0x197   : > { %v1354_v18 = vpop.f32.mrf.mxu0  ;;  %5099 = vmatpush3.bf16.msra.mxu0 %v4091_v15  ;;  %5100 = vmatprep.mubr.msk.bf16.mxu0 %vm5216_vm2, %v5214_v1 }
 0x198   : > { %v1748_v14 = vpop.f32.mrf.mxu1  ;;  %v1360_v5 = vadd.f32 %v1354_v18, %v1294_v54 }
 0x199   : > { %v4802_v16 = vpop.f32.mrf.mxu0 }
 0x19a   : > { %v4844_v17 = vpop.f32.mrf.mxu1  ;;  %v1410_v1 = vadd.f32 %v5998_v22, %v1360_v5 }
 0x19b   : > { %v1357_v51 = vpop.f32.mrf.mxu0 }
 0x19c   : > { %v1751_v55 = vpop.f32.mrf.mxu1 }
 0x19d   : > { %v4803_v25 = vpop.f32.mrf.mxu0 }
 0x19e   : > { %v4845_v21 = vpop.f32.mrf.mxu1  ;;  %5101 = vmatmul.mubr.msk.bf16.vlgmr.msra.gmra.mxu0 %vm187_vm3, %v4086_v19 }
 0x19f   : > { %v5175_v23 = vpop.eup %5174  ;;  %v1457_v26 = vpop.f32.mrf.mxu0 }
 0x1a0   : > { %v1855_v27 = vpop.f32.mrf.mxu1  ;;  %v1194_v30 = vadd.f32 1.0, %v5175_v23  ;;  %v1463_v45 = vadd.f32 %v1457_v26, %v1410_v1 }
 0x1a1   : > { %v4814_v32 = vpop.f32.mrf.mxu0 }
 0x1a2   : > { %v4856_v13 = vpop.f32.mrf.mxu1  ;;  %5176 = vrcp.f32 %v1194_v30  ;;  %v1525_v38 = vadd.f32 %v6018_v48, %v1463_v45 }
 0x1a3   : > { %v1460_v31 = vpop.f32.mrf.mxu0 }
 0x1a4   : > { %v1858_v33 = vpop.f32.mrf.mxu1 }
 0x1a5   : > { %v4815_v57 = vpop.f32.mrf.mxu0 }
 0x1a6   : > { %v4857_v4 = vpop.f32.mrf.mxu1 }
 0x1a7   : > { %v1569_v36 = vpop.f32.mrf.mxu0 }
 0x1a8   : > { %v1958_v37 = vpop.f32.mrf.mxu1  ;;  %v1575_v40 = vadd.f32 %v1569_v36, %v1525_v38 }
 0x1a9   : > { %v4826_v41 = vpop.f32.mrf.mxu0 }
 0x1aa   : > { %v4868_v42 = vpop.f32.mrf.mxu1  ;;  %v1628_v28 = vadd.f32 %v1622_v3, %v1575_v40 }
 0x1ab   : > { %v1572_v44 = vpop.f32.mrf.mxu0 }
 0x1ac   : > { %v1961_v46 = vpop.f32.mrf.mxu1 }
 0x1ad   : > { %v4827_v50 = vpop.f32.mrf.mxu0 }
 0x1ae   : > { %v4869_v52 = vpop.f32.mrf.mxu1 }
 0x1af   : > { %v5177_v58 = vpop.eup %5176  ;;  %v1684_v22 = vpop.f32.mrf.mxu0 }
 0x1b0   : > { %v2070_v56 = vpop.f32.mrf.mxu1  ;;  %v1196_v12 = vmul.f32 %v5177_v58, %v6029_v60  ;;  %v1690_v59 = vadd.f32 %v1684_v22, %v1628_v28 }
 0x1b1   : > { %v4838_v47 = vpop.f32.mrf.mxu0 }
 0x1b2   : > { %v4880_v61 = vpop.f32.mrf.mxu1  ;;  %4331 = vst.msk [vmem:[%s6035_s22 + $0x8] sm:$0xff] %vm696_vm4, %v1196_v12  ;;  %v1691_v48 = vadd.f32 %v5932_v24, %v1690_v59 }
 0x1b3   : > { %v1687_v62 = vpop.f32.mrf.mxu0 }
 0x1b4   : > { %v2073_v39 = vpop.f32.mrf.mxu1  ;;  %v1692_v43 = vsub.f32 0.0, %v1691_v48 }
 0x1b5   : > { %v4839_v34 = vpop.f32.mrf.mxu0 }
 0x1b6   : > { %v4881_v63 = vpop.f32.mrf.mxu1  ;;  %v1693_v0 = vmul.f32 1.442695, %v1692_v43 }
 0x1b7   : > { %v1794_v53 = vpop.f32.mrf.mxu0 }
 0x1b8   : > { %v2185_v2 = vpop.f32.mrf.mxu1  ;;  %5178 = vpow2.f32 %v1693_v0  ;;  %v1795_v6 = vadd.f32 %v1794_v53, %v1748_v14 }
 0x1b9   : > { %v4850_v8 = vpop.f32.mrf.mxu0 }
 0x1ba   : > { %v4892_v3 = vpop.f32.mrf.mxu1  ;;  %v1861_v10 = vadd.f32 %v1855_v27, %v1795_v6 }
 0x1bb   : > { %v1797_v20 = vpop.f32.mrf.mxu0 }
 0x1bc   : > { %v2188_v60 = vpop.f32.mrf.mxu1 }
 0x1bd   : > { %v4851_v49 = vpop.f32.mrf.mxu0 }
 0x1be   : > { %v4893_v35 = vpop.f32.mrf.mxu1 }
 0x1bf   : > { %v1905_v29 = vpop.f32.mrf.mxu0 }
 0x1c0   : > { %v2295_v7 = vpop.f32.mrf.mxu1  ;;  %v1911_v16 = vadd.f32 %v1905_v29, %v1861_v10 }
 0x1c1   : > { %v4862_v9 = vpop.f32.mrf.mxu0 }
 0x1c2   : > { %v4904_v15 = vpop.f32.mrf.mxu1  ;;  %v1964_v21 = vadd.f32 %v1958_v37, %v1911_v16 }
 0x1c3   : > { %v1908_v11 = vpop.f32.mrf.mxu0 }
 0x1c4   : > { %v2298_v18 = vpop.f32.mrf.mxu1 }
 0x1c5   : > { %v5179_v17 = vpop.eup %5178  ;;  %v4863_v51 = vpop.f32.mrf.mxu0 }
 0x1c6   : > { %v4905_v55 = vpop.f32.mrf.mxu1  ;;  %v1695_v54 = vadd.f32 1.0, %v5179_v17 }
 0x1c7   : > { %v2020_v19 = vpop.f32.mrf.mxu0 }
 0x1c8   : > { %v2406_v25 = vpop.f32.mrf.mxu1  ;;  %5180 = vrcp.f32 %v1695_v54  ;;  %v2026_v26 = vadd.f32 %v2020_v19, %v1964_v21 }
 0x1c9   : > { %v4874_v5 = vpop.f32.mrf.mxu0 }
 0x1ca   : > { %v4916_v23 = vpop.f32.mrf.mxu1  ;;  %v2076_v1 = vadd.f32 %v2070_v56, %v2026_v26 }
 0x1cb   : > { %v2023_v14 = vpop.f32.mrf.mxu0 }
 0x1cc   : > { %v2409_v30 = vpop.f32.mrf.mxu1 }
 0x1cd   : > { %v4875_v32 = vpop.f32.mrf.mxu0 }
 0x1ce   : > { %v4917_v13 = vpop.f32.mrf.mxu1 }
 0x1cf   : > { %v2123_v27 = vpop.f32.mrf.mxu0 }
 0x1d0   : > { %v2521_v31 = vpop.f32.mrf.mxu1  ;;  %v2129_v33 = vadd.f32 %v2123_v27, %v2076_v1 }
 0x1d1   : > { %v4886_v45 = vpop.f32.mrf.mxu0 }
 0x1d2   : > { %v4928_v57 = vpop.f32.mrf.mxu1  ;;  %v2191_v4 = vadd.f32 %v2185_v2, %v2129_v33 }
 0x1d3   : > { %v2126_v36 = vpop.f32.mrf.mxu0 }
 0x1d4   : > { %v2524_v38 = vpop.f32.mrf.mxu1  ;;  %v2192_v41 = vadd.f32 %v5932_v24, %v2191_v4 }
 0x1d5   : > { %v5181_v37 = vpop.eup %5180  ;;  %v4887_v42 = vpop.f32.mrf.mxu0 }
 0x1d6   : > { %v4929_v40 = vpop.f32.mrf.mxu1  ;;  %v1697_v44 = vmul.f32 %v5181_v37, %v1691_v48  ;;  %v2193_v46 = vsub.f32 0.0, %v2192_v41 }
 0x1d7   : > { %v2249_v50 = vpop.f32.mrf.mxu0 }
 0x1d8   : > { %v2624_v52 = vpop.f32.mrf.mxu1  ;;  %4364 = vst.msk [vmem:[%s6035_s22 + $0x10] sm:$0xff] %vm696_vm4, %v1697_v44  ;;  %v2194_v28 = vmul.f32 1.442695, %v2193_v46  ;;  %v2296_v48 = vadd.f32 %v2295_v7, %v2249_v50 }
 0x1d9   : > { %v4898_v58 = vpop.f32.mrf.mxu0 }
 0x1da   : > { %v4940_v22 = vpop.f32.mrf.mxu1  ;;  %5182 = vpow2.f32 %v2194_v28 }
 0x1db   : > { %v2252_v56 = vpop.f32.mrf.mxu0 }
 0x1dc   : > { %v2627_v12 = vpop.f32.mrf.mxu1 }
 0x1dd   : > { %v4899_v59 = vpop.f32.mrf.mxu0 }
 0x1de   : > { %v4941_v47 = vpop.f32.mrf.mxu1 }
 0x1df   : > { %v2356_v61 = vpop.f32.mrf.mxu0 }
 0x1e0   : > { %v2750_v62 = vpop.f32.mrf.mxu1  ;;  %v2362_v2 = vadd.f32 %v2356_v61, %v2296_v48 }
 0x1e1   : > { %v4910_v39 = vpop.f32.mrf.mxu0 }
 0x1e2   : > { %v4952_v43 = vpop.f32.mrf.mxu1  ;;  %v2412_v6 = vadd.f32 %v2406_v25, %v2362_v2 }
 0x1e3   : > { %v2359_v34 = vpop.f32.mrf.mxu0 }
 0x1e4   : > { %v2753_v63 = vpop.f32.mrf.mxu1 }
 0x1e5   : > { %v4911_v0 = vpop.f32.mrf.mxu0 }
 0x1e6   : > { %v4953_v53 = vpop.f32.mrf.mxu1 }
 0x1e7   : > { %v5183_v8 = vpop.eup %5182  ;;  %v2459_v3 = vpop.f32.mrf.mxu0 }
 0x1e8   : > { %v2857_v20 = vpop.f32.mrf.mxu1  ;;  %v2196_v60 = vadd.f32 1.0, %v5183_v8  ;;  %v2465_v15 = vadd.f32 %v2459_v3, %v2412_v6 }
 0x1e9   : > { %v4922_v49 = vpop.f32.mrf.mxu0 }
 0x1ea   : > { %v4964_v35 = vpop.f32.mrf.mxu1  ;;  %5184 = vrcp.f32 %v2196_v60  ;;  %v2527_v17 = vadd.f32 %v2521_v31, %v2465_v15 }
 0x1eb   : > { %v2462_v29 = vpop.f32.mrf.mxu0 }
 0x1ec   : > { %v2860_v9 = vpop.f32.mrf.mxu1 }
 0x1ed   : > { %v4923_v10 = vpop.f32.mrf.mxu0 }
 0x1ee   : > { %v4965_v11 = vpop.f32.mrf.mxu1 }
 0x1ef   : > { %v2571_v18 = vpop.f32.mrf.mxu0 }
 0x1f0   : > { %v2960_v16 = vpop.f32.mrf.mxu1  ;;  %v2577_v55 = vadd.f32 %v2571_v18, %v2527_v17 }
 0x1f1   : > { %v4934_v7 = vpop.f32.mrf.mxu0 }
 0x1f2   : > { %v4976_v51 = vpop.f32.mrf.mxu1  ;;  %v2630_v23 = vadd.f32 %v2624_v52, %v2577_v55 }
 0x1f3   : > { %v2574_v54 = vpop.f32.mrf.mxu0 }
 0x1f4   : > { %v2963_v19 = vpop.f32.mrf.mxu1 }
 0x1f5   : > { %v4935_v21 = vpop.f32.mrf.mxu0 }
 0x1f6   : > { %v4977_v5 = vpop.f32.mrf.mxu1 }
 0x1f7   : > { %v5185_v26 = vpop.eup %5184  ;;  %v2686_v14 = vpop.f32.mrf.mxu0 }
 0x1f8   : > { %v3072_v25 = vpop.f32.mrf.mxu1  ;;  %v2198_v30 = vmul.f32 %v5185_v26, %v2192_v41  ;;  %v2692_v32 = vadd.f32 %v2686_v14, %v2630_v23 }
 0x1f9   : > { %v4946_v13 = vpop.f32.mrf.mxu0 }
 0x1fa   : > { %v4988_v1 = vpop.f32.mrf.mxu1  ;;  %4397 = vst.msk [vmem:[%s6035_s22 + $0x18] sm:$0xff] %vm696_vm4, %v2198_v30  ;;  %v2693_v27 = vadd.f32 %v5932_v24, %v2692_v32 }
 0x1fb   : > { %v2689_v31 = vpop.f32.mrf.mxu0 }
 0x1fc   : > { %v3075_v33 = vpop.f32.mrf.mxu1  ;;  %v2694_v45 = vsub.f32 0.0, %v2693_v27 }
 0x1fd   : > { %v4947_v57 = vpop.f32.mrf.mxu0 }
 0x1fe   : > { %v4989_v4 = vpop.f32.mrf.mxu1  ;;  %v2695_v36 = vmul.f32 1.442695, %v2694_v45 }
 0x1ff   : > { %v2796_v38 = vpop.f32.mrf.mxu0 }
 0x200   : > { %v3187_v37 = vpop.f32.mrf.mxu1  ;;  %5186 = vpow2.f32 %v2695_v36  ;;  %v2797_v52 = vadd.f32 %v2796_v38, %v2750_v62 }
 0x201   : > { %v4958_v42 = vpop.f32.mrf.mxu0 }
 0x202   : > { %v5000_v40 = vpop.f32.mrf.mxu1  ;;  %v2863_v12 = vadd.f32 %v2857_v20, %v2797_v52 }
 0x203   : > { %v2799_v44 = vpop.f32.mrf.mxu0 }
 0x204   : > { %v3190_v41 = vpop.f32.mrf.mxu1 }
 0x205   : > { %v4959_v46 = vpop.f32.mrf.mxu0 }
 0x206   : > { %v5001_v50 = vpop.f32.mrf.mxu1 }
 0x207   : > { %v2907_v28 = vpop.f32.mrf.mxu0 }
 0x208   : > { %v3297_v58 = vpop.f32.mrf.mxu1  ;;  %v2913_v61 = vadd.f32 %v2907_v28, %v2863_v12 }
 0x209   : > { %v4970_v22 = vpop.f32.mrf.mxu0 }
 0x20a   : > { %v5012_v56 = vpop.f32.mrf.mxu1  ;;  %v2966_v53 = vadd.f32 %v2960_v16, %v2913_v61 }
 0x20b   : > { %v2910_v59 = vpop.f32.mrf.mxu0 }
 0x20c   : > { %v3300_v47 = vpop.f32.mrf.mxu1 }
 0x20d   : > { %v5187_v39 = vpop.eup %5186  ;;  %v4971_v43 = vpop.f32.mrf.mxu0 }
 0x20e   : > { %v5013_v34 = vpop.f32.mrf.mxu1  ;;  %v2697_v63 = vadd.f32 1.0, %v5187_v39 }
 0x20f   : > { %v3022_v48 = vpop.f32.mrf.mxu0 }
 0x210   : > { %v3408_v0 = vpop.f32.mrf.mxu1  ;;  %5188 = vrcp.f32 %v2697_v63  ;;  %v3028_v3 = vadd.f32 %v3022_v48, %v2966_v53 }
 0x211   : > { %v4982_v2 = vpop.f32.mrf.mxu0 }
 0x212   : > { %v5024_v8 = vpop.f32.mrf.mxu1  ;;  %v3078_v6 = vadd.f32 %v3072_v25, %v3028_v3 }
 0x213   : > { %v3025_v62 = vpop.f32.mrf.mxu0 }
 0x214   : > { %v3411_v60 = vpop.f32.mrf.mxu1 }
 0x215   : > { %v4983_v49 = vpop.f32.mrf.mxu0 }
 0x216   : > { %v5025_v35 = vpop.f32.mrf.mxu1 }
 0x217   : > { %v3125_v20 = vpop.f32.mrf.mxu0 }
 0x218   : > { %v3523_v29 = vpop.f32.mrf.mxu1  ;;  %v3131_v9 = vadd.f32 %v3125_v20, %v3078_v6 }
 0x219   : > { %v4994_v15 = vpop.f32.mrf.mxu0 }
 0x21a   : > { %v5036_v10 = vpop.f32.mrf.mxu1  ;;  %v3193_v11 = vadd.f32 %v3187_v37, %v3131_v9 }
 0x21b   : > { %v3128_v18 = vpop.f32.mrf.mxu0 }
 0x21c   : > { %v3526_v17 = vpop.f32.mrf.mxu1  ;;  %v3194_v7 = vadd.f32 %v5932_v24, %v3193_v11 }
 0x21d   : > { %v5189_v16 = vpop.eup %5188  ;;  %v4995_v51 = vpop.f32.mrf.mxu0 }
 0x21e   : > { %v5037_v55 = vpop.f32.mrf.mxu1  ;;  %v2699_v54 = vmul.f32 %v5189_v16, %v2693_v27  ;;  %v3195_v19 = vsub.f32 0.0, %v3194_v7 }
 0x21f   : > { %v3251_v21 = vpop.f32.mrf.mxu0 }
 0x220   : > { %v3626_v5 = vpop.f32.mrf.mxu1  ;;  %4430 = vst.msk [vmem:[%s6035_s22 + $0x20] sm:$0xff] %vm696_vm4, %v2699_v54  ;;  %v3196_v23 = vmul.f32 1.442695, %v3195_v19  ;;  %v3298_v27 = vadd.f32 %v3297_v58, %v3251_v21 }
 0x221   : > { %v5006_v26 = vpop.f32.mrf.mxu0 }
 0x222   : > { %v5048_v14 = vpop.f32.mrf.mxu1  ;;  %5190 = vpow2.f32 %v3196_v23 }
 0x223   : > { %v3254_v25 = vpop.f32.mrf.mxu0 }
 0x224   : > { %v3629_v30 = vpop.f32.mrf.mxu1 }
 0x225   : > { %v5007_v32 = vpop.f32.mrf.mxu0 }
 0x226   : > { %v5049_v13 = vpop.f32.mrf.mxu1 }
 0x227   : > { %v3358_v1 = vpop.f32.mrf.mxu0 }
 0x228   : > { %v3752_v31 = vpop.f32.mrf.mxu1  ;;  %v3364_v37 = vadd.f32 %v3358_v1, %v3298_v27 }
 0x229   : > { %v5018_v33 = vpop.f32.mrf.mxu0 }
 0x22a   : > { %v5060_v45 = vpop.f32.mrf.mxu1  ;;  %v3414_v52 = vadd.f32 %v3408_v0, %v3364_v37 }
 0x22b   : > { %v3361_v57 = vpop.f32.mrf.mxu0 }
 0x22c   : > { %v3755_v4 = vpop.f32.mrf.mxu1 }
 0x22d   : > { %v5019_v36 = vpop.f32.mrf.mxu0 }
 0x22e   : > { %v5061_v38 = vpop.f32.mrf.mxu1 }
 0x22f   : > { %v5191_v42 = vpop.eup %5190  ;;  %v3461_v40 = vpop.f32.mrf.mxu0 }
 0x230   : > { %v3859_v44 = vpop.f32.mrf.mxu1  ;;  %v3198_v41 = vadd.f32 1.0, %v5191_v42  ;;  %v3467_v56 = vadd.f32 %v3461_v40, %v3414_v52 }
 0x231   : > { %v5030_v46 = vpop.f32.mrf.mxu0 }
 0x232   : > { %v5072_v50 = vpop.f32.mrf.mxu1  ;;  %5192 = vrcp.f32 %v3198_v41  ;;  %v3529_v39 = vadd.f32 %v3523_v29, %v3467_v56 }
 0x233   : > { %v3464_v28 = vpop.f32.mrf.mxu0 }
 0x234   : > { %v3862_v22 = vpop.f32.mrf.mxu1 }
 0x235   : > { %v5031_v12 = vpop.f32.mrf.mxu0 }
 0x236   : > { %v5073_v59 = vpop.f32.mrf.mxu1 }
 0x237   : > { %v3573_v47 = vpop.f32.mrf.mxu0 }
 0x238   : > { %v3962_v61 = vpop.f32.mrf.mxu1  ;;  %v3579_v34 = vadd.f32 %v3573_v47, %v3529_v39 }
 0x239   : > { %v5042_v58 = vpop.f32.mrf.mxu0 }
 0x23a   : > { %v5084_v43 = vpop.f32.mrf.mxu1  ;;  %v3632_v8 = vadd.f32 %v3626_v5, %v3579_v34 }
 0x23b   : > { %v3576_v63 = vpop.f32.mrf.mxu0 }
 0x23c   : > { %v3965_v48 = vpop.f32.mrf.mxu1 }
 0x23d   : > { %v5043_v53 = vpop.f32.mrf.mxu0 }
 0x23e   : > { %v5085_v2 = vpop.f32.mrf.mxu1 }
 0x23f   : > { %v5193_v3 = vpop.eup %5192  ;;  %v3688_v62 = vpop.f32.mrf.mxu0 }
 0x240   : > { %v4074_v0 = vpop.f32.mrf.mxu1  ;;  %v3200_v60 = vmul.f32 %v5193_v3, %v3194_v7  ;;  %v3694_v49 = vadd.f32 %v3688_v62, %v3632_v8 }
 0x241   : > { %v5054_v35 = vpop.f32.mrf.mxu0 }
 0x242   : > { %v5096_v6 = vpop.f32.mrf.mxu1  ;;  %4463 = vst.msk [vmem:[%s6035_s22 + $0x28] sm:$0xff] %vm696_vm4, %v3200_v60  ;;  %v3695_v20 = vadd.f32 %v5932_v24, %v3694_v49 }
 0x243   : > { %v3691_v29 = vpop.f32.mrf.mxu0 }
 0x244   : > { %v4077_v9 = vpop.f32.mrf.mxu1  ;;  %v3696_v15 = vsub.f32 0.0, %v3695_v20 }
 0x245   : > { %v5055_v10 = vpop.f32.mrf.mxu0 }
 0x246   : > { %v5097_v11 = vpop.f32.mrf.mxu1  ;;  %v3697_v18 = vmul.f32 1.442695, %v3696_v15 }
 0x247   : > { %v3798_v17 = vpop.f32.mrf.mxu0 }
 0x248   : > { %v4189_v16 = vpop.f32.mrf.mxu1  ;;  %5194 = vpow2.f32 %v3697_v18  ;;  %v3799_v5 = vadd.f32 %v3798_v17, %v3752_v31 }
 0x249   : > { %v5066_v51 = vpop.f32.mrf.mxu0 }
 0x24a   : > { %v5108_v55 = vpop.f32.mrf.mxu1  ;;  %v3865_v14 = vadd.f32 %v3859_v44, %v3799_v5 }
 0x24b   : > { %v3801_v54 = vpop.f32.mrf.mxu0 }
 0x24c   : > { %v4192_v7 = vpop.f32.mrf.mxu1 }
 0x24d   : > { %v5067_v19 = vpop.f32.mrf.mxu0 }
 0x24e   : > { %v5109_v21 = vpop.f32.mrf.mxu1 }
 0x24f   : > { %v3909_v23 = vpop.f32.mrf.mxu0 }
 0x250   : > { %v3915_v30 = vadd.f32 %v3909_v23, %v3865_v14 }
 0x251   : > { %v5078_v26 = vpop.f32.mrf.mxu0 }
 0x252   : > { %v3968_v45 = vadd.f32 %v3962_v61, %v3915_v30 }
 0x253   : > { %v3912_v25 = vpop.f32.mrf.mxu0 }
 0x255   : > { %v5195_v32 = vpop.eup %5194  ;;  %v5079_v13 = vpop.f32.mrf.mxu0 }
 0x256   : > { %v3699_v1 = vadd.f32 1.0, %v5195_v32 }
 0x257   : > { %v4024_v33 = vpop.f32.mrf.mxu0 }
 0x258   : > { %5196 = vrcp.f32 %v3699_v1  ;;  %v4030_v4 = vadd.f32 %v4024_v33, %v3968_v45 }
 0x259   : > { %v5090_v57 = vpop.f32.mrf.mxu0 }
 0x25a   : > { %v4080_v38 = vadd.f32 %v4074_v0, %v4030_v4 }
 0x25b   : > { %v4027_v27 = vpop.f32.mrf.mxu0 }
 0x25d   : > { %v5091_v36 = vpop.f32.mrf.mxu0 }
 0x25f   : > { %v4127_v37 = vpop.f32.mrf.mxu0 }
 0x260   : > { %v4133_v42 = vadd.f32 %v4127_v37, %v4080_v38 }
 0x261   : > { %v5102_v31 = vpop.f32.mrf.mxu0 }
 0x262   : > { %v4195_v40 = vadd.f32 %v4189_v16, %v4133_v42 }
 0x263   : > { %v4130_v44 = vpop.f32.mrf.mxu0 }
 0x264   : > { %v4196_v41 = vadd.f32 %v5932_v24, %v4195_v40 }
 0x265   : > { %v5197_v46 = vpop.eup %5196  ;;  %v5103_v50 = vpop.f32.mrf.mxu0 }
 0x266   : > { %v3701_v52 = vmul.f32 %v5197_v46, %v3695_v20  ;;  %v4197_v28 = vsub.f32 0.0, %v4196_v41 }
 0x268   : > { %4496 = vst.msk [vmem:[%s6035_s22 + $0x30] sm:$0xff] %vm696_vm4, %v3701_v52  ;;  %v4198_v22 = vmul.f32 1.442695, %v4197_v28 }
 0x26a   : > { %5198 = vpow2.f32 %v4198_v22 }
 0x277   : > { %v5199_v56 = vpop.eup %5198 }
 0x278   : > { %v4200_v12 = vadd.f32 1.0, %v5199_v56 }
 0x27a   : > { %5200 = vrcp.f32 %v4200_v12 }
 0x287   : > { %v5201_v59 = vpop.eup %5200 }
 0x288   : > { %v4202_v47 = vmul.f32 %v5201_v59, %v4196_v41 }
 0x28a   : > { %4529 = vst.msk [vmem:[%s6035_s22 + $0x38] sm:$0xff] %vm696_vm4, %v4202_v47 }
 0x28b PF: > { %s13_s12 = sadd.s32 1, %s5212_s12  }
 0x28c   : > { %p10_p5 = scmp.ge.s32.totalorder %s13_s12, 4  }
 0x28e   :  { %12 = sbr.rel (!%p10_p5) target bundleno = 1 (0x1), region = 93 }

</bundles_post_ra>
